<compile_context>
chip_gen: v7x
topology: tpu7x:2x2x1
jax: 0.10.0
libtpu: 0.0.40
codegen_flags: <defaults>
</compile_context>

<pallas_src>
import functools

import jax
import jax.numpy as jnp
import numpy as np
from jax.experimental import pallas as pl
from jax.experimental.pallas import tpu as pltpu

_COMPUTE_DTYPE = jnp.bfloat16          # MXU operand / inter-stage activation dtype
_VMEM_LIMIT_BYTES = 48 * 1024 * 1024   # explicit limit, headroom for v7x's 64 MiB VMEM


def _silu(x):
    return x * jax.nn.sigmoid(x)


# ------------------------- Kernel 1: fused cv1 + cv2 ------------------------

def _dual_conv1x1_kernel(x_ref, w1_ref, b1_ref, w2_ref, y1_ref, y2_ref):
    # x: (TM, Cin); w1/w2: (Cin, C_) bf16 (BN scale folded into w1); b1: (1, C_) f32.
    x = x_ref[...].astype(w1_ref.dtype)
    y1 = jnp.dot(x, w1_ref[...], preferred_element_type=jnp.float32) + b1_ref[...]
    y1_ref[...] = _silu(y1).astype(y1_ref.dtype)
    y2 = jnp.dot(x, w2_ref[...], preferred_element_type=jnp.float32)
    y2_ref[...] = y2.astype(y2_ref.dtype)


def dual_conv1x1(x_nhwc, w1, b1, w2, *, tm=512, out_dtype=_COMPUTE_DTYPE):
    """cv1 (1x1 conv + folded BN + SiLU) and cv2 (plain 1x1 conv), reading x once."""
    B, H, W, Cin = x_nhwc.shape
    C1, C2 = w1.shape[1], w2.shape[1]
    M = B * H * W
    tm = min(tm, M)
    xm = x_nhwc.reshape(M, Cin)
    y1, y2 = pl.pallas_call(
        _dual_conv1x1_kernel,
        out_shape=(jax.ShapeDtypeStruct((M, C1), out_dtype),
                   jax.ShapeDtypeStruct((M, C2), out_dtype)),
        grid=(pl.cdiv(M, tm),),
        in_specs=[
            pl.BlockSpec((tm, Cin), lambda i: (i, 0)),
            pl.BlockSpec((Cin, C1), lambda i: (0, 0)),
            pl.BlockSpec((1, C1), lambda i: (0, 0)),
            pl.BlockSpec((Cin, C2), lambda i: (0, 0)),
        ],
        out_specs=(pl.BlockSpec((tm, C1), lambda i: (i, 0)),
                   pl.BlockSpec((tm, C2), lambda i: (i, 0))),
        compiler_params=pltpu.CompilerParams(
            dimension_semantics=("parallel",),
            vmem_limit_bytes=_VMEM_LIMIT_BYTES),
    )(xm, w1, b1, w2)
    return y1.reshape(B, H, W, C1), y2.reshape(B, H, W, C2)


# ------------------ Kernel 2: fused Bottleneck (3x3 -> 3x3 + res) -----------

def _bottleneck_pair_kernel(y_ref, w1_ref, b1_ref, w2_ref, b2_ref, o_ref,
                            xpad_ref, hpad_ref, acc_ref, *, shortcut):
    # y: (1, H, W, C) bf16; w*: (3, 3*C, C) bf16 (BN scale folded, dx taps
    # flattened along K); b*: (1, C) f32; xpad/hpad: (H+2, W+2, C) f32 VMEM;
    # acc: (H*W, C) f32 VMEM accumulator.
    H, W, C = o_ref.shape[1], o_ref.shape[2], o_ref.shape[3]
    cdt = w1_ref.dtype

    def pad_hw(a):
        # 1-pixel zero halo built in VMEM (no jnp.pad round-trip through HBM).
        zc = jnp.zeros((H, 1, C), a.dtype)
        zr = jnp.zeros((1, W + 2, C), a.dtype)
        a = jnp.concatenate([zc, a, zc], axis=1)
        return jnp.concatenate([zr, a, zr], axis=0)

    def conv3x3(src_ref, w_ref):
        # Same-padded 3x3 conv as 3 deep-K (K = 3*C) MXU contractions,
        # accumulated in the f32 VMEM scratch (not live vregs).
        acc_ref[...] = jnp.zeros_like(acc_ref)
        for dy in range(3):
            rows = src_ref[dy:dy + H, :, :]                             # (H, W+2, C)
            patch = jnp.concatenate(
                [rows[:, dx:dx + W, :] for dx in range(3)], axis=-1)    # (H, W, 3C)
            acc_ref[...] += jnp.dot(
                patch.reshape(H * W, 3 * C).astype(cdt), w_ref[dy],
                preferred_element_type=jnp.float32)
        return acc_ref[...].reshape(H, W, C)

    xpad_ref[...] = pad_hw(y_ref[0].astype(jnp.float32))
    h = _silu(conv3x3(xpad_ref, w1_ref) + b1_ref[...])      # stays in VMEM
    hpad_ref[...] = pad_hw(h)
    z = _silu(conv3x3(hpad_ref, w2_ref) + b2_ref[...])
    if shortcut:
        z = z + y_ref[0].astype(jnp.float32)
    o_ref[0] = z.astype(o_ref.dtype)


def bottleneck_pair(y_nhwc, w1, b1, w2, b2, *, shortcut=True):
    """One Bottleneck block as a single pallas_call; the intermediate
    activation and both halos never leave VMEM."""
    B, H, W, C = y_nhwc.shape
    # TODO(synk): additionally tile H with halo-overlapping index_maps so a
    # single large image can be split across v7x's two TensorCores.
    return pl.pallas_call(
        functools.partial(_bottleneck_pair_kernel, shortcut=shortcut),
        out_shape=jax.ShapeDtypeStruct((B, H, W, C), y_nhwc.dtype),
        grid=(B,),
        in_specs=[
            pl.BlockSpec((1, H, W, C), lambda b: (b, 0, 0, 0)),
            pl.BlockSpec((3, 3 * C, C), lambda b: (0, 0, 0)),
            pl.BlockSpec((1, C), lambda b: (0, 0)),
            pl.BlockSpec((3, 3 * C, C), lambda b: (0, 0, 0)),
            pl.BlockSpec((1, C), lambda b: (0, 0)),
        ],
        out_specs=pl.BlockSpec((1, H, W, C), lambda b: (b, 0, 0, 0)),
        scratch_shapes=[
            pltpu.VMEM((H + 2, W + 2, C), jnp.float32),   # padded input
            pltpu.VMEM((H + 2, W + 2, C), jnp.float32),   # padded intermediate
            pltpu.VMEM((H * W, C), jnp.float32),          # conv accumulator
        ],
        compiler_params=pltpu.CompilerParams(
            dimension_semantics=("parallel",),
            vmem_limit_bytes=_VMEM_LIMIT_BYTES),
    )(y_nhwc, w1, b1, w2, b2)


# --------------- Kernel 3: fused cv3 + BN + SiLU + cv4 (+BN+SiLU) -----------

def _csp_tail_kernel(y_ref, y2_ref, w3_ref, b1_ref, s2_ref, b2_ref,
                     w4a_ref, w4b_ref, b4_ref, o_ref):
    cdt = w4a_ref.dtype
    # y1 half of the concat: cv3 (BN scale already folded into w3) + shift + SiLU.
    t1 = _silu(jnp.dot(y_ref[...], w3_ref[...],
                       preferred_element_type=jnp.float32) + b1_ref[...])
    # y2 half of the concat: BN scale/shift + SiLU.
    t2 = _silu(y2_ref[...].astype(jnp.float32) * s2_ref[...] + b2_ref[...])
    # cv4 over the virtual concat: split weight, sum the two halves' matmuls.
    z = (jnp.dot(t1.astype(cdt), w4a_ref[...], preferred_element_type=jnp.float32)
         + jnp.dot(t2.astype(cdt), w4b_ref[...], preferred_element_type=jnp.float32)
         + b4_ref[...])
    o_ref[...] = _silu(z).astype(o_ref.dtype)


def csp_tail(y1_nhwc, y2_nhwc, w3, bn_b1, bn_s2, bn_b2, w4a, w4b, b4,
             *, tm=512, out_dtype=jnp.float32):
    B, H, W, C = y1_nhwc.shape
    Cout = w4a.shape[1]
    M = B * H * W
    tm = min(tm, M)
    ym = y1_nhwc.reshape(M, C)
    y2m = y2_nhwc.reshape(M, C)
    out = pl.pallas_call(
        _csp_tail_kernel,
        out_shape=jax.ShapeDtypeStruct((M, Cout), out_dtype),
        grid=(pl.cdiv(M, tm),),
        in_specs=[
            pl.BlockSpec((tm, C), lambda i: (i, 0)),
            pl.BlockSpec((tm, C), lambda i: (i, 0)),
            pl.BlockSpec((C, C), lambda i: (0, 0)),
            pl.BlockSpec((1, C), lambda i: (0, 0)),
            pl.BlockSpec((1, C), lambda i: (0, 0)),
            pl.BlockSpec((1, C), lambda i: (0, 0)),
            pl.BlockSpec((C, Cout), lambda i: (0, 0)),
            pl.BlockSpec((C, Cout), lambda i: (0, 0)),
            pl.BlockSpec((1, Cout), lambda i: (0, 0)),
        ],
        out_specs=pl.BlockSpec((tm, Cout), lambda i: (i, 0)),
        compiler_params=pltpu.CompilerParams(
            dimension_semantics=("parallel",),
            vmem_limit_bytes=_VMEM_LIMIT_BYTES),
    )(ym, y2m, w3, bn_b1, bn_s2, bn_b2, w4a, w4b, b4)
    return out.reshape(B, H, W, Cout)


# ------------------------- Parameters / preparation -------------------------

def _bn_fold(gamma, beta, mean, var, eps=1e-5):
    scale = gamma / jnp.sqrt(var + eps)
    return scale, beta - mean * scale


def init_raw_params(key, c1, c2, n=1, e=0.5):
    """Random parameters mirroring the PyTorch module's layers (eval-mode BN)."""
    c_ = int(c2 * e)
    keys = iter(jax.random.split(key, 128))

    def w1x1(cin, cout):
        return jax.random.normal(next(keys), (cin, cout), jnp.float32) * 0.1

    def w3x3(cin, cout):
        return jax.random.normal(next(keys), (3, 3, cin, cout), jnp.float32) * 0.1

    def bn(c):
        gamma = 1.0 + 0.1 * jax.random.normal(next(keys), (c,), jnp.float32)
        beta = 0.1 * jax.random.normal(next(keys), (c,), jnp.float32)
        mean = 0.1 * jax.random.normal(next(keys), (c,), jnp.float32)
        var = jnp.abs(jax.random.normal(next(keys), (c,), jnp.float32)) + 0.5
        return (gamma, beta, mean, var)

    return {
        'cv1_w': w1x1(c1, c_), 'cv1_bn': bn(c_),
        'cv2_w': w1x1(c1, c_),                 # plain Conv2d, no bias/BN/act
        'cv3_w': w1x1(c_, c_),                 # plain Conv2d, no bias/BN/act
        'cv4_w': w1x1(2 * c_, c2), 'cv4_bn': bn(c2),
        'bn': bn(2 * c_),                      # standalone BatchNorm2d(2*c_)
        'm': [{'cv1_w': w3x3(c_, c_), 'cv1_bn': bn(c_),
               'cv2_w': w3x3(c_, c_), 'cv2_bn': bn(c_)} for _ in range(n)],
    }
    # TODO(synk): grouped conv (g > 1) inside Bottleneck is not implemented.


def prepare_params(raw, compute_dtype=_COMPUTE_DTYPE):
    """Fold eval-mode BN scales into conv weight columns, split cv4's weight
    across the virtual concat, flatten 3x3 taps for deep-K dots, cast MXU
    operands to bf16 (one-time glue)."""
    c_ = raw['cv3_w'].shape[0]
    pp = {}

    s1, b1 = _bn_fold(*raw['cv1_bn'])
    pp['cv1_w'] = (raw['cv1_w'] * s1[None, :]).astype(compute_dtype)
    pp['cv1_b'] = b1.reshape(1, -1)

    pp['cv2_w'] = raw['cv2_w'].astype(compute_dtype)

    bn_s, bn_b = _bn_fold(*raw['bn'])
    pp['cv3_w'] = (raw['cv3_w'] * bn_s[:c_][None, :]).astype(compute_dtype)
    pp['bn_b1'] = bn_b[:c_].reshape(1, -1)
    pp['bn_s2'] = bn_s[c_:].reshape(1, -1)
    pp['bn_b2'] = bn_b[c_:].reshape(1, -1)

    s4, b4 = _bn_fold(*raw['cv4_bn'])
    w4 = raw['cv4_w'] * s4[None, :]
    pp['cv4_wa'] = w4[:c_].astype(compute_dtype)
    pp['cv4_wb'] = w4[c_:].astype(compute_dtype)
    pp['cv4_b'] = b4.reshape(1, -1)

    pp['m'] = []
    for blk in raw['m']:
        bs1, bb1 = _bn_fold(*blk['cv1_bn'])
        bs2, bb2 = _bn_fold(*blk['cv2_bn'])
        pp['m'].append({
            'w1': (blk['cv1_w'] * bs1).reshape(3, 3 * c_, c_).astype(compute_dtype),
            'b1': bb1.reshape(1, -1),
            'w2': (blk['cv2_w'] * bs2).reshape(3, 3 * c_, c_).astype(compute_dtype),
            'b2': bb2.reshape(1, -1),
        })
    return pp


# --------------------------------- Forward ----------------------------------

def bottleneck_csp_forward(x_nchw, pp, shortcut=True, tm=512):
    """BottleneckCSP forward (eval mode). NCHW in, NCHW out."""
    x = jnp.transpose(x_nchw, (0, 2, 3, 1))          # NCHW -> NHWC (channels on lanes)
    y, y2 = dual_conv1x1(x, pp['cv1_w'], pp['cv1_b'], pp['cv2_w'], tm=tm)
    for blk in pp['m']:
        y = bottleneck_pair(y, blk['w1'], blk['b1'], blk['w2'], blk['b2'],
                            shortcut=shortcut)
    out = csp_tail(y, y2, pp['cv3_w'], pp['bn_b1'], pp['bn_s2'], pp['bn_b2'],
                   pp['cv4_wa'], pp['cv4_wb'], pp['cv4_b'], tm=tm)
    return jnp.transpose(out, (0, 3, 1, 2))


# ------------------------------ pure-JAX reference --------------------------

def ref_forward(x_nchw, pp, shortcut=True, compute_dtype=_COMPUTE_DTYPE):
    """Pure-JAX reference with the same prepared params and the same
    bf16-operand / f32-accumulate numerics as the kernels."""
    f32 = jnp.float32
    x = jnp.transpose(x_nchw, (0, 2, 3, 1)).astype(compute_dtype)
    y = _silu(jnp.einsum('bhwi,io->bhwo', x, pp['cv1_w'],
                         preferred_element_type=f32) + pp['cv1_b'])
    y2 = jnp.einsum('bhwi,io->bhwo', x, pp['cv2_w'], preferred_element_type=f32)
    y = y.astype(compute_dtype)
    y2 = y2.astype(compute_dtype)
    C = y.shape[-1]
    for blk in pp['m']:
        w1 = blk['w1'].reshape(3, 3, C, C)
        w2 = blk['w2'].reshape(3, 3, C, C)
        h = _silu(jax.lax.conv_general_dilated(
            y, w1, (1, 1), 'SAME', dimension_numbers=('NHWC', 'HWIO', 'NHWC'),
            preferred_element_type=f32) + blk['b1'])
        z = _silu(jax.lax.conv_general_dilated(
            h.astype(compute_dtype), w2, (1, 1), 'SAME',
            dimension_numbers=('NHWC', 'HWIO', 'NHWC'),
            preferred_element_type=f32) + blk['b2'])
        if shortcut:
            z = z + y.astype(f32)
        y = z.astype(compute_dtype)
    t1 = _silu(jnp.einsum('bhwi,io->bhwo', y, pp['cv3_w'],
                          preferred_element_type=f32) + pp['bn_b1'])
    t2 = _silu(y2.astype(f32) * pp['bn_s2'] + pp['bn_b2'])
    z = (jnp.einsum('bhwi,io->bhwo', t1.astype(compute_dtype), pp['cv4_wa'],
                    preferred_element_type=f32)
         + jnp.einsum('bhwi,io->bhwo', t2.astype(compute_dtype), pp['cv4_wb'],
                      preferred_element_type=f32)
         + pp['cv4_b'])
    return jnp.transpose(_silu(z), (0, 3, 1, 2))


if __name__ == "__main__":
    key = jax.random.PRNGKey(0)
    kx, kp = jax.random.split(key)

    B, c1, c2, H, W = 2, 8, 8, 16, 16        # c_ = int(c2 * 0.5) = 4
    x = jax.random.normal(kx, (B, c1, H, W), jnp.float32)
    raw = init_raw_params(kp, c1, c2, n=1, e=0.5)
    pp = prepare_params(raw)

    fwd = jax.jit(functools.partial(bottleneck_csp_forward, shortcut=True, tm=128))
    out = jax.block_until_ready(fwd(x, pp))
    assert out.shape == (B, c2, H, W), out.shape

    ref = ref_forward(x, pp, shortcut=True)
    np.testing.assert_allclose(np.asarray(out, dtype=np.float32),
                               np.asarray(ref, dtype=np.float32),
                               rtol=2e-2, atol=2e-3)
    print("KERNEL_OK")
</pallas_src>

<mosaic_0001>
module attributes {stable_mosaic.version = 11 : i64} {
  func.func @_dual_conv1x1_kernel(%arg0: i32, %arg1: memref<128x8xf32, #tpu.memory_space<vmem>>, %arg2: memref<8x4xbf16, #tpu.memory_space<vmem>>, %arg3: memref<1x4xf32, #tpu.memory_space<vmem>>, %arg4: memref<8x4xbf16, #tpu.memory_space<vmem>>, %arg5: memref<128x4xbf16, #tpu.memory_space<vmem>>, %arg6: memref<128x4xbf16, #tpu.memory_space<vmem>>) attributes {dimension_semantics = [#tpu.dimension_semantics<parallel>], iteration_bounds = array<i64: 4>, scalar_prefetch = 0 : i64, scratch_operands = 0 : i64, tpu.core_type = #tpu.core_type<tc>, window_params = [{transform_indices = @transform_0, window_bounds = array<i64: 128, 8>}, {pipeline_mode = #tpu.pipeline_mode<synchronous>, transform_indices = @transform_1, window_bounds = array<i64: 8, 4>}, {pipeline_mode = #tpu.pipeline_mode<synchronous>, transform_indices = @transform_2, window_bounds = array<i64: 1, 4>}, {pipeline_mode = #tpu.pipeline_mode<synchronous>, transform_indices = @transform_3, window_bounds = array<i64: 8, 4>}, {transform_indices = @transform_4, window_bounds = array<i64: 128, 4>}, {transform_indices = @transform_5, window_bounds = array<i64: 128, 4>}]} {
    %c0 = arith.constant 0 : index
    %c0_0 = arith.constant 0 : index
    %0 = vector.load %arg1[%c0, %c0_0] : memref<128x8xf32, #tpu.memory_space<vmem>>, vector<128x8xf32>
    %1 = arith.truncf %0 : vector<128x8xf32> to vector<128x8xbf16>
    %c0_1 = arith.constant 0 : index
    %c0_2 = arith.constant 0 : index
    %2 = vector.load %arg2[%c0_1, %c0_2] : memref<8x4xbf16, #tpu.memory_space<vmem>>, vector<8x4xbf16>
    %cst = arith.constant dense<0.000000e+00> : vector<128x4xf32>
    %3 = tpu.matmul %1, %2, %cst {dimension_numbers = #tpu.dot_dimension_numbers<[1], [0], [0], [1], [0, 0, 1, 1], [], []>} : vector<128x8xbf16>, vector<8x4xbf16>, vector<128x4xf32> -> vector<128x4xf32>
    %c0_3 = arith.constant 0 : index
    %c0_4 = arith.constant 0 : index
    %4 = vector.load %arg3[%c0_3, %c0_4] : memref<1x4xf32, #tpu.memory_space<vmem>>, vector<1x4xf32>
    %5 = vector.broadcast %4 : vector<1x4xf32> to vector<128x4xf32>
    %6 = arith.addf %3, %5 : vector<128x4xf32>
    %7 = arith.negf %6 : vector<128x4xf32>
    %8 = math.exp %7 : vector<128x4xf32>
    %cst_5 = arith.constant 1.000000e+00 : f32
    %9 = vector.broadcast %cst_5 : f32 to vector<128x4xf32>
    %10 = arith.addf %9, %8 : vector<128x4xf32>
    %11 = arith.divf %9, %10 : vector<128x4xf32>
    %12 = arith.mulf %6, %11 : vector<128x4xf32>
    %13 = arith.truncf %12 : vector<128x4xf32> to vector<128x4xbf16>
    %c0_6 = arith.constant 0 : index
    %c0_7 = arith.constant 0 : index
    %14 = vector.load %arg5[%c0_6, %c0_7] : memref<128x4xbf16, #tpu.memory_space<vmem>>, vector<128x4xbf16>
    tpu.vector_store %arg5[%c0_6, %c0_7], %13 {strides = array<i32>} : memref<128x4xbf16, #tpu.memory_space<vmem>>, vector<128x4xbf16>,
    %c0_8 = arith.constant 0 : index
    %c0_9 = arith.constant 0 : index
    %15 = vector.load %arg4[%c0_8, %c0_9] : memref<8x4xbf16, #tpu.memory_space<vmem>>, vector<8x4xbf16>
    %cst_10 = arith.constant dense<0.000000e+00> : vector<128x4xf32>
    %16 = tpu.matmul %1, %15, %cst_10 {dimension_numbers = #tpu.dot_dimension_numbers<[1], [0], [0], [1], [0, 0, 1, 1], [], []>} : vector<128x8xbf16>, vector<8x4xbf16>, vector<128x4xf32> -> vector<128x4xf32>
    %17 = arith.truncf %16 : vector<128x4xf32> to vector<128x4xbf16>
    %c0_11 = arith.constant 0 : index
    %c0_12 = arith.constant 0 : index
    %18 = vector.load %arg6[%c0_11, %c0_12] : memref<128x4xbf16, #tpu.memory_space<vmem>>, vector<128x4xbf16>
    tpu.vector_store %arg6[%c0_11, %c0_12], %17 {strides = array<i32>} : memref<128x4xbf16, #tpu.memory_space<vmem>>, vector<128x4xbf16>,
    return
  }
  func.func @transform_0(%arg0: i32) -> (i32, i32) {
    %c0_i32 = arith.constant 0 : i32
    %c0_i32_0 = arith.constant 0 : i32
    return %arg0, %c0_i32 : i32, i32
  }
  func.func @transform_1(%arg0: i32) -> (i32, i32) {
    %c0_i32 = arith.constant 0 : i32
    %c0_i32_0 = arith.constant 0 : i32
    %c0_i32_1 = arith.constant 0 : i32
    return %c0_i32, %c0_i32_0 : i32, i32
  }
  func.func @transform_2(%arg0: i32) -> (i32, i32) {
    %c0_i32 = arith.constant 0 : i32
    %c0_i32_0 = arith.constant 0 : i32
    %c0_i32_1 = arith.constant 0 : i32
    return %c0_i32, %c0_i32_0 : i32, i32
  }
  func.func @transform_3(%arg0: i32) -> (i32, i32) {
    %c0_i32 = arith.constant 0 : i32
    %c0_i32_0 = arith.constant 0 : i32
    %c0_i32_1 = arith.constant 0 : i32
    return %c0_i32, %c0_i32_0 : i32, i32
  }
  func.func @transform_4(%arg0: i32) -> (i32, i32) {
    %c0_i32 = arith.constant 0 : i32
    %c0_i32_0 = arith.constant 0 : i32
    return %arg0, %c0_i32 : i32, i32
  }
  func.func @transform_5(%arg0: i32) -> (i32, i32) {
    %c0_i32 = arith.constant 0 : i32
    %c0_i32_0 = arith.constant 0 : i32
    return %arg0, %c0_i32 : i32, i32
  }
}

module attributes {stable_mosaic.version = 11 : i64} {
  func.func @_csp_tail_kernel(%arg0: i32, %arg1: memref<128x4xbf16, #tpu.memory_space<vmem>>, %arg2: memref<128x4xbf16, #tpu.memory_space<vmem>>, %arg3: memref<4x4xbf16, #tpu.memory_space<vmem>>, %arg4: memref<1x4xf32, #tpu.memory_space<vmem>>, %arg5: memref<1x4xf32, #tpu.memory_space<vmem>>, %arg6: memref<1x4xf32, #tpu.memory_space<vmem>>, %arg7: memref<4x8xbf16, #tpu.memory_space<vmem>>, %arg8: memref<4x8xbf16, #tpu.memory_space<vmem>>, %arg9: memref<1x8xf32, #tpu.memory_space<vmem>>, %arg10: memref<128x8xf32, #tpu.memory_space<vmem>>) attributes {dimension_semantics = [#tpu.dimension_semantics<parallel>], iteration_bounds = array<i64: 4>, scalar_prefetch = 0 : i64, scratch_operands = 0 : i64, tpu.core_type = #tpu.core_type<tc>, window_params = [{transform_indices = @transform_0, window_bounds = array<i64: 128, 4>}, {transform_indices = @transform_1, window_bounds = array<i64: 128, 4>}, {pipeline_mode = #tpu.pipeline_mode<synchronous>, transform_indices = @transform_2, window_bounds = array<i64: 4, 4>}, {pipeline_mode = #tpu.pipeline_mode<synchronous>, transform_indices = @transform_3, window_bounds = array<i64: 1, 4>}, {pipeline_mode = #tpu.pipeline_mode<synchronous>, transform_indices = @transform_4, window_bounds = array<i64: 1, 4>}, {pipeline_mode = #tpu.pipeline_mode<synchronous>, transform_indices = @transform_5, window_bounds = array<i64: 1, 4>}, {pipeline_mode = #tpu.pipeline_mode<synchronous>, transform_indices = @transform_6, window_bounds = array<i64: 4, 8>}, {pipeline_mode = #tpu.pipeline_mode<synchronous>, transform_indices = @transform_7, window_bounds = array<i64: 4, 8>}, {pipeline_mode = #tpu.pipeline_mode<synchronous>, transform_indices = @transform_8, window_bounds = array<i64: 1, 8>}, {transform_indices = @transform_9, window_bounds = array<i64: 128, 8>}]} {
    %c0 = arith.constant 0 : index
    %c0_0 = arith.constant 0 : index
    %0 = vector.load %arg1[%c0, %c0_0] : memref<128x4xbf16, #tpu.memory_space<vmem>>, vector<128x4xbf16>
    %c0_1 = arith.constant 0 : index
    %c0_2 = arith.constant 0 : index
    %1 = vector.load %arg3[%c0_1, %c0_2] : memref<4x4xbf16, #tpu.memory_space<vmem>>, vector<4x4xbf16>
    %cst = arith.constant dense<0.000000e+00> : vector<128x4xf32>
    %2 = tpu.matmul %0, %1, %cst {dimension_numbers = #tpu.dot_dimension_numbers<[1], [0], [0], [1], [0, 0, 1, 1], [], []>} : vector<128x4xbf16>, vector<4x4xbf16>, vector<128x4xf32> -> vector<128x4xf32>
    %c0_3 = arith.constant 0 : index
    %c0_4 = arith.constant 0 : index
    %3 = vector.load %arg4[%c0_3, %c0_4] : memref<1x4xf32, #tpu.memory_space<vmem>>, vector<1x4xf32>
    %4 = vector.broadcast %3 : vector<1x4xf32> to vector<128x4xf32>
    %5 = arith.addf %2, %4 : vector<128x4xf32>
    %6 = arith.negf %5 : vector<128x4xf32>
    %7 = math.exp %6 : vector<128x4xf32>
    %cst_5 = arith.constant 1.000000e+00 : f32
    %8 = vector.broadcast %cst_5 : f32 to vector<128x4xf32>
    %9 = arith.addf %8, %7 : vector<128x4xf32>
    %10 = arith.divf %8, %9 : vector<128x4xf32>
    %11 = arith.mulf %5, %10 : vector<128x4xf32>
    %c0_6 = arith.constant 0 : index
    %c0_7 = arith.constant 0 : index
    %12 = vector.load %arg2[%c0_6, %c0_7] : memref<128x4xbf16, #tpu.memory_space<vmem>>, vector<128x4xbf16>
    %13 = arith.extf %12 : vector<128x4xbf16> to vector<128x4xf32>
    %c0_8 = arith.constant 0 : index
    %c0_9 = arith.constant 0 : index
    %14 = vector.load %arg5[%c0_8, %c0_9] : memref<1x4xf32, #tpu.memory_space<vmem>>, vector<1x4xf32>
    %15 = vector.broadcast %14 : vector<1x4xf32> to vector<128x4xf32>
    %16 = arith.mulf %13, %15 : vector<128x4xf32>
    %c0_10 = arith.constant 0 : index
    %c0_11 = arith.constant 0 : index
    %17 = vector.load %arg6[%c0_10, %c0_11] : memref<1x4xf32, #tpu.memory_space<vmem>>, vector<1x4xf32>
    %18 = vector.broadcast %17 : vector<1x4xf32> to vector<128x4xf32>
    %19 = arith.addf %16, %18 : vector<128x4xf32>
    %20 = arith.negf %19 : vector<128x4xf32>
    %21 = math.exp %20 : vector<128x4xf32>
    %cst_12 = arith.constant 1.000000e+00 : f32
    %22 = vector.broadcast %cst_12 : f32 to vector<128x4xf32>
    %23 = arith.addf %22, %21 : vector<128x4xf32>
    %24 = arith.divf %22, %23 : vector<128x4xf32>
    %25 = arith.mulf %19, %24 : vector<128x4xf32>
    %26 = arith.truncf %11 : vector<128x4xf32> to vector<128x4xbf16>
    %c0_13 = arith.constant 0 : index
    %c0_14 = arith.constant 0 : index
    %27 = vector.load %arg7[%c0_13, %c0_14] : memref<4x8xbf16, #tpu.memory_space<vmem>>, vector<4x8xbf16>
    %cst_15 = arith.constant dense<0.000000e+00> : vector<128x8xf32>
    %28 = tpu.matmul %26, %27, %cst_15 {dimension_numbers = #tpu.dot_dimension_numbers<[1], [0], [0], [1], [0, 0, 1, 1], [], []>} : vector<128x4xbf16>, vector<4x8xbf16>, vector<128x8xf32> -> vector<128x8xf32>
    %29 = arith.truncf %25 : vector<128x4xf32> to vector<128x4xbf16>
    %c0_16 = arith.constant 0 : index
    %c0_17 = arith.constant 0 : index
    %30 = vector.load %arg8[%c0_16, %c0_17] : memref<4x8xbf16, #tpu.memory_space<vmem>>, vector<4x8xbf16>
    %cst_18 = arith.constant dense<0.000000e+00> : vector<128x8xf32>
    %31 = tpu.matmul %29, %30, %cst_18 {dimension_numbers = #tpu.dot_dimension_numbers<[1], [0], [0], [1], [0, 0, 1, 1], [], []>} : vector<128x4xbf16>, vector<4x8xbf16>, vector<128x8xf32> -> vector<128x8xf32>
    %32 = arith.addf %28, %31 : vector<128x8xf32>
    %c0_19 = arith.constant 0 : index
    %c0_20 = arith.constant 0 : index
    %33 = vector.load %arg9[%c0_19, %c0_20] : memref<1x8xf32, #tpu.memory_space<vmem>>, vector<1x8xf32>
    %34 = vector.broadcast %33 : vector<1x8xf32> to vector<128x8xf32>
    %35 = arith.addf %32, %34 : vector<128x8xf32>
    %36 = arith.negf %35 : vector<128x8xf32>
    %37 = math.exp %36 : vector<128x8xf32>
    %cst_21 = arith.constant 1.000000e+00 : f32
    %38 = vector.broadcast %cst_21 : f32 to vector<128x8xf32>
    %39 = arith.addf %38, %37 : vector<128x8xf32>
    %40 = arith.divf %38, %39 : vector<128x8xf32>
    %41 = arith.mulf %35, %40 : vector<128x8xf32>
    %c0_22 = arith.constant 0 : index
    %c0_23 = arith.constant 0 : index
    %42 = vector.load %arg10[%c0_22, %c0_23] : memref<128x8xf32, #tpu.memory_space<vmem>>, vector<128x8xf32>
    tpu.vector_store %arg10[%c0_22, %c0_23], %41 {strides = array<i32>} : memref<128x8xf32, #tpu.memory_space<vmem>>, vector<128x8xf32>,
    return
  }
  func.func @transform_0(%arg0: i32) -> (i32, i32) {
    %c0_i32 = arith.constant 0 : i32
    %c0_i32_0 = arith.constant 0 : i32
    return %arg0, %c0_i32 : i32, i32
  }
  func.func @transform_1(%arg0: i32) -> (i32, i32) {
    %c0_i32 = arith.constant 0 : i32
    %c0_i32_0 = arith.constant 0 : i32
    return %arg0, %c0_i32 : i32, i32
  }
  func.func @transform_2(%arg0: i32) -> (i32, i32) {
    %c0_i32 = arith.constant 0 : i32
    %c0_i32_0 = arith.constant 0 : i32
    %c0_i32_1 = arith.constant 0 : i32
    return %c0_i32, %c0_i32_0 : i32, i32
  }
  func.func @transform_3(%arg0: i32) -> (i32, i32) {
    %c0_i32 = arith.constant 0 : i32
    %c0_i32_0 = arith.constant 0 : i32
    %c0_i32_1 = arith.constant 0 : i32
    return %c0_i32, %c0_i32_0 : i32, i32
  }
  func.func @transform_4(%arg0: i32) -> (i32, i32) {
    %c0_i32 = arith.constant 0 : i32
    %c0_i32_0 = arith.constant 0 : i32
    %c0_i32_1 = arith.constant 0 : i32
    return %c0_i32, %c0_i32_0 : i32, i32
  }
  func.func @transform_5(%arg0: i32) -> (i32, i32) {
    %c0_i32 = arith.constant 0 : i32
    %c0_i32_0 = arith.constant 0 : i32
    %c0_i32_1 = arith.constant 0 : i32
    return %c0_i32, %c0_i32_0 : i32, i32
  }
  func.func @transform_6(%arg0: i32) -> (i32, i32) {
    %c0_i32 = arith.constant 0 : i32
    %c0_i32_0 = arith.constant 0 : i32
    %c0_i32_1 = arith.constant 0 : i32
    return %c0_i32, %c0_i32_0 : i32, i32
  }
  func.func @transform_7(%arg0: i32) -> (i32, i32) {
    %c0_i32 = arith.constant 0 : i32
    %c0_i32_0 = arith.constant 0 : i32
    %c0_i32_1 = arith.constant 0 : i32
    return %c0_i32, %c0_i32_0 : i32, i32
  }
  func.func @transform_8(%arg0: i32) -> (i32, i32) {
    %c0_i32 = arith.constant 0 : i32
    %c0_i32_0 = arith.constant 0 : i32
    %c0_i32_1 = arith.constant 0 : i32
    return %c0_i32, %c0_i32_0 : i32, i32
  }
  func.func @transform_9(%arg0: i32) -> (i32, i32) {
    %c0_i32 = arith.constant 0 : i32
    %c0_i32_0 = arith.constant 0 : i32
    return %arg0, %c0_i32 : i32, i32
  }
}

module attributes {stable_mosaic.version = 11 : i64} {
  func.func @_bottleneck_pair_kernel(%arg0: i32, %arg1: memref<1x16x16x4xbf16, #tpu.memory_space<vmem>>, %arg2: memref<3x12x4xbf16, #tpu.memory_space<vmem>>, %arg3: memref<1x4xf32, #tpu.memory_space<vmem>>, %arg4: memref<3x12x4xbf16, #tpu.memory_space<vmem>>, %arg5: memref<1x4xf32, #tpu.memory_space<vmem>>, %arg6: memref<1x16x16x4xbf16, #tpu.memory_space<vmem>>, %arg7: memref<18x18x4xf32, #tpu.memory_space<vmem>>, %arg8: memref<18x18x4xf32, #tpu.memory_space<vmem>>, %arg9: memref<256x4xf32, #tpu.memory_space<vmem>>) attributes {dimension_semantics = [#tpu.dimension_semantics<parallel>], iteration_bounds = array<i64: 2>, scalar_prefetch = 0 : i64, scratch_operands = 3 : i64, tpu.core_type = #tpu.core_type<tc>, window_params = [{transform_indices = @transform_0, window_bounds = array<i64: 1, 16, 16, 4>}, {pipeline_mode = #tpu.pipeline_mode<synchronous>, transform_indices = @transform_1, window_bounds = array<i64: 3, 12, 4>}, {pipeline_mode = #tpu.pipeline_mode<synchronous>, transform_indices = @transform_2, window_bounds = array<i64: 1, 4>}, {pipeline_mode = #tpu.pipeline_mode<synchronous>, transform_indices = @transform_3, window_bounds = array<i64: 3, 12, 4>}, {pipeline_mode = #tpu.pipeline_mode<synchronous>, transform_indices = @transform_4, window_bounds = array<i64: 1, 4>}, {transform_indices = @transform_5, window_bounds = array<i64: 1, 16, 16, 4>}]} {
    %c0 = arith.constant 0 : index
    %c0_0 = arith.constant 0 : index
    %c0_1 = arith.constant 0 : index
    %c0_2 = arith.constant 0 : index
    %0 = vector.load %arg1[%c0, %c0_0, %c0_1, %c0_2] : memref<1x16x16x4xbf16, #tpu.memory_space<vmem>>, vector<1x16x16x4xbf16>
    %1 = vector.shape_cast %0 : vector<1x16x16x4xbf16> to vector<16x16x4xbf16>
    %2 = arith.extf %1 : vector<16x16x4xbf16> to vector<16x16x4xf32>
    %cst = arith.constant 0.000000e+00 : f32
    %3 = vector.broadcast %cst : f32 to vector<16x1x4xf32>
    %cst_3 = arith.constant 0.000000e+00 : f32
    %4 = vector.broadcast %cst_3 : f32 to vector<1x18x4xf32>
    %5 = tpu.concatenate %3, %2, %3 in 1 : vector<16x1x4xf32>, vector<16x16x4xf32>, vector<16x1x4xf32> -> vector<16x18x4xf32>
    %6 = tpu.concatenate %4, %5, %4 in 0 : vector<1x18x4xf32>, vector<16x18x4xf32>, vector<1x18x4xf32> -> vector<18x18x4xf32>
    %c0_4 = arith.constant 0 : index
    %c0_5 = arith.constant 0 : index
    %c0_6 = arith.constant 0 : index
    %7 = vector.load %arg7[%c0_4, %c0_5, %c0_6] : memref<18x18x4xf32, #tpu.memory_space<vmem>>, vector<18x18x4xf32>
    tpu.vector_store %arg7[%c0_4, %c0_5, %c0_6], %6 {strides = array<i32>} : memref<18x18x4xf32, #tpu.memory_space<vmem>>, vector<18x18x4xf32>,
    %cst_7 = arith.constant 0.000000e+00 : f32
    %8 = vector.broadcast %cst_7 : f32 to vector<256x4xf32>
    %c0_8 = arith.constant 0 : index
    %c0_9 = arith.constant 0 : index
    %9 = vector.load %arg9[%c0_8, %c0_9] : memref<256x4xf32, #tpu.memory_space<vmem>>, vector<256x4xf32>
    tpu.vector_store %arg9[%c0_8, %c0_9], %8 {strides = array<i32>} : memref<256x4xf32, #tpu.memory_space<vmem>>, vector<256x4xf32>,
    %c0_10 = arith.constant 0 : index
    %c0_11 = arith.constant 0 : index
    %c0_12 = arith.constant 0 : index
    %10 = vector.load %arg7[%c0_10, %c0_11, %c0_12] : memref<18x18x4xf32, #tpu.memory_space<vmem>>, vector<16x18x4xf32>
    %11 = vector.extract_strided_slice %10 {offsets = [0, 0, 0], sizes = [16, 16, 4], strides = [1, 1, 1]} : vector<16x18x4xf32> to vector<16x16x4xf32>
    %12 = vector.extract_strided_slice %10 {offsets = [0, 1, 0], sizes = [16, 16, 4], strides = [1, 1, 1]} : vector<16x18x4xf32> to vector<16x16x4xf32>
    %13 = vector.extract_strided_slice %10 {offsets = [0, 2, 0], sizes = [16, 16, 4], strides = [1, 1, 1]} : vector<16x18x4xf32> to vector<16x16x4xf32>
    %14 = tpu.concatenate %11, %12, %13 in 2 : vector<16x16x4xf32>, vector<16x16x4xf32>, vector<16x16x4xf32> -> vector<16x16x12xf32>
    %c0_13 = arith.constant 0 : index
    %c0_14 = arith.constant 0 : index
    %15 = vector.load %arg9[%c0_13, %c0_14] : memref<256x4xf32, #tpu.memory_space<vmem>>, vector<256x4xf32>
    %16 = vector.shape_cast %14 : vector<16x16x12xf32> to vector<256x12xf32>
    %17 = arith.truncf %16 : vector<256x12xf32> to vector<256x12xbf16>
    %c0_15 = arith.constant 0 : index
    %c0_16 = arith.constant 0 : index
    %c0_17 = arith.constant 0 : index
    %18 = vector.load %arg2[%c0_15, %c0_16, %c0_17] : memref<3x12x4xbf16, #tpu.memory_space<vmem>>, vector<1x12x4xbf16>
    %19 = vector.shape_cast %18 : vector<1x12x4xbf16> to vector<12x4xbf16>
    %cst_18 = arith.constant dense<0.000000e+00> : vector<256x4xf32>
    %20 = tpu.matmul %17, %19, %cst_18 {dimension_numbers = #tpu.dot_dimension_numbers<[1], [0], [0], [1], [0, 0, 1, 1], [], []>} : vector<256x12xbf16>, vector<12x4xbf16>, vector<256x4xf32> -> vector<256x4xf32>
    %21 = arith.addf %15, %20 : vector<256x4xf32>
    %c0_19 = arith.constant 0 : index
    %c0_20 = arith.constant 0 : index
    %22 = vector.load %arg9[%c0_19, %c0_20] : memref<256x4xf32, #tpu.memory_space<vmem>>, vector<256x4xf32>
    tpu.vector_store %arg9[%c0_19, %c0_20], %21 {strides = array<i32>} : memref<256x4xf32, #tpu.memory_space<vmem>>, vector<256x4xf32>,
    %c1 = arith.constant 1 : index
    %c0_21 = arith.constant 0 : index
    %c0_22 = arith.constant 0 : index
    %23 = vector.load %arg7[%c1, %c0_21, %c0_22] : memref<18x18x4xf32, #tpu.memory_space<vmem>>, vector<16x18x4xf32>
    %24 = vector.extract_strided_slice %23 {offsets = [0, 0, 0], sizes = [16, 16, 4], strides = [1, 1, 1]} : vector<16x18x4xf32> to vector<16x16x4xf32>
    %25 = vector.extract_strided_slice %23 {offsets = [0, 1, 0], sizes = [16, 16, 4], strides = [1, 1, 1]} : vector<16x18x4xf32> to vector<16x16x4xf32>
    %26 = vector.extract_strided_slice %23 {offsets = [0, 2, 0], sizes = [16, 16, 4], strides = [1, 1, 1]} : vector<16x18x4xf32> to vector<16x16x4xf32>
    %27 = tpu.concatenate %24, %25, %26 in 2 : vector<16x16x4xf32>, vector<16x16x4xf32>, vector<16x16x4xf32> -> vector<16x16x12xf32>
    %c0_23 = arith.constant 0 : index
    %c0_24 = arith.constant 0 : index
    %28 = vector.load %arg9[%c0_23, %c0_24] : memref<256x4xf32, #tpu.memory_space<vmem>>, vector<256x4xf32>
    %29 = vector.shape_cast %27 : vector<16x16x12xf32> to vector<256x12xf32>
    %30 = arith.truncf %29 : vector<256x12xf32> to vector<256x12xbf16>
    %c1_25 = arith.constant 1 : index
    %c0_26 = arith.constant 0 : index
    %c0_27 = arith.constant 0 : index
    %31 = vector.load %arg2[%c1_25, %c0_26, %c0_27] : memref<3x12x4xbf16, #tpu.memory_space<vmem>>, vector<1x12x4xbf16>
    %32 = vector.shape_cast %31 : vector<1x12x4xbf16> to vector<12x4xbf16>
    %cst_28 = arith.constant dense<0.000000e+00> : vector<256x4xf32>
    %33 = tpu.matmul %30, %32, %cst_28 {dimension_numbers = #tpu.dot_dimension_numbers<[1], [0], [0], [1], [0, 0, 1, 1], [], []>} : vector<256x12xbf16>, vector<12x4xbf16>, vector<256x4xf32> -> vector<256x4xf32>
    %34 = arith.addf %28, %33 : vector<256x4xf32>
    %c0_29 = arith.constant 0 : index
    %c0_30 = arith.constant 0 : index
    %35 = vector.load %arg9[%c0_29, %c0_30] : memref<256x4xf32, #tpu.memory_space<vmem>>, vector<256x4xf32>
    tpu.vector_store %arg9[%c0_29, %c0_30], %34 {strides = array<i32>} : memref<256x4xf32, #tpu.memory_space<vmem>>, vector<256x4xf32>,
    %c2 = arith.constant 2 : index
    %c0_31 = arith.constant 0 : index
    %c0_32 = arith.constant 0 : index
    %36 = vector.load %arg7[%c2, %c0_31, %c0_32] : memref<18x18x4xf32, #tpu.memory_space<vmem>>, vector<16x18x4xf32>
    %37 = vector.extract_strided_slice %36 {offsets = [0, 0, 0], sizes = [16, 16, 4], strides = [1, 1, 1]} : vector<16x18x4xf32> to vector<16x16x4xf32>
    %38 = vector.extract_strided_slice %36 {offsets = [0, 1, 0], sizes = [16, 16, 4], strides = [1, 1, 1]} : vector<16x18x4xf32> to vector<16x16x4xf32>
    %39 = vector.extract_strided_slice %36 {offsets = [0, 2, 0], sizes = [16, 16, 4], strides = [1, 1, 1]} : vector<16x18x4xf32> to vector<16x16x4xf32>
    %40 = tpu.concatenate %37, %38, %39 in 2 : vector<16x16x4xf32>, vector<16x16x4xf32>, vector<16x16x4xf32> -> vector<16x16x12xf32>
    %c0_33 = arith.constant 0 : index
    %c0_34 = arith.constant 0 : index
    %41 = vector.load %arg9[%c0_33, %c0_34] : memref<256x4xf32, #tpu.memory_space<vmem>>, vector<256x4xf32>
    %42 = vector.shape_cast %40 : vector<16x16x12xf32> to vector<256x12xf32>
    %43 = arith.truncf %42 : vector<256x12xf32> to vector<256x12xbf16>
    %c2_35 = arith.constant 2 : index
    %c0_36 = arith.constant 0 : index
    %c0_37 = arith.constant 0 : index
    %44 = vector.load %arg2[%c2_35, %c0_36, %c0_37] : memref<3x12x4xbf16, #tpu.memory_space<vmem>>, vector<1x12x4xbf16>
    %45 = vector.shape_cast %44 : vector<1x12x4xbf16> to vector<12x4xbf16>
    %cst_38 = arith.constant dense<0.000000e+00> : vector<256x4xf32>
    %46 = tpu.matmul %43, %45, %cst_38 {dimension_numbers = #tpu.dot_dimension_numbers<[1], [0], [0], [1], [0, 0, 1, 1], [], []>} : vector<256x12xbf16>, vector<12x4xbf16>, vector<256x4xf32> -> vector<256x4xf32>
    %47 = arith.addf %41, %46 : vector<256x4xf32>
    %c0_39 = arith.constant 0 : index
    %c0_40 = arith.constant 0 : index
    %48 = vector.load %arg9[%c0_39, %c0_40] : memref<256x4xf32, #tpu.memory_space<vmem>>, vector<256x4xf32>
    tpu.vector_store %arg9[%c0_39, %c0_40], %47 {strides = array<i32>} : memref<256x4xf32, #tpu.memory_space<vmem>>, vector<256x4xf32>,
    %c0_41 = arith.constant 0 : index
    %c0_42 = arith.constant 0 : index
    %49 = vector.load %arg9[%c0_41, %c0_42] : memref<256x4xf32, #tpu.memory_space<vmem>>, vector<256x4xf32>
    %50 = vector.shape_cast %49 : vector<256x4xf32> to vector<16x16x4xf32>
    %c0_43 = arith.constant 0 : index
    %c0_44 = arith.constant 0 : index
    %51 = vector.load %arg3[%c0_43, %c0_44] : memref<1x4xf32, #tpu.memory_space<vmem>>, vector<1x4xf32>
    %52 = vector.shape_cast %51 : vector<1x4xf32> to vector<1x1x4xf32>
    %53 = vector.broadcast %52 : vector<1x1x4xf32> to vector<16x16x4xf32>
    %54 = arith.addf %50, %53 : vector<16x16x4xf32>
    %55 = arith.negf %54 : vector<16x16x4xf32>
    %56 = math.exp %55 : vector<16x16x4xf32>
    %cst_45 = arith.constant 1.000000e+00 : f32
    %57 = vector.broadcast %cst_45 : f32 to vector<16x16x4xf32>
    %58 = arith.addf %57, %56 : vector<16x16x4xf32>
    %59 = arith.divf %57, %58 : vector<16x16x4xf32>
    %60 = arith.mulf %54, %59 : vector<16x16x4xf32>
    %cst_46 = arith.constant 0.000000e+00 : f32
    %61 = vector.broadcast %cst_46 : f32 to vector<16x1x4xf32>
    %cst_47 = arith.constant 0.000000e+00 : f32
    %62 = vector.broadcast %cst_47 : f32 to vector<1x18x4xf32>
    %63 = tpu.concatenate %61, %60, %61 in 1 : vector<16x1x4xf32>, vector<16x16x4xf32>, vector<16x1x4xf32> -> vector<16x18x4xf32>
    %64 = tpu.concatenate %62, %63, %62 in 0 : vector<1x18x4xf32>, vector<16x18x4xf32>, vector<1x18x4xf32> -> vector<18x18x4xf32>
    %c0_48 = arith.constant 0 : index
    %c0_49 = arith.constant 0 : index
    %c0_50 = arith.constant 0 : index
    %65 = vector.load %arg8[%c0_48, %c0_49, %c0_50] : memref<18x18x4xf32, #tpu.memory_space<vmem>>, vector<18x18x4xf32>
    tpu.vector_store %arg8[%c0_48, %c0_49, %c0_50], %64 {strides = array<i32>} : memref<18x18x4xf32, #tpu.memory_space<vmem>>, vector<18x18x4xf32>,
    %cst_51 = arith.constant 0.000000e+00 : f32
    %66 = vector.broadcast %cst_51 : f32 to vector<256x4xf32>
    %c0_52 = arith.constant 0 : index
    %c0_53 = arith.constant 0 : index
    %67 = vector.load %arg9[%c0_52, %c0_53] : memref<256x4xf32, #tpu.memory_space<vmem>>, vector<256x4xf32>
    tpu.vector_store %arg9[%c0_52, %c0_53], %66 {strides = array<i32>} : memref<256x4xf32, #tpu.memory_space<vmem>>, vector<256x4xf32>,
    %c0_54 = arith.constant 0 : index
    %c0_55 = arith.constant 0 : index
    %c0_56 = arith.constant 0 : index
    %68 = vector.load %arg8[%c0_54, %c0_55, %c0_56] : memref<18x18x4xf32, #tpu.memory_space<vmem>>, vector<16x18x4xf32>
    %69 = vector.extract_strided_slice %68 {offsets = [0, 0, 0], sizes = [16, 16, 4], strides = [1, 1, 1]} : vector<16x18x4xf32> to vector<16x16x4xf32>
    %70 = vector.extract_strided_slice %68 {offsets = [0, 1, 0], sizes = [16, 16, 4], strides = [1, 1, 1]} : vector<16x18x4xf32> to vector<16x16x4xf32>
    %71 = vector.extract_strided_slice %68 {offsets = [0, 2, 0], sizes = [16, 16, 4], strides = [1, 1, 1]} : vector<16x18x4xf32> to vector<16x16x4xf32>
    %72 = tpu.concatenate %69, %70, %71 in 2 : vector<16x16x4xf32>, vector<16x16x4xf32>, vector<16x16x4xf32> -> vector<16x16x12xf32>
    %c0_57 = arith.constant 0 : index
    %c0_58 = arith.constant 0 : index
    %73 = vector.load %arg9[%c0_57, %c0_58] : memref<256x4xf32, #tpu.memory_space<vmem>>, vector<256x4xf32>
    %74 = vector.shape_cast %72 : vector<16x16x12xf32> to vector<256x12xf32>
    %75 = arith.truncf %74 : vector<256x12xf32> to vector<256x12xbf16>
    %c0_59 = arith.constant 0 : index
    %c0_60 = arith.constant 0 : index
    %c0_61 = arith.constant 0 : index
    %76 = vector.load %arg4[%c0_59, %c0_60, %c0_61] : memref<3x12x4xbf16, #tpu.memory_space<vmem>>, vector<1x12x4xbf16>
    %77 = vector.shape_cast %76 : vector<1x12x4xbf16> to vector<12x4xbf16>
    %cst_62 = arith.constant dense<0.000000e+00> : vector<256x4xf32>
    %78 = tpu.matmul %75, %77, %cst_62 {dimension_numbers = #tpu.dot_dimension_numbers<[1], [0], [0], [1], [0, 0, 1, 1], [], []>} : vector<256x12xbf16>, vector<12x4xbf16>, vector<256x4xf32> -> vector<256x4xf32>
    %79 = arith.addf %73, %78 : vector<256x4xf32>
    %c0_63 = arith.constant 0 : index
    %c0_64 = arith.constant 0 : index
    %80 = vector.load %arg9[%c0_63, %c0_64] : memref<256x4xf32, #tpu.memory_space<vmem>>, vector<256x4xf32>
    tpu.vector_store %arg9[%c0_63, %c0_64], %79 {strides = array<i32>} : memref<256x4xf32, #tpu.memory_space<vmem>>, vector<256x4xf32>,
    %c1_65 = arith.constant 1 : index
    %c0_66 = arith.constant 0 : index
    %c0_67 = arith.constant 0 : index
    %81 = vector.load %arg8[%c1_65, %c0_66, %c0_67] : memref<18x18x4xf32, #tpu.memory_space<vmem>>, vector<16x18x4xf32>
    %82 = vector.extract_strided_slice %81 {offsets = [0, 0, 0], sizes = [16, 16, 4], strides = [1, 1, 1]} : vector<16x18x4xf32> to vector<16x16x4xf32>
    %83 = vector.extract_strided_slice %81 {offsets = [0, 1, 0], sizes = [16, 16, 4], strides = [1, 1, 1]} : vector<16x18x4xf32> to vector<16x16x4xf32>
    %84 = vector.extract_strided_slice %81 {offsets = [0, 2, 0], sizes = [16, 16, 4], strides = [1, 1, 1]} : vector<16x18x4xf32> to vector<16x16x4xf32>
    %85 = tpu.concatenate %82, %83, %84 in 2 : vector<16x16x4xf32>, vector<16x16x4xf32>, vector<16x16x4xf32> -> vector<16x16x12xf32>
    %c0_68 = arith.constant 0 : index
    %c0_69 = arith.constant 0 : index
    %86 = vector.load %arg9[%c0_68, %c0_69] : memref<256x4xf32, #tpu.memory_space<vmem>>, vector<256x4xf32>
    %87 = vector.shape_cast %85 : vector<16x16x12xf32> to vector<256x12xf32>
    %88 = arith.truncf %87 : vector<256x12xf32> to vector<256x12xbf16>
    %c1_70 = arith.constant 1 : index
    %c0_71 = arith.constant 0 : index
    %c0_72 = arith.constant 0 : index
    %89 = vector.load %arg4[%c1_70, %c0_71, %c0_72] : memref<3x12x4xbf16, #tpu.memory_space<vmem>>, vector<1x12x4xbf16>
    %90 = vector.shape_cast %89 : vector<1x12x4xbf16> to vector<12x4xbf16>
    %cst_73 = arith.constant dense<0.000000e+00> : vector<256x4xf32>
    %91 = tpu.matmul %88, %90, %cst_73 {dimension_numbers = #tpu.dot_dimension_numbers<[1], [0], [0], [1], [0, 0, 1, 1], [], []>} : vector<256x12xbf16>, vector<12x4xbf16>, vector<256x4xf32> -> vector<256x4xf32>
    %92 = arith.addf %86, %91 : vector<256x4xf32>
    %c0_74 = arith.constant 0 : index
    %c0_75 = arith.constant 0 : index
    %93 = vector.load %arg9[%c0_74, %c0_75] : memref<256x4xf32, #tpu.memory_space<vmem>>, vector<256x4xf32>
    tpu.vector_store %arg9[%c0_74, %c0_75], %92 {strides = array<i32>} : memref<256x4xf32, #tpu.memory_space<vmem>>, vector<256x4xf32>,
    %c2_76 = arith.constant 2 : index
    %c0_77 = arith.constant 0 : index
    %c0_78 = arith.constant 0 : index
    %94 = vector.load %arg8[%c2_76, %c0_77, %c0_78] : memref<18x18x4xf32, #tpu.memory_space<vmem>>, vector<16x18x4xf32>
    %95 = vector.extract_strided_slice %94 {offsets = [0, 0, 0], sizes = [16, 16, 4], strides = [1, 1, 1]} : vector<16x18x4xf32> to vector<16x16x4xf32>
    %96 = vector.extract_strided_slice %94 {offsets = [0, 1, 0], sizes = [16, 16, 4], strides = [1, 1, 1]} : vector<16x18x4xf32> to vector<16x16x4xf32>
    %97 = vector.extract_strided_slice %94 {offsets = [0, 2, 0], sizes = [16, 16, 4], strides = [1, 1, 1]} : vector<16x18x4xf32> to vector<16x16x4xf32>
    %98 = tpu.concatenate %95, %96, %97 in 2 : vector<16x16x4xf32>, vector<16x16x4xf32>, vector<16x16x4xf32> -> vector<16x16x12xf32>
    %c0_79 = arith.constant 0 : index
    %c0_80 = arith.constant 0 : index
    %99 = vector.load %arg9[%c0_79, %c0_80] : memref<256x4xf32, #tpu.memory_space<vmem>>, vector<256x4xf32>
    %100 = vector.shape_cast %98 : vector<16x16x12xf32> to vector<256x12xf32>
    %101 = arith.truncf %100 : vector<256x12xf32> to vector<256x12xbf16>
    %c2_81 = arith.constant 2 : index
    %c0_82 = arith.constant 0 : index
    %c0_83 = arith.constant 0 : index
    %102 = vector.load %arg4[%c2_81, %c0_82, %c0_83] : memref<3x12x4xbf16, #tpu.memory_space<vmem>>, vector<1x12x4xbf16>
    %103 = vector.shape_cast %102 : vector<1x12x4xbf16> to vector<12x4xbf16>
    %cst_84 = arith.constant dense<0.000000e+00> : vector<256x4xf32>
    %104 = tpu.matmul %101, %103, %cst_84 {dimension_numbers = #tpu.dot_dimension_numbers<[1], [0], [0], [1], [0, 0, 1, 1], [], []>} : vector<256x12xbf16>, vector<12x4xbf16>, vector<256x4xf32> -> vector<256x4xf32>
    %105 = arith.addf %99, %104 : vector<256x4xf32>
    %c0_85 = arith.constant 0 : index
    %c0_86 = arith.constant 0 : index
    %106 = vector.load %arg9[%c0_85, %c0_86] : memref<256x4xf32, #tpu.memory_space<vmem>>, vector<256x4xf32>
    tpu.vector_store %arg9[%c0_85, %c0_86], %105 {strides = array<i32>} : memref<256x4xf32, #tpu.memory_space<vmem>>, vector<256x4xf32>,
    %c0_87 = arith.constant 0 : index
    %c0_88 = arith.constant 0 : index
    %107 = vector.load %arg9[%c0_87, %c0_88] : memref<256x4xf32, #tpu.memory_space<vmem>>, vector<256x4xf32>
    %108 = vector.shape_cast %107 : vector<256x4xf32> to vector<16x16x4xf32>
    %c0_89 = arith.constant 0 : index
    %c0_90 = arith.constant 0 : index
    %109 = vector.load %arg5[%c0_89, %c0_90] : memref<1x4xf32, #tpu.memory_space<vmem>>, vector<1x4xf32>
    %110 = vector.shape_cast %109 : vector<1x4xf32> to vector<1x1x4xf32>
    %111 = vector.broadcast %110 : vector<1x1x4xf32> to vector<16x16x4xf32>
    %112 = arith.addf %108, %111 : vector<16x16x4xf32>
    %113 = arith.negf %112 : vector<16x16x4xf32>
    %114 = math.exp %113 : vector<16x16x4xf32>
    %cst_91 = arith.constant 1.000000e+00 : f32
    %115 = vector.broadcast %cst_91 : f32 to vector<16x16x4xf32>
    %116 = arith.addf %115, %114 : vector<16x16x4xf32>
    %117 = arith.divf %115, %116 : vector<16x16x4xf32>
    %118 = arith.mulf %112, %117 : vector<16x16x4xf32>
    %c0_92 = arith.constant 0 : index
    %c0_93 = arith.constant 0 : index
    %c0_94 = arith.constant 0 : index
    %c0_95 = arith.constant 0 : index
    %119 = vector.load %arg1[%c0_92, %c0_93, %c0_94, %c0_95] : memref<1x16x16x4xbf16, #tpu.memory_space<vmem>>, vector<1x16x16x4xbf16>
    %120 = vector.shape_cast %119 : vector<1x16x16x4xbf16> to vector<16x16x4xbf16>
    %121 = arith.extf %120 : vector<16x16x4xbf16> to vector<16x16x4xf32>
    %122 = arith.addf %118, %121 : vector<16x16x4xf32>
    %123 = arith.truncf %122 : vector<16x16x4xf32> to vector<16x16x4xbf16>
    %c0_96 = arith.constant 0 : index
    %c0_97 = arith.constant 0 : index
    %c0_98 = arith.constant 0 : index
    %c0_99 = arith.constant 0 : index
    %124 = vector.load %arg6[%c0_96, %c0_97, %c0_98, %c0_99] : memref<1x16x16x4xbf16, #tpu.memory_space<vmem>>, vector<1x16x16x4xbf16>
    %125 = vector.shape_cast %124 : vector<1x16x16x4xbf16> to vector<16x16x4xbf16>
    %126 = vector.shape_cast %123 : vector<16x16x4xbf16> to vector<1x16x16x4xbf16>
    tpu.vector_store %arg6[%c0_96, %c0_97, %c0_98, %c0_99], %126 {strides = array<i32>} : memref<1x16x16x4xbf16, #tpu.memory_space<vmem>>, vector<1x16x16x4xbf16>,
    return
  }
  func.func @transform_0(%arg0: i32) -> (i32, i32, i32, i32) {
    %c0_i32 = arith.constant 0 : i32
    %c0_i32_0 = arith.constant 0 : i32
    %c0_i32_1 = arith.constant 0 : i32
    %c0_i32_2 = arith.constant 0 : i32
    return %arg0, %c0_i32, %c0_i32_0, %c0_i32_1 : i32, i32, i32, i32
  }
  func.func @transform_1(%arg0: i32) -> (i32, i32, i32) {
    %c0_i32 = arith.constant 0 : i32
    %c0_i32_0 = arith.constant 0 : i32
    %c0_i32_1 = arith.constant 0 : i32
    %c0_i32_2 = arith.constant 0 : i32
    return %c0_i32, %c0_i32_0, %c0_i32_1 : i32, i32, i32
  }
  func.func @transform_2(%arg0: i32) -> (i32, i32) {
    %c0_i32 = arith.constant 0 : i32
    %c0_i32_0 = arith.constant 0 : i32
    %c0_i32_1 = arith.constant 0 : i32
    return %c0_i32, %c0_i32_0 : i32, i32
  }
  func.func @transform_3(%arg0: i32) -> (i32, i32, i32) {
    %c0_i32 = arith.constant 0 : i32
    %c0_i32_0 = arith.constant 0 : i32
    %c0_i32_1 = arith.constant 0 : i32
    %c0_i32_2 = arith.constant 0 : i32
    return %c0_i32, %c0_i32_0, %c0_i32_1 : i32, i32, i32
  }
  func.func @transform_4(%arg0: i32) -> (i32, i32) {
    %c0_i32 = arith.constant 0 : i32
    %c0_i32_0 = arith.constant 0 : i32
    %c0_i32_1 = arith.constant 0 : i32
    return %c0_i32, %c0_i32_0 : i32, i32
  }
  func.func @transform_5(%arg0: i32) -> (i32, i32, i32, i32) {
    %c0_i32 = arith.constant 0 : i32
    %c0_i32_0 = arith.constant 0 : i32
    %c0_i32_1 = arith.constant 0 : i32
    %c0_i32_2 = arith.constant 0 : i32
    return %arg0, %c0_i32, %c0_i32_0, %c0_i32_1 : i32, i32, i32, i32
  }
}

</mosaic_0001>

<bundles_post_ra>
// kernel: bottleneck_csp_forward.3
= control target key start
LH: loop header
LB: loop body
LE: loop exit
PB: predicated region body
PF: predicated region fallthrough
CT: control target
= control target key end

     0   :  { %s1141_s18 = smov 0   ;;  %s1362_s0 = inlined_call_operand.vmem [shape: f32[512,8], index: 0, kind: input, shape index: {}]   ;;  %s1363_s1 = inlined_call_operand.vmem [shape: bf16[8,4], index: 1, kind: input, shape index: {}]   ;;  %s1364_s2 = inlined_call_operand.vmem [shape: f32[1,4], index: 2, kind: input, shape index: {}]   ;;  %s1365_s3 = inlined_call_operand.vmem [shape: bf16[8,4], index: 3, kind: input, shape index: {}]   ;;  %s1366_s4 = inlined_call_operand.vmem [shape: bf16[512,4], index: 4, kind: output, shape index: {0}]   ;;  %s1367_s5 = inlined_call_operand.vmem [shape: bf16[512,4], index: 5, kind: output, shape index: {1}]  }
   0x1 LB: > { %s865_s19 = sadd.s32 4294967295, %s1109_s18   ;;  %p869_p0 = scmp.ge.s32.totalorder %s1109_s18, 1  ;;  %s1109_s18 = sphi %s1141_s18, %s16_s18  }
   0x2   : > { %p191_p1 = scmp.lt.s32.totalorder %s1109_s18, 5 }
   0x4   : > { %p192_p2 = pnand %p869_p0, %p191_p1 }
   0x5   : > { %v267_v0 = vld [vmem:[%s1363_s1] sm:$0xf] (!%p192_p2)  ;;  %vm300_vm0 = vcmask (!%p192_p2), 1043456   ;;  %s870_s22 = sshll.u32 (!%p192_p2), %s865_s19, 4  ;;  %vm275_vm1 = vcmask (!%p192_p2), 64512   ;;  %vm577_vm2 = vcmask (!%p192_p2), 27648  }
   0x6   : > { %195 = sbr.rel (%p192_p2) target bundleno = 294 (0x126), region = 36  ;;  %1029 = vmatprep.subr.msk.bf16.mxu0 (!%p192_p2), %vm300_vm0, %v267_v0  ;;  %v302_v1 = vsel (!%p192_p2), %vm300_vm0, %v267_v0, 0  ;;  %p225_p3 = scmp.lt.s32.totalorder (!%p192_p2), %s870_s22, 63  ;;  %v594_v2 = vld [vmem:[%s1365_s3] sm:$0xf] (!%p192_p2) }
   0x7   : > { %994 = vmatpush3.bf16.msra.mxu0 (!%p192_p2), %v302_v1  ;;  %1030 = vmatprep.subr.msk.bf16.mxu1 (!%p192_p2), %vm300_vm0, %v594_v2  ;;  %v596_v3 = vsel (!%p192_p2), %vm300_vm0, %v594_v2, 0  ;;  %v1199_v28 = vld [vmem:[%s1364_s2] ss:$0 sm:$0xff] (!%p192_p2) }
   0x8   : > { %1012 = vmatpush3.bf16.msra.mxu1 (!%p192_p2), %v596_v3 }
   0xd   : > { %s1369_s22 = smov (!%p225_p3, %s870_s22), 63 }
   0xe   : > { %s871_s25 = sshll.u32 %s1369_s22, 3  ;;  %s873_s29 = sshll.u32 %s1369_s22, 2 }
   0xf   : > { %s1161_s28 = scalar_lea.vmem %s1362_s0, %s871_s25  ;;  %s1206_s9 = scalar_lea.vmem %s1367_s5, %s873_s29 }
  0x10   : > { %v243_v4 = vld [vmem:[%s1161_s28] sm:$0xff]  ;;  %v244_v5 = vld [vmem:[%s1161_s28 + $0x8] sm:$0xff]  ;;  %v245_v6 = vld [vmem:[%s1161_s28 + $0x10] sm:$0xff]  ;;  %s1305_s12 = scalar_lea.vmem %s1366_s4, %s873_s29 }
  0x11   : > { %v259_v7 = vpack.c.bf16 %v244_v5, %v243_v4  ;;  %v246_v8 = vld [vmem:[%s1161_s28 + $0x18] sm:$0xff]  ;;  %v247_v9 = vld [vmem:[%s1161_s28 + $0x20] sm:$0xff]  ;;  %v248_v10 = vld [vmem:[%s1161_s28 + $0x28] sm:$0xff] }
  0x12   : > { %v260_v11 = vpack.c.bf16 %v246_v8, %v245_v6  ;;  %v261_v12 = vpack.c.bf16 %v248_v10, %v247_v9  ;;  %v249_v13 = vld [vmem:[%s1161_s28 + $0x30] sm:$0xff]  ;;  %v250_v14 = vld [vmem:[%s1161_s28 + $0x38] sm:$0xff]  ;;  %v251_v15 = vld [vmem:[%s1161_s28 + $0x40] sm:$0xff] }
  0x13   : > { %995 = vmatprep.mubr.msk.bf16.mxu0 %vm275_vm1, %v259_v7  ;;  %1013 = vmatprep.mubr.msk.bf16.mxu1 %vm275_vm1, %v259_v7  ;;  %v252_v16 = vld [vmem:[%s1161_s28 + $0x48] sm:$0xff]  ;;  %v262_v17 = vpack.c.bf16 %v250_v14, %v249_v13  ;;  %v253_v19 = vld [vmem:[%s1161_s28 + $0x50] sm:$0xff]  ;;  %v254_v20 = vld [vmem:[%s1161_s28 + $0x58] sm:$0xff] }
  0x14   : > { %996 = vmatmul.mubr.msk.bf16.vlgmr.msra.gmra.mrb[0].mxu0 %vm275_vm1, %v260_v11  ;;  %1014 = vmatmul.mubr.msk.bf16.vlgmr.msra.gmra.mrb[0].mxu1 %vm275_vm1, %v260_v11  ;;  %v263_v18 = vpack.c.bf16 %v252_v16, %v251_v15  ;;  %v255_v21 = vld [vmem:[%s1161_s28 + $0x60] sm:$0xff]  ;;  %v256_v22 = vld [vmem:[%s1161_s28 + $0x68] sm:$0xff]  ;;  %v264_v23 = vpack.c.bf16 %v254_v20, %v253_v19  ;;  %v257_v25 = vld [vmem:[%s1161_s28 + $0x70] sm:$0xff] }
  0x15   : > { %999 = vmatprep.mubr.msk.bf16.mxu0 %vm275_vm1, %v261_v12  ;;  %1017 = vmatprep.mubr.msk.bf16.mxu1 %vm275_vm1, %v261_v12  ;;  %v265_v24 = vpack.c.bf16 %v256_v22, %v255_v21  ;;  %v258_v26 = vld [vmem:[%s1161_s28 + $0x78] sm:$0xff] }
  0x16   : > { %v266_v27 = vpack.c.bf16 %v258_v26, %v257_v25 }
  0x1c   : > { %1000 = vmatmul.mubr.msk.bf16.gmra.mrb[4].mxu0 %vm275_vm1, %v262_v17  ;;  %1018 = vmatmul.mubr.msk.bf16.gmra.mrb[4].mxu1 %vm275_vm1, %v262_v17 }
  0x1d   : > { %1003 = vmatprep.mubr.msk.bf16.mxu0 %vm275_vm1, %v263_v18  ;;  %1021 = vmatprep.mubr.msk.bf16.mxu1 %vm275_vm1, %v263_v18 }
  0x24   : > { %1004 = vmatmul.mubr.msk.bf16.gmra.mrb[8].mxu0 %vm275_vm1, %v264_v23  ;;  %1022 = vmatmul.mubr.msk.bf16.gmra.mrb[8].mxu1 %vm275_vm1, %v264_v23 }
  0x25   : > { %1007 = vmatprep.mubr.msk.bf16.mxu0 %vm275_vm1, %v265_v24  ;;  %1025 = vmatprep.mubr.msk.bf16.mxu1 %vm275_vm1, %v265_v24 }
  0x2c   : > { %1008 = vmatmul.mubr.msk.bf16.gmra.mrb[12].mxu0 %vm275_vm1, %v266_v27  ;;  %1026 = vmatmul.mubr.msk.bf16.gmra.mrb[12].mxu1 %vm275_vm1, %v266_v27 }
  0xe7   : > { %v997_v29 = vpop.f32.mrb[0].mxu0  ;;  %v1015_v30 = vpop.f32.mrb[0].mxu1 }
  0xe8   : > { %v1209_v31 = vadd.f32 %v997_v29, %v1199_v28  ;;  %v338_v32 = vpop.f32.mrb[1].mxu0  ;;  %v961_v33 = vpack.c.bf16 %v1015_v30, %v1015_v30  ;;  %v632_v34 = vpop.f32.mrb[1].mxu1 }
  0xe9   : > { %v1212_v35 = vadd.f32 %v1199_v28, %v338_v32  ;;  %v998_v36 = vpop.f32.mrb[2].mxu0  ;;  %v959_v37 = vpack.c.bf16 %v632_v34, %v632_v34  ;;  %v1016_v38 = vpop.f32.mrb[2].mxu1 }
  0xea   : > { %v887_v39 = vmul.f32 -1.442695, %v1209_v31  ;;  %v1216_v40 = vadd.f32 %v998_v36, %v1199_v28  ;;  %v341_v41 = vpop.f32.mrb[3].mxu0  ;;  %761 = vst.msk [vmem:[%s1206_s9 + $0x8] sm:$0xf] %vm577_vm2, %v961_v33  ;;  %v962_v42 = vpack.c.bf16 %v1016_v38, %v1016_v38  ;;  %v635_v43 = vpop.f32.mrb[3].mxu1 }
  0xeb   : > { %v885_v44 = vmul.f32 -1.442695, %v1212_v35  ;;  %v1222_v45 = vadd.f32 %v1199_v28, %v341_v41  ;;  %759 = vst.msk [vmem:[%s1206_s9] sm:$0xf] %vm577_vm2, %v959_v37  ;;  %v960_v46 = vpack.c.bf16 %v635_v43, %v635_v43 }
  0xec   : > { %1039 = vpow2.f32 %v887_v39  ;;  %v888_v47 = vmul.f32 -1.442695, %v1216_v40  ;;  %762 = vst.msk [vmem:[%s1206_s9 + $0xc] sm:$0xf] %vm577_vm2, %v962_v42 }
  0xed   : > { %1041 = vpow2.f32 %v885_v44  ;;  %v886_v48 = vmul.f32 -1.442695, %v1222_v45  ;;  %760 = vst.msk [vmem:[%s1206_s9 + $0x4] sm:$0xf] %vm577_vm2, %v960_v46 }
  0xee   : > { %1043 = vpow2.f32 %v888_v47 }
  0xef   : > { %1045 = vpow2.f32 %v886_v48  ;;  %v1001_v49 = vpop.f32.mrb[4].mxu0  ;;  %v1019_v50 = vpop.f32.mrb[4].mxu1 }
  0xf0   : > { %v1233_v51 = vadd.f32 %v1001_v49, %v1199_v28  ;;  %v354_v52 = vpop.f32.mrb[5].mxu0  ;;  %v965_v53 = vpack.c.bf16 %v1019_v50, %v1019_v50  ;;  %v648_v54 = vpop.f32.mrb[5].mxu1 }
  0xf1   : > { %v1236_v55 = vadd.f32 %v1199_v28, %v354_v52  ;;  %v1002_v56 = vpop.f32.mrb[6].mxu0  ;;  %v963_v57 = vpack.c.bf16 %v648_v54, %v648_v54  ;;  %v1020_v58 = vpop.f32.mrb[6].mxu1 }
  0xf2   : > { %v891_v59 = vmul.f32 -1.442695, %v1233_v51  ;;  %v1240_v60 = vadd.f32 %v1002_v56, %v1199_v28  ;;  %v357_v61 = vpop.f32.mrb[7].mxu0  ;;  %765 = vst.msk [vmem:[%s1206_s9 + $0x18] sm:$0xf] %vm577_vm2, %v965_v53  ;;  %v966_v62 = vpack.c.bf16 %v1020_v58, %v1020_v58  ;;  %v651_v63 = vpop.f32.mrb[7].mxu1 }
  0xf3   : > { %v889_v0 = vmul.f32 -1.442695, %v1236_v55  ;;  %v1246_v1 = vadd.f32 %v1199_v28, %v357_v61  ;;  %763 = vst.msk [vmem:[%s1206_s9 + $0x10] sm:$0xf] %vm577_vm2, %v963_v57  ;;  %v964_v2 = vpack.c.bf16 %v651_v63, %v651_v63 }
  0xf4   : > { %1047 = vpow2.f32 %v891_v59  ;;  %v892_v3 = vmul.f32 -1.442695, %v1240_v60  ;;  %766 = vst.msk [vmem:[%s1206_s9 + $0x1c] sm:$0xf] %vm577_vm2, %v966_v62 }
  0xf5   : > { %1049 = vpow2.f32 %v889_v0  ;;  %v890_v4 = vmul.f32 -1.442695, %v1246_v1  ;;  %764 = vst.msk [vmem:[%s1206_s9 + $0x14] sm:$0xf] %vm577_vm2, %v964_v2 }
  0xf6   : > { %v1040_v5 = vpop.eup %1039  ;;  %1051 = vpow2.f32 %v892_v3 }
  0xf7   : > { %v1042_v6 = vpop.eup %1041  ;;  %v451_v7 = vadd.f32 1.0, %v1040_v5  ;;  %1053 = vpow2.f32 %v890_v4  ;;  %v1005_v8 = vpop.f32.mrb[8].mxu0 }
  0xf8   : > { %v1023_v9 = vpop.f32.mrb[8].mxu1  ;;  %v1044_v10 = vpop.eup %1043  ;;  %v449_v11 = vadd.f32 1.0, %v1042_v6  ;;  %v1257_v12 = vadd.f32 %v1005_v8, %v1199_v28 }
  0xf9   : > { %v370_v13 = vpop.f32.mrb[9].mxu0  ;;  %v969_v14 = vpack.c.bf16 %v1023_v9, %v1023_v9  ;;  %v664_v15 = vpop.f32.mrb[9].mxu1  ;;  %1055 = vrcp.f32 %v451_v7  ;;  %v452_v17 = vadd.f32 1.0, %v1044_v10 }
  0xfa   : > { %v1046_v16 = vpop.eup %1045  ;;  %v1260_v18 = vadd.f32 %v1199_v28, %v370_v13  ;;  %v1006_v19 = vpop.f32.mrb[10].mxu0  ;;  %v967_v20 = vpack.c.bf16 %v664_v15, %v664_v15  ;;  %1057 = vrcp.f32 %v449_v11  ;;  %v895_v23 = vmul.f32 -1.442695, %v1257_v12 }
  0xfb   : > { %v1024_v21 = vpop.f32.mrb[10].mxu1  ;;  %v450_v22 = vadd.f32 1.0, %v1046_v16  ;;  %v1264_v24 = vadd.f32 %v1006_v19, %v1199_v28  ;;  %v373_v25 = vpop.f32.mrb[11].mxu0  ;;  %769 = vst.msk [vmem:[%s1206_s9 + $0x28] sm:$0xf] %vm577_vm2, %v969_v14  ;;  %1059 = vrcp.f32 %v452_v17 }
  0xfc   : > { %v667_v26 = vpop.f32.mrb[11].mxu1  ;;  %v893_v27 = vmul.f32 -1.442695, %v1260_v18  ;;  %v1270_v29 = vadd.f32 %v1199_v28, %v373_v25  ;;  %767 = vst.msk [vmem:[%s1206_s9 + $0x20] sm:$0xf] %vm577_vm2, %v967_v20  ;;  %v970_v30 = vpack.c.bf16 %v1024_v21, %v1024_v21 }
  0xfd   : > { %1061 = vrcp.f32 %v450_v22  ;;  %v896_v32 = vmul.f32 -1.442695, %v1264_v24  ;;  %v968_v33 = vpack.c.bf16 %v667_v26, %v667_v26 }
  0xfe   : > { %1063 = vpow2.f32 %v895_v23  ;;  %v894_v34 = vmul.f32 -1.442695, %v1270_v29  ;;  %770 = vst.msk [vmem:[%s1206_s9 + $0x2c] sm:$0xf] %vm577_vm2, %v970_v30  ;;  %v1048_v36 = vpop.eup %1047 }
  0xff   : > { %1065 = vpow2.f32 %v893_v27  ;;  %768 = vst.msk [vmem:[%s1206_s9 + $0x24] sm:$0xf] %vm577_vm2, %v968_v33  ;;  %v1050_v37 = vpop.eup %1049  ;;  %v455_v38 = vadd.f32 1.0, %v1048_v36  ;;  %v1009_v39 = vpop.f32.mrb[12].mxu0 }
 0x100   : > { %1067 = vpow2.f32 %v896_v32  ;;  %v1027_v41 = vpop.f32.mrb[12].mxu1  ;;  %v1052_v42 = vpop.eup %1051  ;;  %v453_v43 = vadd.f32 1.0, %v1050_v37  ;;  %v1281_v44 = vadd.f32 %v1009_v39, %v1199_v28 }
 0x101   : > { %1069 = vpow2.f32 %v894_v34  ;;  %v386_v46 = vpop.f32.mrb[13].mxu0  ;;  %v973_v47 = vpack.c.bf16 %v1027_v41, %v1027_v41  ;;  %v680_v48 = vpop.f32.mrb[13].mxu1  ;;  %v456_v50 = vadd.f32 1.0, %v1052_v42 }
 0x102   : > { %v1054_v49 = vpop.eup %1053  ;;  %1071 = vrcp.f32 %v455_v38  ;;  %v1284_v52 = vadd.f32 %v1199_v28, %v386_v46  ;;  %v1010_v53 = vpop.f32.mrb[14].mxu0  ;;  %v971_v54 = vpack.c.bf16 %v680_v48, %v680_v48  ;;  %v899_v58 = vmul.f32 -1.442695, %v1281_v44 }
 0x103   : > { %v1028_v56 = vpop.f32.mrb[14].mxu1  ;;  %1073 = vrcp.f32 %v453_v43  ;;  %v454_v57 = vadd.f32 1.0, %v1054_v49  ;;  %v1288_v59 = vadd.f32 %v1010_v53, %v1199_v28  ;;  %v389_v61 = vpop.f32.mrb[15].mxu0  ;;  %773 = vst.msk [vmem:[%s1206_s9 + $0x38] sm:$0xf] %vm577_vm2, %v973_v47 }
 0x104   : > { %v683_v62 = vpop.f32.mrb[15].mxu1  ;;  %v1056_v63 = vpop.eup %1055  ;;  %1075 = vrcp.f32 %v456_v50  ;;  %v897_v0 = vmul.f32 -1.442695, %v1284_v52  ;;  %v1294_v2 = vadd.f32 %v1199_v28, %v389_v61  ;;  %771 = vst.msk [vmem:[%s1206_s9 + $0x30] sm:$0xf] %vm577_vm2, %v971_v54  ;;  %v974_v3 = vpack.c.bf16 %v1028_v56, %v1028_v56 }
 0x105   : > { %v1058_v4 = vpop.eup %1057  ;;  %v499_v5 = vmul.f32 %v1056_v63, %v1209_v31  ;;  %1077 = vrcp.f32 %v454_v57  ;;  %v900_v6 = vmul.f32 -1.442695, %v1288_v59  ;;  %v972_v7 = vpack.c.bf16 %v683_v62, %v683_v62 }
 0x106   : > { %v1060_v8 = vpop.eup %1059  ;;  %v497_v28 = vmul.f32 %v1058_v4, %v1212_v35  ;;  %1079 = vpow2.f32 %v899_v58  ;;  %v898_v9 = vmul.f32 -1.442695, %v1294_v2  ;;  %774 = vst.msk [vmem:[%s1206_s9 + $0x3c] sm:$0xf] %vm577_vm2, %v974_v3 }
 0x107   : > { %v1062_v31 = vpop.eup %1061  ;;  %v945_v10 = vpack.c.bf16 %v499_v5, %v499_v5  ;;  %v500_v11 = vmul.f32 %v1060_v8, %v1216_v40  ;;  %1081 = vpow2.f32 %v897_v0  ;;  %772 = vst.msk [vmem:[%s1206_s9 + $0x34] sm:$0xf] %vm577_vm2, %v972_v7 }
 0x108   : > { %v1064_v13 = vpop.eup %1063  ;;  %v943_v14 = vpack.c.bf16 %v497_v28, %v497_v28  ;;  %v498_v15 = vmul.f32 %v1062_v31, %v1222_v45  ;;  %1083 = vpow2.f32 %v900_v6 }
 0x109   : > { %v1066_v35 = vpop.eup %1065  ;;  %580 = vst.msk [vmem:[%s1305_s12 + $0x8] sm:$0xf] %vm577_vm2, %v945_v10  ;;  %v946_v16 = vpack.c.bf16 %v500_v11, %v500_v11  ;;  %v459_v17 = vadd.f32 1.0, %v1064_v13  ;;  %1085 = vpow2.f32 %v898_v9 }
 0x10a   : > { %v1068_v19 = vpop.eup %1067  ;;  %578 = vst.msk [vmem:[%s1305_s12] sm:$0xf] %vm577_vm2, %v943_v14  ;;  %v944_v40 = vpack.c.bf16 %v498_v15, %v498_v15  ;;  %v457_v20 = vadd.f32 1.0, %v1066_v35 }
 0x10b   : > { %v1070_v21 = vpop.eup %1069  ;;  %581 = vst.msk [vmem:[%s1305_s12 + $0xc] sm:$0xf] %vm577_vm2, %v946_v16  ;;  %1087 = vrcp.f32 %v459_v17  ;;  %v460_v22 = vadd.f32 1.0, %v1068_v19 }
 0x10c   : > { %v1072_v23 = vpop.eup %1071  ;;  %579 = vst.msk [vmem:[%s1305_s12 + $0x4] sm:$0xf] %vm577_vm2, %v944_v40  ;;  %1089 = vrcp.f32 %v457_v20  ;;  %v458_v45 = vadd.f32 1.0, %v1070_v21 }
 0x10d   : > { %v1074_v25 = vpop.eup %1073  ;;  %v503_v26 = vmul.f32 %v1072_v23, %v1233_v51  ;;  %1091 = vrcp.f32 %v460_v22 }
 0x10e   : > { %v1076_v27 = vpop.eup %1075  ;;  %v501_v30 = vmul.f32 %v1074_v25, %v1236_v55  ;;  %1093 = vrcp.f32 %v458_v45 }
 0x10f   : > { %v1078_v32 = vpop.eup %1077  ;;  %v949_v33 = vpack.c.bf16 %v503_v26, %v503_v26  ;;  %v504_v34 = vmul.f32 %v1076_v27, %v1240_v60 }
 0x110   : > { %v1080_v36 = vpop.eup %1079  ;;  %v947_v37 = vpack.c.bf16 %v501_v30, %v501_v30  ;;  %v502_v38 = vmul.f32 %v1078_v32, %v1246_v1 }
 0x111   : > { %v1082_v39 = vpop.eup %1081  ;;  %584 = vst.msk [vmem:[%s1305_s12 + $0x18] sm:$0xf] %vm577_vm2, %v949_v33  ;;  %v950_v51 = vpack.c.bf16 %v504_v34, %v504_v34  ;;  %v463_v41 = vadd.f32 1.0, %v1080_v36 }
 0x112   : > { %v1084_v42 = vpop.eup %1083  ;;  %582 = vst.msk [vmem:[%s1305_s12 + $0x10] sm:$0xf] %vm577_vm2, %v947_v37  ;;  %v948_v55 = vpack.c.bf16 %v502_v38, %v502_v38  ;;  %v461_v43 = vadd.f32 1.0, %v1082_v39 }
 0x113   : > { %v1086_v46 = vpop.eup %1085  ;;  %585 = vst.msk [vmem:[%s1305_s12 + $0x1c] sm:$0xf] %vm577_vm2, %v950_v51  ;;  %1095 = vrcp.f32 %v463_v41  ;;  %v464_v60 = vadd.f32 1.0, %v1084_v42 }
 0x114   : > { %583 = vst.msk [vmem:[%s1305_s12 + $0x14] sm:$0xf] %vm577_vm2, %v948_v55  ;;  %1097 = vrcp.f32 %v461_v43  ;;  %v462_v1 = vadd.f32 1.0, %v1086_v46 }
 0x115   : > { %v1088_v47 = vpop.eup %1087  ;;  %1099 = vrcp.f32 %v464_v60 }
 0x116   : > { %v1090_v48 = vpop.eup %1089  ;;  %v507_v49 = vmul.f32 %v1088_v47, %v1257_v12  ;;  %1101 = vrcp.f32 %v462_v1 }
 0x117   : > { %v1092_v50 = vpop.eup %1091  ;;  %v505_v53 = vmul.f32 %v1090_v48, %v1260_v18 }
 0x118   : > { %v1094_v54 = vpop.eup %1093  ;;  %v953_v56 = vpack.c.bf16 %v507_v49, %v507_v49  ;;  %v508_v57 = vmul.f32 %v1092_v50, %v1264_v24 }
 0x119   : > { %v951_v58 = vpack.c.bf16 %v505_v53, %v505_v53  ;;  %v506_v61 = vmul.f32 %v1094_v54, %v1270_v29 }
 0x11a   : > { %588 = vst.msk [vmem:[%s1305_s12 + $0x28] sm:$0xf] %vm577_vm2, %v953_v56  ;;  %v954_v62 = vpack.c.bf16 %v508_v57, %v508_v57 }
 0x11b   : > { %586 = vst.msk [vmem:[%s1305_s12 + $0x20] sm:$0xf] %vm577_vm2, %v951_v58  ;;  %v952_v63 = vpack.c.bf16 %v506_v61, %v506_v61 }
 0x11c   : > { %589 = vst.msk [vmem:[%s1305_s12 + $0x2c] sm:$0xf] %vm577_vm2, %v954_v62 }
 0x11d   : > { %v1096_v12 = vpop.eup %1095  ;;  %587 = vst.msk [vmem:[%s1305_s12 + $0x24] sm:$0xf] %vm577_vm2, %v952_v63 }
 0x11e   : > { %v1098_v18 = vpop.eup %1097  ;;  %v511_v24 = vmul.f32 %v1096_v12, %v1281_v44 }
 0x11f   : > { %v1100_v0 = vpop.eup %1099  ;;  %v509_v29 = vmul.f32 %v1098_v18, %v1284_v52 }
 0x120   : > { %v1102_v3 = vpop.eup %1101  ;;  %v957_v4 = vpack.c.bf16 %v511_v24, %v511_v24  ;;  %v512_v5 = vmul.f32 %v1100_v0, %v1288_v59 }
 0x121   : > { %v955_v6 = vpack.c.bf16 %v509_v29, %v509_v29  ;;  %v510_v7 = vmul.f32 %v1102_v3, %v1294_v2 }
 0x122   : > { %592 = vst.msk [vmem:[%s1305_s12 + $0x38] sm:$0xf] %vm577_vm2, %v957_v4  ;;  %v958_v8 = vpack.c.bf16 %v512_v5, %v512_v5 }
 0x123   : > { %590 = vst.msk [vmem:[%s1305_s12 + $0x30] sm:$0xf] %vm577_vm2, %v955_v6  ;;  %v956_v28 = vpack.c.bf16 %v510_v7, %v510_v7 }
 0x124   : > { %593 = vst.msk [vmem:[%s1305_s12 + $0x3c] sm:$0xf] %vm577_vm2, %v958_v8 }
 0x125   : > { %591 = vst.msk [vmem:[%s1305_s12 + $0x34] sm:$0xf] %vm577_vm2, %v956_v28 }
 0x126 PF: > { %s16_s18 = sadd.s32 1, %s1109_s18  }
 0x127   : > { %p13_p4 = scmp.ge.s32.totalorder %s16_s18, 6  }
 0x129   :  { %15 = sbr.rel (!%p13_p4) target bundleno = 1 (0x1), region = 78 }

// kernel: bottleneck_csp_forward.5
= control target key start
LH: loop header
LB: loop body
LE: loop exit
PB: predicated region body
PF: predicated region fallthrough
CT: control target
= control target key end

     0   :  { %s1842_s30 = smov 0   ;;  %s2226_s0 = inlined_call_operand.vmem [shape: bf16[512,4], index: 0, kind: input, shape index: {}]   ;;  %s2227_s1 = inlined_call_operand.vmem [shape: bf16[512,4], index: 1, kind: input, shape index: {}]   ;;  %s2228_s2 = inlined_call_operand.vmem [shape: bf16[4,4], index: 2, kind: input, shape index: {}]   ;;  %s2229_s3 = inlined_call_operand.vmem [shape: f32[1,4], index: 3, kind: input, shape index: {}]   ;;  %s2230_s4 = inlined_call_operand.vmem [shape: f32[1,4], index: 4, kind: input, shape index: {}]   ;;  %s2231_s5 = inlined_call_operand.vmem [shape: f32[1,4], index: 5, kind: input, shape index: {}]   ;;  %s2232_s6 = inlined_call_operand.vmem [shape: bf16[4,8], index: 6, kind: input, shape index: {}]   ;;  %s2233_s7 = inlined_call_operand.vmem [shape: bf16[4,8], index: 7, kind: input, shape index: {}]   ;;  %s2234_s8 = inlined_call_operand.vmem [shape: f32[1,8], index: 8, kind: input, shape index: {}]   ;;  %s2235_s9 = inlined_call_operand.vmem [shape: f32[512,8], index: 9, kind: output, shape index: {}]  }
   0x1 LB: > { %s1337_s10 = sadd.s32 4294967295, %s1790_s30   ;;  %p1341_p0 = scmp.ge.s32.totalorder %s1790_s30, 1  ;;  %s1790_s30 = sphi %s1842_s30, %s19_s30  }
   0x2   : > { %p299_p1 = scmp.lt.s32.totalorder %s1790_s30, 5 }
   0x4   : > { %p300_p2 = pnand %p1341_p0, %p299_p1 }
   0x5   : > { %v375_v0 = vld [vmem:[%s2228_s2] sm:$0x3] (!%p300_p2)  ;;  %vm448_vm0 = vcmask (!%p300_p2), 1041408   ;;  %s1342_s13 = sshll.u32 (!%p300_p2), %s1337_s10, 4  ;;  %vm423_vm1 = vcmask (!%p300_p2), 31744   ;;  %vm1252_vm2 = vcmask (!%p300_p2), 64512  }
   0x6   : > { %303 = sbr.rel (%p300_p2) target bundleno = 539 (0x21b), region = 56  ;;  %1572 = vmatprep.subr.msk.bf16.mxu0 (!%p300_p2), %vm448_vm0, %v375_v0  ;;  %v450_v1 = vsel (!%p300_p2), %vm448_vm0, %v375_v0, 0  ;;  %p341_p3 = scmp.lt.s32.totalorder (!%p300_p2), %s1342_s13, 63  ;;  %v1879_v14 = vld [vmem:[%s2230_s4] ss:$0 sm:$0xff] (!%p300_p2) }
   0x7   : > { %1501 = vmatpush3.bf16.msra.mxu0 (!%p300_p2), %v450_v1  ;;  %v1886_v19 = vld [vmem:[%s2231_s5] ss:$0 sm:$0xff] (!%p300_p2) }
   0xd   : > { %s2237_s13 = smov (!%p341_p3, %s1342_s13), 63 }
   0xe   : > { %s1343_s14 = sshll.u32 %s2237_s13, 2 }
   0xf   : > { %s344_s17 = scalar_lea.vmem %s2226_s0, %s1343_s14  ;;  %s1872_s20 = scalar_lea.vmem %s2227_s1, %s1343_s14 }
  0x10   : > { %v1584_v2 = vld [vmem:[%s344_s17] sm:$0xff]   ;;  %v1585_v3 = vld [vmem:[%s344_s17 + $0x8] sm:$0xff]   ;;  %v1586_v4 = vld [vmem:[%s344_s17 + $0x10] sm:$0xff]   ;;  %s1347_s14 = sshll.u32 %s2237_s13, 3 }
  0x11   : > { %1502 = vmatprep.mubr.msk.bf16.mxu0 %vm423_vm1, %v1584_v2  ;;  %v1587_v5 = vld [vmem:[%s344_s17 + $0x18] sm:$0xff]   ;;  %v1588_v6 = vld [vmem:[%s344_s17 + $0x20] sm:$0xff]   ;;  %v1589_v7 = vld [vmem:[%s344_s17 + $0x28] sm:$0xff]   ;;  %s2171_s16 = scalar_lea.vmem %s2235_s9, %s1347_s14 }
  0x12   : > { %1503 = vmatmul.mubr.msk.bf16.vlgmr.msra.gmra.mrb[0].mxu0 %vm423_vm1, %v1585_v3  ;;  %v1590_v8 = vld [vmem:[%s344_s17 + $0x30] sm:$0xff]   ;;  %v1591_v9 = vld [vmem:[%s344_s17 + $0x38] sm:$0xff]   ;;  %v1469_v10 = vld [vmem:[%s1872_s20 + $0x20] sm:$0xff]  }
  0x13   : > { %1506 = vmatprep.mubr.msk.bf16.mxu0 %vm423_vm1, %v1586_v4  ;;  %v1452_v11 = vunpack.c.l.bf16 %v1469_v10  ;;  %v1453_v12 = vunpack.c.h.bf16 %v1469_v10  ;;  %v1470_v13 = vld [vmem:[%s1872_s20 + $0x28] sm:$0xff]   ;;  %v1471_v30 = vld [vmem:[%s1872_s20 + $0x30] sm:$0xff]   ;;  %v1472_v33 = vld [vmem:[%s1872_s20 + $0x38] sm:$0xff]  }
  0x14   : > { %v1456_v15 = vunpack.c.l.bf16 %v1470_v13  ;;  %v1457_v16 = vunpack.c.h.bf16 %v1470_v13  ;;  %v1460_v31 = vunpack.c.l.bf16 %v1471_v30  ;;  %v1461_v32 = vunpack.c.h.bf16 %v1471_v30  ;;  %v1435_v48 = vld [vmem:[%s1872_s20] sm:$0xff]   ;;  %v1466_v49 = vld [vmem:[%s1872_s20 + $0x8] sm:$0xff]  }
  0x15   : > { %v708_v17 = vmul.f32 %v1452_v11, %v1879_v14  ;;  %v709_v18 = vmul.f32 %v1453_v12, %v1879_v14  ;;  %v1464_v34 = vunpack.c.l.bf16 %v1472_v33  ;;  %v1465_v35 = vunpack.c.h.bf16 %v1472_v33  ;;  %v1468_v12 = vld [vmem:[%s1872_s20 + $0x18] sm:$0xff]  }
  0x16   : > { %v710_v20 = vmul.f32 %v1456_v15, %v1879_v14  ;;  %v711_v21 = vmul.f32 %v1457_v16, %v1879_v14  ;;  %v712_v36 = vmul.f32 %v1460_v31, %v1879_v14  ;;  %v713_v37 = vmul.f32 %v1461_v32, %v1879_v14 }
  0x17   : > { %v1891_v22 = vadd.f32 %v1886_v19, %v708_v17  ;;  %v1894_v23 = vadd.f32 %v1886_v19, %v709_v18  ;;  %v714_v38 = vmul.f32 %v1464_v34, %v1879_v14  ;;  %v715_v39 = vmul.f32 %v1465_v35, %v1879_v14 }
  0x18   : > { %v1897_v24 = vadd.f32 %v1886_v19, %v710_v20  ;;  %v1900_v25 = vadd.f32 %v1886_v19, %v711_v21  ;;  %v1913_v40 = vadd.f32 %v1886_v19, %v712_v36  ;;  %v1916_v41 = vadd.f32 %v1886_v19, %v713_v37 }
  0x19   : > { %v1391_v26 = vmul.f32 -1.442695, %v1891_v22  ;;  %v1392_v27 = vmul.f32 -1.442695, %v1894_v23  ;;  %v1919_v42 = vadd.f32 %v1886_v19, %v714_v38  ;;  %v1922_v43 = vadd.f32 %v1886_v19, %v715_v39 }
  0x1a   : > { %1507 = vmatmul.mubr.msk.bf16.gmra.mrb[4].mxu0 %vm423_vm1, %v1587_v5  ;;  %v1393_v28 = vmul.f32 -1.442695, %v1897_v24  ;;  %v1394_v29 = vmul.f32 -1.442695, %v1900_v25  ;;  %v1395_v44 = vmul.f32 -1.442695, %v1913_v40  ;;  %v1436_v50 = vunpack.c.l.bf16 %v1435_v48 }
  0x1b   : > { %1510 = vmatprep.mubr.msk.bf16.mxu0 %vm423_vm1, %v1588_v6  ;;  %1592 = vpow2.f32 %v1391_v26  ;;  %v1396_v45 = vmul.f32 -1.442695, %v1916_v41  ;;  %v1397_v46 = vmul.f32 -1.442695, %v1919_v42  ;;  %v1398_v47 = vmul.f32 -1.442695, %v1922_v43 }
  0x1c   : > { %1594 = vpow2.f32 %v1392_v27  ;;  %v1437_v51 = vunpack.c.h.bf16 %v1435_v48  ;;  %v1440_v52 = vunpack.c.l.bf16 %v1466_v49  ;;  %v1441_v54 = vunpack.c.h.bf16 %v1466_v49 }
  0x1d   : > { %1596 = vpow2.f32 %v1393_v28  ;;  %v700_v57 = vmul.f32 %v1436_v50, %v1879_v14  ;;  %v1448_v15 = vunpack.c.l.bf16 %v1468_v12  ;;  %v1449_v16 = vunpack.c.h.bf16 %v1468_v12 }
  0x1e   : > { %1598 = vpow2.f32 %v1394_v29  ;;  %v701_v58 = vmul.f32 %v1437_v51, %v1879_v14  ;;  %v702_v61 = vmul.f32 %v1440_v52, %v1879_v14  ;;  %v703_v62 = vmul.f32 %v1441_v54, %v1879_v14 }
  0x1f   : > { %1600 = vpow2.f32 %v1395_v44  ;;  %v1935_v1 = vadd.f32 %v1886_v19, %v700_v57  ;;  %v706_v27 = vmul.f32 %v1448_v15, %v1879_v14  ;;  %v707_v31 = vmul.f32 %v1449_v16, %v1879_v14 }
  0x20   : > { %1602 = vpow2.f32 %v1396_v45  ;;  %v1938_v2 = vadd.f32 %v1886_v19, %v701_v58  ;;  %v1941_v4 = vadd.f32 %v1886_v19, %v702_v61  ;;  %v1944_v5 = vadd.f32 %v1886_v19, %v703_v62 }
  0x21   : > { %1604 = vpow2.f32 %v1397_v46  ;;  %v1383_v6 = vmul.f32 -1.442695, %v1935_v1  ;;  %v1963_v35 = vadd.f32 %v1886_v19, %v706_v27  ;;  %v1967_v38 = vadd.f32 %v1886_v19, %v707_v31  ;;  %v868_v46 = vld [vmem:[%s2233_s7] sm:$0x3] }
  0x22   : > { %1511 = vmatmul.mubr.msk.bf16.gmra.mrb[8].mxu0 %vm423_vm1, %v1589_v7  ;;  %1606 = vpow2.f32 %v1398_v47  ;;  %v1384_v7 = vmul.f32 -1.442695, %v1938_v2  ;;  %v1386_v10 = vmul.f32 -1.442695, %v1944_v5  ;;  %1574 = vmatprep.subr.msk.bf16.mxu1 %vm448_vm0, %v868_v46 }
  0x23   : > { %1514 = vmatprep.mubr.msk.bf16.mxu0 %vm423_vm1, %v1590_v8  ;;  %v1467_v8 = vld [vmem:[%s1872_s20 + $0x10] sm:$0xff]   ;;  %v1389_v44 = vmul.f32 -1.442695, %v1963_v35  ;;  %v1390_v48 = vmul.f32 -1.442695, %v1967_v38  ;;  %1573 = vmatprep.subr.msk.bf16.mxu0 %vm448_vm0, %v868_v46 }
  0x24   : > { %v1444_v11 = vunpack.c.l.bf16 %v1467_v8  ;;  %v1445_v13 = vunpack.c.h.bf16 %v1467_v8 }
  0x25   : > { %v1593_v53 = vpop.eup %1592 }
  0x26   : > { %v1595_v55 = vpop.eup %1594  ;;  %v795_v56 = vadd.f32 1.0, %v1593_v53  ;;  %v704_v18 = vmul.f32 %v1444_v11, %v1879_v14  ;;  %v705_v26 = vmul.f32 %v1445_v13, %v1879_v14 }
  0x27   : > { %v1597_v59 = vpop.eup %1596  ;;  %v796_v60 = vadd.f32 1.0, %v1595_v55 }
  0x28   : > { %v1599_v63 = vpop.eup %1598  ;;  %1608 = vrcp.f32 %v795_v56  ;;  %v797_v0 = vadd.f32 1.0, %v1597_v59  ;;  %v1956_v30 = vadd.f32 %v1886_v19, %v704_v18  ;;  %v1960_v34 = vadd.f32 %v1886_v19, %v705_v26 }
  0x29   : > { %1610 = vrcp.f32 %v796_v60  ;;  %v798_v3 = vadd.f32 1.0, %v1599_v63  ;;  %v1601_v17 = vpop.eup %1600  ;;  %v894_v19 = vsel %vm448_vm0, %v868_v46, 0 }
  0x2a   : > { %1515 = vmatmul.mubr.msk.bf16.gmra.mrb[12].mxu0 %vm423_vm1, %v1591_v9  ;;  %1612 = vrcp.f32 %v797_v0  ;;  %v1385_v9 = vmul.f32 -1.442695, %v1941_v4  ;;  %v1603_v20 = vpop.eup %1602  ;;  %v799_v21 = vadd.f32 1.0, %v1601_v17  ;;  %v1387_v37 = vmul.f32 -1.442695, %v1956_v30  ;;  %1555 = vmatpush3.bf16.msra.mxu1 %v894_v19 }
  0x2b   : > { %1614 = vrcp.f32 %v798_v3  ;;  %v1605_v28 = vpop.eup %1604  ;;  %v800_v29 = vadd.f32 1.0, %v1603_v20  ;;  %v1388_v14 = vmul.f32 -1.442695, %v1960_v34  ;;  %1519 = vmatpush3.bf16.msra.mxu0 %v894_v19 }
  0x2c   : > { %1616 = vpow2.f32 %v1383_v6  ;;  %v1607_v32 = vpop.eup %1606  ;;  %v801_v33 = vadd.f32 1.0, %v1605_v28 }
  0x2d   : > { %1618 = vpow2.f32 %v1384_v7  ;;  %v802_v36 = vadd.f32 1.0, %v1607_v32 }
  0x2e   : > { %1620 = vpow2.f32 %v1385_v9 }
  0x2f   : > { %1622 = vpow2.f32 %v1386_v10 }
  0x30   : > { %1624 = vrcp.f32 %v799_v21 }
  0x31   : > { %1626 = vrcp.f32 %v800_v29 }
  0x32   : > { %v1609_v39 = vpop.eup %1608  ;;  %1628 = vrcp.f32 %v801_v33 }
  0x33   : > { %v1611_v45 = vpop.eup %1610  ;;  %v843_v47 = vmul.f32 %v1609_v39, %v1891_v22  ;;  %1630 = vrcp.f32 %v802_v36 }
  0x34   : > { %v1613_v49 = vpop.eup %1612  ;;  %v844_v50 = vmul.f32 %v1611_v45, %v1894_v23  ;;  %1632 = vpow2.f32 %v1387_v37  ;;  %v2010_v45 = vld [vmem:[%s2229_s3] ss:$0 sm:$0xff] }
  0x35   : > { %v1615_v51 = vpop.eup %1614  ;;  %v845_v52 = vmul.f32 %v1613_v49, %v1897_v24  ;;  %1634 = vpow2.f32 %v1388_v14 }
  0x36   : > { %v1617_v22 = vpop.eup %1616  ;;  %v864_v53 = vpack.c.bf16 %v844_v50, %v843_v47  ;;  %v846_v54 = vmul.f32 %v1615_v51, %v1900_v25  ;;  %1636 = vpow2.f32 %v1389_v44 }
  0x37   : > { %v1619_v55 = vpop.eup %1618  ;;  %v787_v56 = vadd.f32 1.0, %v1617_v22  ;;  %1638 = vpow2.f32 %v1390_v48 }
  0x38   : > { %v1621_v57 = vpop.eup %1620  ;;  %1528 = vmatprep.mubr.msk.bf16.mxu1 %vm423_vm1, %v864_v53  ;;  %v865_v58 = vpack.c.bf16 %v846_v54, %v845_v52  ;;  %v788_v23 = vadd.f32 1.0, %v1619_v55 }
  0x39   : > { %v1623_v59 = vpop.eup %1622  ;;  %1640 = vrcp.f32 %v787_v56  ;;  %v789_v60 = vadd.f32 1.0, %v1621_v57 }
  0x3a   : > { %v1625_v61 = vpop.eup %1624  ;;  %1529 = vmatmul.mubr.msk.bf16.vlgmr.msra.gmra.mrb[0].mxu1 %vm423_vm1, %v865_v58  ;;  %1642 = vrcp.f32 %v788_v23  ;;  %v790_v24 = vadd.f32 1.0, %v1623_v59 }
  0x3b   : > { %v1627_v62 = vpop.eup %1626  ;;  %v847_v25 = vmul.f32 %v1625_v61, %v1913_v40  ;;  %1644 = vrcp.f32 %v789_v60 }
  0x3c   : > { %v1629_v63 = vpop.eup %1628  ;;  %v848_v0 = vmul.f32 %v1627_v62, %v1916_v41  ;;  %1646 = vrcp.f32 %v790_v24 }
  0x3d   : > { %v1631_v3 = vpop.eup %1630  ;;  %v849_v6 = vmul.f32 %v1629_v63, %v1919_v42  ;;  %v859_v42 = vld [vmem:[%s2232_s6] sm:$0x3] }
  0x3e   : > { %v1633_v7 = vpop.eup %1632  ;;  %v866_v8 = vpack.c.bf16 %v848_v0, %v847_v25  ;;  %v850_v9 = vmul.f32 %v1631_v3, %v1922_v43  ;;  %1575 = vmatprep.subr.msk.bf16.mxu1 %vm448_vm0, %v859_v42  ;;  %v1018_v18 = vsel %vm448_vm0, %v859_v42, 0 }
  0x3f   : > { %v1635_v10 = vpop.eup %1634  ;;  %v791_v11 = vadd.f32 1.0, %v1633_v7  ;;  %1537 = vmatpush3.bf16.msra.mxu1 %v1018_v18 }
  0x40   : > { %v1637_v12 = vpop.eup %1636  ;;  %1532 = vmatprep.mubr.msk.bf16.mxu1 %vm423_vm1, %v866_v8  ;;  %v867_v13 = vpack.c.bf16 %v850_v9, %v849_v6  ;;  %v792_v15 = vadd.f32 1.0, %v1635_v10 }
  0x41   : > { %v1639_v40 = vpop.eup %1638  ;;  %1648 = vrcp.f32 %v791_v11  ;;  %v793_v16 = vadd.f32 1.0, %v1637_v12 }
  0x42   : > { %1533 = vmatmul.mubr.msk.bf16.gmra.mrb[4].mxu1 %vm423_vm1, %v867_v13  ;;  %1650 = vrcp.f32 %v792_v15  ;;  %v794_v41 = vadd.f32 1.0, %v1639_v40 }
  0x43   : > { %v1641_v17 = vpop.eup %1640  ;;  %1652 = vrcp.f32 %v793_v16 }
  0x44   : > { %v1643_v43 = vpop.eup %1642  ;;  %v835_v20 = vmul.f32 %v1641_v17, %v1935_v1  ;;  %1654 = vrcp.f32 %v794_v41 }
  0x45   : > { %v1645_v21 = vpop.eup %1644  ;;  %v836_v26 = vmul.f32 %v1643_v43, %v1938_v2 }
  0x46   : > { %v1647_v27 = vpop.eup %1646  ;;  %v837_v28 = vmul.f32 %v1645_v21, %v1941_v4 }
  0x47   : > { %v860_v29 = vpack.c.bf16 %v836_v26, %v835_v20  ;;  %v838_v31 = vmul.f32 %v1647_v27, %v1944_v5 }
  0x49   : > { %1520 = vmatprep.mubr.msk.bf16.mxu0 %vm423_vm1, %v860_v29  ;;  %v861_v32 = vpack.c.bf16 %v838_v31, %v837_v28 }
  0x4b   : > { %v1649_v33 = vpop.eup %1648  ;;  %1521 = vmatmul.mubr.msk.bf16.vlgmr.msra.gmra.mrb[16].mxu0 %vm423_vm1, %v861_v32 }
  0x4c   : > { %v1651_v36 = vpop.eup %1650  ;;  %v839_v1 = vmul.f32 %v1649_v33, %v1956_v30 }
  0x4d   : > { %v1653_v37 = vpop.eup %1652  ;;  %v840_v39 = vmul.f32 %v1651_v36, %v1960_v34 }
  0x4e   : > { %v1655_v14 = vpop.eup %1654  ;;  %v841_v2 = vmul.f32 %v1653_v37, %v1963_v35 }
  0x4f   : > { %v862_v44 = vpack.c.bf16 %v840_v39, %v839_v1  ;;  %v842_v4 = vmul.f32 %v1655_v14, %v1967_v38 }
  0x51   : > { %1524 = vmatprep.mubr.msk.bf16.mxu0 %vm423_vm1, %v862_v44  ;;  %v863_v5 = vpack.c.bf16 %v842_v4, %v841_v2 }
  0x53   : > { %1525 = vmatmul.mubr.msk.bf16.gmra.mrb[20].mxu0 %vm423_vm1, %v863_v5 }
  0xe5   : > { %v1504_v30 = vpop.f32.mrb[0].mxu0 }
  0xe6   : > { %v2013_v46 = vadd.f32 %v1504_v30, %v2010_v45  ;;  %v486_v34 = vpop.f32.mrb[1].mxu0 }
  0xe7   : > { %v2016_v35 = vadd.f32 %v2010_v45, %v486_v34  ;;  %v1505_v47 = vpop.f32.mrb[2].mxu0 }
  0xe8   : > { %v1367_v38 = vmul.f32 -1.442695, %v2013_v46  ;;  %v2020_v48 = vadd.f32 %v1505_v47, %v2010_v45  ;;  %v489_v49 = vpop.f32.mrb[3].mxu0 }
  0xe9   : > { %v1365_v19 = vmul.f32 -1.442695, %v2016_v35  ;;  %v2024_v50 = vadd.f32 %v2010_v45, %v489_v49 }
  0xea   : > { %1656 = vpow2.f32 %v1367_v38  ;;  %v1368_v51 = vmul.f32 -1.442695, %v2020_v48 }
  0xeb   : > { %1658 = vpow2.f32 %v1365_v19  ;;  %v1366_v52 = vmul.f32 -1.442695, %v2024_v50 }
  0xec   : > { %1660 = vpow2.f32 %v1368_v51 }
  0xed   : > { %1662 = vpow2.f32 %v1366_v52  ;;  %v1508_v22 = vpop.f32.mrb[4].mxu0 }
  0xee   : > { %v2029_v53 = vadd.f32 %v1508_v22, %v2010_v45  ;;  %v502_v54 = vpop.f32.mrb[5].mxu0 }
  0xef   : > { %v2032_v55 = vadd.f32 %v2010_v45, %v502_v54  ;;  %v1509_v56 = vpop.f32.mrb[6].mxu0 }
  0xf0   : > { %v1371_v57 = vmul.f32 -1.442695, %v2029_v53  ;;  %v2036_v58 = vadd.f32 %v1509_v56, %v2010_v45  ;;  %v505_v23 = vpop.f32.mrb[7].mxu0 }
  0xf1   : > { %v1369_v59 = vmul.f32 -1.442695, %v2032_v55  ;;  %v2040_v60 = vadd.f32 %v2010_v45, %v505_v23 }
  0xf2   : > { %1664 = vpow2.f32 %v1371_v57  ;;  %v1372_v61 = vmul.f32 -1.442695, %v2036_v58 }
  0xf3   : > { %1666 = vpow2.f32 %v1369_v59  ;;  %v1370_v24 = vmul.f32 -1.442695, %v2040_v60 }
  0xf4   : > { %v1657_v62 = vpop.eup %1656  ;;  %1668 = vpow2.f32 %v1372_v61 }
  0xf5   : > { %v1659_v25 = vpop.eup %1658  ;;  %v599_v63 = vadd.f32 1.0, %v1657_v62  ;;  %1670 = vpow2.f32 %v1370_v24  ;;  %v1512_v0 = vpop.f32.mrb[8].mxu0 }
  0xf6   : > { %v1661_v3 = vpop.eup %1660  ;;  %v597_v6 = vadd.f32 1.0, %v1659_v25  ;;  %v2045_v7 = vadd.f32 %v1512_v0, %v2010_v45  ;;  %v518_v8 = vpop.f32.mrb[9].mxu0 }
  0xf7   : > { %v1663_v9 = vpop.eup %1662  ;;  %1672 = vrcp.f32 %v599_v63  ;;  %v600_v10 = vadd.f32 1.0, %v1661_v3  ;;  %v2048_v11 = vadd.f32 %v2010_v45, %v518_v8  ;;  %v1513_v12 = vpop.f32.mrb[10].mxu0 }
  0xf8   : > { %1674 = vrcp.f32 %v597_v6  ;;  %v598_v13 = vadd.f32 1.0, %v1663_v9  ;;  %v1375_v15 = vmul.f32 -1.442695, %v2045_v7  ;;  %v2052_v40 = vadd.f32 %v1513_v12, %v2010_v45  ;;  %v521_v16 = vpop.f32.mrb[11].mxu0 }
  0xf9   : > { %1676 = vrcp.f32 %v600_v10  ;;  %v1373_v41 = vmul.f32 -1.442695, %v2048_v11  ;;  %v2056_v17 = vadd.f32 %v2010_v45, %v521_v16 }
  0xfa   : > { %1678 = vrcp.f32 %v598_v13  ;;  %v1376_v42 = vmul.f32 -1.442695, %v2052_v40 }
  0xfb   : > { %1680 = vpow2.f32 %v1375_v15  ;;  %v1374_v43 = vmul.f32 -1.442695, %v2056_v17 }
  0xfc   : > { %v1665_v18 = vpop.eup %1664  ;;  %1682 = vpow2.f32 %v1373_v41 }
  0xfd   : > { %v1667_v20 = vpop.eup %1666  ;;  %v603_v21 = vadd.f32 1.0, %v1665_v18  ;;  %1684 = vpow2.f32 %v1376_v42  ;;  %v1516_v26 = vpop.f32.mrb[12].mxu0 }
  0xfe   : > { %v1669_v27 = vpop.eup %1668  ;;  %v601_v28 = vadd.f32 1.0, %v1667_v20  ;;  %1686 = vpow2.f32 %v1374_v43  ;;  %v2061_v29 = vadd.f32 %v1516_v26, %v2010_v45  ;;  %v534_v31 = vpop.f32.mrb[13].mxu0 }
  0xff   : > { %v1671_v32 = vpop.eup %1670  ;;  %1688 = vrcp.f32 %v603_v21  ;;  %v604_v33 = vadd.f32 1.0, %v1669_v27  ;;  %v2064_v36 = vadd.f32 %v2010_v45, %v534_v31  ;;  %v1517_v1 = vpop.f32.mrb[14].mxu0 }
 0x100   : > { %1690 = vrcp.f32 %v601_v28  ;;  %v602_v37 = vadd.f32 1.0, %v1671_v32  ;;  %v1379_v39 = vmul.f32 -1.442695, %v2061_v29  ;;  %v2068_v14 = vadd.f32 %v1517_v1, %v2010_v45  ;;  %v537_v2 = vpop.f32.mrb[15].mxu0 }
 0x101   : > { %v1673_v44 = vpop.eup %1672  ;;  %1692 = vrcp.f32 %v604_v33  ;;  %v1377_v4 = vmul.f32 -1.442695, %v2064_v36  ;;  %v2072_v5 = vadd.f32 %v2010_v45, %v537_v2 }
 0x102   : > { %v1675_v30 = vpop.eup %1674  ;;  %1694 = vrcp.f32 %v602_v37  ;;  %v1380_v34 = vmul.f32 -1.442695, %v2068_v14  ;;  %v647_v19 = vmul.f32 %v1673_v44, %v2013_v46 }
 0x103   : > { %v1677_v47 = vpop.eup %1676  ;;  %1696 = vpow2.f32 %v1379_v39  ;;  %v1378_v38 = vmul.f32 -1.442695, %v2072_v5  ;;  %v645_v22 = vmul.f32 %v1675_v30, %v2016_v35 }
 0x104   : > { %v1679_v49 = vpop.eup %1678  ;;  %v648_v51 = vmul.f32 %v1677_v47, %v2020_v48  ;;  %1698 = vpow2.f32 %v1377_v4 }
 0x105   : > { %v1681_v52 = vpop.eup %1680  ;;  %v646_v45 = vmul.f32 %v1679_v49, %v2024_v50  ;;  %1700 = vpow2.f32 %v1380_v34 }
 0x106   : > { %v1683_v54 = vpop.eup %1682  ;;  %v852_v56 = vpack.c.bf16 %v648_v51, %v647_v19  ;;  %v607_v57 = vadd.f32 1.0, %v1681_v52  ;;  %1702 = vpow2.f32 %v1378_v38 }
 0x107   : > { %v1685_v23 = vpop.eup %1684  ;;  %v851_v59 = vpack.c.bf16 %v646_v45, %v645_v22  ;;  %v605_v61 = vadd.f32 1.0, %v1683_v54 }
 0x108   : > { %v1687_v24 = vpop.eup %1686  ;;  %1704 = vrcp.f32 %v607_v57  ;;  %v608_v62 = vadd.f32 1.0, %v1685_v23 }
 0x109   : > { %v1689_v46 = vpop.eup %1688  ;;  %1706 = vrcp.f32 %v605_v61  ;;  %v606_v48 = vadd.f32 1.0, %v1687_v24  ;;  %1538 = vmatprep.mubr.msk.bf16.mxu1 %vm423_vm1, %v851_v59 }
 0x10a   : > { %v1691_v25 = vpop.eup %1690  ;;  %1708 = vrcp.f32 %v608_v62  ;;  %1539 = vmatmul.mubr.msk.bf16.vlgmr.msra.gmra.mrb[8].mxu1 %vm423_vm1, %v852_v56  ;;  %v651_v63 = vmul.f32 %v1689_v46, %v2029_v53 }
 0x10b   : > { %v1693_v35 = vpop.eup %1692  ;;  %1710 = vrcp.f32 %v606_v48  ;;  %v649_v6 = vmul.f32 %v1691_v25, %v2032_v55 }
 0x10c   : > { %v1695_v50 = vpop.eup %1694  ;;  %v652_v0 = vmul.f32 %v1693_v35, %v2036_v58 }
 0x10d   : > { %v1697_v3 = vpop.eup %1696  ;;  %v650_v8 = vmul.f32 %v1695_v50, %v2040_v60 }
 0x10e   : > { %v1699_v9 = vpop.eup %1698  ;;  %v854_v10 = vpack.c.bf16 %v652_v0, %v651_v63  ;;  %v611_v12 = vadd.f32 1.0, %v1697_v3 }
 0x10f   : > { %v1701_v13 = vpop.eup %1700  ;;  %v853_v15 = vpack.c.bf16 %v650_v8, %v649_v6  ;;  %v609_v16 = vadd.f32 1.0, %v1699_v9 }
 0x110   : > { %v1703_v41 = vpop.eup %1702  ;;  %1712 = vrcp.f32 %v611_v12  ;;  %v612_v42 = vadd.f32 1.0, %v1701_v13 }
 0x111   : > { %1714 = vrcp.f32 %v609_v16  ;;  %v610_v43 = vadd.f32 1.0, %v1703_v41  ;;  %1542 = vmatprep.mubr.msk.bf16.mxu1 %vm423_vm1, %v853_v15 }
 0x112   : > { %v1705_v53 = vpop.eup %1704  ;;  %1716 = vrcp.f32 %v612_v42  ;;  %1543 = vmatmul.mubr.msk.bf16.gmra.mrb[12].mxu1 %vm423_vm1, %v854_v10 }
 0x113   : > { %v1707_v55 = vpop.eup %1706  ;;  %1718 = vrcp.f32 %v610_v43  ;;  %v655_v18 = vmul.f32 %v1705_v53, %v2045_v7 }
 0x114   : > { %v1709_v58 = vpop.eup %1708  ;;  %v653_v21 = vmul.f32 %v1707_v55, %v2048_v11 }
 0x115   : > { %v1711_v60 = vpop.eup %1710  ;;  %v656_v20 = vmul.f32 %v1709_v58, %v2052_v40 }
 0x116   : > { %v654_v26 = vmul.f32 %v1711_v60, %v2056_v17 }
 0x117   : > { %v856_v27 = vpack.c.bf16 %v656_v20, %v655_v18 }
 0x118   : > { %v855_v28 = vpack.c.bf16 %v654_v26, %v653_v21 }
 0x11a   : > { %v1713_v31 = vpop.eup %1712  ;;  %1546 = vmatprep.mubr.msk.bf16.mxu1 %vm423_vm1, %v855_v28 }
 0x11b   : > { %v1715_v32 = vpop.eup %1714  ;;  %1547 = vmatmul.mubr.msk.bf16.gmra.mrb[0].mxu1 %vm423_vm1, %v856_v27  ;;  %v659_v37 = vmul.f32 %v1713_v31, %v2061_v29 }
 0x11c   : > { %v1717_v33 = vpop.eup %1716  ;;  %v657_v40 = vmul.f32 %v1715_v32, %v2064_v36  ;;  %v2103_v36 = vld [vmem:[%s2234_s8] ss:$0 sm:$0xff] }
 0x11d   : > { %v1719_v1 = vpop.eup %1718  ;;  %v660_v7 = vmul.f32 %v1717_v33, %v2068_v14 }
 0x11e   : > { %v658_v11 = vmul.f32 %v1719_v1, %v2072_v5  ;;  %v1522_v2 = vpop.f32.mrb[16].mxu0 }
 0x11f   : > { %v858_v39 = vpack.c.bf16 %v660_v7, %v659_v37  ;;  %v930_v44 = vpop.f32.mrb[17].mxu0 }
 0x120   : > { %v857_v17 = vpack.c.bf16 %v658_v11, %v657_v40  ;;  %v1523_v4 = vpop.f32.mrb[18].mxu0 }
 0x121   : > { %v933_v30 = vpop.f32.mrb[19].mxu0 }
 0x122   : > { %1550 = vmatprep.mubr.msk.bf16.mxu1 %vm423_vm1, %v857_v17 }
 0x123   : > { %1551 = vmatmul.mubr.msk.bf16.gmra.mrb[4].mxu1 %vm423_vm1, %v858_v39 }
 0x126   : > { %v1526_v34 = vpop.f32.mrb[20].mxu0 }
 0x127   : > { %v946_v47 = vpop.f32.mrb[21].mxu0 }
 0x128   : > { %v1527_v38 = vpop.f32.mrb[22].mxu0 }
 0x129   : > { %v949_v29 = vpop.f32.mrb[23].mxu0 }
 0x1dd   : > { %v1540_v49 = vpop.f32.mrb[8].mxu1 }
 0x1de   : > { %v1063_v14 = vadd.f32 %v1540_v49, %v1522_v2  ;;  %v1054_v5 = vpop.f32.mrb[9].mxu1 }
 0x1df   : > { %v1055_v19 = vadd.f32 %v1054_v5, %v930_v44  ;;  %v1541_v51 = vpop.f32.mrb[10].mxu1 }
 0x1e0   : > { %v2106_v52 = vadd.f32 %v2103_v36, %v1063_v14  ;;  %v1066_v22 = vadd.f32 %v1541_v51, %v1523_v4  ;;  %v1057_v45 = vpop.f32.mrb[11].mxu1 }
 0x1e1   : > { %v2109_v54 = vadd.f32 %v2103_v36, %v1055_v19  ;;  %v1058_v56 = vadd.f32 %v1057_v45, %v933_v30 }
 0x1e2   : > { %v1418_v57 = vmul.f32 -1.442695, %v2106_v52  ;;  %v2113_v23 = vadd.f32 %v2103_v36, %v1066_v22 }
 0x1e3   : > { %v1416_v59 = vmul.f32 -1.442695, %v2109_v54  ;;  %v2117_v61 = vadd.f32 %v2103_v36, %v1058_v56 }
 0x1e4   : > { %1720 = vpow2.f32 %v1418_v57  ;;  %v1419_v24 = vmul.f32 -1.442695, %v2113_v23 }
 0x1e5   : > { %1722 = vpow2.f32 %v1416_v59  ;;  %v1417_v62 = vmul.f32 -1.442695, %v2117_v61  ;;  %v1544_v46 = vpop.f32.mrb[12].mxu1 }
 0x1e6   : > { %1724 = vpow2.f32 %v1419_v24  ;;  %v1079_v48 = vadd.f32 %v1544_v46, %v1526_v34  ;;  %v1070_v25 = vpop.f32.mrb[13].mxu1 }
 0x1e7   : > { %1726 = vpow2.f32 %v1417_v62  ;;  %v1071_v35 = vadd.f32 %v1070_v25, %v946_v47  ;;  %v1545_v50 = vpop.f32.mrb[14].mxu1 }
 0x1e8   : > { %v2122_v63 = vadd.f32 %v2103_v36, %v1079_v48  ;;  %v1082_v0 = vadd.f32 %v1545_v50, %v1527_v38  ;;  %v1073_v3 = vpop.f32.mrb[15].mxu1 }
 0x1e9   : > { %v2125_v6 = vadd.f32 %v2103_v36, %v1071_v35  ;;  %v1074_v8 = vadd.f32 %v1073_v3, %v949_v29 }
 0x1ea   : > { %v1422_v9 = vmul.f32 -1.442695, %v2122_v63  ;;  %v2129_v10 = vadd.f32 %v2103_v36, %v1082_v0 }
 0x1eb   : > { %v1420_v12 = vmul.f32 -1.442695, %v2125_v6  ;;  %v2133_v13 = vadd.f32 %v2103_v36, %v1074_v8 }
 0x1ec   : > { %1728 = vpow2.f32 %v1422_v9  ;;  %v1423_v15 = vmul.f32 -1.442695, %v2129_v10 }
 0x1ed   : > { %1730 = vpow2.f32 %v1420_v12  ;;  %v1421_v16 = vmul.f32 -1.442695, %v2133_v13 }
 0x1ee   : > { %v1721_v41 = vpop.eup %1720  ;;  %1732 = vpow2.f32 %v1423_v15  ;;  %v1548_v42 = vpop.f32.mrb[0].mxu1 }
 0x1ef   : > { %v1723_v43 = vpop.eup %1722  ;;  %v1190_v53 = vadd.f32 1.0, %v1721_v41  ;;  %1734 = vpow2.f32 %v1421_v16  ;;  %v2138_v55 = vadd.f32 %v1548_v42, %v2103_v36  ;;  %v1086_v58 = vpop.f32.mrb[1].mxu1 }
 0x1f0   : > { %v1725_v60 = vpop.eup %1724  ;;  %v1188_v18 = vadd.f32 1.0, %v1723_v43  ;;  %v2141_v20 = vadd.f32 %v2103_v36, %v1086_v58  ;;  %v1549_v21 = vpop.f32.mrb[2].mxu1 }
 0x1f1   : > { %v1727_v26 = vpop.eup %1726  ;;  %1736 = vrcp.f32 %v1190_v53  ;;  %v1191_v27 = vadd.f32 1.0, %v1725_v60  ;;  %v1426_v28 = vmul.f32 -1.442695, %v2138_v55  ;;  %v2145_v31 = vadd.f32 %v1549_v21, %v2103_v36  ;;  %v1089_v32 = vpop.f32.mrb[3].mxu1 }
 0x1f2   : > { %1738 = vrcp.f32 %v1188_v18  ;;  %v1189_v33 = vadd.f32 1.0, %v1727_v26  ;;  %v1424_v1 = vmul.f32 -1.442695, %v2141_v20  ;;  %v2149_v37 = vadd.f32 %v2103_v36, %v1089_v32 }
 0x1f3   : > { %1740 = vrcp.f32 %v1191_v27  ;;  %v1427_v7 = vmul.f32 -1.442695, %v2145_v31 }
 0x1f4   : > { %1742 = vrcp.f32 %v1189_v33  ;;  %v1425_v40 = vmul.f32 -1.442695, %v2149_v37 }
 0x1f5   : > { %1744 = vpow2.f32 %v1426_v28 }
 0x1f6   : > { %v1729_v11 = vpop.eup %1728  ;;  %1746 = vpow2.f32 %v1424_v1  ;;  %v1552_v39 = vpop.f32.mrb[4].mxu1 }
 0x1f7   : > { %v1731_v17 = vpop.eup %1730  ;;  %v1194_v2 = vadd.f32 1.0, %v1729_v11  ;;  %1748 = vpow2.f32 %v1427_v7  ;;  %v2154_v44 = vadd.f32 %v1552_v39, %v2103_v36  ;;  %v1102_v4 = vpop.f32.mrb[5].mxu1 }
 0x1f8   : > { %v1733_v30 = vpop.eup %1732  ;;  %v1192_v34 = vadd.f32 1.0, %v1731_v17  ;;  %1750 = vpow2.f32 %v1425_v40  ;;  %v2158_v47 = vadd.f32 %v2103_v36, %v1102_v4  ;;  %v1553_v38 = vpop.f32.mrb[6].mxu1 }
 0x1f9   : > { %v1735_v29 = vpop.eup %1734  ;;  %1752 = vrcp.f32 %v1194_v2  ;;  %v1195_v49 = vadd.f32 1.0, %v1733_v30  ;;  %v1430_v14 = vmul.f32 -1.442695, %v2154_v44  ;;  %v2162_v5 = vadd.f32 %v1553_v38, %v2103_v36  ;;  %v1105_v19 = vpop.f32.mrb[7].mxu1 }
 0x1fa   : > { %1754 = vrcp.f32 %v1192_v34  ;;  %v1193_v51 = vadd.f32 1.0, %v1735_v29  ;;  %v1428_v22 = vmul.f32 -1.442695, %v2158_v47  ;;  %v2166_v45 = vadd.f32 %v2103_v36, %v1105_v19 }
 0x1fb   : > { %v1737_v56 = vpop.eup %1736  ;;  %1756 = vrcp.f32 %v1195_v49  ;;  %v1431_v57 = vmul.f32 -1.442695, %v2162_v5 }
 0x1fc   : > { %v1739_v59 = vpop.eup %1738  ;;  %v1238_v24 = vmul.f32 %v1737_v56, %v2106_v52  ;;  %1758 = vrcp.f32 %v1193_v51  ;;  %v1429_v36 = vmul.f32 -1.442695, %v2166_v45 }
 0x1fd   : > { %v1741_v62 = vpop.eup %1740  ;;  %v1236_v46 = vmul.f32 %v1739_v59, %v2109_v54  ;;  %1760 = vpow2.f32 %v1430_v14 }
 0x1fe   : > { %v1743_v48 = vpop.eup %1742  ;;  %1255 = vst.msk [vmem:[%s2171_s16 + $0x10] sm:$0xff] %vm1252_vm2, %v1238_v24  ;;  %v1239_v25 = vmul.f32 %v1741_v62, %v2113_v23  ;;  %1762 = vpow2.f32 %v1428_v22 }
 0x1ff   : > { %v1745_v35 = vpop.eup %1744  ;;  %1253 = vst.msk [vmem:[%s2171_s16] sm:$0xff] %vm1252_vm2, %v1236_v46  ;;  %v1237_v50 = vmul.f32 %v1743_v48, %v2117_v61  ;;  %1764 = vpow2.f32 %v1431_v57 }
 0x200   : > { %v1747_v52 = vpop.eup %1746  ;;  %1256 = vst.msk [vmem:[%s2171_s16 + $0x18] sm:$0xff] %vm1252_vm2, %v1239_v25  ;;  %v1198_v0 = vadd.f32 1.0, %v1745_v35  ;;  %1766 = vpow2.f32 %v1429_v36 }
 0x201   : > { %v1749_v3 = vpop.eup %1748  ;;  %1254 = vst.msk [vmem:[%s2171_s16 + $0x8] sm:$0xff] %vm1252_vm2, %v1237_v50  ;;  %v1196_v54 = vadd.f32 1.0, %v1747_v52 }
 0x202   : > { %v1751_v8 = vpop.eup %1750  ;;  %1768 = vrcp.f32 %v1198_v0  ;;  %v1199_v23 = vadd.f32 1.0, %v1749_v3 }
 0x203   : > { %v1753_v9 = vpop.eup %1752  ;;  %1770 = vrcp.f32 %v1196_v54  ;;  %v1197_v12 = vadd.f32 1.0, %v1751_v8 }
 0x204   : > { %v1755_v61 = vpop.eup %1754  ;;  %v1242_v15 = vmul.f32 %v1753_v9, %v2122_v63  ;;  %1772 = vrcp.f32 %v1199_v23 }
 0x205   : > { %v1757_v16 = vpop.eup %1756  ;;  %v1240_v41 = vmul.f32 %v1755_v61, %v2125_v6  ;;  %1774 = vrcp.f32 %v1197_v12 }
 0x206   : > { %v1759_v42 = vpop.eup %1758  ;;  %1259 = vst.msk [vmem:[%s2171_s16 + $0x30] sm:$0xff] %vm1252_vm2, %v1242_v15  ;;  %v1243_v43 = vmul.f32 %v1757_v16, %v2129_v10 }
 0x207   : > { %v1761_v53 = vpop.eup %1760  ;;  %1257 = vst.msk [vmem:[%s2171_s16 + $0x20] sm:$0xff] %vm1252_vm2, %v1240_v41  ;;  %v1241_v58 = vmul.f32 %v1759_v42, %v2133_v13 }
 0x208   : > { %v1763_v60 = vpop.eup %1762  ;;  %1260 = vst.msk [vmem:[%s2171_s16 + $0x38] sm:$0xff] %vm1252_vm2, %v1243_v43  ;;  %v1202_v18 = vadd.f32 1.0, %v1761_v53 }
 0x209   : > { %v1765_v63 = vpop.eup %1764  ;;  %1258 = vst.msk [vmem:[%s2171_s16 + $0x28] sm:$0xff] %vm1252_vm2, %v1241_v58  ;;  %v1200_v6 = vadd.f32 1.0, %v1763_v60 }
 0x20a   : > { %v1767_v21 = vpop.eup %1766  ;;  %1776 = vrcp.f32 %v1202_v18  ;;  %v1203_v26 = vadd.f32 1.0, %v1765_v63 }
 0x20b   : > { %1778 = vrcp.f32 %v1200_v6  ;;  %v1201_v10 = vadd.f32 1.0, %v1767_v21 }
 0x20c   : > { %v1769_v27 = vpop.eup %1768  ;;  %1780 = vrcp.f32 %v1203_v26 }
 0x20d   : > { %v1771_v13 = vpop.eup %1770  ;;  %v1246_v28 = vmul.f32 %v1769_v27, %v2138_v55  ;;  %1782 = vrcp.f32 %v1201_v10 }
 0x20e   : > { %v1773_v32 = vpop.eup %1772  ;;  %v1244_v33 = vmul.f32 %v1771_v13, %v2141_v20 }
 0x20f   : > { %v1775_v1 = vpop.eup %1774  ;;  %1263 = vst.msk [vmem:[%s2171_s16 + $0x50] sm:$0xff] %vm1252_vm2, %v1246_v28  ;;  %v1247_v7 = vmul.f32 %v1773_v32, %v2145_v31 }
 0x210   : > { %1261 = vst.msk [vmem:[%s2171_s16 + $0x40] sm:$0xff] %vm1252_vm2, %v1244_v33  ;;  %v1245_v40 = vmul.f32 %v1775_v1, %v2149_v37 }
 0x211   : > { %1264 = vst.msk [vmem:[%s2171_s16 + $0x58] sm:$0xff] %vm1252_vm2, %v1247_v7 }
 0x212   : > { %1262 = vst.msk [vmem:[%s2171_s16 + $0x48] sm:$0xff] %vm1252_vm2, %v1245_v40 }
 0x214   : > { %v1777_v55 = vpop.eup %1776 }
 0x215   : > { %v1779_v11 = vpop.eup %1778  ;;  %v1250_v20 = vmul.f32 %v1777_v55, %v2154_v44 }
 0x216   : > { %v1781_v39 = vpop.eup %1780  ;;  %v1248_v17 = vmul.f32 %v1779_v11, %v2158_v47 }
 0x217   : > { %v1783_v2 = vpop.eup %1782  ;;  %1267 = vst.msk [vmem:[%s2171_s16 + $0x70] sm:$0xff] %vm1252_vm2, %v1250_v20  ;;  %v1251_v31 = vmul.f32 %v1781_v39, %v2162_v5 }
 0x218   : > { %1265 = vst.msk [vmem:[%s2171_s16 + $0x60] sm:$0xff] %vm1252_vm2, %v1248_v17  ;;  %v1249_v37 = vmul.f32 %v1783_v2, %v2166_v45 }
 0x219   : > { %1268 = vst.msk [vmem:[%s2171_s16 + $0x78] sm:$0xff] %vm1252_vm2, %v1251_v31 }
 0x21a   : > { %1266 = vst.msk [vmem:[%s2171_s16 + $0x68] sm:$0xff] %vm1252_vm2, %v1249_v37 }
 0x21b PF: > { %s19_s30 = sadd.s32 1, %s1790_s30  }
 0x21c   : > { %p16_p4 = scmp.ge.s32.totalorder %s19_s30, 6  }
 0x21e   :  { %18 = sbr.rel (!%p16_p4) target bundleno = 1 (0x1), region = 89 }

// kernel: bottleneck_csp_forward.4
= control target key start
LH: loop header
LB: loop body
LE: loop exit
PB: predicated region body
PF: predicated region fallthrough
CT: control target
= control target key end

     0   :  { %s8837_s18 = smov 0   ;;  %s12580_s0 = inlined_call_operand.vmem [shape: bf16[2,16,16,4], index: 0, kind: input, shape index: {}]   ;;  %s12581_s1 = inlined_call_operand.vmem [shape: bf16[3,12,4], index: 1, kind: input, shape index: {}]   ;;  %s12582_s2 = inlined_call_operand.vmem [shape: f32[1,4], index: 2, kind: input, shape index: {}]   ;;  %s12583_s3 = inlined_call_operand.vmem [shape: bf16[3,12,4], index: 3, kind: input, shape index: {}]   ;;  %s12584_s4 = inlined_call_operand.vmem [shape: f32[1,4], index: 4, kind: input, shape index: {}]   ;;  %s12585_s5 = inlined_call_operand.vmem [shape: bf16[2,16,16,4], index: 5, kind: output, shape index: {}]  }
   0x1 LB: > { %s6757_s19 = sadd.s32 4294967295, %s8802_s18   ;;  %p6761_p0 = scmp.ge.s32.totalorder %s8802_s18, 1  ;;  %s8802_s18 = sphi %s8837_s18, %s15_s18  }
   0x2   : > { %p187_p1 = scmp.lt.s32.totalorder %s8802_s18, 3 }
   0x4   : > { %p188_p2 = pnand %p6761_p0, %p187_p1 }
   0x6   : > { %191 = sbr.rel (%p188_p2) target bundleno = 1140 (0x474), region = 40 }
   0xd   : > { %vm451_vm0 = vcmask 31744   ;;  %vm454_vm1 = vcmask 25600   ;;  %v12586_v0 = vmov 0.0   ;;  %p215_p3 = scmp.lt.s32.totalorder %s6757_s19, 1  ;;  %vm812_vm2 = vcmask 1045504   ;;  %s8805_s24 = smov 8  }
   0xe   : > { %452 = vst.msk [vmem:[#allocation2] sm:$0xff] %vm451_vm0, %v12586_v0  ;;  %453 = vst.msk [vmem:[#allocation2 + $0x8] sm:$0xff] %vm451_vm0, %v12586_v0  ;;  %vm635_vm3 = vcmask 1046528   ;;  %vm322_vm4 = vcmask 1040384   ;;  %s8806_s25 = smov 4   ;;  %vm1021_vm5 = vcmask 64512  }
   0xf   : > { %455 = vst.msk [vmem:[#allocation2 + $0x10] sm:$0x3] %vm454_vm1, %v12586_v0  ;;  %506 = vst.msk [vmem:[#allocation2 + $0x1a8] sm:$0x3] %vm454_vm1, %v12586_v0  ;;  %s12648_s19 = smov (!%p215_p3, %s6757_s19), 1  ;;  %vm1109_vm6 = vcmask 97280  }
  0x10   : > { %504 = vst.msk [vmem:[#allocation2 + $0x198] sm:$0xff] %vm451_vm0, %v12586_v0  ;;  %505 = vst.msk [vmem:[#allocation2 + $0x1a0] sm:$0xff] %vm451_vm0, %v12586_v0  ;;  %s6976_s20 = sshll.u32 %s12648_s19, 7  ;;  %vm6669_vm7 = vcmask 27648  }
  0x11   : > { %507 = vst.msk [vmem:[#allocation4] sm:$0xff] %vm451_vm0, %v12586_v0  ;;  %508 = vst.msk [vmem:[#allocation4 + $0x8] sm:$0xff] %vm451_vm0, %v12586_v0  ;;  %s8945_s23 = scalar_lea.vmem %s12580_s0, %s6976_s20  ;;  %s12337_s29 = scalar_lea.vmem %s12585_s5, %s6976_s20 }
  0x12   : > { %509 = vst.msk [vmem:[#allocation4 + $0x10] sm:$0xff] %vm451_vm0, %v12586_v0  ;;  %510 = vst.msk [vmem:[#allocation4 + $0x18] sm:$0xff] %vm451_vm0, %v12586_v0  ;;  %v7011_v1 = vld [vmem:[%s8945_s23] sm:$0xff]   ;;  %v7139_v2 = vld [vmem:[%s8945_s23 + $0x10] sm:$0xff]  }
  0x13   : > { %511 = vst.msk [vmem:[#allocation4 + $0x20] sm:$0xff] %vm451_vm0, %v12586_v0  ;;  %512 = vst.msk [vmem:[#allocation4 + $0x28] sm:$0xff] %vm451_vm0, %v12586_v0  ;;  %v7012_v6 = vunpack.c.l.bf16 %v7011_v1  ;;  %v7013_v7 = vunpack.c.h.bf16 %v7011_v1  ;;  %v7020_v8 = vunpack.c.l.bf16 %v7139_v2  ;;  %v7021_v9 = vunpack.c.h.bf16 %v7139_v2  ;;  %v7138_v22 = vld [vmem:[%s8945_s23 + $0x8] sm:$0xff]   ;;  %v7141_v27 = vld [vmem:[%s8945_s23 + $0x20] sm:$0xff]  }
  0x14   : > { %513 = vst.msk [vmem:[#allocation4 + $0x30] sm:$0xff] %vm451_vm0, %v12586_v0  ;;  %514 = vst.msk [vmem:[#allocation4 + $0x38] sm:$0xff] %vm451_vm0, %v12586_v0  ;;  %v7140_v28 = vld [vmem:[%s8945_s23 + $0x18] sm:$0xff]   ;;  %v7143_v33 = vld [vmem:[%s8945_s23 + $0x30] sm:$0xff]   ;;  %v7016_v36 = vunpack.c.l.bf16 %v7138_v22  ;;  %v7017_v37 = vunpack.c.h.bf16 %v7138_v22  ;;  %v7028_v38 = vunpack.c.l.bf16 %v7141_v27  ;;  %v7029_v39 = vunpack.c.h.bf16 %v7141_v27 }
  0x15   : > { %515 = vst.msk [vmem:[#allocation4 + $0x40] sm:$0xff] %vm451_vm0, %v12586_v0  ;;  %516 = vst.msk [vmem:[#allocation4 + $0x48] sm:$0xff] %vm451_vm0, %v12586_v0  ;;  %v539_v3 = vld [vmem:[#allocation2] sm:$0xff]  ;;  %v540_v4 = vld [vmem:[#allocation2 + $0x8] sm:$0xff]  ;;  %v323_v16 = vrot.slane %v7012_v6, 7  ;;  %v324_v17 = vrot.slane %v7013_v7, 7  ;;  %v7024_v40 = vunpack.c.l.bf16 %v7140_v28  ;;  %v7025_v41 = vunpack.c.h.bf16 %v7140_v28 }
  0x16   : > { %517 = vst.msk [vmem:[#allocation4 + $0x50] sm:$0xff] %vm451_vm0, %v12586_v0  ;;  %518 = vst.msk [vmem:[#allocation4 + $0x58] sm:$0xff] %vm451_vm0, %v12586_v0  ;;  %v541_v5 = vld [vmem:[#allocation2 + $0x10] sm:$0x3]  ;;  %v813_v10 = vrot.slane %v539_v3, 2  ;;  %v814_v11 = vrot.slane %v540_v4, 2  ;;  %v7036_v44 = vunpack.c.l.bf16 %v7143_v33  ;;  %v7037_v45 = vunpack.c.h.bf16 %v7143_v33 }
  0x17   : > { %519 = vst.msk [vmem:[#allocation4 + $0x60] sm:$0xff] %vm451_vm0, %v12586_v0  ;;  %520 = vst.msk [vmem:[#allocation4 + $0x68] sm:$0xff] %vm451_vm0, %v12586_v0  ;;  %v816_v12 = vrot.slane %v541_v5, 2  ;;  %v636_v13 = vrot.slane %v539_v3, 1  ;;  %v637_v14 = vrot.slane %v540_v4, 1  ;;  %v639_v15 = vrot.slane %v541_v5, 1 }
  0x18   : > { %521 = vst.msk [vmem:[#allocation4 + $0x70] sm:$0xff] %vm451_vm0, %v12586_v0  ;;  %522 = vst.msk [vmem:[#allocation4 + $0x78] sm:$0xff] %vm451_vm0, %v12586_v0  ;;  %v815_v18 = vsel %vm812_vm2, %v813_v10, %v814_v11  ;;  %v329_v20 = vrot.slane %v7020_v8, 7  ;;  %v330_v21 = vrot.slane %v7021_v9, 7  ;;  %v325_v26 = vsel %vm322_vm4, %v323_v16, %v324_v17  ;;  %v8975_v54 = vld [vmem:[%s8945_s23 + $0x28] sm:$0xff]  }
  0x19   : > { %523 = vst.msk [vmem:[#allocation4 + $0x80] sm:$0xff] %vm451_vm0, %v12586_v0  ;;  %524 = vst.msk [vmem:[#allocation4 + $0x88] sm:$0xff] %vm451_vm0, %v12586_v0  ;;  %v817_v19 = vsel %vm812_vm2, %v814_v11, %v816_v12  ;;  %v638_v24 = vsel %vm635_vm3, %v636_v13, %v637_v14  ;;  %v640_v25 = vsel %vm635_vm3, %v637_v14, %v639_v15  ;;  %v419_v30 = vsel %vm322_vm4, 0.0, %v323_v16 }
  0x1a   : > { %525 = vst.msk [vmem:[#allocation4 + $0x90] sm:$0xff] %vm451_vm0, %v12586_v0  ;;  %526 = vst.msk [vmem:[#allocation4 + $0x98] sm:$0xff] %vm451_vm0, %v12586_v0  ;;  %v7496_v23 = vpack.i.bf16 %v817_v19, %v815_v18  ;;  %v7491_v29 = vpack.i.bf16 %v640_v25, %v638_v24  ;;  %v435_v31 = vsel %vm322_vm4, %v324_v17, 0.0  ;;  %v331_v32 = vsel %vm322_vm4, %v329_v20, %v330_v21 }
  0x1b   : > { %527 = vst.msk [vmem:[#allocation4 + $0xa0] sm:$0xff] %vm451_vm0, %v12586_v0  ;;  %528 = vst.msk [vmem:[#allocation4 + $0xa8] sm:$0xff] %vm451_vm0, %v12586_v0  ;;  %v421_v34 = vsel %vm322_vm4, 0.0, %v329_v20  ;;  %v437_v35 = vsel %vm322_vm4, %v330_v21, 0.0  ;;  %v326_v42 = vrot.slane %v7016_v36, 7  ;;  %v327_v43 = vrot.slane %v7017_v37, 7 }
  0x1c   : > { %529 = vst.msk [vmem:[#allocation4 + $0xb0] sm:$0xff] %vm451_vm0, %v12586_v0  ;;  %530 = vst.msk [vmem:[#allocation4 + $0xb8] sm:$0xff] %vm451_vm0, %v12586_v0  ;;  %7497 = vrot.lane.b32.xlu1 %v7496_v23, %s8805_s24  ;;  %7492 = vrot.lane.b32.xlu0 %v7491_v29, %s8806_s25  ;;  %v335_v46 = vrot.slane %v7028_v38, 7  ;;  %v336_v47 = vrot.slane %v7029_v39, 7  ;;  %v332_v48 = vrot.slane %v7024_v40, 7  ;;  %v333_v49 = vrot.slane %v7025_v41, 7 }
  0x1d   : > { %531 = vst.msk [vmem:[#allocation4 + $0xc0] sm:$0xff] %vm451_vm0, %v12586_v0  ;;  %532 = vst.msk [vmem:[#allocation4 + $0xc8] sm:$0xff] %vm451_vm0, %v12586_v0  ;;  %v328_v50 = vsel %vm322_vm4, %v326_v42, %v327_v43  ;;  %v420_v51 = vsel %vm322_vm4, 0.0, %v326_v42  ;;  %v436_v52 = vsel %vm322_vm4, %v327_v43, 0.0  ;;  %v341_v53 = vrot.slane %v7036_v44, 7 }
  0x1e   : > { %533 = vst.msk [vmem:[#allocation4 + $0xd0] sm:$0xff] %vm451_vm0, %v12586_v0  ;;  %534 = vst.msk [vmem:[#allocation4 + $0xd8] sm:$0xff] %vm451_vm0, %v12586_v0  ;;  %v337_v55 = vsel %vm322_vm4, %v335_v46, %v336_v47  ;;  %v423_v56 = vsel %vm322_vm4, 0.0, %v335_v46  ;;  %v439_v57 = vsel %vm322_vm4, %v336_v47, 0.0  ;;  %v334_v58 = vsel %vm322_vm4, %v332_v48, %v333_v49 }
  0x1f   : > { %535 = vst.msk [vmem:[#allocation4 + $0xe0] sm:$0xff] %vm451_vm0, %v12586_v0  ;;  %536 = vst.msk [vmem:[#allocation4 + $0xe8] sm:$0xff] %vm451_vm0, %v12586_v0  ;;  %v422_v60 = vsel %vm322_vm4, 0.0, %v332_v48  ;;  %v438_v61 = vsel %vm322_vm4, %v333_v49, 0.0  ;;  %v342_v62 = vrot.slane %v7037_v45, 7  ;;  %v425_v63 = vsel %vm322_vm4, 0.0, %v341_v53 }
  0x20   : > { %537 = vst.msk [vmem:[#allocation4 + $0xf0] sm:$0xff] %vm451_vm0, %v12586_v0  ;;  %538 = vst.msk [vmem:[#allocation4 + $0xf8] sm:$0xff] %vm451_vm0, %v12586_v0  ;;  %v7032_v6 = vunpack.c.l.bf16 %v8975_v54  ;;  %v7033_v7 = vunpack.c.h.bf16 %v8975_v54 }
  0x21   : > { %3531 = vst.msk [vmem:[#allocation3] sm:$0xff] %vm451_vm0, %v12586_v0  ;;  %3532 = vst.msk [vmem:[#allocation3 + $0x8] sm:$0xff] %vm451_vm0, %v12586_v0  ;;  %v441_v33 = vsel %vm322_vm4, %v342_v62, 0.0 }
  0x22   : > { %3533 = vst.msk [vmem:[#allocation3 + $0x10] sm:$0x3] %vm454_vm1, %v12586_v0  ;;  %3584 = vst.msk [vmem:[#allocation3 + $0x1a8] sm:$0x3] %vm454_vm1, %v12586_v0 }
  0x23   : > { %3582 = vst.msk [vmem:[#allocation3 + $0x198] sm:$0xff] %vm451_vm0, %v12586_v0  ;;  %3583 = vst.msk [vmem:[#allocation3 + $0x1a0] sm:$0xff] %vm451_vm0, %v12586_v0 }
  0x24   : > { %457 = vst.msk [vmem:[#allocation2 + $0x20] sm:$0xff] %vm451_vm0, %v325_v26  ;;  %456 = vst.msk [vmem:[#allocation2 + $0x18] sm:$0xff] %vm451_vm0, %v419_v30  ;;  %v9025_v26 = vld [vmem:[%s12581_s1] sm:$0x3f]  }
  0x25   : > { %458 = vst.msk [vmem:[#allocation2 + $0x28] sm:$0x3] %vm454_vm1, %v435_v31  ;;  %464 = vst.msk [vmem:[#allocation2 + $0x58] sm:$0x3] %vm454_vm1, %v437_v35  ;;  %7474 = vmatprep.subr.msk.bf16.mxu0 %vm812_vm2, %v9025_v26 }
  0x26   : > { %463 = vst.msk [vmem:[#allocation2 + $0x50] sm:$0xff] %vm451_vm0, %v331_v32  ;;  %462 = vst.msk [vmem:[#allocation2 + $0x48] sm:$0xff] %vm451_vm0, %v421_v34  ;;  %v343_v32 = vsel %vm322_vm4, %v341_v53, %v342_v62 }
  0x27   : > { %459 = vst.msk [vmem:[#allocation2 + $0x30] sm:$0xff] %vm451_vm0, %v420_v51  ;;  %460 = vst.msk [vmem:[#allocation2 + $0x38] sm:$0xff] %vm451_vm0, %v328_v50 }
  0x28   : > { %461 = vst.msk [vmem:[#allocation2 + $0x40] sm:$0x3] %vm454_vm1, %v436_v52  ;;  %470 = vst.msk [vmem:[#allocation2 + $0x88] sm:$0x3] %vm454_vm1, %v439_v57 }
  0x29   : > { %468 = vst.msk [vmem:[#allocation2 + $0x78] sm:$0xff] %vm451_vm0, %v423_v56  ;;  %469 = vst.msk [vmem:[#allocation2 + $0x80] sm:$0xff] %vm451_vm0, %v337_v55 }
  0x2a   : > { %466 = vst.msk [vmem:[#allocation2 + $0x68] sm:$0xff] %vm451_vm0, %v334_v58  ;;  %465 = vst.msk [vmem:[#allocation2 + $0x60] sm:$0xff] %vm451_vm0, %v422_v60 }
  0x2b   : > { %v543_v59 = vld [vmem:[#allocation2 + $0x20] sm:$0xff]  ;;  %v542_v1 = vld [vmem:[#allocation2 + $0x18] sm:$0xff]  ;;  %467 = vst.msk [vmem:[#allocation2 + $0x70] sm:$0x3] %vm454_vm1, %v438_v61  ;;  %476 = vst.msk [vmem:[#allocation2 + $0xb8] sm:$0x3] %vm454_vm1, %v441_v33 }
  0x2c   : > { %v544_v2 = vld [vmem:[#allocation2 + $0x28] sm:$0x3]  ;;  %v8991_v3 = vrot.slane %v543_v59, 2  ;;  %v8993_v4 = vrot.slane %v543_v59, 1  ;;  %474 = vst.msk [vmem:[#allocation2 + $0xa8] sm:$0xff] %vm451_vm0, %v425_v63  ;;  %v818_v8 = vrot.slane %v542_v1, 2 }
  0x2d   : > { %v549_v5 = vld [vmem:[#allocation2 + $0x50] sm:$0xff]  ;;  %v821_v9 = vrot.slane %v544_v2, 2  ;;  %v641_v10 = vrot.slane %v542_v1, 1  ;;  %v644_v11 = vrot.slane %v544_v2, 1  ;;  %v548_v12 = vld [vmem:[#allocation2 + $0x48] sm:$0xff]  ;;  %475 = vst.msk [vmem:[#allocation2 + $0xb0] sm:$0xff] %vm451_vm0, %v343_v32 }
  0x2e   : > { %v550_v13 = vld [vmem:[#allocation2 + $0x58] sm:$0x3]  ;;  %v651_v14 = vrot.slane %v548_v12, 1  ;;  %v9000_v15 = vrot.slane %v549_v5, 1  ;;  %v828_v16 = vrot.slane %v548_v12, 2  ;;  %v9002_v17 = vrot.slane %v549_v5, 2 }
  0x2f   : > { %v9006_v18 = vsel %vm812_vm2, %v818_v8, %v8991_v3  ;;  %v822_v19 = vsel %vm812_vm2, %v8991_v3, %v821_v9  ;;  %v9012_v20 = vsel %vm635_vm3, %v641_v10, %v8993_v4  ;;  %v645_v21 = vsel %vm635_vm3, %v8993_v4, %v644_v11  ;;  %v545_v27 = vld [vmem:[#allocation2 + $0x30] sm:$0xff]  ;;  %v546_v28 = vld [vmem:[#allocation2 + $0x38] sm:$0xff]  ;;  %v547_v29 = vld [vmem:[#allocation2 + $0x40] sm:$0x3] }
  0x30   : > { %v7506_v22 = vpack.i.bf16 %v822_v19, %v9006_v18  ;;  %v7501_v23 = vpack.i.bf16 %v645_v21, %v9012_v20  ;;  %v9020_v24 = vsel %vm635_vm3, %v651_v14, %v9000_v15  ;;  %v654_v25 = vrot.slane %v550_v13, 1  ;;  %v554_v38 = vld [vmem:[#allocation2 + $0x78] sm:$0xff]  ;;  %v555_v39 = vld [vmem:[#allocation2 + $0x80] sm:$0xff]  ;;  %v556_v44 = vld [vmem:[#allocation2 + $0x88] sm:$0x3] }
  0x31   : > { %v9029_v30 = vsel %vm812_vm2, %v828_v16, %v9002_v17  ;;  %v831_v31 = vrot.slane %v550_v13, 2  ;;  %v646_v35 = vrot.slane %v545_v27, 1  ;;  %v9037_v36 = vrot.slane %v546_v28, 1  ;;  %v551_v45 = vld [vmem:[#allocation2 + $0x60] sm:$0xff]  ;;  %v552_v46 = vld [vmem:[#allocation2 + $0x68] sm:$0xff] }
  0x32   : > { %7507 = vrot.lane.b32.xlu1 %v7506_v22, %s8805_s24  ;;  %7502 = vrot.lane.b32.xlu0 %v7501_v23, %s8806_s25  ;;  %v655_v34 = vsel %vm635_vm3, %v9000_v15, %v654_v25  ;;  %v649_v37 = vrot.slane %v547_v29, 1  ;;  %v823_v42 = vrot.slane %v545_v27, 2  ;;  %v9044_v43 = vrot.slane %v546_v28, 2  ;;  %v553_v51 = vld [vmem:[#allocation2 + $0x70] sm:$0x3] }
  0x33   : > { %v7516_v40 = vpack.i.bf16 %v655_v34, %v9020_v24  ;;  %v832_v41 = vsel %vm812_vm2, %v9002_v17, %v831_v31  ;;  %v9050_v47 = vsel %vm635_vm3, %v646_v35, %v9037_v36  ;;  %v826_v50 = vrot.slane %v547_v29, 2  ;;  %v560_v10 = vld [vmem:[#allocation2 + $0xa8] sm:$0xff]  ;;  %v562_v19 = vld [vmem:[#allocation2 + $0xb8] sm:$0x3] }
  0x34   : > { %v650_v48 = vsel %vm635_vm3, %v9037_v36, %v649_v37  ;;  %v7526_v49 = vpack.i.bf16 %v832_v41, %v9029_v30  ;;  %v9058_v53 = vsel %vm812_vm2, %v823_v42, %v9044_v43  ;;  %v661_v55 = vrot.slane %v554_v38, 1  ;;  %v561_v16 = vld [vmem:[#allocation2 + $0xb0] sm:$0xff]  ;;  %v7145_v37 = vld [vmem:[%s8945_s23 + $0x40] sm:$0xff]   ;;  %v7144_v42 = vld [vmem:[%s8945_s23 + $0x38] sm:$0xff]  }
  0x35   : > { %v7511_v52 = vpack.i.bf16 %v650_v48, %v9050_v47  ;;  %v9060_v56 = vrot.slane %v555_v39, 1  ;;  %v827_v57 = vsel %vm812_vm2, %v9044_v43, %v826_v50  ;;  %v664_v58 = vrot.slane %v556_v44, 1 }
  0x36   : > { %7517 = vrot.lane.b32.xlu1 %v7516_v40, %s8806_s25  ;;  %v656_v59 = vrot.slane %v551_v45, 1  ;;  %v9065_v60 = vrot.slane %v552_v46, 1  ;;  %v7521_v61 = vpack.i.bf16 %v827_v57, %v9058_v53  ;;  %v659_v63 = vrot.slane %v553_v51, 1 }
  0x37   : > { %7512 = vrot.lane.b32.xlu0 %v7511_v52, %s8806_s25  ;;  %v9071_v62 = vsel %vm635_vm3, %v661_v55, %v9060_v56  ;;  %v838_v1 = vrot.slane %v554_v38, 2  ;;  %v665_v2 = vsel %vm635_vm3, %v9060_v56, %v664_v58  ;;  %v9079_v8 = vrot.slane %v555_v39, 2 }
  0x38   : > { %v9077_v5 = vsel %vm635_vm3, %v656_v59, %v9065_v60  ;;  %v841_v9 = vrot.slane %v556_v44, 2  ;;  %v7536_v11 = vpack.i.bf16 %v665_v2, %v9071_v62  ;;  %v660_v12 = vsel %vm635_vm3, %v9065_v60, %v659_v63  ;;  %v7147_v44 = vld [vmem:[%s8945_s23 + $0x50] sm:$0xff]  }
  0x39   : > { %v833_v13 = vrot.slane %v551_v45, 2  ;;  %v9084_v14 = vrot.slane %v552_v46, 2  ;;  %v7531_v21 = vpack.i.bf16 %v660_v12, %v9077_v5  ;;  %v9090_v22 = vsel %vm812_vm2, %v838_v1, %v9079_v8  ;;  %v7146_v46 = vld [vmem:[%s8945_s23 + $0x48] sm:$0xff]  }
  0x3a   : > { %7527 = vrot.lane.b32.xlu1 %v7526_v49, %s8805_s24  ;;  %v842_v23 = vsel %vm812_vm2, %v9079_v8, %v841_v9  ;;  %v836_v25 = vrot.slane %v553_v51, 2  ;;  %v671_v29 = vrot.slane %v560_v10, 1  ;;  %v9100_v31 = vrot.slane %v561_v16, 1 }
  0x3b   : > { %7522 = vrot.lane.b32.xlu0 %v7521_v61, %s8805_s24  ;;  %v7546_v27 = vpack.i.bf16 %v842_v23, %v9090_v22  ;;  %v9098_v28 = vsel %vm812_vm2, %v833_v13, %v9084_v14  ;;  %v674_v33 = vrot.slane %v562_v19, 1  ;;  %v338_v34 = vrot.slane %v7032_v6, 7 }
  0x3c   : > { %v837_v32 = vsel %vm812_vm2, %v9084_v14, %v836_v25  ;;  %v339_v35 = vrot.slane %v7033_v7, 7  ;;  %v9112_v39 = vsel %vm635_vm3, %v671_v29, %v9100_v31  ;;  %v848_v40 = vrot.slane %v560_v10, 2 }
  0x3d   : > { %v7541_v38 = vpack.i.bf16 %v837_v32, %v9098_v28  ;;  %v9114_v41 = vrot.slane %v561_v16, 2  ;;  %v675_v6 = vsel %vm635_vm3, %v9100_v31, %v674_v33  ;;  %v424_v7 = vsel %vm322_vm4, 0.0, %v338_v34 }
  0x3e   : > { %7537 = vrot.lane.b32.xlu1 %v7536_v11, %s8806_s25  ;;  %v340_v54 = vsel %vm322_vm4, %v338_v34, %v339_v35  ;;  %v440_v45 = vsel %vm322_vm4, %v339_v35, 0.0  ;;  %v7556_v48 = vpack.i.bf16 %v675_v6, %v9112_v39  ;;  %471 = vst.msk [vmem:[#allocation2 + $0x90] sm:$0xff] %vm451_vm0, %v424_v7  ;;  %v851_v50 = vrot.slane %v562_v19, 2 }
  0x3f   : > { %7532 = vrot.lane.b32.xlu0 %v7531_v21, %s8806_s25  ;;  %472 = vst.msk [vmem:[#allocation2 + $0x98] sm:$0xff] %vm451_vm0, %v340_v54  ;;  %v9132_v49 = vsel %vm812_vm2, %v848_v40, %v9114_v41  ;;  %v7044_v51 = vunpack.c.l.bf16 %v7145_v37  ;;  %v7045_v52 = vunpack.c.h.bf16 %v7145_v37  ;;  %v7040_v55 = vunpack.c.l.bf16 %v7144_v42  ;;  %v7149_v21 = vld [vmem:[%s8945_s23 + $0x60] sm:$0xff]  }
  0x40   : > { %473 = vst.msk [vmem:[#allocation2 + $0xa0] sm:$0x3] %vm454_vm1, %v440_v45  ;;  %v7041_v57 = vunpack.c.h.bf16 %v7144_v42  ;;  %v7052_v58 = vunpack.c.l.bf16 %v7147_v44  ;;  %v852_v59 = vsel %vm812_vm2, %v9114_v41, %v851_v50  ;;  %v7053_v63 = vunpack.c.h.bf16 %v7147_v44 }
  0x41   : > { %v347_v61 = vrot.slane %v7044_v51, 7  ;;  %v7048_v1 = vunpack.c.l.bf16 %v7146_v46  ;;  %v7566_v2 = vpack.i.bf16 %v852_v59, %v9132_v49  ;;  %v348_v9 = vrot.slane %v7045_v52, 7 }
  0x42   : > { %7547 = vrot.lane.b32.xlu1 %v7546_v27, %s8805_s24  ;;  %v344_v10 = vrot.slane %v7040_v55, 7  ;;  %v345_v11 = vrot.slane %v7041_v57, 7  ;;  %v353_v13 = vrot.slane %v7052_v58, 7  ;;  %v354_v16 = vrot.slane %v7053_v63, 7  ;;  %v9175_v63 = vld [vmem:[%s8945_s23 + $0x58] sm:$0xff]  }
  0x43   : > { %7542 = vrot.lane.b32.xlu0 %v7541_v38, %s8805_s24  ;;  %v427_v12 = vsel %vm322_vm4, 0.0, %v347_v61  ;;  %v7049_v19 = vunpack.c.h.bf16 %v7146_v46  ;;  %v349_v23 = vsel %vm322_vm4, %v347_v61, %v348_v9  ;;  %v443_v25 = vsel %vm322_vm4, %v348_v9, 0.0 }
  0x44   : > { %480 = vst.msk [vmem:[#allocation2 + $0xd8] sm:$0xff] %vm451_vm0, %v427_v12  ;;  %v346_v27 = vsel %vm322_vm4, %v344_v10, %v345_v11  ;;  %v426_v29 = vsel %vm322_vm4, 0.0, %v344_v10  ;;  %481 = vst.msk [vmem:[#allocation2 + $0xe0] sm:$0xff] %vm451_vm0, %v349_v23  ;;  %v442_v32 = vsel %vm322_vm4, %v345_v11, 0.0  ;;  %v355_v33 = vsel %vm322_vm4, %v353_v13, %v354_v16 }
  0x45   : > { %482 = vst.msk [vmem:[#allocation2 + $0xe8] sm:$0x3] %vm454_vm1, %v443_v25  ;;  %v429_v34 = vsel %vm322_vm4, 0.0, %v353_v13  ;;  %v445_v35 = vsel %vm322_vm4, %v354_v16, 0.0  ;;  %v557_v37 = vld [vmem:[#allocation2 + $0x90] sm:$0xff]  ;;  %v350_v42 = vrot.slane %v7048_v1, 7  ;;  %v7060_v6 = vunpack.c.l.bf16 %v7149_v21 }
  0x46   : > { %477 = vst.msk [vmem:[#allocation2 + $0xc0] sm:$0xff] %vm451_vm0, %v426_v29  ;;  %478 = vst.msk [vmem:[#allocation2 + $0xc8] sm:$0xff] %vm451_vm0, %v346_v27  ;;  %7557 = vrot.lane.b32.xlu1 %v7556_v48, %s8806_s25  ;;  %v558_v38 = vld [vmem:[#allocation2 + $0x98] sm:$0xff]  ;;  %v351_v44 = vrot.slane %v7049_v19, 7  ;;  %v7061_v54 = vunpack.c.h.bf16 %v7149_v21  ;;  %v666_v7 = vrot.slane %v557_v37, 1  ;;  %v843_v48 = vrot.slane %v557_v37, 2 }
  0x47   : > { %v559_v40 = vld [vmem:[#allocation2 + $0xa0] sm:$0x3]  ;;  %479 = vst.msk [vmem:[#allocation2 + $0xd0] sm:$0x3] %vm454_vm1, %v442_v32  ;;  %488 = vst.msk [vmem:[#allocation2 + $0x118] sm:$0x3] %vm454_vm1, %v445_v35 }
  0x48   : > { %486 = vst.msk [vmem:[#allocation2 + $0x108] sm:$0xff] %vm451_vm0, %v429_v34  ;;  %487 = vst.msk [vmem:[#allocation2 + $0x110] sm:$0xff] %vm451_vm0, %v355_v33  ;;  %v9159_v45 = vrot.slane %v558_v38, 1  ;;  %v669_v46 = vrot.slane %v559_v40, 1  ;;  %v9161_v50 = vrot.slane %v558_v38, 2  ;;  %v846_v51 = vrot.slane %v559_v40, 2 }
  0x49   : > { %v352_v52 = vsel %vm322_vm4, %v350_v42, %v351_v44  ;;  %v428_v55 = vsel %vm322_vm4, 0.0, %v350_v42  ;;  %v444_v59 = vsel %vm322_vm4, %v351_v44, 0.0  ;;  %v359_v61 = vrot.slane %v7060_v6, 7 }
  0x4a   : > { %v9167_v57 = vsel %vm635_vm3, %v666_v7, %v9159_v45  ;;  %v670_v58 = vsel %vm635_vm3, %v9159_v45, %v669_v46  ;;  %483 = vst.msk [vmem:[#allocation2 + $0xf0] sm:$0xff] %vm451_vm0, %v428_v55  ;;  %484 = vst.msk [vmem:[#allocation2 + $0xf8] sm:$0xff] %vm451_vm0, %v352_v52  ;;  %7567 = vrot.lane.b32.xlu1 %v7566_v2, %s8805_s24  ;;  %v9181_v9 = vsel %vm812_vm2, %v843_v48, %v9161_v50 }
  0x4b   : > { %v7551_v1 = vpack.i.bf16 %v670_v58, %v9167_v57  ;;  %v847_v10 = vsel %vm812_vm2, %v9161_v50, %v846_v51  ;;  %485 = vst.msk [vmem:[#allocation2 + $0x100] sm:$0x3] %vm454_vm1, %v444_v59  ;;  %v9186_v11 = vrot.slane %v7061_v54, 7  ;;  %v566_v13 = vld [vmem:[#allocation2 + $0xd8] sm:$0xff]  ;;  %v431_v16 = vsel %vm322_vm4, 0.0, %v359_v61  ;;  %v567_v19 = vld [vmem:[#allocation2 + $0xe0] sm:$0xff] }
  0x4c   : > { %v7561_v12 = vpack.i.bf16 %v847_v10, %v9181_v9  ;;  %v568_v2 = vld [vmem:[#allocation2 + $0xe8] sm:$0x3]  ;;  %v681_v21 = vrot.slane %v566_v13, 1  ;;  %v858_v25 = vrot.slane %v566_v13, 2  ;;  %492 = vst.msk [vmem:[#allocation2 + $0x138] sm:$0xff] %vm451_vm0, %v431_v16  ;;  %v9195_v32 = vrot.slane %v567_v19, 1 }
  0x4d   : > { %7552 = vrot.lane.b32.xlu0 %v7551_v1, %s8806_s25  ;;  %v563_v23 = vld [vmem:[#allocation2 + $0xc0] sm:$0xff]  ;;  %v361_v27 = vsel %vm322_vm4, %v359_v61, %v9186_v11  ;;  %v684_v33 = vrot.slane %v568_v2, 1  ;;  %v564_v34 = vld [vmem:[#allocation2 + $0xc8] sm:$0xff]  ;;  %v9201_v44 = vrot.slane %v567_v19, 2  ;;  %v861_v6 = vrot.slane %v568_v2, 2 }
  0x4e   : > { %v565_v35 = vld [vmem:[#allocation2 + $0xd0] sm:$0x3]  ;;  %v676_v37 = vrot.slane %v563_v23, 1  ;;  %493 = vst.msk [vmem:[#allocation2 + $0x140] sm:$0xff] %vm451_vm0, %v361_v27  ;;  %v9199_v40 = vrot.slane %v564_v34, 1  ;;  %v9205_v54 = vsel %vm635_vm3, %v681_v21, %v9195_v32  ;;  %v853_v46 = vrot.slane %v563_v23, 2 }
  0x4f   : > { %v679_v42 = vrot.slane %v565_v35, 1  ;;  %12606 = vst [vmem:[#allocation5_spill] sm:$0xff] %v9201_v44  ;;  %v685_v7 = vsel %vm635_vm3, %v9195_v32, %v684_v33  ;;  %v9209_v48 = vrot.slane %v564_v34, 2  ;;  %v572_v51 = vld [vmem:[#allocation2 + $0x108] sm:$0xff]  ;;  %v573_v52 = vld [vmem:[#allocation2 + $0x110] sm:$0xff]  ;;  %v9221_v1 = vsel %vm812_vm2, %v858_v25, %v9201_v44 }
  0x50   : > { %v574_v55 = vld [vmem:[#allocation2 + $0x118] sm:$0x3]  ;;  %v7576_v58 = vpack.i.bf16 %v685_v7, %v9205_v54  ;;  %v9215_v59 = vsel %vm635_vm3, %v676_v37, %v9199_v40  ;;  %12607 = vst [vmem:[#allocation6_spill] sm:$0xff] %v9221_v1  ;;  %v856_v2 = vrot.slane %v565_v35, 2  ;;  %v691_v27 = vrot.slane %v572_v51, 1  ;;  %v7150_v34 = vld [vmem:[%s8945_s23 + $0x68] sm:$0xff]  }
  0x51   : > { %7562 = vrot.lane.b32.xlu0 %v7561_v12, %s8805_s24  ;;  %v680_v61 = vsel %vm635_vm3, %v9199_v40, %v679_v42  ;;  %v569_v10 = vld [vmem:[#allocation2 + $0xf0] sm:$0xff]  ;;  %v570_v13 = vld [vmem:[#allocation2 + $0xf8] sm:$0xff]  ;;  %v862_v12 = vsel %vm812_vm2, %v9201_v44, %v861_v6  ;;  %v9228_v19 = vsel %vm812_vm2, %v853_v46, %v9209_v48  ;;  %v692_v25 = vrot.slane %v573_v52, 1 }
  0x52   : > { %v7571_v16 = vpack.i.bf16 %v680_v61, %v9215_v59  ;;  %v571_v21 = vld [vmem:[#allocation2 + $0x100] sm:$0x3]  ;;  %7577 = vrot.lane.b32.xlu1 %v7576_v58, %s8806_s25  ;;  %v7586_v23 = vpack.i.bf16 %v862_v12, %v9221_v1  ;;  %v694_v33 = vrot.slane %v574_v55, 1  ;;  %v857_v37 = vsel %vm812_vm2, %v9209_v48, %v856_v2 }
  0x53   : > { %v686_v42 = vrot.slane %v569_v10, 1  ;;  %v9235_v7 = vrot.slane %v570_v13, 1  ;;  %v689_v6 = vrot.slane %v571_v21, 1  ;;  %v7581_v35 = vpack.i.bf16 %v857_v37, %v9228_v19 }
  0x54   : > { %v693_v46 = vsel %vm635_vm3, %v691_v27, %v692_v25  ;;  %v695_v58 = vsel %vm635_vm3, %v692_v25, %v694_v33  ;;  %v868_v61 = vrot.slane %v572_v51, 2  ;;  %v869_v0 = vrot.slane %v573_v52, 2  ;;  %v578_v27 = vld [vmem:[#allocation2 + $0x138] sm:$0xff] }
  0x55   : > { %7572 = vrot.lane.b32.xlu0 %v7571_v16, %s8806_s25  ;;  %v9243_v12 = vsel %vm635_vm3, %v686_v42, %v9235_v7  ;;  %v690_v2 = vsel %vm635_vm3, %v9235_v7, %v689_v6  ;;  %v7064_v38 = vunpack.c.l.bf16 %v7150_v34  ;;  %v7596_v29 = vpack.i.bf16 %v695_v58, %v693_v46  ;;  %v9250_v44 = vld [vmem:[#allocation2 + $0x140] sm:$0xff]  ;;  %v1389_v46 = vld [vmem:[#allocation2 + $0x28] sm:$0x3] }
  0x56   : > { %12608 = vst [vmem:[#allocation7_spill] sm:$0xff] %v9243_v12  ;;  %7587 = vrot.lane.b32.xlu1 %v7586_v23, %s8805_s24  ;;  %v871_v16 = vrot.slane %v574_v55, 2  ;;  %v863_v1 = vrot.slane %v569_v10, 2  ;;  %v9248_v37 = vrot.slane %v570_v13, 2  ;;  %v870_v51 = vsel %vm812_vm2, %v868_v61, %v869_v0  ;;  %v9265_v23 = vld [vmem:[#allocation2 + $0x40] sm:$0x3] }
  0x57   : > { %v866_v25 = vrot.slane %v571_v21, 2  ;;  %v447_v33 = vsel %vm322_vm4, %v9186_v11, 0.0  ;;  %v7065_v42 = vunpack.c.h.bf16 %v7150_v34  ;;  %v7591_v52 = vpack.i.bf16 %v690_v2, %v9243_v12 }
  0x58   : > { %12609 = vst [vmem:[#allocation8_spill] sm:$0xff] %v9248_v37  ;;  %v872_v55 = vsel %vm812_vm2, %v869_v0, %v871_v16  ;;  %v9260_v10 = vsel %vm812_vm2, %v863_v1, %v9248_v37  ;;  %494 = vst.msk [vmem:[#allocation2 + $0x148] sm:$0x3] %vm454_vm1, %v447_v33  ;;  %v12611_v13 = vunpack.c.l.bf16 %v9175_v63  ;;  %v701_v34 = vrot.slane %v578_v27, 1  ;;  %v7151_v16 = vld [vmem:[%s8945_s23 + $0x70] sm:$0xff]  }
  0x59   : > { %7582 = vrot.lane.b32.xlu0 %v7581_v35, %s8805_s24  ;;  %12610 = vst [vmem:[#allocation9_spill] sm:$0xff] %v9260_v10  ;;  %v867_v11 = vsel %vm812_vm2, %v9248_v37, %v866_v25  ;;  %v702_v6 = vrot.slane %v9250_v44, 1  ;;  %v12612_v35 = vunpack.c.h.bf16 %v9175_v63  ;;  %v7606_v1 = vpack.i.bf16 %v872_v55, %v870_v51 }
  0x5a   : > { %v356_v21 = vrot.slane %v12611_v13, 7  ;;  %7597 = vrot.lane.b32.xlu1 %v7596_v29, %s8806_s25  ;;  %v878_v61 = vrot.slane %v578_v27, 2  ;;  %v879_v2 = vrot.slane %v9250_v44, 2  ;;  %v7601_v33 = vpack.i.bf16 %v867_v11, %v9260_v10 }
  0x5b   : > { %v357_v0 = vrot.slane %v12612_v35, 7  ;;  %v1491_v63 = vrot.slane %v9265_v23, 1  ;;  %v1486_v29 = vrot.slane %v1389_v46, 1  ;;  %v362_v27 = vrot.slane %v7064_v38, 7 }
  0x5c   : > { %v430_v58 = vsel %vm322_vm4, 0.0, %v356_v21  ;;  %v363_v44 = vrot.slane %v7065_v42, 7  ;;  %v1662_v51 = vrot.slane %v1389_v46, 2  ;;  %v703_v55 = vsel %vm635_vm3, %v701_v34, %v702_v6 }
  0x5d   : > { %v358_v25 = vsel %vm322_vm4, %v356_v21, %v357_v0  ;;  %v446_v13 = vsel %vm322_vm4, %v357_v0, 0.0  ;;  %489 = vst.msk [vmem:[#allocation2 + $0x120] sm:$0xff] %vm451_vm0, %v430_v58  ;;  %7592 = vrot.lane.b32.xlu0 %v7591_v52, %s8806_s25  ;;  %v7068_v11 = vunpack.c.l.bf16 %v7151_v16  ;;  %v7069_v21 = vunpack.c.h.bf16 %v7151_v16 }
  0x5e   : > { %490 = vst.msk [vmem:[#allocation2 + $0x128] sm:$0xff] %vm451_vm0, %v358_v25  ;;  %7607 = vrot.lane.b32.xlu1 %v7606_v1, %s8805_s24  ;;  %v880_v35 = vsel %vm812_vm2, %v878_v61, %v879_v2  ;;  %v9289_v0 = vsel %vm635_vm3, %v9037_v36, %v1491_v63  ;;  %v364_v52 = vsel %vm322_vm4, %v362_v27, %v363_v44  ;;  %v432_v58 = vsel %vm322_vm4, 0.0, %v362_v27  ;;  %v9293_v25 = vld [vmem:[#allocation2 + $0x58] sm:$0x3]  ;;  %v9310_v27 = vld [vmem:[#allocation2 + $0x70] sm:$0x3] }
  0x5f   : > { %491 = vst.msk [vmem:[#allocation2 + $0x130] sm:$0x3] %vm454_vm1, %v446_v13  ;;  %v580_v38 = vld [vmem:[#allocation2 + $0x148] sm:$0x3]  ;;  %v448_v42 = vsel %vm322_vm4, %v363_v44, 0.0  ;;  %v9300_v34 = vsel %vm812_vm2, %v8991_v3, %v1662_v51  ;;  %v365_v46 = vrot.slane %v7068_v11, 7  ;;  %v9305_v13 = vsel %vm635_vm3, %v8993_v4, %v1486_v29 }
  0x60   : > { %495 = vst.msk [vmem:[#allocation2 + $0x150] sm:$0xff] %vm451_vm0, %v432_v58  ;;  %496 = vst.msk [vmem:[#allocation2 + $0x158] sm:$0xff] %vm451_vm0, %v364_v52  ;;  %v366_v1 = vrot.slane %v7069_v21, 7  ;;  %v704_v61 = vrot.slane %v580_v38, 1  ;;  %v881_v16 = vrot.slane %v580_v38, 2  ;;  %v7636_v29 = vpack.i.bf16 %v9289_v0, %v9050_v47 }
  0x61   : > { %7602 = vrot.lane.b32.xlu0 %v7601_v33, %s8805_s24  ;;  %497 = vst.msk [vmem:[#allocation2 + $0x160] sm:$0x3] %vm454_vm1, %v448_v42  ;;  %v433_v44 = vsel %vm322_vm4, 0.0, %v365_v46  ;;  %v1667_v33 = vrot.slane %v9265_v23, 2  ;;  %v1496_v52 = vrot.slane %v9293_v25, 1 }
  0x62   : > { %v367_v3 = vsel %vm322_vm4, %v365_v46, %v366_v1  ;;  %v449_v51 = vsel %vm322_vm4, %v366_v1, 0.0  ;;  %v705_v11 = vsel %vm635_vm3, %v702_v6, %v704_v61  ;;  %v882_v4 = vsel %vm812_vm2, %v879_v2, %v881_v16  ;;  %498 = vst.msk [vmem:[#allocation2 + $0x168] sm:$0xff] %vm451_vm0, %v433_v44 }
  0x63   : > { %499 = vst.msk [vmem:[#allocation2 + $0x170] sm:$0xff] %vm451_vm0, %v367_v3  ;;  %v7616_v58 = vpack.i.bf16 %v705_v11, %v703_v55  ;;  %v1501_v6 = vrot.slane %v9310_v27, 1  ;;  %v7626_v16 = vpack.i.bf16 %v882_v4, %v880_v35  ;;  %v7631_v3 = vpack.i.bf16 %v9305_v13, %v9012_v20 }
  0x64   : > { %v575_v21 = vld [vmem:[#allocation2 + $0x120] sm:$0xff]  ;;  %500 = vst.msk [vmem:[#allocation2 + $0x178] sm:$0x3] %vm454_vm1, %v449_v51  ;;  %v9334_v55 = vsel %vm812_vm2, %v9044_v43, %v1667_v33  ;;  %v9338_v44 = vsel %vm635_vm3, %v9000_v15, %v1496_v52 }
  0x65   : > { %v576_v38 = vld [vmem:[#allocation2 + $0x128] sm:$0xff]  ;;  %v696_v23 = vrot.slane %v575_v21, 1  ;;  %v873_v46 = vrot.slane %v575_v21, 2  ;;  %7617 = vrot.lane.b32.xlu1 %v7616_v58, %s8806_s25 }
  0x66   : > { %v577_v42 = vld [vmem:[#allocation2 + $0x130] sm:$0x3]  ;;  %v9325_v1 = vrot.slane %v576_v38, 1  ;;  %v9327_v61 = vrot.slane %v576_v38, 2  ;;  %v9355_v38 = vsel %vm635_vm3, %v9065_v60, %v1501_v6 }
  0x67   : > { %v699_v2 = vrot.slane %v577_v42, 1  ;;  %v876_v0 = vrot.slane %v577_v42, 2  ;;  %v581_v13 = vld [vmem:[#allocation2 + $0x150] sm:$0xff]  ;;  %v582_v33 = vld [vmem:[#allocation2 + $0x158] sm:$0xff] }
  0x68   : > { %12613 = vst [vmem:[#allocation10_spill] sm:$0xff] %v9325_v1  ;;  %12614 = vst [vmem:[#allocation11_spill] sm:$0xff] %v9327_v61  ;;  %v9342_v51 = vsel %vm635_vm3, %v696_v23, %v9325_v1  ;;  %v9348_v35 = vsel %vm812_vm2, %v873_v46, %v9327_v61  ;;  %v583_v4 = vld [vmem:[#allocation2 + $0x160] sm:$0x3]  ;;  %v706_v52 = vrot.slane %v581_v13, 1  ;;  %v707_v58 = vrot.slane %v582_v33, 1 }
  0x69   : > { %12615 = vst [vmem:[#allocation12_spill] sm:$0xff] %v9342_v51  ;;  %v700_v11 = vsel %vm635_vm3, %v9325_v1, %v699_v2  ;;  %12616 = vst [vmem:[#allocation13_spill] sm:$0xff] %v9348_v35  ;;  %v877_v20 = vsel %vm812_vm2, %v9327_v61, %v876_v0  ;;  %v709_v42 = vrot.slane %v583_v4, 1  ;;  %v883_v23 = vrot.slane %v581_v13, 2  ;;  %7627 = vrot.lane.b32.xlu1 %v7626_v16, %s8805_s24 }
  0x6a   : > { %v7611_v21 = vpack.i.bf16 %v700_v11, %v9342_v51  ;;  %v884_v2 = vrot.slane %v582_v33, 2  ;;  %v886_v63 = vrot.slane %v583_v4, 2  ;;  %v7621_v46 = vpack.i.bf16 %v877_v20, %v9348_v35  ;;  %v584_v11 = vld [vmem:[#allocation2 + $0x168] sm:$0xff]  ;;  %v585_v61 = vld [vmem:[#allocation2 + $0x170] sm:$0xff]  ;;  %v9364_v4 = vld [vmem:[#allocation2 + $0x58] sm:$0x3] }
  0x6b   : > { %v708_v0 = vsel %vm635_vm3, %v706_v52, %v707_v58  ;;  %v586_v51 = vld [vmem:[#allocation2 + $0x178] sm:$0x3]  ;;  %v710_v6 = vsel %vm635_vm3, %v707_v58, %v709_v42  ;;  %v711_v10 = vrot.slane %v584_v11, 1  ;;  %v712_v13 = vrot.slane %v585_v61, 1  ;;  %v2234_v58 = vld [vmem:[#allocation2 + $0x40] sm:$0x3] }
  0x6c   : > { %7612 = vrot.lane.b32.xlu0 %v7611_v21, %s8806_s25  ;;  %v714_v33 = vrot.slane %v586_v51, 1  ;;  %v888_v21 = vrot.slane %v584_v11, 2  ;;  %v889_v37 = vrot.slane %v585_v61, 2  ;;  %v891_v16 = vrot.slane %v586_v51, 2  ;;  %v9378_v42 = vld [vmem:[%s12581_s1 + $0x8] sm:$0x3f]  }
  0x6d   : > { %v1677_v20 = vrot.slane %v9310_v27, 2  ;;  %v713_v52 = vsel %vm635_vm3, %v711_v10, %v712_v13  ;;  %v9370_v12 = vsel %vm812_vm2, %v883_v23, %v884_v2  ;;  %v9373_v1 = vsel %vm812_vm2, %v884_v2, %v886_v63  ;;  %7637 = vrot.lane.b32.xlu1 %v7636_v29, %s8806_s25  ;;  %v1404_v23 = vld [vmem:[#allocation2 + $0xa0] sm:$0x3]  ;;  %7475 = vmatprep.subr.msk.bf16.mxu1 %vm812_vm2, %v9378_v42 }
  0x6e   : > { %v715_v35 = vsel %vm635_vm3, %v712_v13, %v714_v33  ;;  %v7646_v27 = vpack.i.bf16 %v710_v6, %v708_v0  ;;  %v890_v10 = vsel %vm812_vm2, %v888_v21, %v889_v37  ;;  %v892_v61 = vsel %vm812_vm2, %v889_v37, %v891_v16 }
  0x6f   : > { %v2336_v51 = vrot.slane %v9364_v4, 1  ;;  %v7656_v63 = vpack.i.bf16 %v715_v35, %v713_v52  ;;  %v7651_v2 = vpack.i.bf16 %v9334_v55, %v9058_v53  ;;  %v1672_v13 = vrot.slane %v9293_v25, 2 }
  0x70   : > { %7622 = vrot.lane.b32.xlu0 %v7621_v46, %s8805_s24  ;;  %v1401_v46 = vld [vmem:[#allocation2 + $0x88] sm:$0x3]  ;;  %v7666_v29 = vpack.i.bf16 %v892_v61, %v890_v10  ;;  %v7661_v37 = vpack.i.bf16 %v9373_v1, %v9370_v12  ;;  %v2331_v35 = vrot.slane %v2234_v58, 1  ;;  %v9400_v55 = vsel %vm812_vm2, %v9084_v14, %v1677_v20 }
  0x71   : > { %v9396_v0 = vsel %vm635_vm3, %v9000_v15, %v2336_v51  ;;  %v2507_v6 = vrot.slane %v2234_v58, 2  ;;  %v1511_v33 = vrot.slane %v1404_v23, 1  ;;  %7647 = vrot.lane.b32.xlu1 %v7646_v27, %s8806_s25  ;;  %v1506_v15 = vrot.slane %v1401_v46, 1  ;;  %v2243_v10 = vld [vmem:[#allocation2 + $0x88] sm:$0x3] }
  0x72   : > { %v9408_v21 = vsel %vm635_vm3, %v9037_v36, %v2331_v35  ;;  %v1687_v16 = vrot.slane %v1404_v23, 2  ;;  %v1682_v52 = vrot.slane %v1401_v46, 2  ;;  %v9412_v20 = vsel %vm812_vm2, %v9002_v17, %v1672_v13  ;;  %v2240_v36 = vld [vmem:[#allocation2 + $0x70] sm:$0x3]  ;;  %v2249_v35 = vld [vmem:[#allocation2 + $0xb8] sm:$0x3] }
  0x73   : > { %v9422_v27 = vsel %vm635_vm3, %v9159_v45, %v1511_v33  ;;  %v9432_v13 = vsel %vm635_vm3, %v9060_v56, %v1506_v15  ;;  %v1410_v46 = vld [vmem:[#allocation2 + $0xd0] sm:$0x3]  ;;  %v2346_v51 = vrot.slane %v2243_v10, 1  ;;  %v12617_v23 = vpack.i.bf16 %v9300_v34, %v9006_v18 }
  0x74   : > { %7632 = vrot.lane.b32.xlu0 %v7631_v3, %s8806_s25  ;;  %v9418_v3 = vsel %vm812_vm2, %v9044_v43, %v2507_v6  ;;  %v1407_v43 = vld [vmem:[#allocation2 + $0xb8] sm:$0x3]  ;;  %v9438_v6 = vsel %vm812_vm2, %v9161_v50, %v1687_v16  ;;  %v9442_v33 = vsel %vm812_vm2, %v9079_v8, %v1682_v52  ;;  %v2341_v16 = vrot.slane %v2240_v36, 1 }
  0x75   : > { %7657 = vrot.lane.b32.xlu1 %v7656_v63, %s8806_s25  ;;  %v7726_v15 = vpack.i.bf16 %v9438_v6, %v9181_v9  ;;  %v2522_v58 = vrot.slane %v2243_v10, 2  ;;  %v9455_v52 = vsel %vm635_vm3, %v9060_v56, %v2346_v51  ;;  %v2517_v25 = vrot.slane %v2240_v36, 2  ;;  %v2246_v10 = vld [vmem:[#allocation2 + $0xa0] sm:$0x3] }
  0x76   : > { %v1516_v61 = vrot.slane %v1407_v43, 1  ;;  %v1521_v11 = vrot.slane %v1410_v46, 1  ;;  %v7736_v18 = vpack.i.bf16 %v9455_v52, %v9071_v62  ;;  %v9461_v34 = vsel %vm635_vm3, %v9065_v60, %v2341_v16  ;;  %v1416_v56 = vld [vmem:[#allocation2 + $0x100] sm:$0x3]  ;;  %v2251_v52 = vld [vmem:[#allocation2 + $0xc8] sm:$0xff] }
  0x77   : > { %v9465_v63 = vsel %vm812_vm2, %v9079_v8, %v2522_v58  ;;  %v9473_v51 = vsel %vm812_vm2, %v9084_v14, %v2517_v25  ;;  %v1697_v14 = vrot.slane %v1410_v46, 2  ;;  %v1413_v25 = vld [vmem:[#allocation2 + $0xe8] sm:$0x3]  ;;  %v2356_v16 = vrot.slane %v2249_v35, 1 }
  0x78   : > { %7642 = vrot.lane.b32.xlu0 %v12617_v23, %s8805_s24  ;;  %v1692_v23 = vrot.slane %v1407_v43, 2  ;;  %v9477_v60 = vsel %vm635_vm3, %v9100_v31, %v1516_v61  ;;  %v9487_v43 = vsel %vm635_vm3, %v9199_v40, %v1521_v11  ;;  %v2527_v40 = vrot.slane %v2246_v10, 2 }
  0x79   : > { %7667 = vrot.lane.b32.xlu1 %v7666_v29, %s8805_s24  ;;  %v2351_v29 = vrot.slane %v2246_v10, 1  ;;  %v9499_v58 = vsel %vm812_vm2, %v9209_v48, %v1697_v14  ;;  %v2532_v11 = vrot.slane %v2249_v35, 2  ;;  %v1526_v36 = vrot.slane %v1413_v25, 1 }
  0x7a   : > { %v7766_v46 = vpack.i.bf16 %v9499_v58, %v9228_v19  ;;  %v12618_v48 = vpack.i.bf16 %v9355_v38, %v9077_v5  ;;  %v2512_v10 = vrot.slane %v9364_v4, 2  ;;  %v1531_v14 = vrot.slane %v1416_v56, 1 }
  0x7b   : > { %v9505_v61 = vsel %vm635_vm3, %v9159_v45, %v2351_v29  ;;  %v9532_v1 = vsel %vm812_vm2, %v9114_v41, %v2532_v11  ;;  %v9536_v38 = vsel %vm635_vm3, %v9195_v32, %v1526_v36  ;;  %v1702_v29 = vrot.slane %v1413_v25, 2 }
  0x7c   : > { %7652 = vrot.lane.b32.xlu0 %v7651_v2, %s8805_s24  ;;  %v9493_v2 = vsel %vm812_vm2, %v9114_v41, %v1692_v23  ;;  %v9509_v23 = vsel %vm635_vm3, %v9100_v31, %v2356_v16  ;;  %v7771_v45 = vpack.i.bf16 %v9505_v61, %v9167_v57  ;;  %v9525_v31 = vsel %vm812_vm2, %v9161_v50, %v2527_v40 }
  0x7d   : > { %v7761_v8 = vpack.i.bf16 %v9493_v2, %v9132_v49  ;;  %7677 = vrot.lane.b32.xlu1 %v12618_v48, %s8806_s25  ;;  %v7776_v35 = vpack.i.bf16 %v9509_v23, %v9112_v39  ;;  %v7781_v12 = vpack.i.bf16 %v9525_v31, %v9181_v9  ;;  %v7786_v50 = vpack.i.bf16 %v9532_v1, %v9132_v49  ;;  %v9701_v2 = vld [vmem:[#allocation2 + $0x18] sm:$0xff]  ;;  %v9762_v31 = vld [vmem:[#allocation2 + $0x48] sm:$0xff] }
  0x7e   : > { %v7791_v4 = vpack.i.bf16 %v9536_v38, %v9205_v54  ;;  %v1159_v41 = vsel %vm812_vm2, %v9025_v26, 0  ;;  %v1707_v16 = vrot.slane %v1416_v56, 2  ;;  %v12619_v32 = vpack.i.bf16 %v9338_v44, %v9020_v24  ;;  %v12621_v56 = vld [vmem:[#allocation7_spill] sm:$0xff]  ;;  %v12622_v44 = vld [vmem:[#allocation5_spill] sm:$0xff]  ;;  %v9733_v1 = vld [vmem:[#allocation2 + $0xf8] sm:$0xff] }
  0x7f   : > { %7271 = vmatpush3.bf16.msra.mxu0 %v1159_v41  ;;  %v12620_v36 = vpack.i.bf16 %v9400_v55, %v9098_v28  ;;  %v7681_v40 = vpack.i.bf16 %v9412_v20, %v9029_v30  ;;  %v9561_v11 = vsel %vm635_vm3, %v9235_v7, %v1531_v14  ;;  %v2513_v26 = vsel %vm812_vm2, %v9002_v17, %v2512_v10  ;;  %v12623_v41 = vld [vmem:[#allocation8_spill] sm:$0xff]  ;;  %v12624_v20 = vld [vmem:[#allocation6_spill] sm:$0xff]  ;;  %v12625_v14 = vld [vmem:[#allocation9_spill] sm:$0xff] }
  0x80   : > { %7662 = vrot.lane.b32.xlu0 %v7661_v37, %s8805_s24  ;;  %v9541_v37 = vld [vmem:[%s12581_s1 + $0x10] sm:$0x3f]   ;;  %v7796_v25 = vpack.i.bf16 %v9561_v11, %v12621_v56  ;;  %v9569_v48 = vsel %vm812_vm2, %v12622_v44, %v1702_v29  ;;  %v9573_v55 = vsel %vm812_vm2, %v12623_v41, %v1707_v16  ;;  %v12626_v10 = vpack.i.bf16 %v9396_v0, %v9020_v24  ;;  %v12628_v41 = vld [vmem:[#allocation10_spill] sm:$0xff]  ;;  %v12629_v7 = vld [vmem:[#allocation12_spill] sm:$0xff] }
  0x81   : > { %7687 = vrot.lane.b32.xlu1 %v12620_v36, %s8805_s24  ;;  %7476 = vmatprep.subr.msk.bf16.mxu0 %vm812_vm2, %v9541_v37  ;;  %v7806_v17 = vpack.i.bf16 %v9573_v55, %v12625_v14  ;;  %v7706_v29 = vpack.i.bf16 %v2513_v26, %v9029_v30  ;;  %v1422_v16 = vld [vmem:[#allocation2 + $0x130] sm:$0x3]  ;;  %v12633_v26 = vld [vmem:[#allocation13_spill] sm:$0xff]  ;;  %v12636_v6 = vpack.i.bf16 %v9461_v34, %v9077_v5 }
  0x82   : > { %v1541_v36 = vrot.slane %v1422_v16, 1  ;;  %v1717_v44 = vrot.slane %v1422_v16, 2  ;;  %v12630_v0 = vld [vmem:[#allocation11_spill] sm:$0xff]  ;;  %v1424_v55 = vld [vmem:[#allocation2 + $0x140] sm:$0xff] }
  0x84   : > { %7672 = vrot.lane.b32.xlu0 %v12619_v32, %s8806_s25  ;;  %v12627_v32 = vpack.i.bf16 %v9408_v21, %v9050_v47  ;;  %v9600_v30 = vsel %vm812_vm2, %v12630_v0, %v1717_v44  ;;  %v12631_v47 = vpack.i.bf16 %v9418_v3, %v9058_v53  ;;  %v12632_v21 = vpack.i.bf16 %v9422_v27, %v9167_v57  ;;  %v8714_v44 = vld [vmem:[#allocation2 + $0x8] sm:$0xff]  ;;  %v7152_v0 = vld [vmem:[%s8945_s23 + $0x78] sm:$0xff]  }
  0x85   : > { %7697 = vrot.lane.b32.xlu1 %v12626_v10, %s8806_s25  ;;  %v7846_v10 = vpack.i.bf16 %v9600_v30, %v12633_v26  ;;  %v12635_v53 = vpack.i.bf16 %v9442_v33, %v9090_v22  ;;  %v12637_v33 = vpack.i.bf16 %v9465_v63, %v9090_v22  ;;  %v12638_v22 = vpack.i.bf16 %v9473_v51, %v9098_v28 }
  0x86   : > { %v12639_v63 = vpack.i.bf16 %v9487_v43, %v9215_v59  ;;  %v12640_v59 = vpack.i.bf16 %v9477_v60, %v9112_v39  ;;  %v1418_v60 = vld [vmem:[#allocation2 + $0x110] sm:$0xff] }
  0x88   : > { %7682 = vrot.lane.b32.xlu0 %v7681_v40, %s8805_s24  ;;  %v9594_v40 = vsel %vm635_vm3, %v12628_v41, %v1541_v36 }
  0x89   : > { %7707 = vrot.lane.b32.xlu1 %v7706_v29, %s8805_s24  ;;  %v7836_v24 = vpack.i.bf16 %v9594_v40, %v12629_v7  ;;  %v12634_v29 = vpack.i.bf16 %v9432_v13, %v9071_v62  ;;  %v2250_v62 = vld [vmem:[#allocation2 + $0xc0] sm:$0xff] }
  0x8a   : > { %v9918_v40 = vld [vmem:[#allocation2 + $0x120] sm:$0xff] }
  0x8c   : > { %7692 = vrot.lane.b32.xlu0 %v12627_v32, %s8806_s25 }
  0x8d   : > { %7717 = vrot.lane.b32.xlu1 %v12632_v21, %s8806_s25 }
  0x8e   : > { %v7498_v3 = vpop.permute.xlu1 %7497  ;;  %v7493_v16 = vpop.permute.xlu0 %7492 }
  0x8f   : > { %v7500_v27 = vunpack.i.h.bf16 %v7498_v3  ;;  %v7499_v13 = vunpack.i.l.bf16 %v7498_v3  ;;  %v7494_v32 = vunpack.i.l.bf16 %v7493_v16  ;;  %v2253_v3 = vld [vmem:[#allocation2 + $0xd8] sm:$0xff] }
  0x90   : > { %7702 = vrot.lane.b32.xlu0 %v12631_v47, %s8805_s24  ;;  %v2252_v47 = vld [vmem:[#allocation2 + $0xd0] sm:$0x3] }
  0x91   : > { %7727 = vrot.lane.b32.xlu1 %v7726_v15, %s8805_s24  ;;  %v7495_v15 = vunpack.i.h.bf16 %v7493_v16  ;;  %v2254_v16 = vld [vmem:[#allocation2 + $0xe0] sm:$0xff] }
  0x93   : > { %v990_v41 = vsel %vm451_vm0, %v8714_v44, %v7495_v15  ;;  %v2363_v15 = vrot.slane %v2253_v3, 1  ;;  %v2535_v44 = vrot.slane %v2251_v52, 2 }
  0x94   : > { %7712 = vrot.lane.b32.xlu0 %v12634_v29, %s8806_s25  ;;  %v1023_v34 = vsel %vm1021_vm5, %v990_v41, %v7500_v27  ;;  %v2358_v29 = vrot.slane %v2250_v62, 1  ;;  %v2361_v27 = vrot.slane %v2252_v47, 1  ;;  %v2537_v41 = vrot.slane %v2252_v47, 2 }
  0x95   : > { %7737 = vrot.lane.b32.xlu1 %v7736_v18, %s8806_s25  ;;  %v8713_v18 = vld [vmem:[#allocation2] sm:$0xff] }
  0x96   : > { %v989_v36 = vsel %vm451_vm0, %v8713_v18, %v7494_v32  ;;  %v2364_v32 = vrot.slane %v2254_v16, 1  ;;  %v2534_v18 = vrot.slane %v2250_v62, 2 }
  0x97   : > { %v1022_v5 = vsel %vm1021_vm5, %v989_v36, %v7499_v13  ;;  %v2255_v13 = vld [vmem:[#allocation2 + $0xe8] sm:$0x3] }
  0x98   : > { %7722 = vrot.lane.b32.xlu0 %v12635_v53, %s8805_s24  ;;  %v1086_v21 = vpack.c.bf16 %v1023_v34, %v1022_v5  ;;  %v2359_v53 = vrot.slane %v2251_v52, 1  ;;  %v2366_v28 = vrot.slane %v2255_v13, 1  ;;  %v2540_v34 = vrot.slane %v2254_v16, 2 }
  0x99   : > { %7747 = vrot.lane.b32.xlu1 %v12637_v33, %s8805_s24  ;;  %v7073_v33 = vunpack.c.h.bf16 %v7152_v0  ;;  %v9671_v52 = vsel %vm635_vm3, %v2363_v15, %v2364_v32 }
  0x9a   : > { %7272 = vmatprep.mubr.msk.bf16.mxu0 %vm1109_vm6, %v1086_v21  ;;  %v9659_v43 = vsel %vm635_vm3, %v2358_v29, %v2359_v53  ;;  %v9668_v62 = vsel %vm635_vm3, %v2359_v53, %v2361_v27  ;;  %v9674_v47 = vsel %vm635_vm3, %v2364_v32, %v2366_v28  ;;  %v2004_v29 = vsel %vm812_vm2, %v9378_v42, 0 }
  0x9b   : > { %v369_v36 = vrot.slane %v7073_v33, 7  ;;  %v9692_v27 = vsel %vm812_vm2, %v2535_v44, %v2537_v41  ;;  %v9695_v33 = vrot.slane %v1418_v60, 1  ;;  %7305 = vmatpush3.bf16.msra.mxu1 %v2004_v29  ;;  %v7816_v41 = vpack.i.bf16 %v9674_v47, %v9671_v52 }
  0x9c   : > { %7732 = vrot.lane.b32.xlu0 %v12636_v6, %s8806_s25  ;;  %v7072_v6 = vunpack.c.l.bf16 %v7152_v0  ;;  %v2539_v0 = vrot.slane %v2253_v3, 2 }
  0x9d   : > { %7757 = vrot.lane.b32.xlu1 %v12639_v63, %s8806_s25  ;;  %v9662_v63 = vld [vmem:[#allocation2 + $0x108] sm:$0xff]  ;;  %v450_v19 = vsel %vm322_vm4, %v369_v36, 0.0 }
  0x9e   : > { %v368_v51 = vrot.slane %v7072_v6, 7  ;;  %503 = vst.msk [vmem:[#allocation2 + $0x190] sm:$0x3] %vm454_vm1, %v450_v19  ;;  %v9689_v6 = vsel %vm812_vm2, %v2534_v18, %v2535_v44  ;;  %v1533_v42 = vrot.slane %v9662_v63, 1  ;;  %v7811_v44 = vpack.i.bf16 %v9668_v62, %v9659_v43 }
  0xa0   : > { %7742 = vrot.lane.b32.xlu0 %v12638_v22, %s8805_s24  ;;  %v434_v5 = vsel %vm322_vm4, 0.0, %v368_v51  ;;  %v2542_v22 = vrot.slane %v2255_v13, 2  ;;  %v370_v21 = vsel %vm322_vm4, %v368_v51, %v369_v36 }
  0xa1   : > { %7767 = vrot.lane.b32.xlu1 %v7766_v46, %s8805_s24  ;;  %501 = vst.msk [vmem:[#allocation2 + $0x180] sm:$0xff] %vm451_vm0, %v434_v5  ;;  %502 = vst.msk [vmem:[#allocation2 + $0x188] sm:$0xff] %vm451_vm0, %v370_v21  ;;  %v2849_v5 = vsel %vm812_vm2, %v9541_v37, 0  ;;  %v9740_v21 = vsel %vm635_vm3, %v1533_v42, %v9695_v33  ;;  %v9756_v42 = vld [vmem:[#allocation2 + $0x118] sm:$0x3] }
  0xa2   : > { %v9709_v15 = vsel %vm812_vm2, %v2540_v34, %v2542_v22 }
  0xa4   : > { %7752 = vrot.lane.b32.xlu0 %v12640_v59, %s8806_s25  ;;  %v7508_v58 = vpop.permute.xlu1 %7507  ;;  %v7503_v46 = vpop.permute.xlu0 %7502  ;;  %v1419_v59 = vld [vmem:[#allocation2 + $0x118] sm:$0x3] }
  0xa5   : > { %7777 = vrot.lane.b32.xlu1 %v7776_v35, %s8806_s25  ;;  %v7510_v53 = vunpack.i.h.bf16 %v7508_v58  ;;  %v7509_v3 = vunpack.i.l.bf16 %v7508_v58  ;;  %v7505_v16 = vunpack.i.h.bf16 %v7503_v46  ;;  %v7504_v13 = vunpack.i.l.bf16 %v7503_v46 }
  0xa6   : > { %v9706_v35 = vsel %vm812_vm2, %v2539_v0, %v2540_v34  ;;  %v9725_v0 = vld [vmem:[#allocation2 + $0xf0] sm:$0xff]  ;;  %v1536_v37 = vrot.slane %v1419_v59, 1  ;;  %v1709_v58 = vrot.slane %v9662_v63, 2  ;;  %v9743_v46 = vrot.slane %v1418_v60, 2 }
  0xa7   : > { %v991_v23 = vsel %vm451_vm0, %v9701_v2, %v7504_v13  ;;  %v7826_v49 = vpack.i.bf16 %v9709_v15, %v9706_v35  ;;  %v1712_v29 = vrot.slane %v1419_v59, 2  ;;  %v2369_v63 = vrot.slane %v9733_v1, 1 }
  0xa8   : > { %7762 = vrot.lane.b32.xlu0 %v7761_v8, %s8805_s24  ;;  %v9697_v8 = vld [vmem:[#allocation2 + $0x20] sm:$0xff]  ;;  %v7518_v32 = vpop.permute.xlu1 %7517  ;;  %v1024_v28 = vsel %vm1021_vm5, %v991_v23, %v7509_v3 }
  0xa9   : > { %v992_v39 = vsel %vm451_vm0, %v9697_v8, %v7505_v16  ;;  %7787 = vrot.lane.b32.xlu1 %v7786_v50, %s8805_s24  ;;  %v7513_v18 = vpop.permute.xlu0 %7512  ;;  %v7520_v57 = vunpack.i.h.bf16 %v7518_v32  ;;  %v7519_v61 = vunpack.i.l.bf16 %v7518_v32  ;;  %v9735_v50 = vld [vmem:[#allocation2 + $0x100] sm:$0x3]  ;;  %v9770_v32 = vld [vmem:[#allocation2 + $0x30] sm:$0xff]  ;;  %v9797_v54 = vsel %vm812_vm2, %v9743_v46, %v1712_v29 }
  0xaa   : > { %v1025_v51 = vsel %vm1021_vm5, %v992_v39, %v7510_v53  ;;  %v7515_v34 = vunpack.i.h.bf16 %v7513_v18  ;;  %v7514_v22 = vunpack.i.l.bf16 %v7513_v18  ;;  %v2368_v53 = vrot.slane %v9725_v0, 1  ;;  %v9758_v39 = vld [vmem:[#allocation2 + $0x50] sm:$0xff] }
  0xab   : > { %v1087_v36 = vpack.c.bf16 %v1025_v51, %v1024_v28  ;;  %v2371_v60 = vrot.slane %v9735_v50, 1  ;;  %v996_v9 = vsel %vm451_vm0, %v9758_v39, %v7520_v57 }
  0xac   : > { %7772 = vrot.lane.b32.xlu0 %v7771_v45, %s8806_s25  ;;  %v7821_v45 = vpack.i.bf16 %v9692_v27, %v9689_v6  ;;  %v7528_v19 = vpop.permute.xlu1 %7527  ;;  %v993_v28 = vsel %vm451_vm0, %v9770_v32, %v7514_v22  ;;  %v9800_v38 = vsel %vm635_vm3, %v2368_v53, %v2369_v63 }
  0xad   : > { %7273 = vmatmul.mubr.msk.bf16.vlgmr.msra.gmra.mrb[0].mxu0 %vm1109_vm6, %v1087_v36  ;;  %7797 = vrot.lane.b32.xlu1 %v7796_v25, %s8806_s25  ;;  %v7530_v3 = vunpack.i.h.bf16 %v7528_v19  ;;  %v7529_v16 = vunpack.i.l.bf16 %v7528_v19  ;;  %v7523_v13 = vpop.permute.xlu0 %7522  ;;  %v9766_v25 = vld [vmem:[#allocation2 + $0x38] sm:$0xff]  ;;  %v9789_v19 = vsel %vm635_vm3, %v9695_v33, %v1536_v37  ;;  %v2544_v37 = vrot.slane %v9725_v0, 2 }
  0xae   : > { %7339 = vmatpush3.bf16.msra.mxu0 %v2849_v5  ;;  %v7525_v11 = vunpack.i.h.bf16 %v7523_v13  ;;  %v7524_v56 = vunpack.i.l.bf16 %v7523_v13  ;;  %v994_v23 = vsel %vm451_vm0, %v9766_v25, %v7515_v34  ;;  %v9809_v29 = vsel %vm635_vm3, %v2369_v63, %v2371_v60 }
  0xaf   : > { %v1029_v59 = vsel %vm1021_vm5, %v996_v9, %v7530_v3  ;;  %v9793_v3 = vsel %vm812_vm2, %v1709_v58, %v9743_v46  ;;  %v2545_v58 = vrot.slane %v9733_v1, 2  ;;  %v12641_v0 = vpack.i.bf16 %v9569_v48, %v12624_v20  ;;  %v9834_v20 = vld [vmem:[#allocation2 + $0x78] sm:$0xff] }
  0xb0   : > { %7782 = vrot.lane.b32.xlu0 %v7781_v12, %s8805_s24  ;;  %v995_v12 = vsel %vm451_vm0, %v9762_v31, %v7519_v61  ;;  %v1026_v18 = vsel %vm1021_vm5, %v993_v28, %v7524_v56  ;;  %v1027_v36 = vsel %vm1021_vm5, %v994_v23, %v7525_v11  ;;  %v7538_v5 = vpop.permute.xlu1 %7537  ;;  %v2376_v61 = vrot.slane %v9756_v42, 1  ;;  %v9825_v56 = vld [vmem:[#allocation2 + $0x148] sm:$0x3] }
  0xb1   : > { %v1028_v51 = vsel %vm1021_vm5, %v995_v12, %v7529_v16  ;;  %7807 = vrot.lane.b32.xlu1 %v7806_v17, %s8805_s24  ;;  %v7533_v34 = vpop.permute.xlu0 %7532  ;;  %v1088_v22 = vpack.c.bf16 %v1027_v36, %v1026_v18  ;;  %v7540_v16 = vunpack.i.h.bf16 %v7538_v5  ;;  %v7539_v13 = vunpack.i.l.bf16 %v7538_v5  ;;  %v9838_v23 = vld [vmem:[#allocation2 + $0x68] sm:$0xff]  ;;  %v9848_v5 = vld [vmem:[#allocation2 + $0x150] sm:$0xff] }
  0xb2   : > { %v1089_v57 = vpack.c.bf16 %v1029_v59, %v1028_v51  ;;  %v7535_v14 = vunpack.i.h.bf16 %v7533_v34  ;;  %v7534_v17 = vunpack.i.l.bf16 %v7533_v34  ;;  %v9813_v53 = vsel %vm635_vm3, %v9695_v33, %v2376_v61  ;;  %v9842_v51 = vld [vmem:[#allocation2 + $0x60] sm:$0xff] }
  0xb3   : > { %7276 = vmatprep.mubr.msk.bf16.mxu0 %vm1109_vm6, %v1088_v22  ;;  %v2547_v12 = vrot.slane %v9735_v50, 2  ;;  %v2552_v11 = vrot.slane %v9756_v42, 2  ;;  %v9828_v50 = vrot.slane %v1424_v55, 1  ;;  %v9830_v42 = vld [vmem:[#allocation2 + $0x80] sm:$0xff]  ;;  %v999_v52 = vsel %vm451_vm0, %v9834_v20, %v7539_v13 }
  0xb4   : > { %7792 = vrot.lane.b32.xlu0 %v7791_v4, %s8806_s25  ;;  %v9802_v4 = vld [vmem:[#allocation2 + $0x138] sm:$0xff]  ;;  %v7548_v9 = vpop.permute.xlu1 %7547  ;;  %v1000_v48 = vsel %vm451_vm0, %v9830_v42, %v7540_v16  ;;  %v998_v28 = vsel %vm451_vm0, %v9838_v23, %v7535_v14  ;;  %v997_v59 = vsel %vm451_vm0, %v9842_v51, %v7534_v17  ;;  %v9850_v61 = vld [vmem:[#allocation2 + $0x160] sm:$0x3]  ;;  %v1546_v14 = vrot.slane %v9825_v56, 1 }
  0xb5   : > { %7277 = vmatmul.mubr.msk.bf16.gmra.mrb[4].mxu0 %vm1109_vm6, %v1089_v57  ;;  %7817 = vrot.lane.b32.xlu1 %v7816_v41, %s8806_s25  ;;  %v7550_v1 = vunpack.i.h.bf16 %v7548_v9  ;;  %v7549_v63 = vunpack.i.l.bf16 %v7548_v9  ;;  %v7543_v60 = vpop.permute.xlu0 %7542  ;;  %v1543_v33 = vrot.slane %v9802_v4, 1  ;;  %v1427_v57 = vld [vmem:[#allocation2 + $0x158] sm:$0xff]  ;;  %v9864_v9 = vsel %vm812_vm2, %v2544_v37, %v2545_v58 }
  0xb6   : > { %v7545_v47 = vunpack.i.h.bf16 %v7543_v60  ;;  %v7544_v41 = vunpack.i.l.bf16 %v7543_v60  ;;  %v9874_v43 = vrot.slane %v1427_v57, 1  ;;  %v1551_v62 = vrot.slane %v9850_v61, 1 }
  0xb7   : > { %v1032_v18 = vsel %vm1021_vm5, %v999_v52, %v7549_v63  ;;  %v1033_v36 = vsel %vm1021_vm5, %v1000_v48, %v7550_v1  ;;  %v9871_v1 = vsel %vm812_vm2, %v9743_v46, %v2552_v11  ;;  %v1548_v63 = vrot.slane %v9848_v5, 1 }
  0xb8   : > { %7802 = vrot.lane.b32.xlu0 %v12641_v0, %s8805_s24  ;;  %v1030_v34 = vsel %vm1021_vm5, %v997_v59, %v7544_v41  ;;  %v1031_v22 = vsel %vm1021_vm5, %v998_v28, %v7545_v47  ;;  %v7558_v16 = vpop.permute.xlu1 %7557  ;;  %v1091_v13 = vpack.c.bf16 %v1033_v36, %v1032_v18  ;;  %v9867_v0 = vsel %vm812_vm2, %v2545_v58, %v2547_v12  ;;  %v9943_v36 = vld [vmem:[#allocation2 + $0xb0] sm:$0xff] }
  0xb9   : > { %7827 = vrot.lane.b32.xlu1 %v7826_v49, %s8805_s24  ;;  %v1090_v17 = vpack.c.bf16 %v1031_v22, %v1030_v34  ;;  %v7831_v35 = vpack.i.bf16 %v9789_v19, %v9740_v21  ;;  %v7841_v15 = vpack.i.bf16 %v9797_v54, %v9793_v3  ;;  %v7851_v49 = vpack.i.bf16 %v9809_v29, %v9800_v38  ;;  %v2267_v22 = vld [vmem:[#allocation2 + $0x148] sm:$0x3]  ;;  %v10008_v38 = vld [vmem:[#allocation2 + $0xd8] sm:$0xff] }
  0xba   : > { %v7856_v46 = vpack.i.bf16 %v9813_v53, %v9740_v21  ;;  %v9889_v37 = vsel %vm635_vm3, %v1543_v33, %v9828_v50  ;;  %v9893_v19 = vsel %vm635_vm3, %v9828_v50, %v1546_v14  ;;  %v7861_v21 = vpack.i.bf16 %v9867_v0, %v9864_v9  ;;  %v9925_v33 = vld [vmem:[#allocation2 + $0x130] sm:$0x3]  ;;  %v10051_v0 = vld [vmem:[#allocation2 + $0x180] sm:$0xff] }
  0xbb   : > { %7280 = vmatprep.mubr.msk.bf16.mxu0 %vm1109_vm6, %v1090_v17  ;;  %v7866_v54 = vpack.i.bf16 %v9871_v1, %v9793_v3  ;;  %v1719_v58 = vrot.slane %v9802_v4, 2  ;;  %v9908_v53 = vrot.slane %v1424_v55, 2  ;;  %v7560_v12 = vunpack.i.h.bf16 %v7558_v16  ;;  %v9923_v55 = vld [vmem:[#allocation2 + $0x128] sm:$0xff]  ;;  %v9955_v17 = vld [vmem:[#allocation2 + $0x98] sm:$0xff] }
  0xbc   : > { %7812 = vrot.lane.b32.xlu0 %v7811_v44, %s8806_s25  ;;  %v7568_v44 = vpop.permute.xlu1 %7567  ;;  %v7559_v11 = vunpack.i.l.bf16 %v7558_v16  ;;  %v9912_v6 = vsel %vm635_vm3, %v1548_v63, %v9874_v43  ;;  %v9916_v7 = vsel %vm635_vm3, %v9874_v43, %v1551_v62  ;;  %v1722_v4 = vrot.slane %v9825_v56, 2  ;;  %v9959_v62 = vld [vmem:[#allocation2 + $0x90] sm:$0xff] }
  0xbd   : > { %7281 = vmatmul.mubr.msk.bf16.gmra.mrb[8].mxu0 %vm1109_vm6, %v1091_v13  ;;  %7837 = vrot.lane.b32.xlu1 %v7836_v24, %s8806_s25  ;;  %v7570_v24 = vunpack.i.h.bf16 %v7568_v44  ;;  %v7569_v27 = vunpack.i.l.bf16 %v7568_v44  ;;  %v1724_v47 = vrot.slane %v9848_v5, 2  ;;  %v9928_v41 = vrot.slane %v1427_v57, 2  ;;  %v9947_v57 = vld [vmem:[#allocation2 + $0xa8] sm:$0xff] }
  0xbe   : > { %v7876_v56 = vpack.i.bf16 %v9916_v7, %v9912_v6  ;;  %v9939_v28 = vsel %vm812_vm2, %v1719_v58, %v9908_v53  ;;  %v1727_v59 = vrot.slane %v9850_v61, 2  ;;  %v2378_v18 = vrot.slane %v9918_v40, 1 }
  0xbf   : > { %v7553_v60 = vpop.permute.xlu0 %7552  ;;  %v1004_v5 = vsel %vm451_vm0, %v9943_v36, %v7560_v12  ;;  %v1003_v30 = vsel %vm451_vm0, %v9947_v57, %v7559_v11  ;;  %v2381_v34 = vrot.slane %v9925_v33, 1  ;;  %v9965_v58 = vsel %vm812_vm2, %v9908_v53, %v1722_v4 }
  0xc0   : > { %7822 = vrot.lane.b32.xlu0 %v7821_v45, %s8805_s24  ;;  %v7871_v45 = vpack.i.bf16 %v9893_v19, %v9889_v37  ;;  %v7555_v48 = vunpack.i.h.bf16 %v7553_v60  ;;  %v7554_v52 = vunpack.i.l.bf16 %v7553_v60  ;;  %v1036_v61 = vsel %vm1021_vm5, %v1003_v30, %v7569_v27 }
  0xc1   : > { %7847 = vrot.lane.b32.xlu1 %v7846_v10, %s8805_s24  ;;  %v2379_v10 = vrot.slane %v9923_v55, 1  ;;  %v1037_v16 = vsel %vm1021_vm5, %v1004_v5, %v7570_v24  ;;  %v9969_v12 = vsel %vm812_vm2, %v1724_v47, %v9928_v41  ;;  %v9977_v24 = vsel %vm812_vm2, %v9928_v41, %v1727_v59 }
  0xc2   : > { %v1002_v63 = vsel %vm451_vm0, %v9955_v17, %v7555_v48  ;;  %v2386_v27 = vrot.slane %v2267_v22, 1  ;;  %v1093_v30 = vpack.c.bf16 %v1037_v16, %v1036_v61  ;;  %v7881_v47 = vpack.i.bf16 %v9965_v58, %v9939_v28  ;;  %v10004_v16 = vld [vmem:[#allocation2 + $0xe0] sm:$0xff]  ;;  %v10112_v58 = vld [vmem:[#allocation2 + $0x178] sm:$0x3] }
  0xc3   : > { %v7563_v26 = vpop.permute.xlu0 %7562  ;;  %v2562_v61 = vrot.slane %v2267_v22, 2 }
  0xc4   : > { %7832 = vrot.lane.b32.xlu0 %v7831_v35, %s8806_s25  ;;  %v7565_v13 = vunpack.i.h.bf16 %v7563_v26  ;;  %v7564_v14 = vunpack.i.l.bf16 %v7563_v26  ;;  %v1001_v35 = vsel %vm451_vm0, %v9959_v62, %v7554_v52  ;;  %v7578_v44 = vpop.permute.xlu1 %7577  ;;  %v9985_v26 = vsel %vm635_vm3, %v2379_v10, %v2381_v34 }
  0xc5   : > { %7857 = vrot.lane.b32.xlu1 %v7856_v46, %s8806_s25  ;;  %v7580_v48 = vunpack.i.h.bf16 %v7578_v44  ;;  %v7579_v4 = vunpack.i.l.bf16 %v7578_v44  ;;  %v2554_v46 = vrot.slane %v9918_v40, 2  ;;  %v2555_v34 = vrot.slane %v9923_v55, 2  ;;  %v10018_v44 = vld [vmem:[#allocation2 + $0xc8] sm:$0xff] }
  0xc6   : > { %v1034_v11 = vsel %vm1021_vm5, %v1001_v35, %v7564_v14  ;;  %v1035_v60 = vsel %vm1021_vm5, %v1002_v63, %v7565_v13  ;;  %v7886_v63 = vpack.i.bf16 %v9977_v24, %v9969_v12 }
  0xc7   : > { %v7573_v52 = vpop.permute.xlu0 %7572  ;;  %v1092_v5 = vpack.c.bf16 %v1035_v60, %v1034_v11  ;;  %v1008_v22 = vsel %vm451_vm0, %v10004_v16, %v7580_v48  ;;  %v1007_v29 = vsel %vm451_vm0, %v10008_v38, %v7579_v4  ;;  %v10022_v60 = vld [vmem:[#allocation2 + $0xc0] sm:$0xff]  ;;  %v10030_v48 = vsel %vm812_vm2, %v9908_v53, %v2562_v61  ;;  %v10032_v4 = vld [vmem:[#allocation2 + $0x168] sm:$0xff] }
  0xc8   : > { %7842 = vrot.lane.b32.xlu0 %v7841_v15, %s8805_s24  ;;  %v9982_v15 = vsel %vm635_vm3, %v2378_v18, %v2379_v10  ;;  %v7575_v13 = vunpack.i.h.bf16 %v7573_v52  ;;  %v7574_v59 = vunpack.i.l.bf16 %v7573_v52  ;;  %v7588_v14 = vpop.permute.xlu1 %7587  ;;  %v10001_v10 = vsel %vm635_vm3, %v9828_v50, %v2386_v27  ;;  %12642 = vst [vmem:[#allocation7_spill] sm:$0xff] %v10032_v4  ;;  %v10034_v52 = vld [vmem:[#allocation2 + $0x170] sm:$0xff] }
  0xc9   : > { %7284 = vmatprep.mubr.msk.bf16.mxu0 %vm1109_vm6, %v1092_v5  ;;  %7867 = vrot.lane.b32.xlu1 %v7866_v54, %s8805_s24  ;;  %v7590_v40 = vunpack.i.h.bf16 %v7588_v14  ;;  %v7589_v18 = vunpack.i.l.bf16 %v7588_v14  ;;  %v7891_v1 = vpack.i.bf16 %v9985_v26, %v9982_v15  ;;  %v2557_v50 = vrot.slane %v9925_v33, 2  ;;  %12643 = vst [vmem:[#allocation5_spill] sm:$0xff] %v10034_v52 }
  0xca   : > { %7285 = vmatmul.mubr.msk.bf16.gmra.mrb[12].mxu0 %vm1109_vm6, %v1093_v30  ;;  %v1006_v11 = vsel %vm451_vm0, %v10018_v44, %v7575_v13  ;;  %v1005_v24 = vsel %vm451_vm0, %v10022_v60, %v7574_v59  ;;  %v7896_v33 = vpack.i.bf16 %v10001_v10, %v9889_v37  ;;  %v10047_v53 = vsel %vm812_vm2, %v2554_v46, %v2555_v34  ;;  %v10049_v13 = vld [vmem:[#allocation2 + $0x178] sm:$0x3]  ;;  %v10062_v46 = vld [vmem:[#allocation2 + $0x188] sm:$0xff]  ;;  %v1434_v10 = vld [vmem:[#allocation2 + $0x190] sm:$0x3] }
  0xcb   : > { %v7583_v3 = vpop.permute.xlu0 %7582  ;;  %v1041_v54 = vsel %vm1021_vm5, %v1008_v22, %v7590_v40  ;;  %v1553_v7 = vrot.slane %v10032_v4, 1  ;;  %v10080_v37 = vrot.slane %v10062_v46, 1  ;;  %v1561_v19 = vrot.slane %v1434_v10, 1 }
  0xcc   : > { %7852 = vrot.lane.b32.xlu0 %v7851_v49, %s8806_s25  ;;  %v1040_v49 = vsel %vm1021_vm5, %v1007_v29, %v7589_v18  ;;  %v7585_v55 = vunpack.i.h.bf16 %v7583_v3  ;;  %v7584_v35 = vunpack.i.l.bf16 %v7583_v3  ;;  %v7598_v27 = vpop.permute.xlu1 %7597  ;;  %v7906_v18 = vpack.i.bf16 %v10030_v48, %v9939_v28 }
  0xcd   : > { %7877 = vrot.lane.b32.xlu1 %v7876_v56, %s8806_s25  ;;  %v7600_v59 = vunpack.i.h.bf16 %v7598_v27  ;;  %v7599_v14 = vunpack.i.l.bf16 %v7598_v27  ;;  %v1095_v9 = vpack.c.bf16 %v1041_v54, %v1040_v49  ;;  %v10060_v56 = vrot.slane %v10034_v52, 1  ;;  %v8734_v27 = vld [vmem:[#allocation2 + $0x108] sm:$0xff] }
  0xce   : > { %v1038_v5 = vsel %vm1021_vm5, %v1005_v24, %v7584_v35  ;;  %v1039_v30 = vsel %vm1021_vm5, %v1006_v11, %v7585_v55  ;;  %v1556_v49 = vrot.slane %v10049_v13, 1  ;;  %v1558_v55 = vrot.slane %v10051_v0, 1  ;;  %v8733_v11 = vld [vmem:[#allocation2 + $0x110] sm:$0xff] }
  0xcf   : > { %v7593_v61 = vpop.permute.xlu0 %7592  ;;  %v1094_v40 = vpack.c.bf16 %v1039_v30, %v1038_v5  ;;  %v10074_v35 = vrot.slane %v10034_v52, 2  ;;  %v1012_v24 = vsel %vm451_vm0, %v8733_v11, %v7600_v59  ;;  %v1011_v48 = vsel %vm451_vm0, %v8734_v27, %v7599_v14 }
  0xd0   : > { %7862 = vrot.lane.b32.xlu0 %v7861_v21, %s8805_s24  ;;  %v10054_v21 = vsel %vm812_vm2, %v2555_v34, %v2557_v50  ;;  %v7595_v22 = vunpack.i.h.bf16 %v7593_v61  ;;  %v7594_v29 = vunpack.i.l.bf16 %v7593_v61  ;;  %v7608_v3 = vpop.permute.xlu1 %7607  ;;  %v1729_v34 = vrot.slane %v10032_v4, 2 }
  0xd1   : > { %7288 = vmatprep.mubr.msk.bf16.mxu0 %vm1109_vm6, %v1094_v40  ;;  %7887 = vrot.lane.b32.xlu1 %v7886_v63, %s8805_s24  ;;  %v7610_v50 = vunpack.i.h.bf16 %v7608_v3  ;;  %v7609_v54 = vunpack.i.l.bf16 %v7608_v3  ;;  %v10084_v40 = vld [vmem:[#allocation2 + $0xf8] sm:$0xff]  ;;  %v10088_v3 = vld [vmem:[#allocation2 + $0xf0] sm:$0xff]  ;;  %v1734_v11 = vrot.slane %v10051_v0, 2  ;;  %v1562_v28 = vsel %vm635_vm3, %v10080_v37, %v1561_v19 }
  0xd2   : > { %7289 = vmatmul.mubr.msk.bf16.gmra.mrb[16].mxu0 %vm1109_vm6, %v1095_v9  ;;  %v1010_v59 = vsel %vm451_vm0, %v10084_v40, %v7595_v22  ;;  %v1009_v14 = vsel %vm451_vm0, %v10088_v3, %v7594_v29  ;;  %v1732_v9 = vrot.slane %v10049_v13, 2  ;;  %v10102_v22 = vrot.slane %v10062_v46, 2  ;;  %v10104_v29 = vld [vmem:[#allocation2 + $0x160] sm:$0x3] }
  0xd3   : > { %v7603_v5 = vpop.permute.xlu0 %7602  ;;  %v1045_v63 = vsel %vm1021_vm5, %v1012_v24, %v7610_v50  ;;  %v1737_v24 = vrot.slane %v1434_v10, 2  ;;  %v10119_v10 = vsel %vm635_vm3, %v1553_v7, %v10060_v56 }
  0xd4   : > { %7872 = vrot.lane.b32.xlu0 %v7871_v45, %s8806_s25  ;;  %v1044_v45 = vsel %vm1021_vm5, %v1011_v48, %v7609_v54  ;;  %v7605_v30 = vunpack.i.h.bf16 %v7603_v5  ;;  %v7604_v61 = vunpack.i.l.bf16 %v7603_v5  ;;  %v10108_v48 = vsel %vm635_vm3, %v1558_v55, %v10080_v37 }
  0xd5   : > { %7897 = vrot.lane.b32.xlu1 %v7896_v33, %s8806_s25  ;;  %v1097_v27 = vpack.c.bf16 %v1045_v63, %v1044_v45  ;;  %v7901_v33 = vpack.i.bf16 %v10054_v21, %v10047_v53  ;;  %v1557_v5 = vsel %vm635_vm3, %v10060_v56, %v1556_v49  ;;  %v2391_v55 = vrot.slane %v10104_v29, 1 }
  0xd6   : > { %v1042_v50 = vsel %vm1021_vm5, %v1009_v14, %v7604_v61  ;;  %v1043_v54 = vsel %vm1021_vm5, %v1010_v59, %v7605_v30  ;;  %v7916_v53 = vpack.i.bf16 %v1562_v28, %v10108_v48  ;;  %v10132_v21 = vsel %vm812_vm2, %v1729_v34, %v10074_v35  ;;  %v10146_v59 = vld [vmem:[#allocation2 + $0x198] sm:$0xff] }
  0xd7   : > { %v1096_v13 = vpack.c.bf16 %v1043_v54, %v1042_v50  ;;  %v1733_v7 = vsel %vm812_vm2, %v10074_v35, %v1732_v9  ;;  %v2396_v49 = vrot.slane %v10112_v58, 1  ;;  %v10140_v15 = vsel %vm812_vm2, %v1734_v11, %v10102_v22  ;;  %v10153_v54 = vld [vmem:[#allocation2 + $0x1a0] sm:$0xff]  ;;  %v8738_v28 = vld [vmem:[#allocation2 + $0x138] sm:$0xff] }
  0xd8   : > { %7882 = vrot.lane.b32.xlu0 %v7881_v47, %s8805_s24  ;;  %v7618_v47 = vpop.permute.xlu1 %7617  ;;  %v1738_v26 = vsel %vm812_vm2, %v10102_v22, %v1737_v24  ;;  %v7911_v30 = vpack.i.bf16 %v1557_v5, %v10119_v10  ;;  %v7921_v61 = vpack.i.bf16 %v1733_v7, %v10132_v21  ;;  %v2392_v50 = vsel %vm635_vm3, %v9874_v43, %v2391_v55  ;;  %v2279_v24 = vld [vmem:[#allocation2 + $0x1a8] sm:$0x3] }
  0xd9   : > { %7292 = vmatprep.mubr.msk.bf16.mxu0 %vm1109_vm6, %v1096_v13  ;;  %7907 = vrot.lane.b32.xlu1 %v7906_v18, %s8805_s24  ;;  %v7620_v19 = vunpack.i.h.bf16 %v7618_v47  ;;  %v7619_v45 = vunpack.i.l.bf16 %v7618_v47  ;;  %v7926_v11 = vpack.i.bf16 %v1738_v26, %v10140_v15  ;;  %v8737_v13 = vld [vmem:[#allocation2 + $0x140] sm:$0xff]  ;;  %v2397_v5 = vsel %vm635_vm3, %v10060_v56, %v2396_v49 }
  0xda   : > { %7293 = vmatmul.mubr.msk.bf16.gmra.mrb[20].mxu0 %vm1109_vm6, %v1097_v27  ;;  %v2572_v55 = vrot.slane %v10112_v58, 2  ;;  %v7936_v58 = vpack.i.bf16 %v2397_v5, %v10119_v10  ;;  %v2580_v10 = vrot.slane %v10153_v54, 2 }
  0xdb   : > { %v1016_v27 = vsel %vm451_vm0, %v8737_v13, %v7620_v19  ;;  %v1015_v47 = vsel %vm451_vm0, %v8738_v28, %v7619_v45  ;;  %v2404_v45 = vrot.slane %v10153_v54, 1  ;;  %v2406_v13 = vrot.slane %v2279_v24, 1  ;;  %v10167_v28 = vld [vmem:[#allocation2 + $0x128] sm:$0xff] }
  0xdc   : > { %7892 = vrot.lane.b32.xlu0 %v7891_v1, %s8806_s25  ;;  %v7628_v18 = vpop.permute.xlu1 %7627 }
  0xdd   : > { %v7630_v34 = vunpack.i.h.bf16 %v7628_v18  ;;  %v7629_v63 = vunpack.i.l.bf16 %v7628_v18  ;;  %7917 = vrot.lane.b32.xlu1 %v7916_v53, %s8806_s25 }
  0xde   : > { %v7613_v1 = vpop.permute.xlu0 %7612 }
  0xdf   : > { %v7615_v14 = vunpack.i.h.bf16 %v7613_v1  ;;  %v7614_v9 = vunpack.i.l.bf16 %v7613_v1  ;;  %v1048_v53 = vsel %vm1021_vm5, %v1015_v47, %v7629_v63  ;;  %v1049_v7 = vsel %vm1021_vm5, %v1016_v27, %v7630_v34  ;;  %v2276_v34 = vld [vmem:[#allocation2 + $0x190] sm:$0x3] }
  0xe0   : > { %7902 = vrot.lane.b32.xlu0 %v7901_v33, %s8805_s24  ;;  %v2567_v33 = vrot.slane %v10104_v29, 2  ;;  %v10162_v43 = vpop.permute.xlu1 %7637  ;;  %v2403_v1 = vrot.slane %v10146_v59, 1  ;;  %v10171_v29 = vld [vmem:[#allocation2 + $0x120] sm:$0xff]  ;;  %v1099_v47 = vpack.c.bf16 %v1049_v7, %v1048_v53  ;;  %v2582_v53 = vrot.slane %v2279_v24, 2 }
  0xe1   : > { %v1014_v56 = vsel %vm451_vm0, %v10167_v28, %v7615_v14  ;;  %v1013_v49 = vsel %vm451_vm0, %v10171_v29, %v7614_v9  ;;  %7927 = vrot.lane.b32.xlu1 %v7926_v11, %s8805_s24  ;;  %v2579_v9 = vrot.slane %v10146_v59, 2  ;;  %v2401_v11 = vrot.slane %v2276_v34, 1 }
  0xe2   : > { %v7623_v26 = vpop.permute.xlu0 %7622  ;;  %v2568_v14 = vsel %vm812_vm2, %v9928_v41, %v2567_v33  ;;  %v2405_v5 = vsel %vm635_vm3, %v2403_v1, %v2404_v45  ;;  %v7931_v41 = vpack.i.bf16 %v2392_v50, %v9912_v6  ;;  %v2577_v24 = vrot.slane %v2276_v34, 2 }
  0xe3   : > { %v7625_v19 = vunpack.i.h.bf16 %v7623_v26  ;;  %v7624_v18 = vunpack.i.l.bf16 %v7623_v26  ;;  %v7941_v1 = vpack.i.bf16 %v2568_v14, %v9969_v12  ;;  %v2583_v6 = vsel %vm812_vm2, %v2580_v10, %v2582_v53 }
  0xe4   : > { %7912 = vrot.lane.b32.xlu0 %v7911_v30, %s8806_s25  ;;  %v10182_v52 = vpop.permute.xlu1 %7647  ;;  %v2573_v30 = vsel %vm812_vm2, %v10074_v35, %v2572_v55  ;;  %v7640_v50 = vunpack.i.h.bf16 %v10162_v43 }
  0xe5   : > { %v1046_v63 = vsel %vm1021_vm5, %v1013_v49, %v7624_v18  ;;  %v1047_v27 = vsel %vm1021_vm5, %v1014_v56, %v7625_v19  ;;  %v2407_v19 = vsel %vm635_vm3, %v2404_v45, %v2406_v13  ;;  %7937 = vrot.lane.b32.xlu1 %v7936_v58, %s8806_s25  ;;  %v7946_v35 = vpack.i.bf16 %v2573_v30, %v10132_v21 }
  0xe6   : > { %v7633_v26 = vpop.permute.xlu0 %7632  ;;  %v1098_v4 = vpack.c.bf16 %v1047_v27, %v1046_v63  ;;  %v7956_v45 = vpack.i.bf16 %v2407_v19, %v2405_v5  ;;  %v2581_v13 = vsel %vm812_vm2, %v2579_v9, %v2580_v10  ;;  %v7639_v49 = vunpack.i.l.bf16 %v10162_v43 }
  0xe7   : > { %v7635_v7 = vunpack.i.h.bf16 %v7633_v26  ;;  %v7634_v18 = vunpack.i.l.bf16 %v7633_v26  ;;  %v2578_v26 = vsel %vm812_vm2, %v10102_v22, %v2577_v24  ;;  %v7650_v19 = vunpack.i.h.bf16 %v10182_v52  ;;  %v8741_v22 = vld [vmem:[#allocation2 + $0x170] sm:$0xff] }
  0xe8   : > { %7922 = vrot.lane.b32.xlu0 %v7921_v61, %s8805_s24  ;;  %7296 = vmatprep.mubr.msk.bf16.mxu0 %vm1109_vm6, %v1098_v4  ;;  %v7658_v55 = vpop.permute.xlu1 %7657  ;;  %v2402_v4 = vsel %vm635_vm3, %v10080_v37, %v2401_v11  ;;  %v1838_v11 = vsel %vm451_vm0, %v9766_v25, %v7640_v50  ;;  %v1837_v5 = vsel %vm451_vm0, %v9770_v32, %v7639_v49  ;;  %v7649_v53 = vunpack.i.l.bf16 %v10182_v52  ;;  %v8744_v50 = vld [vmem:[#allocation2 + $0x150] sm:$0xff] }
  0xe9   : > { %7297 = vmatmul.mubr.msk.bf16.gmra.mrb[24].mxu0 %vm1109_vm6, %v1099_v47  ;;  %v1835_v12 = vsel %vm451_vm0, %v9701_v2, %v7634_v18  ;;  %v1836_v21 = vsel %vm451_vm0, %v9697_v8, %v7635_v7  ;;  %v7660_v58 = vunpack.i.h.bf16 %v7658_v55  ;;  %v7659_v34 = vunpack.i.l.bf16 %v7658_v55  ;;  %7947 = vrot.lane.b32.xlu1 %v7946_v35, %s8805_s24  ;;  %v8742_v7 = vld [vmem:[#allocation2 + $0x168] sm:$0xff] }
  0xea   : > { %v7643_v33 = vpop.permute.xlu0 %7642  ;;  %v7951_v43 = vpack.i.bf16 %v2402_v4, %v10108_v48  ;;  %v7966_v2 = vpack.i.bf16 %v2583_v6, %v2581_v13  ;;  %v8743_v4 = vld [vmem:[#allocation2 + $0x158] sm:$0xff]  ;;  %v1017_v49 = vsel %vm451_vm0, %v8744_v50, %v7649_v53 }
  0xeb   : > { %v7645_v56 = vunpack.i.h.bf16 %v7643_v33  ;;  %v7644_v61 = vunpack.i.l.bf16 %v7643_v33  ;;  %v1020_v48 = vsel %vm451_vm0, %v8741_v22, %v7660_v58  ;;  %v1019_v18 = vsel %vm451_vm0, %v8742_v7, %v7659_v34 }
  0xec   : > { %7932 = vrot.lane.b32.xlu0 %v7931_v41, %s8806_s25  ;;  %v7668_v14 = vpop.permute.xlu1 %7667  ;;  %v1018_v6 = vsel %vm451_vm0, %v8743_v4, %v7650_v19 }
  0xed   : > { %v1867_v63 = vsel %vm1021_vm5, %v1835_v12, %v7644_v61  ;;  %v1868_v37 = vsel %vm1021_vm5, %v1836_v21, %v7645_v56  ;;  %v7670_v8 = vunpack.i.h.bf16 %v7668_v14  ;;  %v7669_v10 = vunpack.i.l.bf16 %v7668_v14  ;;  %7957 = vrot.lane.b32.xlu1 %v7956_v45, %s8806_s25 }
  0xee   : > { %v7653_v27 = vpop.permute.xlu0 %7652  ;;  %v1931_v47 = vpack.c.bf16 %v1868_v37, %v1867_v63  ;;  %v7961_v61 = vpack.i.bf16 %v2578_v26, %v10140_v15 }
  0xef   : > { %v7655_v30 = vunpack.i.h.bf16 %v7653_v27  ;;  %v7654_v9 = vunpack.i.l.bf16 %v7653_v27  ;;  %v1052_v33 = vsel %vm1021_vm5, %v1019_v18, %v7669_v10  ;;  %v1053_v52 = vsel %vm1021_vm5, %v1020_v48, %v7670_v8 }
  0xf0   : > { %7942 = vrot.lane.b32.xlu0 %v7941_v1, %s8805_s24  ;;  %7306 = vmatprep.mubr.msk.bf16.mxu1 %vm1109_vm6, %v1931_v47  ;;  %v7678_v24 = vpop.permute.xlu1 %7677  ;;  %v1101_v34 = vpack.c.bf16 %v1053_v52, %v1052_v33 }
  0xf1   : > { %v1870_v41 = vsel %vm1021_vm5, %v1838_v11, %v7655_v30  ;;  %v1869_v35 = vsel %vm1021_vm5, %v1837_v5, %v7654_v9  ;;  %v7680_v45 = vunpack.i.h.bf16 %v7678_v24  ;;  %v7679_v12 = vunpack.i.l.bf16 %v7678_v24  ;;  %7967 = vrot.lane.b32.xlu1 %v7966_v2, %s8805_s24 }
  0xf2   : > { %v7663_v55 = vpop.permute.xlu0 %7662  ;;  %v1932_v1 = vpack.c.bf16 %v1870_v41, %v1869_v35 }
  0xf3   : > { %v7665_v13 = vunpack.i.h.bf16 %v7663_v55  ;;  %v7664_v56 = vunpack.i.l.bf16 %v7663_v55  ;;  %v1842_v14 = vsel %vm451_vm0, %v9838_v23, %v7680_v45 }
  0xf4   : > { %7952 = vrot.lane.b32.xlu0 %v7951_v43, %s8806_s25  ;;  %7307 = vmatmul.mubr.msk.bf16.vlgmr.msra.gmra.mrb[0].mxu1 %vm1109_vm6, %v1932_v1  ;;  %v7688_v37 = vpop.permute.xlu1 %7687  ;;  %v1841_v43 = vsel %vm451_vm0, %v9842_v51, %v7679_v12 }
  0xf5   : > { %v1051_v21 = vsel %vm1021_vm5, %v1018_v6, %v7665_v13  ;;  %v1050_v58 = vsel %vm1021_vm5, %v1017_v49, %v7664_v56  ;;  %v7690_v27 = vunpack.i.h.bf16 %v7688_v37  ;;  %v7689_v47 = vunpack.i.l.bf16 %v7688_v37 }
  0xf6   : > { %v7673_v15 = vpop.permute.xlu0 %7672  ;;  %v1100_v63 = vpack.c.bf16 %v1051_v21, %v1050_v58 }
  0xf7   : > { %v7675_v26 = vunpack.i.h.bf16 %v7673_v15  ;;  %v7674_v30 = vunpack.i.l.bf16 %v7673_v15  ;;  %v1873_v2 = vsel %vm1021_vm5, %v1841_v43, %v7689_v47  ;;  %v1874_v9 = vsel %vm1021_vm5, %v1842_v14, %v7690_v27 }
  0xf8   : > { %7962 = vrot.lane.b32.xlu0 %v7961_v61, %s8805_s24  ;;  %7300 = vmatprep.mubr.msk.bf16.mxu0 %vm1109_vm6, %v1100_v63  ;;  %v7698_v10 = vpop.permute.xlu1 %7697  ;;  %v1934_v22 = vpack.c.bf16 %v1874_v9, %v1873_v2 }
  0xf9   : > { %7301 = vmatmul.mubr.msk.bf16.gmra.mrb[28].mxu0 %vm1109_vm6, %v1101_v34  ;;  %v1840_v19 = vsel %vm451_vm0, %v9758_v39, %v7675_v26  ;;  %v1839_v53 = vsel %vm451_vm0, %v9762_v31, %v7674_v30  ;;  %v7700_v18 = vunpack.i.h.bf16 %v7698_v10  ;;  %v7699_v41 = vunpack.i.l.bf16 %v7698_v10 }
  0xfa   : > { %v7683_v8 = vpop.permute.xlu0 %7682 }
  0xfb   : > { %v7685_v11 = vunpack.i.h.bf16 %v7683_v8  ;;  %v7684_v5 = vunpack.i.l.bf16 %v7683_v8  ;;  %v2683_v56 = vsel %vm451_vm0, %v9758_v39, %v7700_v18  ;;  %v2682_v61 = vsel %vm451_vm0, %v9762_v31, %v7699_v41 }
  0xfc   : > { %v7708_v52 = vpop.permute.xlu1 %7707 }
  0xfd   : > { %v1871_v48 = vsel %vm1021_vm5, %v1839_v53, %v7684_v5  ;;  %v1872_v7 = vsel %vm1021_vm5, %v1840_v19, %v7685_v11  ;;  %v7710_v55 = vunpack.i.h.bf16 %v7708_v52  ;;  %v7709_v1 = vunpack.i.l.bf16 %v7708_v52 }
  0xfe   : > { %v7693_v35 = vpop.permute.xlu0 %7692  ;;  %v1933_v33 = vpack.c.bf16 %v1872_v7, %v1871_v48 }
  0xff   : > { %v7695_v24 = vunpack.i.h.bf16 %v7693_v35  ;;  %v7694_v13 = vunpack.i.l.bf16 %v7693_v35  ;;  %v2714_v4 = vsel %vm1021_vm5, %v2682_v61, %v7709_v1  ;;  %v2715_v6 = vsel %vm1021_vm5, %v2683_v56, %v7710_v55 }
 0x100   : > { %7310 = vmatprep.mubr.msk.bf16.mxu1 %vm1109_vm6, %v1933_v33  ;;  %v7718_v49 = vpop.permute.xlu1 %7717  ;;  %v2777_v15 = vpack.c.bf16 %v2715_v6, %v2714_v4 }
 0x101   : > { %7311 = vmatmul.mubr.msk.bf16.gmra.mrb[4].mxu1 %vm1109_vm6, %v1934_v22  ;;  %v2681_v21 = vsel %vm451_vm0, %v9766_v25, %v7695_v24  ;;  %v2680_v58 = vsel %vm451_vm0, %v9770_v32, %v7694_v13  ;;  %v7720_v39 = vunpack.i.h.bf16 %v7718_v49  ;;  %v7719_v34 = vunpack.i.l.bf16 %v7718_v49 }
 0x102   : > { %v7703_v50 = vpop.permute.xlu0 %7702 }
 0x103   : > { %v7705_v45 = vunpack.i.h.bf16 %v7703_v50  ;;  %v7704_v12 = vunpack.i.l.bf16 %v7703_v50  ;;  %v1846_v26 = vsel %vm451_vm0, %v9955_v17, %v7720_v39  ;;  %v1845_v25 = vsel %vm451_vm0, %v9959_v62, %v7719_v34 }
 0x104   : > { %v7728_v47 = vpop.permute.xlu1 %7727 }
 0x105   : > { %v2712_v31 = vsel %vm1021_vm5, %v2680_v58, %v7704_v12  ;;  %v2713_v63 = vsel %vm1021_vm5, %v2681_v21, %v7705_v45  ;;  %v7730_v14 = vunpack.i.h.bf16 %v7728_v47  ;;  %v7729_v43 = vunpack.i.l.bf16 %v7728_v47 }
 0x106   : > { %v7713_v37 = vpop.permute.xlu0 %7712  ;;  %v2776_v27 = vpack.c.bf16 %v2713_v63, %v2712_v31 }
 0x107   : > { %v7715_v30 = vunpack.i.h.bf16 %v7713_v37  ;;  %v7714_v32 = vunpack.i.l.bf16 %v7713_v37  ;;  %v1877_v2 = vsel %vm1021_vm5, %v1845_v25, %v7729_v43  ;;  %v1878_v9 = vsel %vm1021_vm5, %v1846_v26, %v7730_v14 }
 0x108   : > { %7340 = vmatprep.mubr.msk.bf16.mxu0 %vm1109_vm6, %v2776_v27  ;;  %v7738_v10 = vpop.permute.xlu1 %7737  ;;  %v1936_v22 = vpack.c.bf16 %v1878_v9, %v1877_v2 }
 0x109   : > { %7341 = vmatmul.mubr.msk.bf16.vlgmr.msra.gmra.mrb[32].mxu0 %vm1109_vm6, %v2777_v15  ;;  %v1844_v19 = vsel %vm451_vm0, %v9830_v42, %v7715_v30  ;;  %v1843_v53 = vsel %vm451_vm0, %v9834_v20, %v7714_v32  ;;  %v7740_v18 = vunpack.i.h.bf16 %v7738_v10  ;;  %v7739_v41 = vunpack.i.l.bf16 %v7738_v10 }
 0x10a   : > { %v7723_v8 = vpop.permute.xlu0 %7722 }
 0x10b   : > { %v7725_v11 = vunpack.i.h.bf16 %v7723_v8  ;;  %v7724_v5 = vunpack.i.l.bf16 %v7723_v8  ;;  %v2687_v56 = vsel %vm451_vm0, %v9830_v42, %v7740_v18  ;;  %v2686_v61 = vsel %vm451_vm0, %v9834_v20, %v7739_v41 }
 0x10c   : > { %v7748_v52 = vpop.permute.xlu1 %7747 }
 0x10d   : > { %v1875_v48 = vsel %vm1021_vm5, %v1843_v53, %v7724_v5  ;;  %v1876_v7 = vsel %vm1021_vm5, %v1844_v19, %v7725_v11  ;;  %v7750_v55 = vunpack.i.h.bf16 %v7748_v52  ;;  %v7749_v1 = vunpack.i.l.bf16 %v7748_v52 }
 0x10e   : > { %v7733_v35 = vpop.permute.xlu0 %7732  ;;  %v1935_v33 = vpack.c.bf16 %v1876_v7, %v1875_v48 }
 0x10f   : > { %v7735_v24 = vunpack.i.h.bf16 %v7733_v35  ;;  %v7734_v13 = vunpack.i.l.bf16 %v7733_v35  ;;  %v2718_v4 = vsel %vm1021_vm5, %v2686_v61, %v7749_v1  ;;  %v2719_v6 = vsel %vm1021_vm5, %v2687_v56, %v7750_v55 }
 0x110   : > { %7314 = vmatprep.mubr.msk.bf16.mxu1 %vm1109_vm6, %v1935_v33  ;;  %v7758_v49 = vpop.permute.xlu1 %7757  ;;  %v2779_v15 = vpack.c.bf16 %v2719_v6, %v2718_v4 }
 0x111   : > { %7315 = vmatmul.mubr.msk.bf16.gmra.mrb[8].mxu1 %vm1109_vm6, %v1936_v22  ;;  %v7760_v21 = vunpack.i.h.bf16 %v7758_v49  ;;  %v7759_v58 = vunpack.i.l.bf16 %v7758_v49  ;;  %v2685_v39 = vsel %vm451_vm0, %v9838_v23, %v7735_v24  ;;  %v2684_v42 = vsel %vm451_vm0, %v9842_v51, %v7734_v13 }
 0x112   : > { %v7743_v50 = vpop.permute.xlu0 %7742 }
 0x113   : > { %v7745_v45 = vunpack.i.h.bf16 %v7743_v50  ;;  %v7744_v12 = vunpack.i.l.bf16 %v7743_v50  ;;  %v1850_v63 = vsel %vm451_vm0, %v10018_v44, %v7760_v21  ;;  %v1849_v37 = vsel %vm451_vm0, %v10022_v60, %v7759_v58 }
 0x114   : > { %v7768_v47 = vpop.permute.xlu1 %7767 }
 0x115   : > { %v2716_v20 = vsel %vm1021_vm5, %v2684_v42, %v7744_v12  ;;  %v2717_v34 = vsel %vm1021_vm5, %v2685_v39, %v7745_v45  ;;  %v7770_v23 = vunpack.i.h.bf16 %v7768_v47  ;;  %v7769_v26 = vunpack.i.l.bf16 %v7768_v47 }
 0x116   : > { %v7753_v31 = vpop.permute.xlu0 %7752  ;;  %v2778_v27 = vpack.c.bf16 %v2717_v34, %v2716_v20 }
 0x117   : > { %v7755_v14 = vunpack.i.h.bf16 %v7753_v31  ;;  %v7754_v43 = vunpack.i.l.bf16 %v7753_v31  ;;  %v1881_v30 = vsel %vm1021_vm5, %v1849_v37, %v7769_v26  ;;  %v1882_v60 = vsel %vm1021_vm5, %v1850_v63, %v7770_v23 }
 0x118   : > { %7344 = vmatprep.mubr.msk.bf16.mxu0 %vm1109_vm6, %v2778_v27  ;;  %v7778_v32 = vpop.permute.xlu1 %7777  ;;  %v1938_v19 = vpack.c.bf16 %v1882_v60, %v1881_v30 }
 0x119   : > { %7345 = vmatmul.mubr.msk.bf16.gmra.mrb[36].mxu0 %vm1109_vm6, %v2779_v15  ;;  %v1848_v51 = vsel %vm451_vm0, %v9943_v36, %v7755_v14  ;;  %v1847_v25 = vsel %vm451_vm0, %v9947_v57, %v7754_v43  ;;  %v7780_v8 = vunpack.i.h.bf16 %v7778_v32  ;;  %v7779_v10 = vunpack.i.l.bf16 %v7778_v32 }
 0x11a   : > { %v7763_v44 = vpop.permute.xlu0 %7762 }
 0x11b   : > { %v7765_v2 = vunpack.i.h.bf16 %v7763_v44  ;;  %v7764_v9 = vunpack.i.l.bf16 %v7763_v44  ;;  %v2691_v22 = vsel %vm451_vm0, %v9943_v36, %v7780_v8  ;;  %v2690_v48 = vsel %vm451_vm0, %v9947_v57, %v7779_v10 }
 0x11c   : > { %v7788_v18 = vpop.permute.xlu1 %7787 }
 0x11d   : > { %v1879_v11 = vsel %vm1021_vm5, %v1847_v25, %v7764_v9  ;;  %v1880_v5 = vsel %vm1021_vm5, %v1848_v51, %v7765_v2  ;;  %v7790_v33 = vunpack.i.h.bf16 %v7788_v18  ;;  %v7789_v52 = vunpack.i.l.bf16 %v7788_v18 }
 0x11e   : > { %v7773_v53 = vpop.permute.xlu0 %7772  ;;  %v1937_v7 = vpack.c.bf16 %v1880_v5, %v1879_v11  ;;  %v8747_v11 = vld [vmem:[#allocation2 + $0xc8] sm:$0xff] }
 0x11f   : > { %v7775_v41 = vunpack.i.h.bf16 %v7773_v53  ;;  %v7774_v35 = vunpack.i.l.bf16 %v7773_v53  ;;  %v2722_v24 = vsel %vm1021_vm5, %v2690_v48, %v7789_v52  ;;  %v2723_v57 = vsel %vm1021_vm5, %v2691_v22, %v7790_v33 }
 0x120   : > { %7318 = vmatprep.mubr.msk.bf16.mxu1 %vm1109_vm6, %v1937_v7  ;;  %v7798_v13 = vpop.permute.xlu1 %7797  ;;  %v2781_v45 = vpack.c.bf16 %v2723_v57, %v2722_v24 }
 0x121   : > { %7319 = vmatmul.mubr.msk.bf16.gmra.mrb[12].mxu1 %vm1109_vm6, %v1938_v19  ;;  %v2689_v55 = vsel %vm451_vm0, %v9955_v17, %v7775_v41  ;;  %v2688_v1 = vsel %vm451_vm0, %v9959_v62, %v7774_v35  ;;  %v7800_v4 = vunpack.i.h.bf16 %v7798_v13  ;;  %v7799_v6 = vunpack.i.l.bf16 %v7798_v13  ;;  %v8748_v19 = vld [vmem:[#allocation2 + $0xc0] sm:$0xff] }
 0x122   : > { %v7783_v36 = vpop.permute.xlu0 %7782 }
 0x123   : > { %v7785_v56 = vunpack.i.h.bf16 %v7783_v36  ;;  %v7784_v61 = vunpack.i.l.bf16 %v7783_v36  ;;  %v1854_v17 = vsel %vm451_vm0, %v10084_v40, %v7800_v4  ;;  %v1853_v62 = vsel %vm451_vm0, %v10088_v3, %v7799_v6 }
 0x124   : > { %v7808_v58 = vpop.permute.xlu1 %7807 }
 0x125   : > { %v2720_v50 = vsel %vm1021_vm5, %v2688_v1, %v7784_v61  ;;  %v2721_v49 = vsel %vm1021_vm5, %v2689_v55, %v7785_v56  ;;  %v7810_v20 = vunpack.i.h.bf16 %v7808_v58  ;;  %v7809_v34 = vunpack.i.l.bf16 %v7808_v58 }
 0x126   : > { %v7793_v12 = vpop.permute.xlu0 %7792  ;;  %v2780_v21 = vpack.c.bf16 %v2721_v49, %v2720_v50 }
 0x127   : > { %v7795_v39 = vunpack.i.h.bf16 %v7793_v12  ;;  %v7794_v42 = vunpack.i.l.bf16 %v7793_v12  ;;  %v1885_v63 = vsel %vm1021_vm5, %v1853_v62, %v7809_v34  ;;  %v1886_v3 = vsel %vm1021_vm5, %v1854_v17, %v7810_v20  ;;  %v8750_v17 = vld [vmem:[#allocation2 + $0x108] sm:$0xff] }
 0x128   : > { %7348 = vmatprep.mubr.msk.bf16.mxu0 %vm1109_vm6, %v2780_v21  ;;  %v7818_v37 = vpop.permute.xlu1 %7817  ;;  %v1940_v51 = vpack.c.bf16 %v1886_v3, %v1885_v63 }
 0x129   : > { %7349 = vmatmul.mubr.msk.bf16.gmra.mrb[40].mxu0 %vm1109_vm6, %v2781_v45  ;;  %v1852_v15 = vsel %vm451_vm0, %v10004_v16, %v7795_v39  ;;  %v1851_v31 = vsel %vm451_vm0, %v10008_v38, %v7794_v42  ;;  %v7820_v14 = vunpack.i.h.bf16 %v7818_v37  ;;  %v7819_v43 = vunpack.i.l.bf16 %v7818_v37  ;;  %v8745_v16 = vld [vmem:[#allocation2 + $0xe0] sm:$0xff]  ;;  %v8746_v38 = vld [vmem:[#allocation2 + $0xd8] sm:$0xff]  ;;  %v8749_v45 = vld [vmem:[#allocation2 + $0x110] sm:$0xff] }
 0x12a   : > { %v7803_v40 = vpop.permute.xlu0 %7802 }
 0x12b   : > { %v7805_v27 = vunpack.i.h.bf16 %v7803_v40  ;;  %v7804_v47 = vunpack.i.l.bf16 %v7803_v40  ;;  %v2695_v44 = vsel %vm451_vm0, %v8745_v16, %v7820_v14  ;;  %v2694_v30 = vsel %vm451_vm0, %v8746_v38, %v7819_v43  ;;  %v8752_v16 = vld [vmem:[#allocation2 + $0xf0] sm:$0xff] }
 0x12c   : > { %v7828_v32 = vpop.permute.xlu1 %7827 }
 0x12d   : > { %v1883_v23 = vsel %vm1021_vm5, %v1851_v31, %v7804_v47  ;;  %v1884_v26 = vsel %vm1021_vm5, %v1852_v15, %v7805_v27  ;;  %v7830_v8 = vunpack.i.h.bf16 %v7828_v32  ;;  %v7829_v10 = vunpack.i.l.bf16 %v7828_v32 }
 0x12e   : > { %v7813_v25 = vpop.permute.xlu0 %7812  ;;  %v1939_v60 = vpack.c.bf16 %v1884_v26, %v1883_v23 }
 0x12f   : > { %v7815_v2 = vunpack.i.h.bf16 %v7813_v25  ;;  %v7814_v9 = vunpack.i.l.bf16 %v7813_v25  ;;  %v2726_v48 = vsel %vm1021_vm5, %v2694_v30, %v7829_v10  ;;  %v2727_v7 = vsel %vm1021_vm5, %v2695_v44, %v7830_v8 }
 0x130   : > { %7322 = vmatprep.mubr.msk.bf16.mxu1 %vm1109_vm6, %v1939_v60  ;;  %v7838_v18 = vpop.permute.xlu1 %7837  ;;  %v2783_v36 = vpack.c.bf16 %v2727_v7, %v2726_v48  ;;  %v10372_v7 = vld [vmem:[#allocation2 + $0x150] sm:$0xff] }
 0x131   : > { %7323 = vmatmul.mubr.msk.bf16.gmra.mrb[16].mxu1 %vm1109_vm6, %v1940_v51  ;;  %v2693_v5 = vsel %vm451_vm0, %v8747_v11, %v7815_v2  ;;  %v2692_v53 = vsel %vm451_vm0, %v8748_v19, %v7814_v9  ;;  %v7840_v33 = vunpack.i.h.bf16 %v7838_v18  ;;  %v7839_v52 = vunpack.i.l.bf16 %v7838_v18  ;;  %v8751_v51 = vld [vmem:[#allocation2 + $0xf8] sm:$0xff] }
 0x132   : > { %v7823_v22 = vpop.permute.xlu0 %7822 }
 0x133   : > { %v7825_v41 = vunpack.i.h.bf16 %v7823_v22  ;;  %v7824_v35 = vunpack.i.l.bf16 %v7823_v22  ;;  %v1858_v57 = vsel %vm451_vm0, %v10167_v28, %v7840_v33  ;;  %v1857_v13 = vsel %vm451_vm0, %v10171_v29, %v7839_v52  ;;  %v10368_v22 = vld [vmem:[#allocation2 + $0x158] sm:$0xff] }
 0x134   : > { %v7848_v61 = vpop.permute.xlu1 %7847 }
 0x135   : > { %v2724_v55 = vsel %vm1021_vm5, %v2692_v53, %v7824_v35  ;;  %v2725_v1 = vsel %vm1021_vm5, %v2693_v5, %v7825_v41  ;;  %v7850_v50 = vunpack.i.h.bf16 %v7848_v61  ;;  %v7849_v49 = vunpack.i.l.bf16 %v7848_v61 }
 0x136   : > { %v7833_v24 = vpop.permute.xlu0 %7832  ;;  %v2782_v56 = vpack.c.bf16 %v2725_v1, %v2724_v55 }
 0x137   : > { %v7835_v4 = vunpack.i.h.bf16 %v7833_v24  ;;  %v7834_v6 = vunpack.i.l.bf16 %v7833_v24  ;;  %v1889_v21 = vsel %vm1021_vm5, %v1857_v13, %v7849_v49  ;;  %v1890_v29 = vsel %vm1021_vm5, %v1858_v57, %v7850_v50  ;;  %v8756_v57 = vld [vmem:[#allocation2 + $0x138] sm:$0xff] }
 0x138   : > { %7352 = vmatprep.mubr.msk.bf16.mxu0 %vm1109_vm6, %v2782_v56  ;;  %v7858_v58 = vpop.permute.xlu1 %7857  ;;  %v1942_v40 = vpack.c.bf16 %v1890_v29, %v1889_v21 }
 0x139   : > { %7353 = vmatmul.mubr.msk.bf16.gmra.mrb[44].mxu0 %vm1109_vm6, %v2783_v36  ;;  %v1856_v12 = vsel %vm451_vm0, %v8749_v45, %v7835_v4  ;;  %v1855_v62 = vsel %vm451_vm0, %v8750_v17, %v7834_v6  ;;  %v7860_v20 = vunpack.i.h.bf16 %v7858_v58  ;;  %v7859_v34 = vunpack.i.l.bf16 %v7858_v58  ;;  %v8755_v36 = vld [vmem:[#allocation2 + $0x140] sm:$0xff] }
 0x13a   : > { %v7843_v28 = vpop.permute.xlu0 %7842 }
 0x13b   : > { %v7845_v39 = vunpack.i.h.bf16 %v7843_v28  ;;  %v7844_v42 = vunpack.i.l.bf16 %v7843_v28  ;;  %v2699_v3 = vsel %vm451_vm0, %v8749_v45, %v7860_v20  ;;  %v2698_v37 = vsel %vm451_vm0, %v8750_v17, %v7859_v34 }
 0x13c   : > { %v7868_v47 = vpop.permute.xlu1 %7867 }
 0x13d   : > { %v1887_v15 = vsel %vm1021_vm5, %v1855_v62, %v7844_v42  ;;  %v1888_v31 = vsel %vm1021_vm5, %v1856_v12, %v7845_v39  ;;  %v7870_v23 = vunpack.i.h.bf16 %v7868_v47  ;;  %v7869_v26 = vunpack.i.l.bf16 %v7868_v47 }
 0x13e   : > { %v7853_v63 = vpop.permute.xlu0 %7852  ;;  %v1941_v27 = vpack.c.bf16 %v1888_v31, %v1887_v15 }
 0x13f   : > { %v7855_v14 = vunpack.i.h.bf16 %v7853_v63  ;;  %v7854_v43 = vunpack.i.l.bf16 %v7853_v63  ;;  %v2730_v30 = vsel %vm1021_vm5, %v2698_v37, %v7869_v26  ;;  %v2731_v60 = vsel %vm1021_vm5, %v2699_v3, %v7870_v23  ;;  %v8758_v3 = vld [vmem:[#allocation2 + $0x120] sm:$0xff] }
 0x140   : > { %7326 = vmatprep.mubr.msk.bf16.mxu1 %vm1109_vm6, %v1941_v27  ;;  %v7878_v32 = vpop.permute.xlu1 %7877  ;;  %v2785_v19 = vpack.c.bf16 %v2731_v60, %v2730_v30 }
 0x141   : > { %7327 = vmatmul.mubr.msk.bf16.gmra.mrb[20].mxu1 %vm1109_vm6, %v1942_v40  ;;  %v2697_v25 = vsel %vm451_vm0, %v8751_v51, %v7855_v14  ;;  %v2696_v44 = vsel %vm451_vm0, %v8752_v16, %v7854_v43  ;;  %v7880_v8 = vunpack.i.h.bf16 %v7878_v32  ;;  %v7879_v10 = vunpack.i.l.bf16 %v7878_v32  ;;  %v8757_v40 = vld [vmem:[#allocation2 + $0x128] sm:$0xff] }
 0x142   : > { %v7863_v38 = vpop.permute.xlu0 %7862 }
 0x143   : > { %v7865_v2 = vunpack.i.h.bf16 %v7863_v38  ;;  %v7864_v9 = vunpack.i.l.bf16 %v7863_v38  ;;  %v1862_v48 = vsel %vm451_vm0, %v10368_v22, %v7880_v8  ;;  %v1861_v18 = vsel %vm451_vm0, %v10372_v7, %v7879_v10 }
 0x144   : > { %v7888_v35 = vpop.permute.xlu1 %7887 }
 0x145   : > { %v2728_v11 = vsel %vm1021_vm5, %v2696_v44, %v7864_v9  ;;  %v2729_v5 = vsel %vm1021_vm5, %v2697_v25, %v7865_v2  ;;  %v7890_v55 = vunpack.i.h.bf16 %v7888_v35  ;;  %v7889_v1 = vunpack.i.l.bf16 %v7888_v35 }
 0x146   : > { %v7873_v53 = vpop.permute.xlu0 %7872  ;;  %v2784_v41 = vpack.c.bf16 %v2729_v5, %v2728_v11 }
 0x147   : > { %v7875_v33 = vunpack.i.h.bf16 %v7873_v53  ;;  %v7874_v52 = vunpack.i.l.bf16 %v7873_v53  ;;  %v1893_v61 = vsel %vm1021_vm5, %v1861_v18, %v7889_v1  ;;  %v1894_v4 = vsel %vm1021_vm5, %v1862_v48, %v7890_v55  ;;  %v12645_v48 = vld [vmem:[#allocation7_spill] sm:$0xff] }
 0x148   : > { %7356 = vmatprep.mubr.msk.bf16.mxu0 %vm1109_vm6, %v2784_v41  ;;  %v7898_v6 = vpop.permute.xlu1 %7897  ;;  %v1944_v28 = vpack.c.bf16 %v1894_v4, %v1893_v61 }
 0x149   : > { %7357 = vmatmul.mubr.msk.bf16.gmra.mrb[48].mxu0 %vm1109_vm6, %v2785_v19  ;;  %v1860_v24 = vsel %vm451_vm0, %v8755_v36, %v7875_v33  ;;  %v1859_v13 = vsel %vm451_vm0, %v8756_v57, %v7874_v52  ;;  %v7900_v45 = vunpack.i.h.bf16 %v7898_v6  ;;  %v7899_v12 = vunpack.i.l.bf16 %v7898_v6  ;;  %v12644_v19 = vld [vmem:[#allocation5_spill] sm:$0xff] }
 0x14a   : > { %v7883_v56 = vpop.permute.xlu0 %7882 }
 0x14b   : > { %v7885_v50 = vunpack.i.h.bf16 %v7883_v56  ;;  %v7884_v49 = vunpack.i.l.bf16 %v7883_v56  ;;  %v2703_v29 = vsel %vm451_vm0, %v8755_v36, %v7900_v45  ;;  %v2702_v58 = vsel %vm451_vm0, %v8756_v57, %v7899_v12 }
 0x14c   : > { %v7908_v42 = vpop.permute.xlu1 %7907 }
 0x14d   : > { %v1891_v17 = vsel %vm1021_vm5, %v1859_v13, %v7884_v49  ;;  %v1892_v62 = vsel %vm1021_vm5, %v1860_v24, %v7885_v50  ;;  %v7910_v15 = vunpack.i.h.bf16 %v7908_v42  ;;  %v7909_v31 = vunpack.i.l.bf16 %v7908_v42 }
 0x14e   : > { %v7893_v21 = vpop.permute.xlu0 %7892  ;;  %v1943_v39 = vpack.c.bf16 %v1892_v62, %v1891_v17 }
 0x14f   : > { %v7895_v20 = vunpack.i.h.bf16 %v7893_v21  ;;  %v7894_v34 = vunpack.i.l.bf16 %v7893_v21  ;;  %v2734_v47 = vsel %vm1021_vm5, %v2702_v58, %v7909_v31  ;;  %v2735_v14 = vsel %vm1021_vm5, %v2703_v29, %v7910_v15 }
 0x150   : > { %7330 = vmatprep.mubr.msk.bf16.mxu1 %vm1109_vm6, %v1943_v39  ;;  %v7918_v43 = vpop.permute.xlu1 %7917  ;;  %v2787_v38 = vpack.c.bf16 %v2735_v14, %v2734_v47 }
 0x151   : > { %7331 = vmatmul.mubr.msk.bf16.gmra.mrb[24].mxu1 %vm1109_vm6, %v1944_v28  ;;  %v2701_v63 = vsel %vm451_vm0, %v8757_v40, %v7895_v20  ;;  %v2700_v37 = vsel %vm451_vm0, %v8758_v3, %v7894_v34  ;;  %v7920_v51 = vunpack.i.h.bf16 %v7918_v43  ;;  %v7919_v25 = vunpack.i.l.bf16 %v7918_v43 }
 0x152   : > { %v7903_v27 = vpop.permute.xlu0 %7902 }
 0x153   : > { %v7905_v23 = vunpack.i.h.bf16 %v7903_v27  ;;  %v7904_v26 = vunpack.i.l.bf16 %v7903_v27  ;;  %v1866_v60 = vsel %vm451_vm0, %v10062_v46, %v7920_v51  ;;  %v1865_v32 = vsel %vm451_vm0, %v10051_v0, %v7919_v25  ;;  %v8760_v51 = vld [vmem:[#allocation2 + $0x180] sm:$0xff] }
 0x154   : > { %v7928_v9 = vpop.permute.xlu1 %7927 }
 0x155   : > { %v2732_v16 = vsel %vm1021_vm5, %v2700_v37, %v7904_v26  ;;  %v2733_v44 = vsel %vm1021_vm5, %v2701_v63, %v7905_v23  ;;  %v7930_v11 = vunpack.i.h.bf16 %v7928_v9  ;;  %v7929_v5 = vunpack.i.l.bf16 %v7928_v9  ;;  %v8759_v23 = vld [vmem:[#allocation2 + $0x188] sm:$0xff]  ;;  %v1056_v9 = vld [vmem:[#allocation4 + $0x10] sm:$0xff] }
 0x156   : > { %v7913_v30 = vpop.permute.xlu0 %7912  ;;  %v2786_v2 = vpack.c.bf16 %v2733_v44, %v2732_v16 }
 0x157   : > { %v7915_v8 = vunpack.i.h.bf16 %v7913_v30  ;;  %v7914_v10 = vunpack.i.l.bf16 %v7913_v30  ;;  %v1897_v41 = vsel %vm1021_vm5, %v1865_v32, %v7929_v5  ;;  %v1898_v0 = vsel %vm1021_vm5, %v1866_v60, %v7930_v11  ;;  %v1057_v11 = vld [vmem:[#allocation4 + $0x18] sm:$0xff] }
 0x158   : > { %7360 = vmatprep.mubr.msk.bf16.mxu0 %vm1109_vm6, %v2786_v2  ;;  %v7938_v52 = vpop.permute.xlu1 %7937  ;;  %v1946_v57 = vpack.c.bf16 %v1898_v0, %v1897_v41 }
 0x159   : > { %7361 = vmatmul.mubr.msk.bf16.gmra.mrb[52].mxu0 %vm1109_vm6, %v2787_v38  ;;  %v1864_v53 = vsel %vm451_vm0, %v12644_v19, %v7915_v8  ;;  %v1863_v18 = vsel %vm451_vm0, %v12645_v48, %v7914_v10  ;;  %v7940_v55 = vunpack.i.h.bf16 %v7938_v52  ;;  %v7939_v1 = vunpack.i.l.bf16 %v7938_v52  ;;  %v1054_v8 = vld [vmem:[#allocation4] sm:$0xff] }
 0x15a   : > { %v7923_v46 = vpop.permute.xlu0 %7922 }
 0x15b   : > { %v7925_v35 = vunpack.i.h.bf16 %v7923_v46  ;;  %v7924_v33 = vunpack.i.l.bf16 %v7923_v46  ;;  %v2707_v6 = vsel %vm451_vm0, %v12644_v19, %v7940_v55  ;;  %v2706_v50 = vsel %vm451_vm0, %v12645_v48, %v7939_v1  ;;  %v1061_v55 = vld [vmem:[#allocation4 + $0x38] sm:$0xff] }
 0x15c   : > { %v7948_v49 = vpop.permute.xlu1 %7947 }
 0x15d   : > { %v1895_v36 = vsel %vm1021_vm5, %v1863_v18, %v7924_v33  ;;  %v1896_v24 = vsel %vm1021_vm5, %v1864_v53, %v7925_v35  ;;  %v7950_v45 = vunpack.i.h.bf16 %v7948_v49  ;;  %v7949_v12 = vunpack.i.l.bf16 %v7948_v49  ;;  %v1055_v53 = vld [vmem:[#allocation4 + $0x8] sm:$0xff]  ;;  %v1060_v35 = vld [vmem:[#allocation4 + $0x30] sm:$0xff]  ;;  %v1058_v33 = vld [vmem:[#allocation4 + $0x20] sm:$0xff] }
 0x15e   : > { %v7933_v13 = vpop.permute.xlu0 %7932  ;;  %v1945_v56 = vpack.c.bf16 %v1896_v24, %v1895_v36  ;;  %v1059_v24 = vld [vmem:[#allocation4 + $0x28] sm:$0xff]  ;;  %v3619_v49 = vld [vmem:[#allocation3 + $0x10] sm:$0x3] }
 0x15f   : > { %v7935_v61 = vunpack.i.h.bf16 %v7933_v13  ;;  %v7934_v4 = vunpack.i.l.bf16 %v7933_v13  ;;  %v2738_v21 = vsel %vm1021_vm5, %v2706_v50, %v7949_v12  ;;  %v2739_v29 = vsel %vm1021_vm5, %v2707_v6, %v7950_v45  ;;  %v3617_v6 = vld [vmem:[#allocation3] sm:$0xff]  ;;  %v3618_v50 = vld [vmem:[#allocation3 + $0x8] sm:$0xff] }
 0x160   : > { %7334 = vmatprep.mubr.msk.bf16.mxu1 %vm1109_vm6, %v1945_v56  ;;  %v7958_v42 = vpop.permute.xlu1 %7957  ;;  %v2789_v40 = vpack.c.bf16 %v2739_v29, %v2738_v21  ;;  %v3713_v45 = vrot.slane %v3617_v6, 1  ;;  %v3714_v12 = vrot.slane %v3618_v50, 1 }
 0x161   : > { %7335 = vmatmul.mubr.msk.bf16.gmra.mrb[28].mxu1 %vm1109_vm6, %v1946_v57  ;;  %v2705_v17 = vsel %vm451_vm0, %v10368_v22, %v7935_v61  ;;  %v2704_v62 = vsel %vm451_vm0, %v10372_v7, %v7934_v4  ;;  %v7960_v20 = vunpack.i.h.bf16 %v7958_v42  ;;  %v7959_v34 = vunpack.i.l.bf16 %v7958_v42 }
 0x162   : > { %v7943_v28 = vpop.permute.xlu0 %7942  ;;  %v3715_v21 = vsel %vm635_vm3, %v3713_v45, %v3714_v12 }
 0x163   : > { %v7945_v58 = vunpack.i.h.bf16 %v7943_v28  ;;  %v7944_v39 = vunpack.i.l.bf16 %v7943_v28  ;;  %v2711_v7 = vsel %vm451_vm0, %v10153_v54, %v7960_v20  ;;  %v2710_v27 = vsel %vm451_vm0, %v10146_v59, %v7959_v34  ;;  %v1062_v28 = vld [vmem:[#allocation4 + $0x40] sm:$0xff]  ;;  %v1063_v34 = vld [vmem:[#allocation4 + $0x48] sm:$0xff] }
 0x164   : > { %v7968_v47 = vpop.permute.xlu1 %7967 }
 0x165   : > { %v2736_v15 = vsel %vm1021_vm5, %v2704_v62, %v7944_v39  ;;  %v2737_v31 = vsel %vm1021_vm5, %v2705_v17, %v7945_v58  ;;  %v7970_v14 = vunpack.i.h.bf16 %v7968_v47  ;;  %v7969_v43 = vunpack.i.l.bf16 %v7968_v47  ;;  %v1064_v17 = vld [vmem:[#allocation4 + $0x50] sm:$0xff]  ;;  %v1065_v58 = vld [vmem:[#allocation4 + $0x58] sm:$0xff] }
 0x166   : > { %v7953_v63 = vpop.permute.xlu0 %7952  ;;  %v2788_v22 = vpack.c.bf16 %v2737_v31, %v2736_v15  ;;  %v3716_v62 = vrot.slane %v3619_v49, 1  ;;  %v3892_v15 = vrot.slane %v3619_v49, 2  ;;  %v1081_v49 = vld [vmem:[#allocation4 + $0xd8] sm:$0xff] }
 0x167   : > { %v7955_v3 = vunpack.i.h.bf16 %v7953_v63  ;;  %v7954_v37 = vunpack.i.l.bf16 %v7953_v63  ;;  %v2742_v44 = vsel %vm1021_vm5, %v2710_v27, %v7969_v43  ;;  %v2743_v54 = vsel %vm1021_vm5, %v2711_v7, %v7970_v14 }
 0x168   : > { %7364 = vmatprep.mubr.msk.bf16.mxu0 %vm1109_vm6, %v2788_v22  ;;  %v2791_v32 = vpack.c.bf16 %v2743_v54, %v2742_v44  ;;  %v3717_v39 = vsel %vm635_vm3, %v3714_v12, %v3716_v62  ;;  %v1067_v54 = vld [vmem:[#allocation4 + $0x68] sm:$0xff] }
 0x169   : > { %7365 = vmatmul.mubr.msk.bf16.gmra.mrb[56].mxu0 %vm1109_vm6, %v2789_v40  ;;  %v2709_v26 = vsel %vm451_vm0, %v8759_v23, %v7955_v3  ;;  %v2708_v25 = vsel %vm451_vm0, %v8760_v51, %v7954_v37  ;;  %v7971_v31 = vpack.i.bf16 %v3717_v39, %v3715_v21  ;;  %v3889_v40 = vrot.slane %v3617_v6, 2  ;;  %v1068_v23 = vld [vmem:[#allocation4 + $0x70] sm:$0xff]  ;;  %v1078_v6 = vld [vmem:[#allocation4 + $0xc0] sm:$0xff] }
 0x16a   : > { %v7963_v16 = vpop.permute.xlu0 %7962  ;;  %v3890_v3 = vrot.slane %v3618_v50, 2 }
 0x16b   : > { %v7965_v38 = vunpack.i.h.bf16 %v7963_v16  ;;  %v7964_v59 = vunpack.i.l.bf16 %v7963_v16  ;;  %7972 = vrot.lane.b32.xlu0 %v7971_v31, %s8806_s25 }
 0x16c   : > { %v3891_v47 = vsel %vm812_vm2, %v3889_v40, %v3890_v3  ;;  %v3893_v14 = vsel %vm812_vm2, %v3890_v3, %v3892_v15 }
 0x16d   : > { %v2740_v30 = vsel %vm1021_vm5, %v2708_v25, %v7964_v59  ;;  %v2741_v60 = vsel %vm1021_vm5, %v2709_v26, %v7965_v38  ;;  %v7976_v43 = vpack.i.bf16 %v3893_v14, %v3891_v47  ;;  %v1066_v26 = vld [vmem:[#allocation4 + $0x60] sm:$0xff]  ;;  %v1069_v25 = vld [vmem:[#allocation4 + $0x78] sm:$0xff] }
 0x16e   : > { %v2790_v2 = vpack.c.bf16 %v2741_v60, %v2740_v30  ;;  %v1082_v47 = vld [vmem:[#allocation4 + $0xe0] sm:$0xff] }
 0x16f   : > { %7977 = vrot.lane.b32.xlu0 %v7976_v43, %s8805_s24  ;;  %v1085_v43 = vld [vmem:[#allocation4 + $0xf8] sm:$0xff] }
 0x170   : > { %7368 = vmatprep.mubr.msk.bf16.mxu0 %vm1109_vm6, %v2790_v2  ;;  %v1072_v2 = vld [vmem:[#allocation4 + $0x90] sm:$0xff] }
 0x171   : > { %7369 = vmatmul.mubr.msk.bf16.gmra.mrb[60].mxu0 %vm1109_vm6, %v2791_v32 }
 0x180   : > { %v7274_v10 = vpop.f32.mrb[0].mxu0 }
 0x181   : > { %v1324_v5 = vadd.f32 %v7274_v10, %v1056_v9  ;;  %v1195_v19 = vpop.f32.mrb[1].mxu0  ;;  %v1070_v9 = vld [vmem:[#allocation4 + $0x80] sm:$0xff]  ;;  %v1073_v10 = vld [vmem:[#allocation4 + $0x98] sm:$0xff] }
 0x182   : > { %v1322_v48 = vadd.f32 %v1195_v19, %v1054_v8  ;;  %v7275_v18 = vpop.f32.mrb[2].mxu0  ;;  %v1071_v19 = vld [vmem:[#allocation4 + $0x88] sm:$0xff] }
 0x183   : > { %1356 = vst.msk [vmem:[#allocation4 + $0x10] sm:$0xff] %vm451_vm0, %v1324_v5  ;;  %v1325_v46 = vadd.f32 %v7275_v18, %v1057_v11  ;;  %v1198_v41 = vpop.f32.mrb[3].mxu0 }
 0x184   : > { %1354 = vst.msk [vmem:[#allocation4] sm:$0xff] %vm451_vm0, %v1322_v48  ;;  %v1323_v0 = vadd.f32 %v1198_v41, %v1055_v53 }
 0x185   : > { %1357 = vst.msk [vmem:[#allocation4 + $0x18] sm:$0xff] %vm451_vm0, %v1325_v46 }
 0x186   : > { %1355 = vst.msk [vmem:[#allocation4 + $0x8] sm:$0xff] %vm451_vm0, %v1323_v0  ;;  %v1076_v0 = vld [vmem:[#allocation4 + $0xb0] sm:$0xff] }
 0x188   : > { %v7278_v52 = vpop.f32.mrb[4].mxu0 }
 0x189   : > { %v1328_v1 = vadd.f32 %v7278_v52, %v1060_v35  ;;  %v1211_v36 = vpop.f32.mrb[5].mxu0  ;;  %v1074_v35 = vld [vmem:[#allocation4 + $0xa0] sm:$0xff]  ;;  %v1077_v52 = vld [vmem:[#allocation4 + $0xb8] sm:$0xff] }
 0x18a   : > { %v1326_v57 = vadd.f32 %v1211_v36, %v1058_v33  ;;  %v7279_v13 = vpop.f32.mrb[6].mxu0  ;;  %v1075_v36 = vld [vmem:[#allocation4 + $0xa8] sm:$0xff]  ;;  %v1901_v39 = vld [vmem:[#allocation4 + $0x10] sm:$0xff] }
 0x18b   : > { %1360 = vst.msk [vmem:[#allocation4 + $0x30] sm:$0xff] %vm451_vm0, %v1328_v1  ;;  %v1329_v56 = vadd.f32 %v7279_v13, %v1061_v55  ;;  %v1214_v61 = vpop.f32.mrb[7].mxu0 }
 0x18c   : > { %1358 = vst.msk [vmem:[#allocation4 + $0x20] sm:$0xff] %vm451_vm0, %v1326_v57  ;;  %v1327_v4 = vadd.f32 %v1214_v61, %v1059_v24  ;;  %v1902_v40 = vld [vmem:[#allocation4 + $0x18] sm:$0xff] }
 0x18d   : > { %1361 = vst.msk [vmem:[#allocation4 + $0x38] sm:$0xff] %vm451_vm0, %v1329_v56  ;;  %v1900_v3 = vld [vmem:[#allocation4 + $0x8] sm:$0xff] }
 0x18e   : > { %1359 = vst.msk [vmem:[#allocation4 + $0x28] sm:$0xff] %vm451_vm0, %v1327_v4  ;;  %v1080_v4 = vld [vmem:[#allocation4 + $0xd0] sm:$0xff] }
 0x190   : > { %v7282_v29 = vpop.f32.mrb[8].mxu0 }
 0x191   : > { %v1332_v42 = vadd.f32 %v7282_v29, %v1064_v17  ;;  %v1227_v20 = vpop.f32.mrb[9].mxu0  ;;  %v1079_v17 = vld [vmem:[#allocation4 + $0xc8] sm:$0xff] }
 0x192   : > { %v1330_v63 = vadd.f32 %v1227_v20, %v1062_v28  ;;  %v7283_v22 = vpop.f32.mrb[10].mxu0 }
 0x193   : > { %1364 = vst.msk [vmem:[#allocation4 + $0x50] sm:$0xff] %vm451_vm0, %v1332_v42  ;;  %v1333_v37 = vadd.f32 %v7283_v22, %v1065_v58  ;;  %v1230_v7 = vpop.f32.mrb[11].mxu0 }
 0x194   : > { %1362 = vst.msk [vmem:[#allocation4 + $0x40] sm:$0xff] %vm451_vm0, %v1330_v63  ;;  %v1331_v27 = vadd.f32 %v1230_v7, %v1063_v34  ;;  %v1899_v34 = vld [vmem:[#allocation4] sm:$0xff]  ;;  %v1084_v7 = vld [vmem:[#allocation4 + $0xf0] sm:$0xff] }
 0x195   : > { %1365 = vst.msk [vmem:[#allocation4 + $0x58] sm:$0xff] %vm451_vm0, %v1333_v37 }
 0x196   : > { %1363 = vst.msk [vmem:[#allocation4 + $0x48] sm:$0xff] %vm451_vm0, %v1331_v27 }
 0x19d   : > { %v7286_v51 = vpop.f32.mrb[12].mxu0 }
 0x19e   : > { %v1336_v16 = vadd.f32 %v7286_v51, %v1068_v23  ;;  %v1243_v44 = vpop.f32.mrb[13].mxu0  ;;  %v1083_v51 = vld [vmem:[#allocation4 + $0xe8] sm:$0xff] }
 0x19f   : > { %v1334_v38 = vadd.f32 %v1243_v44, %v1066_v26  ;;  %v7287_v59 = vpop.f32.mrb[14].mxu0 }
 0x1a0   : > { %1368 = vst.msk [vmem:[#allocation4 + $0x70] sm:$0xff] %vm451_vm0, %v1336_v16  ;;  %v1337_v30 = vadd.f32 %v7287_v59, %v1069_v25  ;;  %v1246_v60 = vpop.f32.mrb[15].mxu0  ;;  %v1905_v59 = vld [vmem:[#allocation4 + $0x30] sm:$0xff] }
 0x1a1   : > { %1366 = vst.msk [vmem:[#allocation4 + $0x60] sm:$0xff] %vm451_vm0, %v1334_v38  ;;  %v1335_v32 = vadd.f32 %v1246_v60, %v1067_v54 }
 0x1a2   : > { %1369 = vst.msk [vmem:[#allocation4 + $0x78] sm:$0xff] %vm451_vm0, %v1337_v30 }
 0x1a3   : > { %1367 = vst.msk [vmem:[#allocation4 + $0x68] sm:$0xff] %vm451_vm0, %v1335_v32  ;;  %v1903_v32 = vld [vmem:[#allocation4 + $0x20] sm:$0xff] }
 0x1a5   : > { %v7290_v8 = vpop.f32.mrb[16].mxu0 }
 0x1a6   : > { %v1340_v11 = vadd.f32 %v7290_v8, %v1072_v2  ;;  %v1259_v5 = vpop.f32.mrb[17].mxu0  ;;  %v1906_v8 = vld [vmem:[#allocation4 + $0x38] sm:$0xff] }
 0x1a7   : > { %v1338_v53 = vadd.f32 %v1259_v5, %v1070_v9  ;;  %v7291_v48 = vpop.f32.mrb[18].mxu0  ;;  %v1904_v5 = vld [vmem:[#allocation4 + $0x28] sm:$0xff] }
 0x1a8   : > { %1372 = vst.msk [vmem:[#allocation4 + $0x90] sm:$0xff] %vm451_vm0, %v1340_v11  ;;  %v1341_v18 = vadd.f32 %v7291_v48, %v1073_v10  ;;  %v1262_v46 = vpop.f32.mrb[19].mxu0 }
 0x1a9   : > { %1370 = vst.msk [vmem:[#allocation4 + $0x80] sm:$0xff] %vm451_vm0, %v1338_v53  ;;  %v1339_v41 = vadd.f32 %v1262_v46, %v1071_v19 }
 0x1aa   : > { %1373 = vst.msk [vmem:[#allocation4 + $0x98] sm:$0xff] %vm451_vm0, %v1341_v18 }
 0x1ab   : > { %1371 = vst.msk [vmem:[#allocation4 + $0x88] sm:$0xff] %vm451_vm0, %v1339_v41 }
 0x1ad   : > { %v7294_v33 = vpop.f32.mrb[20].mxu0 }
 0x1ae   : > { %v1344_v55 = vadd.f32 %v7294_v33, %v1076_v0  ;;  %v1275_v1 = vpop.f32.mrb[21].mxu0 }
 0x1af   : > { %v1342_v24 = vadd.f32 %v1275_v1, %v1074_v35  ;;  %v7295_v57 = vpop.f32.mrb[22].mxu0 }
 0x1b0   : > { %1376 = vst.msk [vmem:[#allocation4 + $0xb0] sm:$0xff] %vm451_vm0, %v1344_v55  ;;  %v1345_v13 = vadd.f32 %v7295_v57, %v1077_v52  ;;  %v1278_v56 = vpop.f32.mrb[23].mxu0  ;;  %v10489_v57 = vld [vmem:[%s12582_s2] ss:$0 sm:$0xff] }
 0x1b1   : > { %1374 = vst.msk [vmem:[#allocation4 + $0xa0] sm:$0xff] %vm451_vm0, %v1342_v24  ;;  %v1343_v61 = vadd.f32 %v1278_v56, %v1075_v36 }
 0x1b2   : > { %1377 = vst.msk [vmem:[#allocation4 + $0xb8] sm:$0xff] %vm451_vm0, %v1345_v13  ;;  %v1909_v13 = vld [vmem:[#allocation4 + $0x50] sm:$0xff] }
 0x1b3   : > { %1375 = vst.msk [vmem:[#allocation4 + $0xa8] sm:$0xff] %vm451_vm0, %v1343_v61 }
 0x1bc   : > { %v7298_v50 = vpop.f32.mrb[24].mxu0 }
 0x1bd   : > { %v1348_v45 = vadd.f32 %v7298_v50, %v1080_v4  ;;  %v1291_v12 = vpop.f32.mrb[25].mxu0  ;;  %v1907_v4 = vld [vmem:[#allocation4 + $0x40] sm:$0xff] }
 0x1be   : > { %v1346_v62 = vadd.f32 %v1291_v12, %v1078_v6  ;;  %v7299_v28 = vpop.f32.mrb[26].mxu0 }
 0x1bf   : > { %1380 = vst.msk [vmem:[#allocation4 + $0xd0] sm:$0xff] %vm451_vm0, %v1348_v45  ;;  %v1349_v21 = vadd.f32 %v7299_v28, %v1081_v49  ;;  %v1294_v29 = vpop.f32.mrb[27].mxu0  ;;  %v1910_v45 = vld [vmem:[#allocation4 + $0x58] sm:$0xff] }
 0x1c0   : > { %1378 = vst.msk [vmem:[#allocation4 + $0xc0] sm:$0xff] %vm451_vm0, %v1346_v62  ;;  %v1347_v58 = vadd.f32 %v1294_v29, %v1079_v17  ;;  %v12646_v62 = vmov 0.0   ;;  %v1908_v29 = vld [vmem:[#allocation4 + $0x48] sm:$0xff] }
 0x1c1   : > { %1381 = vst.msk [vmem:[#allocation4 + $0xd8] sm:$0xff] %vm451_vm0, %v1349_v21 }
 0x1c2   : > { %1379 = vst.msk [vmem:[#allocation4 + $0xc8] sm:$0xff] %vm451_vm0, %v1347_v58 }
 0x1c7   : > { %v7308_v42 = vpop.f32.mrb[0].mxu1 }
 0x1c8   : > { %v2169_v20 = vadd.f32 %v7308_v42, %v1901_v39  ;;  %v2040_v15 = vpop.f32.mrb[1].mxu1 }
 0x1c9   : > { %v2167_v31 = vadd.f32 %v2040_v15, %v1899_v34  ;;  %v7309_v63 = vpop.f32.mrb[2].mxu1 }
 0x1ca   : > { %2201 = vst.msk [vmem:[#allocation4 + $0x10] sm:$0xff] %vm451_vm0, %v2169_v20  ;;  %v2170_v22 = vadd.f32 %v7309_v63, %v1902_v40  ;;  %v2043_v37 = vpop.f32.mrb[3].mxu1 }
 0x1cb   : > { %2199 = vst.msk [vmem:[#allocation4] sm:$0xff] %vm451_vm0, %v2167_v31  ;;  %v2168_v27 = vadd.f32 %v2043_v37, %v1900_v3 }
 0x1cc   : > { %2202 = vst.msk [vmem:[#allocation4 + $0x18] sm:$0xff] %vm451_vm0, %v2170_v22  ;;  %v7302_v14 = vpop.f32.mrb[28].mxu0 }
 0x1cd   : > { %2200 = vst.msk [vmem:[#allocation4 + $0x8] sm:$0xff] %vm451_vm0, %v2168_v27  ;;  %v1352_v23 = vadd.f32 %v7302_v14, %v1084_v7  ;;  %v1307_v26 = vpop.f32.mrb[29].mxu0 }
 0x1ce   : > { %v1350_v25 = vadd.f32 %v1307_v26, %v1082_v47  ;;  %v7303_v16 = vpop.f32.mrb[30].mxu0 }
 0x1cf   : > { %1384 = vst.msk [vmem:[#allocation4 + $0xf0] sm:$0xff] %vm451_vm0, %v1352_v23  ;;  %v1353_v44 = vadd.f32 %v7303_v16, %v1085_v43  ;;  %v1310_v54 = vpop.f32.mrb[31].mxu0 }
 0x1d0   : > { %1382 = vst.msk [vmem:[#allocation4 + $0xe0] sm:$0xff] %vm451_vm0, %v1350_v25  ;;  %v1351_v38 = vadd.f32 %v1310_v54, %v1083_v51  ;;  %v1913_v54 = vld [vmem:[#allocation4 + $0x70] sm:$0xff] }
 0x1d1   : > { %1385 = vst.msk [vmem:[#allocation4 + $0xf8] sm:$0xff] %vm451_vm0, %v1353_v44  ;;  %v2746_v48 = vld [vmem:[#allocation4 + $0x10] sm:$0xff] }
 0x1d2   : > { %1383 = vst.msk [vmem:[#allocation4 + $0xe8] sm:$0xff] %vm451_vm0, %v1351_v38  ;;  %v2744_v41 = vld [vmem:[#allocation4] sm:$0xff] }
 0x1d3   : > { %v2747_v33 = vld [vmem:[#allocation4 + $0x18] sm:$0xff] }
 0x1d4   : > { %v7312_v30 = vpop.f32.mrb[4].mxu1  ;;  %v2745_v1 = vld [vmem:[#allocation4 + $0x8] sm:$0xff] }
 0x1d5   : > { %v2173_v60 = vadd.f32 %v7312_v30, %v1905_v59  ;;  %v2056_v2 = vpop.f32.mrb[5].mxu1 }
 0x1d6   : > { %v2171_v9 = vadd.f32 %v2056_v2, %v1903_v32  ;;  %v7313_v10 = vpop.f32.mrb[6].mxu1 }
 0x1d7   : > { %2205 = vst.msk [vmem:[#allocation4 + $0x30] sm:$0xff] %vm451_vm0, %v2173_v60  ;;  %v2174_v11 = vadd.f32 %v7313_v10, %v1906_v8  ;;  %v2059_v19 = vpop.f32.mrb[7].mxu1  ;;  %v1911_v60 = vld [vmem:[#allocation4 + $0x60] sm:$0xff] }
 0x1d8   : > { %2203 = vst.msk [vmem:[#allocation4 + $0x20] sm:$0xff] %vm451_vm0, %v2171_v9  ;;  %v2172_v53 = vadd.f32 %v2059_v19, %v1904_v5 }
 0x1d9   : > { %2206 = vst.msk [vmem:[#allocation4 + $0x38] sm:$0xff] %vm451_vm0, %v2174_v11  ;;  %v1914_v11 = vld [vmem:[#allocation4 + $0x78] sm:$0xff] }
 0x1da   : > { %2204 = vst.msk [vmem:[#allocation4 + $0x28] sm:$0xff] %vm451_vm0, %v2172_v53 }
 0x1dc   : > { %v7342_v18 = vpop.f32.mrb[32].mxu0 }
 0x1dd   : > { %v3014_v46 = vadd.f32 %v7342_v18, %v2746_v48  ;;  %v2885_v0 = vpop.f32.mrb[33].mxu0 }
 0x1de   : > { %v3012_v35 = vadd.f32 %v2885_v0, %v2744_v41  ;;  %v7343_v52 = vpop.f32.mrb[34].mxu0  ;;  %v2750_v37 = vld [vmem:[#allocation4 + $0x30] sm:$0xff]  ;;  %v1912_v41 = vld [vmem:[#allocation4 + $0x68] sm:$0xff] }
 0x1df   : > { %3046 = vst.msk [vmem:[#allocation4 + $0x10] sm:$0xff] %vm451_vm0, %v3014_v46  ;;  %v3015_v55 = vadd.f32 %v7343_v52, %v2747_v33  ;;  %v2888_v36 = vpop.f32.mrb[35].mxu0  ;;  %v2748_v47 = vld [vmem:[#allocation4 + $0x20] sm:$0xff] }
 0x1e0   : > { %3044 = vst.msk [vmem:[#allocation4] sm:$0xff] %vm451_vm0, %v3012_v35  ;;  %v3013_v24 = vadd.f32 %v2888_v36, %v2745_v1  ;;  %v2751_v23 = vld [vmem:[#allocation4 + $0x38] sm:$0xff] }
 0x1e1   : > { %3047 = vst.msk [vmem:[#allocation4 + $0x18] sm:$0xff] %vm451_vm0, %v3015_v55  ;;  %v2749_v25 = vld [vmem:[#allocation4 + $0x28] sm:$0xff] }
 0x1e2   : > { %3045 = vst.msk [vmem:[#allocation4 + $0x8] sm:$0xff] %vm451_vm0, %v3013_v24 }
 0x1e4   : > { %v7316_v56 = vpop.f32.mrb[8].mxu1 }
 0x1e5   : > { %v2177_v61 = vadd.f32 %v7316_v56, %v1909_v13  ;;  %v2072_v6 = vpop.f32.mrb[9].mxu1 }
 0x1e6   : > { %v3078_v50 = vld [vmem:[#allocation4 + $0x10] sm:$0xff]  ;;  %v2175_v49 = vadd.f32 %v2072_v6, %v1907_v4  ;;  %v7317_v12 = vpop.f32.mrb[10].mxu1 }
 0x1e7   : > { %v10492_v17 = vadd.f32 %v10489_v57, %v3078_v50  ;;  %3587 = vst.msk [vmem:[#allocation4 + $0x10] sm:$0xff] %vm451_vm0, %v12646_v62  ;;  %v3076_v28 = vld [vmem:[#allocation4] sm:$0xff]  ;;  %2209 = vst.msk [vmem:[#allocation4 + $0x50] sm:$0xff] %vm451_vm0, %v2177_v61  ;;  %v2178_v21 = vadd.f32 %v7317_v12, %v1910_v45  ;;  %v2075_v58 = vpop.f32.mrb[11].mxu1 }
 0x1e8   : > { %v10498_v39 = vadd.f32 %v10489_v57, %v3076_v28  ;;  %3585 = vst.msk [vmem:[#allocation4] sm:$0xff] %vm451_vm0, %v12646_v62  ;;  %v3079_v42 = vld [vmem:[#allocation4 + $0x18] sm:$0xff]  ;;  %2207 = vst.msk [vmem:[#allocation4 + $0x40] sm:$0xff] %vm451_vm0, %v2175_v49  ;;  %v2176_v20 = vadd.f32 %v2075_v58, %v1908_v29 }
 0x1e9   : > { %v6824_v34 = vmul.f32 -1.442695, %v10492_v17  ;;  %v10505_v15 = vadd.f32 %v10489_v57, %v3079_v42  ;;  %3588 = vst.msk [vmem:[#allocation4 + $0x18] sm:$0xff] %vm451_vm0, %v12646_v62  ;;  %v3077_v31 = vld [vmem:[#allocation4 + $0x8] sm:$0xff]  ;;  %2210 = vst.msk [vmem:[#allocation4 + $0x58] sm:$0xff] %vm451_vm0, %v2178_v21 }
 0x1ea   : > { %v6822_v40 = vmul.f32 -1.442695, %v10498_v39  ;;  %v10512_v63 = vadd.f32 %v10489_v57, %v3077_v31  ;;  %3586 = vst.msk [vmem:[#allocation4 + $0x8] sm:$0xff] %vm451_vm0, %v12646_v62  ;;  %2208 = vst.msk [vmem:[#allocation4 + $0x48] sm:$0xff] %vm451_vm0, %v2176_v20 }
 0x1eb   : > { %8457 = vpow2.f32 %v6824_v34  ;;  %v6825_v22 = vmul.f32 -1.442695, %v10505_v15 }
 0x1ec   : > { %8459 = vpow2.f32 %v6822_v40  ;;  %v6823_v3 = vmul.f32 -1.442695, %v10512_v63  ;;  %v7346_v7 = vpop.f32.mrb[36].mxu0 }
 0x1ed   : > { %8461 = vpow2.f32 %v6825_v22  ;;  %v3018_v27 = vadd.f32 %v7346_v7, %v2750_v37  ;;  %v2901_v14 = vpop.f32.mrb[37].mxu0 }
 0x1ee   : > { %8463 = vpow2.f32 %v6823_v3  ;;  %v3016_v43 = vadd.f32 %v2901_v14, %v2748_v47  ;;  %v7347_v26 = vpop.f32.mrb[38].mxu0  ;;  %v2754_v49 = vld [vmem:[#allocation4 + $0x50] sm:$0xff] }
 0x1ef   : > { %3050 = vst.msk [vmem:[#allocation4 + $0x30] sm:$0xff] %vm451_vm0, %v3018_v27  ;;  %v3019_v51 = vadd.f32 %v7347_v26, %v2751_v23  ;;  %v2904_v16 = vpop.f32.mrb[39].mxu0  ;;  %v2752_v28 = vld [vmem:[#allocation4 + $0x40] sm:$0xff]  ;;  %v1917_v47 = vld [vmem:[#allocation4 + $0x90] sm:$0xff] }
 0x1f0   : > { %3048 = vst.msk [vmem:[#allocation4 + $0x20] sm:$0xff] %vm451_vm0, %v3016_v43  ;;  %v3017_v44 = vadd.f32 %v2904_v16, %v2749_v25  ;;  %v2755_v58 = vld [vmem:[#allocation4 + $0x58] sm:$0xff]  ;;  %v1915_v25 = vld [vmem:[#allocation4 + $0x80] sm:$0xff] }
 0x1f1   : > { %3051 = vst.msk [vmem:[#allocation4 + $0x38] sm:$0xff] %vm451_vm0, %v3019_v51  ;;  %v2753_v34 = vld [vmem:[#allocation4 + $0x48] sm:$0xff] }
 0x1f2   : > { %3049 = vst.msk [vmem:[#allocation4 + $0x28] sm:$0xff] %vm451_vm0, %v3017_v44 }
 0x1f4   : > { %v7320_v38 = vpop.f32.mrb[12].mxu1 }
 0x1f5   : > { %v8458_v59 = vpop.eup %8457  ;;  %v2181_v30 = vadd.f32 %v7320_v38, %v1913_v54  ;;  %v2088_v32 = vpop.f32.mrb[13].mxu1 }
 0x1f6   : > { %v8460_v2 = vpop.eup %8459  ;;  %v3245_v9 = vadd.f32 1.0, %v8458_v59  ;;  %v3082_v8 = vld [vmem:[#allocation4 + $0x30] sm:$0xff]  ;;  %v2179_v10 = vadd.f32 %v2088_v32, %v1911_v60  ;;  %v7321_v5 = vpop.f32.mrb[14].mxu1 }
 0x1f7   : > { %v8462_v19 = vpop.eup %8461  ;;  %v3243_v53 = vadd.f32 1.0, %v8460_v2  ;;  %v10524_v48 = vadd.f32 %v10489_v57, %v3082_v8  ;;  %3591 = vst.msk [vmem:[#allocation4 + $0x30] sm:$0xff] %vm451_vm0, %v12646_v62  ;;  %v3080_v18 = vld [vmem:[#allocation4 + $0x20] sm:$0xff]  ;;  %2213 = vst.msk [vmem:[#allocation4 + $0x70] sm:$0xff] %vm451_vm0, %v2181_v30  ;;  %v2182_v46 = vadd.f32 %v7321_v5, %v1914_v11  ;;  %v2091_v0 = vpop.f32.mrb[15].mxu1 }
 0x1f8   : > { %v8464_v35 = vpop.eup %8463  ;;  %8465 = vrcp.f32 %v3245_v9  ;;  %v3246_v33 = vadd.f32 1.0, %v8462_v19  ;;  %v10530_v52 = vadd.f32 %v10489_v57, %v3080_v18  ;;  %3589 = vst.msk [vmem:[#allocation4 + $0x20] sm:$0xff] %vm451_vm0, %v12646_v62  ;;  %v3083_v55 = vld [vmem:[#allocation4 + $0x38] sm:$0xff]  ;;  %2211 = vst.msk [vmem:[#allocation4 + $0x60] sm:$0xff] %vm451_vm0, %v2179_v10  ;;  %v2180_v1 = vadd.f32 %v2091_v0, %v1912_v41 }
 0x1f9   : > { %8467 = vrcp.f32 %v3243_v53  ;;  %v3244_v36 = vadd.f32 1.0, %v8464_v35  ;;  %v6828_v24 = vmul.f32 -1.442695, %v10524_v48  ;;  %v10537_v13 = vadd.f32 %v10489_v57, %v3083_v55  ;;  %3592 = vst.msk [vmem:[#allocation4 + $0x38] sm:$0xff] %vm451_vm0, %v12646_v62  ;;  %v3081_v56 = vld [vmem:[#allocation4 + $0x28] sm:$0xff]  ;;  %2214 = vst.msk [vmem:[#allocation4 + $0x78] sm:$0xff] %vm451_vm0, %v2182_v46 }
 0x1fa   : > { %8469 = vrcp.f32 %v3246_v33  ;;  %v6826_v61 = vmul.f32 -1.442695, %v10530_v52  ;;  %v10544_v4 = vadd.f32 %v10489_v57, %v3081_v56  ;;  %3590 = vst.msk [vmem:[#allocation4 + $0x28] sm:$0xff] %vm451_vm0, %v12646_v62  ;;  %2212 = vst.msk [vmem:[#allocation4 + $0x68] sm:$0xff] %vm451_vm0, %v2180_v1 }
 0x1fb   : > { %8471 = vrcp.f32 %v3244_v36  ;;  %v6829_v6 = vmul.f32 -1.442695, %v10537_v13 }
 0x1fc   : > { %8473 = vpow2.f32 %v6828_v24  ;;  %v6827_v50 = vmul.f32 -1.442695, %v10544_v4  ;;  %v7350_v45 = vpop.f32.mrb[40].mxu0 }
 0x1fd   : > { %8475 = vpow2.f32 %v6826_v61  ;;  %v3022_v12 = vadd.f32 %v7350_v45, %v2754_v49  ;;  %v2917_v21 = vpop.f32.mrb[41].mxu0  ;;  %v1918_v61 = vld [vmem:[#allocation4 + $0x98] sm:$0xff] }
 0x1fe   : > { %8477 = vpow2.f32 %v6829_v6  ;;  %v3020_v29 = vadd.f32 %v2917_v21, %v2752_v28  ;;  %v7351_v42 = vpop.f32.mrb[42].mxu0  ;;  %v1916_v6 = vld [vmem:[#allocation4 + $0x88] sm:$0xff]  ;;  %v2758_v45 = vld [vmem:[#allocation4 + $0x70] sm:$0xff] }
 0x1ff   : > { %8479 = vpow2.f32 %v6827_v50  ;;  %3054 = vst.msk [vmem:[#allocation4 + $0x50] sm:$0xff] %vm451_vm0, %v3022_v12  ;;  %v3023_v20 = vadd.f32 %v7351_v42, %v2755_v58  ;;  %v2920_v31 = vpop.f32.mrb[43].mxu0  ;;  %v2756_v42 = vld [vmem:[#allocation4 + $0x60] sm:$0xff] }
 0x200   : > { %3052 = vst.msk [vmem:[#allocation4 + $0x40] sm:$0xff] %vm451_vm0, %v3020_v29  ;;  %v3021_v40 = vadd.f32 %v2920_v31, %v2753_v34  ;;  %v2759_v31 = vld [vmem:[#allocation4 + $0x78] sm:$0xff] }
 0x201   : > { %3055 = vst.msk [vmem:[#allocation4 + $0x58] sm:$0xff] %vm451_vm0, %v3023_v20 }
 0x202   : > { %v8466_v22 = vpop.eup %8465  ;;  %3053 = vst.msk [vmem:[#allocation4 + $0x48] sm:$0xff] %vm451_vm0, %v3021_v40 }
 0x203   : > { %v8468_v3 = vpop.eup %8467  ;;  %v10556_v37 = vmul.f32 %v8466_v22, %v10492_v17 }
 0x204   : > { %v8470_v7 = vpop.eup %8469  ;;  %v3339_v27 = vmul.f32 %v8468_v3, %v10498_v39  ;;  %v7324_v14 = vpop.f32.mrb[16].mxu1  ;;  %v2757_v3 = vld [vmem:[#allocation4 + $0x68] sm:$0xff] }
 0x205   : > { %v8472_v43 = vpop.eup %8471  ;;  %v3406_v23 = vrot.slane %v10556_v37, 7  ;;  %v3342_v26 = vmul.f32 %v8470_v7, %v10505_v15  ;;  %v2185_v51 = vadd.f32 %v7324_v14, %v1917_v47  ;;  %v2104_v16 = vpop.f32.mrb[17].mxu1 }
 0x206   : > { %v8474_v44 = vpop.eup %8473  ;;  %v3403_v54 = vrot.slane %v3339_v27, 7  ;;  %v3340_v38 = vmul.f32 %v8472_v43, %v10512_v63  ;;  %v3086_v59 = vld [vmem:[#allocation4 + $0x50] sm:$0xff]  ;;  %v2183_v17 = vadd.f32 %v2104_v16, %v1915_v25  ;;  %v7325_v30 = vpop.f32.mrb[18].mxu1 }
 0x207   : > { %v8476_v60 = vpop.eup %8475  ;;  %v3500_v39 = vsel %vm322_vm4, 0.0, %v3406_v23  ;;  %v3407_v32 = vrot.slane %v3342_v26, 7  ;;  %v3249_v2 = vadd.f32 1.0, %v8474_v44  ;;  %v10564_v9 = vadd.f32 %v10489_v57, %v3086_v59  ;;  %3595 = vst.msk [vmem:[#allocation4 + $0x50] sm:$0xff] %vm451_vm0, %v12646_v62  ;;  %v3084_v15 = vld [vmem:[#allocation4 + $0x40] sm:$0xff]  ;;  %2217 = vst.msk [vmem:[#allocation4 + $0x90] sm:$0xff] %vm451_vm0, %v2185_v51 }
 0x208   : > { %v2107_v8 = vpop.f32.mrb[19].mxu1  ;;  %v8478_v10 = vpop.eup %8477  ;;  %3537 = vst.msk [vmem:[#allocation3 + $0x30] sm:$0xff] %vm451_vm0, %v3500_v39  ;;  %v3499_v63 = vsel %vm322_vm4, 0.0, %v3403_v54  ;;  %v3404_v11 = vrot.slane %v3340_v38, 7  ;;  %v3247_v5 = vadd.f32 1.0, %v8476_v60  ;;  %v10572_v19 = vadd.f32 %v10489_v57, %v3084_v15  ;;  %3593 = vst.msk [vmem:[#allocation4 + $0x40] sm:$0xff] %vm451_vm0, %v12646_v62 }
 0x209   : > { %v3087_v53 = vld [vmem:[#allocation4 + $0x58] sm:$0xff]  ;;  %2215 = vst.msk [vmem:[#allocation4 + $0x80] sm:$0xff] %vm451_vm0, %v2183_v17  ;;  %v8480_v18 = vpop.eup %8479  ;;  %3534 = vst.msk [vmem:[#allocation3 + $0x18] sm:$0xff] %vm451_vm0, %v3499_v63  ;;  %v3516_v46 = vsel %vm322_vm4, %v3407_v32, 0.0  ;;  %8481 = vrcp.f32 %v3249_v2  ;;  %v3250_v41 = vadd.f32 1.0, %v8478_v10  ;;  %v3085_v35 = vld [vmem:[#allocation4 + $0x48] sm:$0xff]  ;;  %v2186_v50 = vadd.f32 %v7325_v30, %v1918_v61 }
 0x20a   : > { %v6832_v0 = vmul.f32 -1.442695, %v10564_v9  ;;  %3596 = vst.msk [vmem:[#allocation4 + $0x58] sm:$0xff] %vm451_vm0, %v12646_v62  ;;  %v3405_v33 = vsel %vm322_vm4, %v3403_v54, %v3404_v11  ;;  %v3515_v55 = vsel %vm322_vm4, %v3404_v11, 0.0  ;;  %8483 = vrcp.f32 %v3247_v5  ;;  %3594 = vst.msk [vmem:[#allocation4 + $0x48] sm:$0xff] %vm451_vm0, %v12646_v62 }
 0x20b   : > { %3539 = vst.msk [vmem:[#allocation3 + $0x40] sm:$0x3] %vm454_vm1, %v3516_v46  ;;  %v3248_v1 = vadd.f32 1.0, %v8480_v18  ;;  %3536 = vst.msk [vmem:[#allocation3 + $0x28] sm:$0x3] %vm454_vm1, %v3515_v55  ;;  %8485 = vrcp.f32 %v3250_v41  ;;  %v10591_v24 = vadd.f32 %v10489_v57, %v3087_v53  ;;  %v10594_v56 = vadd.f32 %v10489_v57, %v3085_v35 }
 0x20c   : > { %3535 = vst.msk [vmem:[#allocation3 + $0x20] sm:$0xff] %vm451_vm0, %v3405_v33  ;;  %v6830_v36 = vmul.f32 -1.442695, %v10572_v19  ;;  %v2184_v49 = vadd.f32 %v2107_v8, %v1916_v6  ;;  %v7354_v12 = vpop.f32.mrb[44].mxu0  ;;  %v3408_v28 = vsel %vm322_vm4, %v3406_v23, %v3407_v32  ;;  %2218 = vst.msk [vmem:[#allocation4 + $0x98] sm:$0xff] %vm451_vm0, %v2186_v50  ;;  %v1921_v8 = vld [vmem:[#allocation4 + $0xb0] sm:$0xff] }
 0x20d   : > { %8487 = vrcp.f32 %v3248_v1  ;;  %v6833_v21 = vmul.f32 -1.442695, %v10591_v24  ;;  %v6831_v29 = vmul.f32 -1.442695, %v10594_v56  ;;  %v3026_v58 = vadd.f32 %v7354_v12, %v2758_v45  ;;  %v2933_v20 = vpop.f32.mrb[45].mxu0  ;;  %3538 = vst.msk [vmem:[#allocation3 + $0x38] sm:$0xff] %vm451_vm0, %v3408_v28 }
 0x20e   : > { %8489 = vpow2.f32 %v6832_v0  ;;  %2216 = vst.msk [vmem:[#allocation4 + $0x88] sm:$0xff] %vm451_vm0, %v2184_v49  ;;  %v3024_v34 = vadd.f32 %v2933_v20, %v2756_v42  ;;  %v7355_v40 = vpop.f32.mrb[46].mxu0  ;;  %v1919_v0 = vld [vmem:[#allocation4 + $0xa0] sm:$0xff]  ;;  %v1922_v50 = vld [vmem:[#allocation4 + $0xb8] sm:$0xff] }
 0x20f   : > { %8491 = vpow2.f32 %v6830_v36  ;;  %3058 = vst.msk [vmem:[#allocation4 + $0x70] sm:$0xff] %vm451_vm0, %v3026_v58  ;;  %v3027_v22 = vadd.f32 %v7355_v40, %v2759_v31  ;;  %v2936_v37 = vpop.f32.mrb[47].mxu0  ;;  %v10603_v7 = vld [vmem:[#allocation3 + $0x30] sm:$0xff] }
 0x210   : > { %8493 = vpow2.f32 %v6833_v21  ;;  %3056 = vst.msk [vmem:[#allocation4 + $0x60] sm:$0xff] %vm451_vm0, %v3024_v34  ;;  %v3025_v27 = vadd.f32 %v2936_v37, %v2757_v3  ;;  %v4562_v47 = vrot.slane %v10603_v7, 1  ;;  %v3899_v14 = vrot.slane %v10603_v7, 2  ;;  %v10608_v43 = vld [vmem:[#allocation3 + $0x18] sm:$0xff] }
 0x211   : > { %8495 = vpow2.f32 %v6831_v29  ;;  %3059 = vst.msk [vmem:[#allocation4 + $0x78] sm:$0xff] %vm451_vm0, %v3027_v22  ;;  %v3718_v51 = vrot.slane %v10608_v43, 1  ;;  %v3894_v25 = vrot.slane %v10608_v43, 2 }
 0x212   : > { %v10611_v23 = vld [vmem:[#allocation3 + $0x40] sm:$0x3]  ;;  %3057 = vst.msk [vmem:[#allocation4 + $0x68] sm:$0xff] %vm451_vm0, %v3025_v27  ;;  %v10622_v30 = vld [vmem:[#allocation3 + $0x28] sm:$0x3] }
 0x213   : > { %v10613_v26 = vld [vmem:[#allocation3 + $0x40] sm:$0x3]  ;;  %v4565_v16 = vrot.slane %v10611_v23, 1  ;;  %v4741_v44 = vrot.slane %v10611_v23, 2  ;;  %v8482_v17 = vpop.eup %8481  ;;  %v3721_v11 = vrot.slane %v10622_v30, 1  ;;  %v3897_v5 = vrot.slane %v10622_v30, 2 }
 0x214   : > { %v3726_v54 = vrot.slane %v10613_v26, 1  ;;  %v3902_v38 = vrot.slane %v10613_v26, 2  ;;  %v3621_v59 = vld [vmem:[#allocation3 + $0x20] sm:$0xff]  ;;  %v8484_v2 = vpop.eup %8483  ;;  %v3345_v15 = vmul.f32 %v8482_v17, %v10524_v48  ;;  %v7328_v10 = vpop.f32.mrb[20].mxu1  ;;  %v4465_v63 = vld [vmem:[#allocation3 + $0x38] sm:$0xff] }
 0x215   : > { %v10624_v60 = vrot.slane %v3621_v59, 1  ;;  %v10626_v39 = vrot.slane %v3621_v59, 2  ;;  %v10628_v32 = vld [vmem:[#allocation3 + $0x40] sm:$0x3]  ;;  %v8486_v18 = vpop.eup %8485  ;;  %v3343_v46 = vmul.f32 %v8484_v2, %v10530_v52  ;;  %v2189_v41 = vadd.f32 %v7328_v10, %v1921_v8  ;;  %v2120_v35 = vpop.f32.mrb[21].mxu1 }
 0x216   : > { %v5405_v53 = vrot.slane %v10628_v32, 1  ;;  %v10635_v33 = vrot.slane %v4465_v63, 1  ;;  %v10637_v55 = vrot.slane %v4465_v63, 2  ;;  %v3412_v1 = vrot.slane %v3345_v15, 7  ;;  %v3090_v61 = vld [vmem:[#allocation4 + $0x70] sm:$0xff]  ;;  %v7329_v49 = vpop.f32.mrb[22].mxu1 }
 0x217   : > { %v8488_v48 = vpop.eup %8487  ;;  %v3346_v36 = vmul.f32 %v8486_v18, %v10537_v13  ;;  %v2187_v6 = vadd.f32 %v2120_v35, %v1919_v0  ;;  %v10642_v45 = vsel %vm635_vm3, %v3718_v51, %v10624_v60  ;;  %v3409_v12 = vrot.slane %v3343_v46, 7  ;;  %3599 = vst.msk [vmem:[#allocation4 + $0x70] sm:$0xff] %vm451_vm0, %v12646_v62  ;;  %v3088_v29 = vld [vmem:[#allocation4 + $0x60] sm:$0xff]  ;;  %2221 = vst.msk [vmem:[#allocation4 + $0xb0] sm:$0xff] %vm451_vm0, %v2189_v41  ;;  %v2123_v58 = vpop.f32.mrb[23].mxu1  ;;  %v1920_v35 = vld [vmem:[#allocation4 + $0xa8] sm:$0xff] }
 0x218   : > { %v8490_v52 = vpop.eup %8489  ;;  %v3344_v28 = vmul.f32 %v8488_v48, %v10544_v4  ;;  %v10646_v21 = vadd.f32 %v10489_v57, %v3090_v61  ;;  %v2190_v13 = vadd.f32 %v7329_v49, %v1922_v50  ;;  %v3502_v20 = vsel %vm322_vm4, 0.0, %v3412_v1  ;;  %3597 = vst.msk [vmem:[#allocation4 + $0x60] sm:$0xff] %vm451_vm0, %v12646_v62  ;;  %v3091_v4 = vld [vmem:[#allocation4 + $0x78] sm:$0xff] }
 0x219   : > { %v8492_v42 = vpop.eup %8491  ;;  %v3413_v34 = vrot.slane %v3346_v36, 7  ;;  %v3253_v31 = vadd.f32 1.0, %v8490_v52  ;;  %v10653_v40 = vadd.f32 %v10489_v57, %v3088_v29  ;;  %2219 = vst.msk [vmem:[#allocation4 + $0xa0] sm:$0xff] %vm451_vm0, %v2187_v6  ;;  %3543 = vst.msk [vmem:[#allocation3 + $0x60] sm:$0xff] %vm451_vm0, %v3502_v20  ;;  %v3501_v3 = vsel %vm322_vm4, 0.0, %v3409_v12  ;;  %v3089_v59 = vld [vmem:[#allocation4 + $0x68] sm:$0xff] }
 0x21a   : > { %v8494_v22 = vpop.eup %8493  ;;  %v3410_v37 = vrot.slane %v3344_v28, 7  ;;  %v3251_v27 = vadd.f32 1.0, %v8492_v42  ;;  %v6836_v51 = vmul.f32 -1.442695, %v10646_v21  ;;  %3600 = vst.msk [vmem:[#allocation4 + $0x78] sm:$0xff] %vm451_vm0, %v12646_v62  ;;  %2222 = vst.msk [vmem:[#allocation4 + $0xb8] sm:$0xff] %vm451_vm0, %v2190_v13  ;;  %v10677_v41 = vadd.f32 %v10489_v57, %v3091_v4 }
 0x21b   : > { %v8496_v17 = vpop.eup %8495  ;;  %3540 = vst.msk [vmem:[#allocation3 + $0x48] sm:$0xff] %vm451_vm0, %v3501_v3  ;;  %v3414_v2 = vsel %vm322_vm4, %v3412_v1, %v3413_v34  ;;  %v3518_v15 = vsel %vm322_vm4, %v3413_v34, 0.0  ;;  %8497 = vrcp.f32 %v3253_v31  ;;  %v3254_v8 = vadd.f32 1.0, %v8494_v22  ;;  %3598 = vst.msk [vmem:[#allocation4 + $0x68] sm:$0xff] %vm451_vm0, %v12646_v62  ;;  %v2763_v20 = vld [vmem:[#allocation4 + $0x98] sm:$0xff]  ;;  %v2761_v34 = vld [vmem:[#allocation4 + $0x88] sm:$0xff] }
 0x21c   : > { %3544 = vst.msk [vmem:[#allocation3 + $0x68] sm:$0xff] %vm451_vm0, %v3414_v2  ;;  %v3411_v10 = vsel %vm322_vm4, %v3409_v12, %v3410_v37  ;;  %v3517_v63 = vsel %vm322_vm4, %v3410_v37, 0.0  ;;  %8499 = vrcp.f32 %v3251_v27  ;;  %v3252_v18 = vadd.f32 1.0, %v8496_v17  ;;  %v7358_v48 = vpop.f32.mrb[48].mxu0  ;;  %v10741_v23 = vld [vmem:[#allocation3 + $0x28] sm:$0x3] }
 0x21d   : > { %3545 = vst.msk [vmem:[#allocation3 + $0x70] sm:$0x3] %vm454_vm1, %v3518_v15  ;;  %3542 = vst.msk [vmem:[#allocation3 + $0x58] sm:$0x3] %vm454_vm1, %v3517_v63  ;;  %8501 = vrcp.f32 %v3254_v8  ;;  %v6834_v46 = vmul.f32 -1.442695, %v10653_v40  ;;  %v10680_v0 = vadd.f32 %v10489_v57, %v3089_v59  ;;  %v2188_v1 = vadd.f32 %v2123_v58, %v1920_v35 }
 0x21e   : > { %3541 = vst.msk [vmem:[#allocation3 + $0x50] sm:$0xff] %vm451_vm0, %v3411_v10  ;;  %8503 = vrcp.f32 %v3252_v18  ;;  %v10686_v36 = vsel %vm635_vm3, %v4562_v47, %v10635_v33  ;;  %v4566_v61 = vsel %vm635_vm3, %v10635_v33, %v4565_v16  ;;  %v2949_v6 = vpop.f32.mrb[49].mxu0  ;;  %v6837_v50 = vmul.f32 -1.442695, %v10677_v41  ;;  %v1925_v59 = vld [vmem:[#allocation4 + $0xd0] sm:$0xff]  ;;  %v1923_v63 = vld [vmem:[#allocation4 + $0xc0] sm:$0xff] }
 0x21f   : > { %8505 = vpow2.f32 %v6836_v51  ;;  %v6835_v49 = vmul.f32 -1.442695, %v10680_v0  ;;  %v7991_v52 = vpack.i.bf16 %v4566_v61, %v10686_v36  ;;  %v7359_v12 = vpop.f32.mrb[50].mxu0  ;;  %2220 = vst.msk [vmem:[#allocation4 + $0xa8] sm:$0xff] %vm451_vm0, %v2188_v1  ;;  %v3727_v47 = vsel %vm635_vm3, %v10635_v33, %v3726_v54  ;;  %v2760_v54 = vld [vmem:[#allocation4 + $0x80] sm:$0xff]  ;;  %v1926_v61 = vld [vmem:[#allocation4 + $0xd8] sm:$0xff] }
 0x220   : > { %8507 = vpow2.f32 %v6834_v46  ;;  %v10704_v16 = vsel %vm812_vm2, %v3899_v14, %v10637_v55  ;;  %v3903_v28 = vsel %vm812_vm2, %v10637_v55, %v3902_v38  ;;  %v2952_v29 = vpop.f32.mrb[51].mxu0  ;;  %v7981_v13 = vpack.i.bf16 %v3727_v47, %v10686_v36  ;;  %v2762_v14 = vld [vmem:[#allocation4 + $0x90] sm:$0xff] }
 0x221   : > { %8509 = vpow2.f32 %v6837_v50  ;;  %7992 = vrot.lane.b32.xlu1 %v7991_v52, %s8806_s25  ;;  %v7986_v58 = vpack.i.bf16 %v3903_v28, %v10704_v16  ;;  %v3722_v7 = vsel %vm635_vm3, %v10624_v60, %v3721_v11  ;;  %v3030_v42 = vadd.f32 %v7358_v48, %v2762_v14  ;;  %v10718_v31 = vld [vmem:[#allocation3 + $0x60] sm:$0xff]  ;;  %v1924_v28 = vld [vmem:[#allocation4 + $0xc8] sm:$0xff] }
 0x222   : > { %8511 = vpow2.f32 %v6835_v49  ;;  %v8011_v26 = vpack.i.bf16 %v3722_v7, %v10642_v45  ;;  %v3028_v38 = vadd.f32 %v2949_v6, %v2760_v54  ;;  %7982 = vrot.lane.b32.xlu0 %v7981_v13, %s8806_s25  ;;  %v3031_v4 = vadd.f32 %v7359_v12, %v2763_v20  ;;  %v8454_v49 = vld [vmem:[%s12583_s3] sm:$0x3f]  }
 0x223   : > { %v10725_v22 = vsel %vm812_vm2, %v10637_v55, %v4741_v44  ;;  %v10731_v11 = vsel %vm812_vm2, %v3894_v25, %v10626_v39  ;;  %v3898_v3 = vsel %vm812_vm2, %v10626_v39, %v3897_v5  ;;  %v10737_v37 = vld [vmem:[#allocation3 + $0x68] sm:$0xff]  ;;  %3062 = vst.msk [vmem:[#allocation4 + $0x90] sm:$0xff] %vm451_vm0, %v3030_v42  ;;  %v3029_v44 = vadd.f32 %v2952_v29, %v2761_v34 }
 0x224   : > { %v10739_v27 = vld [vmem:[#allocation3 + $0x70] sm:$0x3]  ;;  %3060 = vst.msk [vmem:[#allocation4 + $0x80] sm:$0xff] %vm451_vm0, %v3028_v38  ;;  %v7996_v43 = vpack.i.bf16 %v10725_v22, %v10704_v16  ;;  %v8016_v25 = vpack.i.bf16 %v3898_v3, %v10731_v11  ;;  %v10752_v30 = vsel %vm635_vm3, %v10635_v33, %v5405_v53  ;;  %3063 = vst.msk [vmem:[#allocation4 + $0x98] sm:$0xff] %vm451_vm0, %v3031_v4  ;;  %v7332_v17 = vpop.f32.mrb[24].mxu1  ;;  %v5581_v2 = vrot.slane %v10628_v32, 2 }
 0x225   : > { %v8498_v5 = vpop.eup %8497  ;;  %8012 = vrot.lane.b32.xlu1 %v8011_v26, %s8806_s25  ;;  %v8001_v51 = vpack.i.bf16 %v10752_v30, %v10686_v36  ;;  %v4572_v15 = vrot.slane %v10718_v31, 1  ;;  %v10761_v8 = vrot.slane %v10737_v37, 1  ;;  %3061 = vst.msk [vmem:[#allocation4 + $0x88] sm:$0xff] %vm451_vm0, %v3029_v44  ;;  %v2193_v33 = vadd.f32 %v7332_v17, %v1925_v59  ;;  %v2136_v18 = vpop.f32.mrb[25].mxu1  ;;  %7477 = vmatprep.subr.msk.bf16.mxu1 %vm812_vm2, %v8454_v49 }
 0x226   : > { %v8500_v10 = vpop.eup %8499  ;;  %v3349_v53 = vmul.f32 %v8498_v5, %v10564_v9  ;;  %v4575_v46 = vrot.slane %v10739_v27, 1  ;;  %v4560_v35 = vrot.slane %v10741_v23, 1  ;;  %7987 = vrot.lane.b32.xlu0 %v7986_v58, %s8805_s24  ;;  %v2191_v1 = vadd.f32 %v2136_v18, %v1923_v63  ;;  %v7333_v6 = vpop.f32.mrb[26].mxu1 }
 0x227   : > { %v8502_v48 = vpop.eup %8501  ;;  %v3347_v32 = vmul.f32 %v8500_v10, %v10572_v19  ;;  %v10771_v9 = vsel %vm812_vm2, %v10637_v55, %v5581_v2  ;;  %v10775_v50 = vsel %vm635_vm3, %v4572_v15, %v10761_v8  ;;  %2225 = vst.msk [vmem:[#allocation4 + $0xd0] sm:$0xff] %vm451_vm0, %v2193_v33  ;;  %v2194_v47 = vadd.f32 %v7333_v6, %v1926_v61  ;;  %v2139_v29 = vpop.f32.mrb[27].mxu1 }
 0x228   : > { %v8504_v52 = vpop.eup %8503  ;;  %v3418_v12 = vrot.slane %v3349_v53, 7  ;;  %v3350_v19 = vmul.f32 %v8502_v48, %v10591_v24  ;;  %v8006_v55 = vpack.i.bf16 %v10771_v9, %v10704_v16  ;;  %2223 = vst.msk [vmem:[#allocation4 + $0xc0] sm:$0xff] %vm451_vm0, %v2191_v1  ;;  %v2192_v14 = vadd.f32 %v2139_v29, %v1924_v28  ;;  %v2764_v48 = vld [vmem:[#allocation4 + $0xa0] sm:$0xff] }
 0x229   : > { %v8506_v13 = vpop.eup %8505  ;;  %v3415_v58 = vrot.slane %v3347_v32, 7  ;;  %v3348_v7 = vmul.f32 %v8504_v52, %v10594_v56  ;;  %8017 = vrot.lane.b32.xlu1 %v8016_v25, %s8805_s24  ;;  %v4576_v24 = vsel %vm635_vm3, %v10761_v8, %v4575_v46  ;;  %2226 = vst.msk [vmem:[#allocation4 + $0xd8] sm:$0xff] %vm451_vm0, %v2194_v47  ;;  %v10799_v44 = vsel %vm635_vm3, %v10624_v60, %v4560_v35  ;;  %v2766_v35 = vld [vmem:[#allocation4 + $0xb0] sm:$0xff]  ;;  %v3626_v52 = vld [vmem:[#allocation3 + $0x48] sm:$0xff] }
 0x22a   : > { %v8508_v54 = vpop.eup %8507  ;;  %v3504_v26 = vsel %vm322_vm4, 0.0, %v3418_v12  ;;  %v3419_v42 = vrot.slane %v3350_v19, 7  ;;  %v3257_v38 = vadd.f32 1.0, %v8506_v13  ;;  %v8041_v20 = vpack.i.bf16 %v4576_v24, %v10775_v50  ;;  %v3094_v3 = vld [vmem:[#allocation4 + $0x90] sm:$0xff]  ;;  %7997 = vrot.lane.b32.xlu0 %v7996_v43, %s8805_s24  ;;  %2224 = vst.msk [vmem:[#allocation4 + $0xc8] sm:$0xff] %vm451_vm0, %v2192_v14 }
 0x22b   : > { %v8510_v56 = vpop.eup %8509  ;;  %3549 = vst.msk [vmem:[#allocation3 + $0x90] sm:$0xff] %vm451_vm0, %v3504_v26  ;;  %v3503_v34 = vsel %vm322_vm4, 0.0, %v3415_v58  ;;  %v3416_v4 = vrot.slane %v3348_v7, 7  ;;  %v3255_v22 = vadd.f32 1.0, %v8508_v54  ;;  %v3092_v25 = vld [vmem:[#allocation4 + $0x80] sm:$0xff]  ;;  %3603 = vst.msk [vmem:[#allocation4 + $0x90] sm:$0xff] %vm451_vm0, %v12646_v62  ;;  %v10818_v63 = vadd.f32 %v10489_v57, %v3094_v3 }
 0x22c   : > { %v8512_v5 = vpop.eup %8511  ;;  %3546 = vst.msk [vmem:[#allocation3 + $0x78] sm:$0xff] %vm451_vm0, %v3503_v34  ;;  %v3420_v59 = vsel %vm322_vm4, %v3418_v12, %v3419_v42  ;;  %v3520_v17 = vsel %vm322_vm4, %v3419_v42, 0.0  ;;  %8513 = vrcp.f32 %v3257_v38  ;;  %v3258_v2 = vadd.f32 1.0, %v8510_v56  ;;  %3601 = vst.msk [vmem:[#allocation4 + $0x80] sm:$0xff] %vm451_vm0, %v12646_v62  ;;  %v3095_v43 = vld [vmem:[#allocation4 + $0x98] sm:$0xff]  ;;  %v3093_v53 = vld [vmem:[#allocation4 + $0x88] sm:$0xff] }
 0x22d   : > { %3550 = vst.msk [vmem:[#allocation3 + $0x98] sm:$0xff] %vm451_vm0, %v3420_v59  ;;  %v3417_v60 = vsel %vm322_vm4, %v3415_v58, %v3416_v4  ;;  %v3519_v15 = vsel %vm322_vm4, %v3416_v4, 0.0  ;;  %8515 = vrcp.f32 %v3255_v22  ;;  %v3256_v10 = vadd.f32 1.0, %v8512_v5  ;;  %3604 = vst.msk [vmem:[#allocation4 + $0x98] sm:$0xff] %vm451_vm0, %v12646_v62  ;;  %8042 = vrot.lane.b32.xlu1 %v8041_v20, %s8806_s25  ;;  %v7362_v33 = vpop.f32.mrb[52].mxu0  ;;  %v3627_v12 = vld [vmem:[#allocation3 + $0x50] sm:$0xff] }
 0x22e   : > { %3551 = vst.msk [vmem:[#allocation3 + $0xa0] sm:$0x3] %vm454_vm1, %v3520_v17  ;;  %3548 = vst.msk [vmem:[#allocation3 + $0x88] sm:$0x3] %vm454_vm1, %v3519_v15  ;;  %8517 = vrcp.f32 %v3258_v2  ;;  %v10821_v18 = vadd.f32 %v10489_v57, %v3092_v25  ;;  %v10824_v46 = vadd.f32 %v10489_v57, %v3095_v43  ;;  %v2965_v32 = vpop.f32.mrb[53].mxu0  ;;  %v10829_v1 = vadd.f32 %v10489_v57, %v3093_v53  ;;  %v1929_v25 = vld [vmem:[#allocation4 + $0xf0] sm:$0xff] }
 0x22f   : > { %3547 = vst.msk [vmem:[#allocation3 + $0x80] sm:$0xff] %vm451_vm0, %v3417_v60  ;;  %3602 = vst.msk [vmem:[#allocation4 + $0x88] sm:$0xff] %vm451_vm0, %v12646_v62  ;;  %8519 = vrcp.f32 %v3256_v10  ;;  %8002 = vrot.lane.b32.xlu0 %v8001_v51, %s8806_s25  ;;  %v8021_v61 = vpack.i.bf16 %v10799_v44, %v10642_v45  ;;  %v4748_v6 = vrot.slane %v10718_v31, 2  ;;  %v7363_v49 = vpop.f32.mrb[54].mxu0  ;;  %v10838_v19 = vld [vmem:[#allocation3 + $0x58] sm:$0x3]  ;;  %v3034_v13 = vadd.f32 %v7362_v33, %v2766_v35 }
 0x230   : > { %v6840_v47 = vmul.f32 -1.442695, %v10818_v63  ;;  %v6838_v28 = vmul.f32 -1.442695, %v10821_v18  ;;  %v6841_v29 = vmul.f32 -1.442695, %v10824_v46  ;;  %v3032_v31 = vadd.f32 %v2965_v32, %v2764_v48 }
 0x231   : > { %v6839_v36 = vmul.f32 -1.442695, %v10829_v1  ;;  %v10845_v30 = vrot.slane %v10737_v37, 2  ;;  %v4751_v45 = vrot.slane %v10739_v27, 2  ;;  %v2767_v51 = vld [vmem:[#allocation4 + $0xb8] sm:$0xff]  ;;  %v2968_v58 = vpop.f32.mrb[55].mxu0 }
 0x232   : > { %8521 = vpow2.f32 %v6840_v47  ;;  %3066 = vst.msk [vmem:[#allocation4 + $0xb0] sm:$0xff] %vm451_vm0, %v3034_v13  ;;  %v3035_v7 = vadd.f32 %v7363_v49, %v2767_v51  ;;  %v4736_v14 = vrot.slane %v10741_v23, 2  ;;  %v3728_v24 = vrot.slane %v3626_v52, 1  ;;  %3064 = vst.msk [vmem:[#allocation4 + $0xa0] sm:$0xff] %vm451_vm0, %v3032_v31  ;;  %v10863_v26 = vld [vmem:[#allocation3 + $0x70] sm:$0x3] }
 0x233   : > { %8523 = vpow2.f32 %v6838_v28  ;;  %8007 = vrot.lane.b32.xlu0 %v8006_v55, %s8805_s24  ;;  %v10856_v37 = vsel %vm812_vm2, %v4748_v6, %v10845_v30  ;;  %v4752_v27 = vsel %vm812_vm2, %v10845_v30, %v4751_v45  ;;  %v10861_v54 = vrot.slane %v3627_v12, 1  ;;  %v2765_v55 = vld [vmem:[#allocation4 + $0xa8] sm:$0xff]  ;;  %v1927_v43 = vld [vmem:[#allocation4 + $0xe0] sm:$0xff] }
 0x234   : > { %8525 = vpow2.f32 %v6841_v29  ;;  %v8046_v23 = vpack.i.bf16 %v4752_v27, %v10856_v37  ;;  %3067 = vst.msk [vmem:[#allocation4 + $0xb8] sm:$0xff] %vm451_vm0, %v3035_v7  ;;  %v4737_v16 = vsel %vm812_vm2, %v10626_v39, %v4736_v14  ;;  %v3731_v9 = vrot.slane %v10838_v19, 1  ;;  %v7336_v56 = vpop.f32.mrb[28].mxu1  ;;  %v8455_v15 = vld [vmem:[%s12583_s3 + $0x8] sm:$0x3f]   ;;  %v1930_v29 = vld [vmem:[#allocation4 + $0xf8] sm:$0xff] }
 0x235   : > { %8527 = vpow2.f32 %v6839_v36  ;;  %v8026_v42 = vpack.i.bf16 %v4737_v16, %v10731_v11  ;;  %v10873_v38 = vsel %vm635_vm3, %v3728_v24, %v10861_v54  ;;  %v3033_v20 = vadd.f32 %v2968_v58, %v2765_v55  ;;  %v2152_v44 = vpop.f32.mrb[29].mxu1  ;;  %7478 = vmatprep.subr.msk.bf16.mxu0 %vm812_vm2, %v8455_v15  ;;  %v5311_v27 = vld [vmem:[#allocation3 + $0x58] sm:$0x3] }
 0x236   : > { %v8514_v34 = vpop.eup %8513  ;;  %8047 = vrot.lane.b32.xlu1 %v8046_v23, %s8805_s24  ;;  %v3732_v4 = vsel %vm635_vm3, %v10861_v54, %v3731_v9  ;;  %v3736_v39 = vrot.slane %v10863_v26, 1  ;;  %v3904_v22 = vrot.slane %v3626_v52, 2  ;;  %v10879_v3 = vrot.slane %v3627_v12, 2  ;;  %v7337_v60 = vpop.f32.mrb[30].mxu1 }
 0x237   : > { %v8516_v11 = vpop.eup %8515  ;;  %v3353_v5 = vmul.f32 %v8514_v34, %v10646_v21  ;;  %8022 = vrot.lane.b32.xlu0 %v8021_v61, %s8806_s25  ;;  %v8061_v59 = vpack.i.bf16 %v3732_v4, %v10873_v38  ;;  %3065 = vst.msk [vmem:[#allocation4 + $0xa8] sm:$0xff] %vm451_vm0, %v3033_v20  ;;  %v3907_v17 = vrot.slane %v10838_v19, 2  ;;  %v2197_v2 = vadd.f32 %v7336_v56, %v1929_v25  ;;  %v10898_v48 = vpop.f32.mrb[31].mxu1  ;;  %v10946_v25 = vld [vmem:[#allocation3 + $0x70] sm:$0x3] }
 0x238   : > { %v8518_v10 = vpop.eup %8517  ;;  %v3351_v53 = vmul.f32 %v8516_v11, %v10653_v40  ;;  %v10892_v21 = vsel %vm635_vm3, %v10761_v8, %v3736_v39  ;;  %v10896_v33 = vsel %vm812_vm2, %v3904_v22, %v10879_v3  ;;  %v2195_v35 = vadd.f32 %v2152_v44, %v1927_v43 }
 0x239   : > { %v8520_v32 = vpop.eup %8519  ;;  %v3424_v61 = vrot.slane %v3353_v5, 7  ;;  %v3354_v6 = vmul.f32 %v8518_v10, %v10677_v41  ;;  %v3098_v49 = vld [vmem:[#allocation4 + $0xb0] sm:$0xff]  ;;  %v8031_v52 = vpack.i.bf16 %v10892_v21, %v10775_v50  ;;  %v3908_v40 = vsel %vm812_vm2, %v10879_v3, %v3907_v17  ;;  %2229 = vst.msk [vmem:[#allocation4 + $0xf0] sm:$0xff] %vm451_vm0, %v2197_v2  ;;  %v3096_v41 = vld [vmem:[#allocation4 + $0xa0] sm:$0xff]  ;;  %v1928_v2 = vld [vmem:[#allocation4 + $0xe8] sm:$0xff] }
 0x23a   : > { %v3421_v12 = vrot.slane %v3351_v53, 7  ;;  %v3352_v19 = vmul.f32 %v8520_v32, %v10680_v0  ;;  %v10909_v47 = vadd.f32 %v10489_v57, %v3098_v49  ;;  %3607 = vst.msk [vmem:[#allocation4 + $0xb0] sm:$0xff] %vm451_vm0, %v12646_v62  ;;  %8062 = vrot.lane.b32.xlu1 %v8061_v59, %s8806_s25  ;;  %v8066_v28 = vpack.i.bf16 %v3908_v40, %v10896_v33 }
 0x23b   : > { %2227 = vst.msk [vmem:[#allocation4 + $0xe0] sm:$0xff] %vm451_vm0, %v2195_v35  ;;  %v3506_v13 = vsel %vm322_vm4, 0.0, %v3424_v61  ;;  %v3425_v36 = vrot.slane %v3354_v6, 7  ;;  %v10918_v45 = vadd.f32 %v10489_v57, %v3096_v41  ;;  %3605 = vst.msk [vmem:[#allocation4 + $0xa0] sm:$0xff] %vm451_vm0, %v12646_v62  ;;  %v3099_v0 = vld [vmem:[#allocation4 + $0xb8] sm:$0xff]  ;;  %8027 = vrot.lane.b32.xlu0 %v8026_v42, %s8805_s24  ;;  %v2198_v31 = vadd.f32 %v7337_v60, %v1930_v29 }
 0x23c   : > { %v8522_v51 = vpop.eup %8521  ;;  %3555 = vst.msk [vmem:[#allocation3 + $0xc0] sm:$0xff] %vm451_vm0, %v3506_v13  ;;  %v3505_v58 = vsel %vm322_vm4, 0.0, %v3421_v12  ;;  %v3422_v7 = vrot.slane %v3352_v19, 7  ;;  %v6844_v14 = vmul.f32 -1.442695, %v10909_v47  ;;  %3608 = vst.msk [vmem:[#allocation4 + $0xb8] sm:$0xff] %vm451_vm0, %v12646_v62  ;;  %v2196_v15 = vadd.f32 %v10898_v48, %v1928_v2 }
 0x23d   : > { %v10929_v57 = vld [vmem:[%s12582_s2] ss:$0 sm:$0xff]  ;;  %v8524_v23 = vpop.eup %8523  ;;  %3552 = vst.msk [vmem:[#allocation3 + $0xa8] sm:$0xff] %vm451_vm0, %v3505_v58  ;;  %v3426_v16 = vsel %vm322_vm4, %v3424_v61, %v3425_v36  ;;  %v3522_v9 = vsel %vm322_vm4, %v3425_v36, 0.0  ;;  %v3261_v55 = vadd.f32 1.0, %v8522_v51  ;;  %2230 = vst.msk [vmem:[#allocation4 + $0xf8] sm:$0xff] %vm451_vm0, %v2198_v31 }
 0x23e   : > { %v10932_v24 = vadd.f32 %v10929_v57, %v3099_v0  ;;  %v6842_v42 = vmul.f32 -1.442695, %v10918_v45  ;;  %v7366_v20 = vpop.f32.mrb[56].mxu0  ;;  %v8526_v56 = vpop.eup %8525  ;;  %3556 = vst.msk [vmem:[#allocation3 + $0xc8] sm:$0xff] %vm451_vm0, %v3426_v16  ;;  %v3423_v34 = vsel %vm322_vm4, %v3421_v12, %v3422_v7  ;;  %v3521_v4 = vsel %vm322_vm4, %v3422_v7, 0.0  ;;  %v3097_v22 = vld [vmem:[#allocation4 + $0xa8] sm:$0xff]  ;;  %8067 = vrot.lane.b32.xlu1 %v8066_v28, %s8805_s24 }
 0x23f   : > { %3557 = vst.msk [vmem:[#allocation3 + $0xd0] sm:$0x3] %vm454_vm1, %v3522_v9  ;;  %v3259_v39 = vadd.f32 1.0, %v8524_v23  ;;  %8529 = vpow2.f32 %v6844_v14  ;;  %v2981_v44 = vpop.f32.mrb[57].mxu0  ;;  %v8528_v11 = vpop.eup %8527  ;;  %3554 = vst.msk [vmem:[#allocation3 + $0xb8] sm:$0x3] %vm454_vm1, %v3521_v4  ;;  %v10952_v17 = vadd.f32 %v10929_v57, %v3097_v22  ;;  %8032 = vrot.lane.b32.xlu0 %v8031_v52, %s8806_s25 }
 0x240   : > { %3553 = vst.msk [vmem:[#allocation3 + $0xb0] sm:$0xff] %vm451_vm0, %v3423_v34  ;;  %8531 = vrcp.f32 %v3261_v55  ;;  %v3262_v5 = vadd.f32 1.0, %v8526_v56  ;;  %v6845_v59 = vmul.f32 -1.442695, %v10932_v24  ;;  %3606 = vst.msk [vmem:[#allocation4 + $0xa8] sm:$0xff] %vm451_vm0, %v12646_v62  ;;  %v7367_v43 = vpop.f32.mrb[58].mxu0 }
 0x241   : > { %8533 = vrcp.f32 %v3259_v39  ;;  %v3260_v60 = vadd.f32 1.0, %v8528_v11  ;;  %v3912_v10 = vrot.slane %v10863_v26, 2  ;;  %v2984_v53 = vpop.f32.mrb[59].mxu0  ;;  %v6843_v21 = vmul.f32 -1.442695, %v10952_v17  ;;  %v2770_v61 = vld [vmem:[#allocation4 + $0xd0] sm:$0xff] }
 0x242   : > { %8535 = vrcp.f32 %v3262_v5  ;;  %v5410_v35 = vrot.slane %v5311_v27, 1  ;;  %v5415_v32 = vrot.slane %v10946_v25, 1  ;;  %2228 = vst.msk [vmem:[#allocation4 + $0xe8] sm:$0xff] %vm451_vm0, %v2196_v15  ;;  %v5586_v49 = vrot.slane %v5311_v27, 2  ;;  %v4476_v12 = vld [vmem:[#allocation3 + $0x90] sm:$0xff]  ;;  %v4477_v19 = vld [vmem:[#allocation3 + $0x98] sm:$0xff] }
 0x243   : > { %8537 = vrcp.f32 %v3260_v60  ;;  %v3913_v6 = vsel %vm812_vm2, %v10845_v30, %v3912_v10  ;;  %v3038_v52 = vadd.f32 %v7366_v20, %v2770_v61  ;;  %v4478_v41 = vld [vmem:[#allocation3 + $0xa0] sm:$0x3]  ;;  %v2768_v36 = vld [vmem:[#allocation4 + $0xc0] sm:$0xff]  ;;  %v2771_v0 = vld [vmem:[#allocation4 + $0xd8] sm:$0xff]  ;;  %v4582_v14 = vrot.slane %v4476_v12, 1 }
 0x244   : > { %8539 = vpow2.f32 %v6842_v42  ;;  %v8036_v48 = vpack.i.bf16 %v3913_v6, %v10856_v37  ;;  %v5411_v26 = vsel %vm635_vm3, %v10861_v54, %v5410_v35  ;;  %v5416_v40 = vsel %vm635_vm3, %v10761_v8, %v5415_v32  ;;  %v10974_v31 = vld [vmem:[#allocation3 + $0x58] sm:$0x3]  ;;  %v7370_v7 = vpop.f32.mrb[60].mxu0  ;;  %v2772_v6 = vld [vmem:[#allocation4 + $0xe0] sm:$0xff] }
 0x245   : > { %8541 = vpow2.f32 %v6845_v59  ;;  %v8081_v28 = vpack.i.bf16 %v5411_v26, %v10873_v38  ;;  %v8051_v29 = vpack.i.bf16 %v5416_v40, %v10775_v50  ;;  %v5587_v13 = vsel %vm812_vm2, %v10879_v3, %v5586_v49  ;;  %3070 = vst.msk [vmem:[#allocation4 + $0xd0] sm:$0xff] %vm451_vm0, %v3038_v52  ;;  %v2769_v16 = vld [vmem:[#allocation4 + $0xc8] sm:$0xff]  ;;  %v2997_v9 = vpop.f32.mrb[61].mxu0  ;;  %v2775_v40 = vld [vmem:[#allocation4 + $0xf8] sm:$0xff] }
 0x246   : > { %8543 = vpow2.f32 %v6843_v21  ;;  %8037 = vrot.lane.b32.xlu0 %v8036_v48, %s8805_s24  ;;  %v8086_v8 = vpack.i.bf16 %v5587_v13, %v10896_v33  ;;  %v3036_v51 = vadd.f32 %v2981_v44, %v2768_v36  ;;  %v3039_v58 = vadd.f32 %v7367_v43, %v2771_v0  ;;  %v7371_v34 = vpop.f32.mrb[62].mxu0  ;;  %v2774_v21 = vld [vmem:[#allocation4 + $0xf0] sm:$0xff] }
 0x247   : > { %8082 = vrot.lane.b32.xlu1 %v8081_v28, %s8806_s25  ;;  %v5591_v50 = vrot.slane %v10946_v25, 2  ;;  %v10980_v27 = vrot.slane %v4477_v19, 1  ;;  %v4585_v23 = vrot.slane %v4478_v41, 1  ;;  %v3037_v55 = vadd.f32 %v2984_v53, %v2769_v16  ;;  %v10995_v11 = vpop.f32.mrb[63].mxu0 }
 0x248   : > { %3068 = vst.msk [vmem:[#allocation4 + $0xc0] sm:$0xff] %vm451_vm0, %v3036_v51  ;;  %3071 = vst.msk [vmem:[#allocation4 + $0xd8] sm:$0xff] %vm451_vm0, %v3039_v58  ;;  %v4570_v42 = vrot.slane %v10974_v31, 1  ;;  %v4758_v20 = vrot.slane %v4476_v12, 2  ;;  %v10985_v56 = vrot.slane %v4477_v19, 2  ;;  %v4761_v44 = vrot.slane %v4478_v41, 2 }
 0x249   : > { %v8530_v4 = vpop.eup %8529  ;;  %v5592_v39 = vsel %vm812_vm2, %v10845_v30, %v5591_v50  ;;  %v10991_v22 = vsel %vm635_vm3, %v4582_v14, %v10980_v27  ;;  %v4586_v25 = vsel %vm635_vm3, %v10980_v27, %v4585_v23  ;;  %3069 = vst.msk [vmem:[#allocation4 + $0xc8] sm:$0xff] %vm451_vm0, %v3037_v55  ;;  %v3042_v61 = vadd.f32 %v7370_v7, %v2774_v21  ;;  %v11044_v55 = vld [vmem:[#allocation3 + $0x78] sm:$0xff] }
 0x24a   : > { %v8532_v5 = vpop.eup %8531  ;;  %v3265_v59 = vadd.f32 1.0, %v8530_v4  ;;  %8052 = vrot.lane.b32.xlu0 %v8051_v29, %s8806_s25  ;;  %v8056_v2 = vpack.i.bf16 %v5592_v39, %v10856_v37  ;;  %v8101_v43 = vpack.i.bf16 %v4586_v25, %v10991_v22  ;;  %v4571_v30 = vsel %vm635_vm3, %v10861_v54, %v4570_v42  ;;  %v3633_v42 = vld [vmem:[#allocation3 + $0x80] sm:$0xff]  ;;  %v11054_v39 = vld [vmem:[#allocation3 + $0x88] sm:$0x3] }
 0x24b   : > { %v8534_v60 = vpop.eup %8533  ;;  %v3357_v15 = vmul.f32 %v8532_v5, %v10818_v63  ;;  %8087 = vrot.lane.b32.xlu1 %v8086_v8, %s8805_s24  ;;  %v8071_v10 = vpack.i.bf16 %v4571_v30, %v10873_v38  ;;  %v11008_v53 = vsel %vm812_vm2, %v4758_v20, %v10985_v56  ;;  %v11012_v37 = vsel %vm812_vm2, %v10985_v56, %v4761_v44 }
 0x24c   : > { %v8536_v35 = vpop.eup %8535  ;;  %v3355_v32 = vmul.f32 %v8534_v60, %v10821_v18  ;;  %8545 = vrcp.f32 %v3265_v59  ;;  %v3102_v54 = vld [vmem:[#allocation4 + $0xd0] sm:$0xff]  ;;  %v8106_v63 = vpack.i.bf16 %v11012_v37, %v11008_v53  ;;  %v3040_v26 = vadd.f32 %v2997_v9, %v2772_v6  ;;  %3074 = vst.msk [vmem:[#allocation4 + $0xf0] sm:$0xff] %vm451_vm0, %v3042_v61  ;;  %v2773_v60 = vld [vmem:[#allocation4 + $0xe8] sm:$0xff] }
 0x24d   : > { %v8538_v38 = vpop.eup %8537  ;;  %v3430_v49 = vrot.slane %v3357_v15, 7  ;;  %v3358_v52 = vmul.f32 %v8536_v35, %v10824_v46  ;;  %v11019_v48 = vadd.f32 %v10929_v57, %v3102_v54  ;;  %3611 = vst.msk [vmem:[#allocation4 + $0xd0] sm:$0xff] %vm451_vm0, %v12646_v62  ;;  %v3043_v41 = vadd.f32 %v7371_v34, %v2775_v40  ;;  %v3637_v59 = vld [vmem:[#allocation3 + $0xa0] sm:$0x3] }
 0x24e   : > { %v8540_v18 = vpop.eup %8539  ;;  %v3427_v12 = vrot.slane %v3355_v32, 7  ;;  %v3356_v19 = vmul.f32 %v8538_v38, %v10829_v1  ;;  %8057 = vrot.lane.b32.xlu0 %v8056_v2, %s8805_s24  ;;  %v4746_v28 = vrot.slane %v10974_v31, 2  ;;  %3072 = vst.msk [vmem:[#allocation4 + $0xe0] sm:$0xff] %vm451_vm0, %v3040_v26  ;;  %v11069_v30 = vrot.slane %v3633_v42, 1 }
 0x24f   : > { %v8542_v46 = vpop.eup %8541  ;;  %v3508_v29 = vsel %vm322_vm4, 0.0, %v3430_v49  ;;  %v3431_v13 = vrot.slane %v3358_v52, 7  ;;  %v3263_v36 = vadd.f32 1.0, %v8540_v18  ;;  %v6848_v0 = vmul.f32 -1.442695, %v11019_v48  ;;  %v3100_v8 = vld [vmem:[#allocation4 + $0xc0] sm:$0xff]  ;;  %8102 = vrot.lane.b32.xlu1 %v8101_v43, %s8806_s25 }
 0x250   : > { %v8544_v1 = vpop.eup %8543  ;;  %3561 = vst.msk [vmem:[#allocation3 + $0xf0] sm:$0xff] %vm451_vm0, %v3508_v29  ;;  %v3507_v51 = vsel %vm322_vm4, 0.0, %v3427_v12  ;;  %v3428_v58 = vrot.slane %v3356_v19, 7  ;;  %v3266_v7 = vadd.f32 1.0, %v8542_v46  ;;  %v11034_v31 = vadd.f32 %v10929_v57, %v3100_v8  ;;  %3609 = vst.msk [vmem:[#allocation4 + $0xc0] sm:$0xff] %vm451_vm0, %v12646_v62  ;;  %v3103_v50 = vld [vmem:[#allocation4 + $0xd8] sm:$0xff] }
 0x251   : > { %3075 = vst.msk [vmem:[#allocation4 + $0xf8] sm:$0xff] %vm451_vm0, %v3043_v41  ;;  %3558 = vst.msk [vmem:[#allocation3 + $0xd8] sm:$0xff] %vm451_vm0, %v3507_v51  ;;  %v3432_v14 = vsel %vm322_vm4, %v3430_v49, %v3431_v13  ;;  %v3524_v23 = vsel %vm322_vm4, %v3431_v13, 0.0  ;;  %8547 = vrcp.f32 %v3263_v36  ;;  %v3264_v16 = vadd.f32 1.0, %v8544_v1  ;;  %v3101_v9 = vld [vmem:[#allocation4 + $0xc8] sm:$0xff] }
 0x252   : > { %3612 = vst.msk [vmem:[#allocation4 + $0xd8] sm:$0xff] %vm451_vm0, %v12646_v62  ;;  %3562 = vst.msk [vmem:[#allocation3 + $0xf8] sm:$0xff] %vm451_vm0, %v3432_v14  ;;  %v3429_v20 = vsel %vm322_vm4, %v3427_v12, %v3428_v58  ;;  %v3523_v34 = vsel %vm322_vm4, %v3428_v58, 0.0  ;;  %8549 = vrcp.f32 %v3266_v7  ;;  %v6846_v4 = vmul.f32 -1.442695, %v11034_v31  ;;  %8072 = vrot.lane.b32.xlu0 %v8071_v10, %s8806_s25 }
 0x253   : > { %3563 = vst.msk [vmem:[#allocation3 + $0x100] sm:$0x3] %vm454_vm1, %v3524_v23  ;;  %3560 = vst.msk [vmem:[#allocation3 + $0xe8] sm:$0x3] %vm454_vm1, %v3523_v34  ;;  %8551 = vrcp.f32 %v3264_v16  ;;  %v11059_v25 = vadd.f32 %v10929_v57, %v3103_v50  ;;  %v11062_v44 = vadd.f32 %v10929_v57, %v3101_v9  ;;  %8107 = vrot.lane.b32.xlu1 %v8106_v63, %s8805_s24  ;;  %v3738_v43 = vrot.slane %v11044_v55, 1  ;;  %v3106_v37 = vld [vmem:[#allocation4 + $0xf0] sm:$0xff] }
 0x254   : > { %3610 = vst.msk [vmem:[#allocation4 + $0xc8] sm:$0xff] %vm451_vm0, %v12646_v62  ;;  %3559 = vst.msk [vmem:[#allocation3 + $0xe0] sm:$0xff] %vm451_vm0, %v3429_v20  ;;  %v4747_v5 = vsel %vm812_vm2, %v10879_v3, %v4746_v28  ;;  %8553 = vpow2.f32 %v6848_v0  ;;  %v3741_v21 = vrot.slane %v11054_v39, 1  ;;  %v11075_v3 = vadd.f32 %v10929_v57, %v3106_v37  ;;  %v11105_v19 = vld [vmem:[#allocation3 + $0x88] sm:$0x3] }
 0x255   : > { %v8076_v2 = vpack.i.bf16 %v4747_v5, %v10896_v33  ;;  %8555 = vpow2.f32 %v6846_v4  ;;  %v6849_v15 = vmul.f32 -1.442695, %v11059_v25  ;;  %v6847_v10 = vmul.f32 -1.442695, %v11062_v44  ;;  %3615 = vst.msk [vmem:[#allocation4 + $0xf0] sm:$0xff] %vm451_vm0, %v12646_v62  ;;  %v3104_v33 = vld [vmem:[#allocation4 + $0xe0] sm:$0xff] }
 0x256   : > { %v8546_v35 = vpop.eup %8545  ;;  %v11082_v32 = vsel %vm635_vm3, %v3738_v43, %v11069_v30  ;;  %v3041_v54 = vadd.f32 %v10995_v11, %v2773_v60  ;;  %v3746_v63 = vrot.slane %v3637_v59, 1  ;;  %v11087_v6 = vadd.f32 %v10929_v57, %v3104_v33  ;;  %3613 = vst.msk [vmem:[#allocation4 + $0xe0] sm:$0xff] %vm451_vm0, %v12646_v62  ;;  %v11112_v29 = vld [vmem:[#allocation3 + $0xa0] sm:$0x3] }
 0x257   : > { %8077 = vrot.lane.b32.xlu0 %v8076_v2, %s8805_s24  ;;  %v3361_v61 = vmul.f32 %v8546_v35, %v10909_v47  ;;  %8557 = vpow2.f32 %v6849_v15  ;;  %v3742_v49 = vsel %vm635_vm3, %v11069_v30, %v3741_v21  ;;  %v6852_v52 = vmul.f32 -1.442695, %v11075_v3  ;;  %v4482_v35 = vld [vmem:[#allocation3 + $0xc0] sm:$0xff] }
 0x258   : > { %v3107_v38 = vld [vmem:[#allocation4 + $0xf8] sm:$0xff]  ;;  %8559 = vpow2.f32 %v6847_v10  ;;  %v8121_v47 = vpack.i.bf16 %v3742_v49, %v11082_v32  ;;  %3073 = vst.msk [vmem:[#allocation4 + $0xe8] sm:$0xff] %vm451_vm0, %v3041_v54  ;;  %v6850_v40 = vmul.f32 -1.442695, %v11087_v6  ;;  %v3747_v18 = vsel %vm635_vm3, %v10980_v27, %v3746_v63 }
 0x259   : > { %v11095_v26 = vadd.f32 %v10929_v57, %v3107_v38  ;;  %3616 = vst.msk [vmem:[#allocation4 + $0xf8] sm:$0xff] %vm451_vm0, %v12646_v62  ;;  %v3436_v11 = vrot.slane %v3361_v61, 7  ;;  %v3914_v12 = vrot.slane %v11044_v55, 2  ;;  %8561 = vpow2.f32 %v6852_v52  ;;  %v4484_v61 = vld [vmem:[#allocation3 + $0xd0] sm:$0x3] }
 0x25a   : > { %8122 = vrot.lane.b32.xlu1 %v8121_v47, %s8806_s25  ;;  %v8091_v28 = vpack.i.bf16 %v3747_v18, %v10991_v22  ;;  %v11110_v46 = vrot.slane %v3633_v42, 2  ;;  %8563 = vpow2.f32 %v6850_v40  ;;  %v3917_v0 = vrot.slane %v11054_v39, 2 }
 0x25b   : > { %v6853_v41 = vmul.f32 -1.442695, %v11095_v26  ;;  %v8548_v13 = vpop.eup %8547  ;;  %v3510_v36 = vsel %vm322_vm4, 0.0, %v3436_v11  ;;  %v3922_v8 = vrot.slane %v3637_v59, 2  ;;  %v5420_v7 = vrot.slane %v11105_v19, 1 }
 0x25c   : > { %v8550_v1 = vpop.eup %8549  ;;  %3567 = vst.msk [vmem:[#allocation3 + $0x120] sm:$0xff] %vm451_vm0, %v3510_v36  ;;  %v3359_v51 = vmul.f32 %v8548_v13, %v10918_v45  ;;  %8092 = vrot.lane.b32.xlu0 %v8091_v28, %s8806_s25  ;;  %v11121_v58 = vsel %vm812_vm2, %v3914_v12, %v11110_v46  ;;  %v3918_v23 = vsel %vm812_vm2, %v11110_v46, %v3917_v0  ;;  %v5425_v45 = vrot.slane %v11112_v29, 1  ;;  %v4475_v36 = vld [vmem:[#allocation3 + $0x88] sm:$0x3] }
 0x25d   : > { %8565 = vpow2.f32 %v6853_v41  ;;  %v8552_v50 = vpop.eup %8551  ;;  %v3362_v14 = vmul.f32 %v8550_v1, %v10932_v24  ;;  %v3923_v16 = vsel %vm812_vm2, %v10985_v56, %v3922_v8  ;;  %v8126_v20 = vpack.i.bf16 %v3918_v23, %v11121_v58 }
 0x25e   : > { %v8554_v9 = vpop.eup %8553  ;;  %v3433_v55 = vrot.slane %v3359_v51, 7  ;;  %v3360_v42 = vmul.f32 %v8552_v50, %v10952_v17  ;;  %v8096_v34 = vpack.i.bf16 %v3923_v16, %v11008_v53  ;;  %v5421_v59 = vsel %vm635_vm3, %v11069_v30, %v5420_v7  ;;  %v3638_v50 = vld [vmem:[#allocation3 + $0xa8] sm:$0xff] }
 0x25f   : > { %v8556_v4 = vpop.eup %8555  ;;  %v3437_v39 = vrot.slane %v3362_v14, 7  ;;  %v3269_v5 = vadd.f32 1.0, %v8554_v9  ;;  %v3105_v24 = vld [vmem:[#allocation4 + $0xe8] sm:$0xff]  ;;  %v5426_v2 = vsel %vm635_vm3, %v10980_v27, %v5425_v45  ;;  %8127 = vrot.lane.b32.xlu1 %v8126_v20, %s8805_s24  ;;  %v8141_v21 = vpack.i.bf16 %v5421_v59, %v11082_v32  ;;  %v3639_v14 = vld [vmem:[#allocation3 + $0xb0] sm:$0xff] }
 0x260   : > { %v3509_v43 = vsel %vm322_vm4, 0.0, %v3433_v55  ;;  %v3434_v60 = vrot.slane %v3360_v42, 7  ;;  %v3267_v15 = vadd.f32 1.0, %v8556_v4  ;;  %v11139_v17 = vadd.f32 %v10929_v57, %v3105_v24  ;;  %3614 = vst.msk [vmem:[#allocation4 + $0xe8] sm:$0xff] %vm451_vm0, %v12646_v62  ;;  %8097 = vrot.lane.b32.xlu0 %v8096_v34, %s8805_s24  ;;  %v4483_v57 = vld [vmem:[#allocation3 + $0xc8] sm:$0xff] }
 0x261   : > { %v8558_v10 = vpop.eup %8557  ;;  %3564 = vst.msk [vmem:[#allocation3 + $0x108] sm:$0xff] %vm451_vm0, %v3509_v43  ;;  %v3438_v37 = vsel %vm322_vm4, %v3436_v11, %v3437_v39  ;;  %v3526_v27 = vsel %vm322_vm4, %v3437_v39, 0.0  ;;  %8567 = vrcp.f32 %v3269_v5  ;;  %v8111_v52 = vpack.i.bf16 %v5426_v2, %v10991_v22  ;;  %v3640_v9 = vld [vmem:[#allocation3 + $0xb8] sm:$0x3]  ;;  %v11184_v39 = vld [vmem:[#allocation3 + $0xd0] sm:$0x3] }
 0x262   : > { %v8560_v33 = vpop.eup %8559  ;;  %3568 = vst.msk [vmem:[#allocation3 + $0x128] sm:$0xff] %vm451_vm0, %v3438_v37  ;;  %v3435_v62 = vsel %vm322_vm4, %v3433_v55, %v3434_v60  ;;  %v3525_v54 = vsel %vm322_vm4, %v3434_v60, 0.0  ;;  %8569 = vrcp.f32 %v3267_v15  ;;  %v3270_v63 = vadd.f32 1.0, %v8558_v10 }
 0x263   : > { %3569 = vst.msk [vmem:[#allocation3 + $0x130] sm:$0x3] %vm454_vm1, %v3526_v27  ;;  %3566 = vst.msk [vmem:[#allocation3 + $0x118] sm:$0x3] %vm454_vm1, %v3525_v54  ;;  %v3268_v38 = vadd.f32 1.0, %v8560_v33  ;;  %v5596_v47 = vrot.slane %v11105_v19, 2  ;;  %v8562_v11 = vpop.eup %8561  ;;  %8142 = vrot.lane.b32.xlu1 %v8141_v21, %s8806_s25 }
 0x264   : > { %3565 = vst.msk [vmem:[#allocation3 + $0x110] sm:$0xff] %vm451_vm0, %v3435_v62  ;;  %v6851_v49 = vmul.f32 -1.442695, %v11139_v17  ;;  %8571 = vrcp.f32 %v3270_v63  ;;  %v5601_v40 = vrot.slane %v11112_v29, 2  ;;  %v4592_v18 = vrot.slane %v4482_v35, 1  ;;  %v8564_v41 = vpop.eup %8563  ;;  %8112 = vrot.lane.b32.xlu0 %v8111_v52, %s8806_s25 }
 0x265   : > { %v11160_v12 = vrot.slane %v4483_v57, 1  ;;  %8573 = vrcp.f32 %v3268_v38  ;;  %v3273_v28 = vadd.f32 1.0, %v8562_v11  ;;  %v5597_v13 = vsel %vm812_vm2, %v11110_v46, %v5596_v47 }
 0x266   : > { %v4595_v22 = vrot.slane %v4484_v61, 1  ;;  %v3271_v0 = vadd.f32 1.0, %v8564_v41  ;;  %8575 = vpow2.f32 %v6851_v49  ;;  %v8146_v8 = vpack.i.bf16 %v5597_v13, %v11121_v58 }
 0x267   : > { %v8566_v19 = vpop.eup %8565  ;;  %v5602_v29 = vsel %vm812_vm2, %v10985_v56, %v5601_v40  ;;  %8577 = vrcp.f32 %v3273_v28  ;;  %v11171_v7 = vsel %vm635_vm3, %v4592_v18, %v11160_v12  ;;  %v4580_v16 = vrot.slane %v4475_v36, 1 }
 0x268   : > { %v3274_v1 = vadd.f32 1.0, %v8566_v19  ;;  %v8116_v51 = vpack.i.bf16 %v5602_v29, %v11008_v53  ;;  %8579 = vrcp.f32 %v3271_v0  ;;  %8147 = vrot.lane.b32.xlu1 %v8146_v8, %s8805_s24  ;;  %v4596_v23 = vsel %vm635_vm3, %v11160_v12, %v4595_v22  ;;  %v5323_v19 = vld [vmem:[#allocation3 + $0xb8] sm:$0x3] }
 0x269   : > { %v4768_v45 = vrot.slane %v4482_v35, 2  ;;  %v8161_v56 = vpack.i.bf16 %v4596_v23, %v11171_v7  ;;  %v11178_v53 = vrot.slane %v4483_v57, 2  ;;  %v4771_v55 = vrot.slane %v4484_v61, 2  ;;  %v4481_v0 = vld [vmem:[#allocation3 + $0xb8] sm:$0x3] }
 0x26a   : > { %8581 = vrcp.f32 %v3274_v1  ;;  %8117 = vrot.lane.b32.xlu0 %v8116_v51, %s8805_s24  ;;  %v4581_v42 = vsel %vm635_vm3, %v11069_v30, %v4580_v16  ;;  %v4756_v20 = vrot.slane %v4475_v36, 2  ;;  %v3748_v34 = vrot.slane %v3638_v50, 1 }
 0x26b   : > { %v11182_v4 = vrot.slane %v3639_v14, 1  ;;  %v8568_v5 = vpop.eup %8567  ;;  %v8131_v24 = vpack.i.bf16 %v4581_v42, %v11082_v32  ;;  %v11189_v59 = vsel %vm812_vm2, %v4768_v45, %v11178_v53  ;;  %v4772_v2 = vsel %vm812_vm2, %v11178_v53, %v4771_v55 }
 0x26c   : > { %v3751_v43 = vrot.slane %v3640_v9, 1  ;;  %v8570_v60 = vpop.eup %8569  ;;  %v3365_v30 = vmul.f32 %v8568_v5, %v11019_v48  ;;  %8162 = vrot.lane.b32.xlu1 %v8161_v56, %s8806_s25  ;;  %v8166_v15 = vpack.i.bf16 %v4772_v2, %v11189_v59  ;;  %v4757_v10 = vsel %vm812_vm2, %v11110_v46, %v4756_v20  ;;  %v4489_v5 = vld [vmem:[#allocation3 + $0xf8] sm:$0xff] }
 0x26d   : > { %v3363_v32 = vmul.f32 %v8570_v60, %v11034_v31  ;;  %v11202_v37 = vsel %vm635_vm3, %v3748_v34, %v11182_v4  ;;  %v3756_v48 = vrot.slane %v11184_v39, 1  ;;  %v8136_v57 = vpack.i.bf16 %v4757_v10, %v11121_v58  ;;  %v3649_v10 = vld [vmem:[#allocation3 + $0x100] sm:$0x3] }
 0x26e   : > { %8132 = vrot.lane.b32.xlu0 %v8131_v24, %s8806_s25  ;;  %v3752_v27 = vsel %vm635_vm3, %v11182_v4, %v3751_v43  ;;  %v8572_v21 = vpop.eup %8571  ;;  %v3442_v35 = vrot.slane %v3365_v30, 7  ;;  %v3924_v33 = vrot.slane %v3638_v50, 2  ;;  %v11208_v62 = vrot.slane %v3639_v14, 2  ;;  %v11254_v24 = vld [vmem:[#allocation3 + $0x100] sm:$0x3] }
 0x26f   : > { %v8574_v46 = vpop.eup %8573  ;;  %v3439_v31 = vrot.slane %v3363_v32, 7  ;;  %v3366_v54 = vmul.f32 %v8572_v21, %v11059_v25  ;;  %v3757_v63 = vsel %vm635_vm3, %v11160_v12, %v3756_v48  ;;  %v3927_v61 = vrot.slane %v3640_v9, 2 }
 0x270   : > { %v8576_v38 = vpop.eup %8575  ;;  %v3512_v49 = vsel %vm322_vm4, 0.0, %v3442_v35  ;;  %v3364_v52 = vmul.f32 %v8574_v46, %v11062_v44  ;;  %8167 = vrot.lane.b32.xlu1 %v8166_v15, %s8805_s24  ;;  %v8171_v58 = vpack.i.bf16 %v3752_v27, %v11202_v37  ;;  %v8151_v47 = vpack.i.bf16 %v3757_v63, %v11171_v7  ;;  %v4488_v15 = vld [vmem:[#allocation3 + $0xf0] sm:$0xff]  ;;  %v3645_v46 = vld [vmem:[#allocation3 + $0xe0] sm:$0xff] }
 0x271   : > { %v8578_v11 = vpop.eup %8577  ;;  %3573 = vst.msk [vmem:[#allocation3 + $0x150] sm:$0xff] %vm451_vm0, %v3512_v49  ;;  %v3511_v25 = vsel %vm322_vm4, 0.0, %v3439_v31  ;;  %v3443_v40 = vrot.slane %v3366_v54, 7  ;;  %v3272_v18 = vadd.f32 1.0, %v8576_v38  ;;  %v11223_v41 = vsel %vm812_vm2, %v3924_v33, %v11208_v62  ;;  %v3644_v49 = vld [vmem:[#allocation3 + $0xd8] sm:$0xff] }
 0x272   : > { %8137 = vrot.lane.b32.xlu0 %v8136_v57, %s8805_s24  ;;  %v8580_v44 = vpop.eup %8579  ;;  %3570 = vst.msk [vmem:[#allocation3 + $0x138] sm:$0xff] %vm451_vm0, %v3511_v25  ;;  %v3440_v28 = vrot.slane %v3364_v52, 7  ;;  %v3369_v13 = vmul.f32 %v8578_v11, %v11075_v3  ;;  %v3928_v22 = vsel %vm812_vm2, %v11208_v62, %v3927_v61  ;;  %v3932_v36 = vrot.slane %v11184_v39, 2 }
 0x273   : > { %v3444_v29 = vsel %vm322_vm4, %v3442_v35, %v3443_v40  ;;  %v3528_v1 = vsel %vm322_vm4, %v3443_v40, 0.0  ;;  %v11233_v51 = vmul.f32 %v8580_v44, %v11087_v6  ;;  %8583 = vrcp.f32 %v3272_v18  ;;  %v11292_v44 = vld [vmem:[#allocation3 + $0xe8] sm:$0x3] }
 0x274   : > { %v8582_v8 = vpop.eup %8581  ;;  %3574 = vst.msk [vmem:[#allocation3 + $0x158] sm:$0xff] %vm451_vm0, %v3444_v29  ;;  %v3441_v3 = vsel %vm322_vm4, %v3439_v31, %v3440_v28  ;;  %v3527_v50 = vsel %vm322_vm4, %v3440_v28, 0.0  ;;  %v3448_v14 = vrot.slane %v3369_v13, 7  ;;  %8172 = vrot.lane.b32.xlu1 %v8171_v58, %s8806_s25  ;;  %v3933_v16 = vsel %vm812_vm2, %v11178_v53, %v3932_v36  ;;  %v3646_v31 = vld [vmem:[#allocation3 + $0xe8] sm:$0x3] }
 0x275   : > { %3575 = vst.msk [vmem:[#allocation3 + $0x160] sm:$0x3] %vm454_vm1, %v3528_v1  ;;  %v3370_v23 = vmul.f32 %v8582_v8, %v11095_v26  ;;  %3572 = vst.msk [vmem:[#allocation3 + $0x148] sm:$0x3] %vm454_vm1, %v3527_v50  ;;  %v3445_v6 = vrot.slane %v11233_v51, 7  ;;  %v5430_v45 = vrot.slane %v5323_v19, 1  ;;  %v8176_v26 = vpack.i.bf16 %v3928_v22, %v11223_v41 }
 0x276   : > { %3571 = vst.msk [vmem:[#allocation3 + $0x140] sm:$0xff] %vm451_vm0, %v3441_v3  ;;  %8152 = vrot.lane.b32.xlu0 %v8151_v47, %s8806_s25  ;;  %v4590_v9 = vrot.slane %v4481_v0, 1  ;;  %v3514_v56 = vsel %vm322_vm4, 0.0, %v3448_v14  ;;  %v8156_v20 = vpack.i.bf16 %v3933_v16, %v11189_v59  ;;  %v5606_v39 = vrot.slane %v5323_v19, 2  ;;  %v3653_v50 = vld [vmem:[#allocation3 + $0x120] sm:$0xff] }
 0x277   : > { %v3449_v55 = vrot.slane %v3370_v23, 7  ;;  %3579 = vst.msk [vmem:[#allocation3 + $0x180] sm:$0xff] %vm451_vm0, %v3514_v56  ;;  %v3513_v42 = vsel %vm322_vm4, 0.0, %v3445_v6  ;;  %v5431_v34 = vsel %vm635_vm3, %v11182_v4, %v5430_v45  ;;  %v4766_v30 = vrot.slane %v4481_v0, 2  ;;  %v3654_v45 = vld [vmem:[#allocation3 + $0x128] sm:$0xff] }
 0x278   : > { %3576 = vst.msk [vmem:[#allocation3 + $0x168] sm:$0xff] %vm451_vm0, %v3513_v42  ;;  %8177 = vrot.lane.b32.xlu1 %v8176_v26, %s8805_s24  ;;  %v4591_v60 = vsel %vm635_vm3, %v11182_v4, %v4590_v9  ;;  %v8191_v32 = vpack.i.bf16 %v5431_v34, %v11202_v37  ;;  %v11266_v27 = vrot.slane %v4489_v5, 1  ;;  %v4605_v48 = vrot.slane %v11254_v24, 1  ;;  %v3655_v9 = vld [vmem:[#allocation3 + $0x130] sm:$0x3] }
 0x279   : > { %v3450_v2 = vsel %vm322_vm4, %v3448_v14, %v3449_v55  ;;  %v3530_v43 = vsel %vm322_vm4, %v3449_v55, 0.0  ;;  %v8181_v21 = vpack.i.bf16 %v4591_v60, %v11202_v37  ;;  %v5607_v4 = vsel %vm812_vm2, %v11208_v62, %v5606_v39  ;;  %v3652_v34 = vld [vmem:[#allocation3 + $0x118] sm:$0x3] }
 0x27a   : > { %3580 = vst.msk [vmem:[#allocation3 + $0x188] sm:$0xff] %vm451_vm0, %v3450_v2  ;;  %8157 = vrot.lane.b32.xlu0 %v8156_v20, %s8805_s24  ;;  %v4767_v35 = vsel %vm812_vm2, %v11208_v62, %v4766_v30  ;;  %v4602_v57 = vrot.slane %v4488_v15, 1  ;;  %v3766_v33 = vrot.slane %v3649_v10, 1  ;;  %v8196_v61 = vpack.i.bf16 %v5607_v4, %v11223_v41  ;;  %v7973_v62 = vpop.permute.xlu0 %7972  ;;  %v3651_v20 = vld [vmem:[#allocation3 + $0x110] sm:$0xff] }
 0x27b   : > { %3581 = vst.msk [vmem:[#allocation3 + $0x190] sm:$0x3] %vm454_vm1, %v3530_v43  ;;  %v4606_v38 = vsel %vm635_vm3, %v11266_v27, %v4605_v48  ;;  %v8186_v52 = vpack.i.bf16 %v4767_v35, %v11223_v41  ;;  %v11285_v58 = vrot.slane %v3645_v46, 1  ;;  %v3761_v47 = vrot.slane %v3646_v31, 1  ;;  %v8763_v43 = vld [vmem:[#allocation3] sm:$0xff] }
 0x27c   : > { %8192 = vrot.lane.b32.xlu1 %v8191_v32, %s8806_s25  ;;  %v11280_v37 = vsel %vm635_vm3, %v4602_v57, %v11266_v27  ;;  %v7975_v11 = vunpack.i.h.bf16 %v7973_v62  ;;  %v11290_v40 = vrot.slane %v4489_v5, 2  ;;  %v3942_v18 = vrot.slane %v3649_v10, 2  ;;  %v3650_v32 = vld [vmem:[#allocation3 + $0x108] sm:$0xff] }
 0x27d   : > { %v8584_v54 = vpop.eup %8583  ;;  %v8211_v28 = vpack.i.bf16 %v4606_v38, %v11280_v37  ;;  %v3758_v41 = vrot.slane %v3644_v49, 1  ;;  %v3939_v13 = vrot.slane %v4488_v15, 2  ;;  %v7974_v22 = vunpack.i.l.bf16 %v7973_v62 }
 0x27e   : > { %8182 = vrot.lane.b32.xlu0 %v8181_v21, %s8806_s25  ;;  %v3368_v63 = vmul.f32 %v8584_v54, %v11139_v17  ;;  %v3767_v17 = vsel %vm635_vm3, %v11266_v27, %v3766_v33  ;;  %v11298_v0 = vrot.slane %v3645_v46, 2  ;;  %v3937_v8 = vrot.slane %v3646_v31, 2  ;;  %v7978_v30 = vpop.permute.xlu0 %7977 }
 0x27f   : > { %v8201_v29 = vpack.i.bf16 %v3767_v17, %v11280_v37  ;;  %v11305_v1 = vsel %vm635_vm3, %v3758_v41, %v11285_v58  ;;  %v3762_v51 = vsel %vm635_vm3, %v11285_v58, %v3761_v47  ;;  %v4600_v3 = vrot.slane %v11292_v44, 1 }
 0x280   : > { %v3446_v25 = vrot.slane %v3368_v63, 7  ;;  %8197 = vrot.lane.b32.xlu1 %v8196_v61, %s8805_s24  ;;  %v11313_v14 = vsel %vm812_vm2, %v3939_v13, %v11290_v40  ;;  %v3943_v23 = vsel %vm812_vm2, %v11290_v40, %v3942_v18  ;;  %v4781_v16 = vrot.slane %v11254_v24, 2  ;;  %v8762_v24 = vld [vmem:[#allocation3 + $0x8] sm:$0xff] }
 0x281   : > { %v8216_v56 = vpack.i.bf16 %v3762_v51, %v11305_v1  ;;  %v3938_v26 = vsel %vm812_vm2, %v11298_v0, %v3937_v8  ;;  %v3773_v42 = vrot.slane %v3653_v50, 1  ;;  %v8206_v39 = vpack.i.bf16 %v3943_v23, %v11313_v14  ;;  %v3660_v8 = vld [vmem:[#allocation3 + $0x158] sm:$0xff]  ;;  %v3657_v51 = vld [vmem:[#allocation3 + $0x140] sm:$0xff] }
 0x282   : > { %8187 = vrot.lane.b32.xlu0 %v8186_v52, %s8805_s24  ;;  %v3447_v36 = vsel %vm322_vm4, %v3445_v6, %v3446_v25  ;;  %v3529_v19 = vsel %vm322_vm4, %v3446_v25, 0.0  ;;  %v3934_v6 = vrot.slane %v3644_v49, 2  ;;  %v4601_v5 = vsel %vm635_vm3, %v11285_v58, %v4600_v3  ;;  %v3658_v3 = vld [vmem:[#allocation3 + $0x148] sm:$0x3] }
 0x283   : > { %3577 = vst.msk [vmem:[#allocation3 + $0x170] sm:$0xff] %vm451_vm0, %v3447_v36  ;;  %v4066_v2 = vsel %vm451_vm0, %v8762_v24, %v7975_v11  ;;  %v4065_v60 = vsel %vm451_vm0, %v8763_v43, %v7974_v22  ;;  %v11332_v15 = vrot.slane %v3654_v45, 1  ;;  %v3776_v10 = vrot.slane %v3655_v9, 1 }
 0x284   : > { %3578 = vst.msk [vmem:[#allocation3 + $0x178] sm:$0x3] %vm454_vm1, %v3529_v19  ;;  %8212 = vrot.lane.b32.xlu1 %v8211_v28, %s8806_s25  ;;  %v11322_v55 = vsel %vm812_vm2, %v3934_v6, %v11298_v0  ;;  %v7980_v48 = vunpack.i.h.bf16 %v7978_v30  ;;  %v7979_v21 = vunpack.i.l.bf16 %v7978_v30  ;;  %v4782_v35 = vsel %vm812_vm2, %v11290_v40, %v4781_v16  ;;  %v3659_v16 = vld [vmem:[#allocation3 + $0x150] sm:$0xff] }
 0x285   : > { %v8221_v4 = vpack.i.bf16 %v3938_v26, %v11322_v55  ;;  %v11338_v57 = vrot.slane %v3651_v20, 1  ;;  %v3771_v33 = vrot.slane %v3652_v34, 1  ;;  %v11340_v46 = vrot.slane %v3654_v45, 2  ;;  %v11381_v45 = vld [vmem:[#allocation3 + $0xd0] sm:$0x3] }
 0x286   : > { %8202 = vrot.lane.b32.xlu0 %v8201_v29, %s8806_s25  ;;  %v3952_v31 = vrot.slane %v3655_v9, 2  ;;  %v4097_v54 = vsel %vm1021_vm5, %v4065_v60, %v7979_v21  ;;  %v4098_v63 = vsel %vm1021_vm5, %v4066_v2, %v7980_v48  ;;  %v8226_v61 = vpack.i.bf16 %v4601_v5, %v11305_v1  ;;  %v3661_v29 = vld [vmem:[#allocation3 + $0x160] sm:$0x3]  ;;  %v8764_v2 = vld [vmem:[%s12583_s3] sm:$0x3f]  }
 0x287   : > { %v3768_v38 = vrot.slane %v3650_v32, 1  ;;  %v4161_v49 = vpack.c.bf16 %v4098_v63, %v4097_v54  ;;  %v11348_v62 = vsel %vm635_vm3, %v3773_v42, %v11332_v15  ;;  %v3777_v52 = vsel %vm635_vm3, %v11332_v15, %v3776_v10 }
 0x288   : > { %8217 = vrot.lane.b32.xlu1 %v8216_v56, %s8806_s25  ;;  %v3949_v47 = vrot.slane %v3653_v50, 2  ;;  %v8246_v11 = vpack.i.bf16 %v4782_v35, %v11313_v14  ;;  %v11358_v17 = vrot.slane %v3651_v20, 2  ;;  %v3947_v18 = vrot.slane %v3652_v34, 2  ;;  %v3656_v20 = vld [vmem:[#allocation3 + $0x138] sm:$0xff]  ;;  %v11392_v34 = vld [vmem:[%s12583_s3 + $0x10] sm:$0x3f]  }
 0x289   : > { %v11356_v25 = vsel %vm635_vm3, %v3768_v38, %v11338_v57  ;;  %7374 = vmatprep.mubr.msk.bf16.mxu1 %vm1109_vm6, %v4161_v49  ;;  %v3772_v28 = vsel %vm635_vm3, %v11338_v57, %v3771_v33  ;;  %v3953_v13 = vsel %vm812_vm2, %v11340_v46, %v3952_v31  ;;  %v4776_v22 = vrot.slane %v11292_v44, 2 }
 0x28a   : > { %8207 = vrot.lane.b32.xlu0 %v8206_v39, %s8805_s24  ;;  %v11365_v41 = vsel %vm812_vm2, %v3949_v47, %v11340_v46  ;;  %v8231_v36 = vpack.i.bf16 %v3777_v52, %v11348_v62  ;;  %v3944_v19 = vrot.slane %v3650_v32, 2  ;;  %v8251_v50 = vpack.i.bf16 %v3772_v28, %v11356_v25 }
 0x28b   : > { %v8236_v23 = vpack.i.bf16 %v3953_v13, %v11365_v41  ;;  %v3948_v44 = vsel %vm812_vm2, %v11358_v17, %v3947_v18  ;;  %v4777_v9 = vsel %vm812_vm2, %v11298_v0, %v4776_v22  ;;  %v11385_v56 = vrot.slane %v3660_v8, 1 }
 0x28c   : > { %8222 = vrot.lane.b32.xlu1 %v8221_v4, %s8805_s24  ;;  %v11377_v6 = vsel %vm812_vm2, %v3944_v19, %v11358_v17  ;;  %v3786_v26 = vrot.slane %v3661_v29, 1  ;;  %v11387_v42 = vrot.slane %v3660_v8, 2  ;;  %v3962_v39 = vrot.slane %v3661_v29, 2  ;;  %v11434_v19 = vld [vmem:[#allocation3 + $0x178] sm:$0x3] }
 0x28d   : > { %v11394_v5 = vrot.slane %v3657_v51, 1  ;;  %v3781_v24 = vrot.slane %v3658_v3, 1  ;;  %v4233_v43 = vsel %vm812_vm2, %v8764_v2, 0  ;;  %v3783_v60 = vrot.slane %v3659_v16, 1 }
 0x28e   : > { %8227 = vrot.lane.b32.xlu0 %v8226_v61, %s8806_s25  ;;  %v5435_v10 = vrot.slane %v11381_v45, 1  ;;  %v3959_v32 = vrot.slane %v3659_v16, 2  ;;  %v3778_v48 = vrot.slane %v3656_v20, 1  ;;  %7373 = vmatpush3.bf16.msra.mxu1 %v4233_v43  ;;  %v8256_v21 = vpack.i.bf16 %v3948_v44, %v11377_v6  ;;  %v4493_v43 = vld [vmem:[#allocation3 + $0x118] sm:$0x3] }
 0x28f   : > { %v8241_v4 = vpack.i.bf16 %v4777_v9, %v11322_v55  ;;  %v11409_v35 = vsel %vm635_vm3, %v3783_v60, %v11385_v56  ;;  %v3787_v33 = vsel %vm635_vm3, %v11385_v56, %v3786_v26  ;;  %7479 = vmatprep.subr.msk.bf16.mxu1 %vm812_vm2, %v11392_v34  ;;  %v3963_v63 = vsel %vm812_vm2, %v11387_v42, %v3962_v39  ;;  %v3662_v39 = vld [vmem:[#allocation3 + $0x168] sm:$0xff]  ;;  %v11450_v60 = vld [vmem:[#allocation3 + $0x38] sm:$0xff] }
 0x290   : > { %8247 = vrot.lane.b32.xlu1 %v8246_v11, %s8805_s24  ;;  %v11417_v54 = vsel %vm812_vm2, %v3959_v32, %v11387_v42  ;;  %v11423_v61 = vsel %vm635_vm3, %v3778_v48, %v11394_v5  ;;  %v3782_v38 = vsel %vm635_vm3, %v11394_v5, %v3781_v24  ;;  %v5436_v52 = vsel %vm635_vm3, %v11160_v12, %v5435_v10 }
 0x291   : > { %v11430_v47 = vrot.slane %v3657_v51, 2  ;;  %v3957_v11 = vrot.slane %v3658_v3, 2  ;;  %v8261_v18 = vpack.i.bf16 %v3787_v33, %v11409_v35  ;;  %v3954_v22 = vrot.slane %v3656_v20, 2  ;;  %v11461_v33 = vld [vmem:[#allocation3 + $0x20] sm:$0xff] }
 0x292   : > { %8232 = vrot.lane.b32.xlu0 %v8231_v36, %s8806_s25  ;;  %v3663_v36 = vld [vmem:[#allocation3 + $0x170] sm:$0xff]  ;;  %v8266_v8 = vpack.i.bf16 %v3963_v63, %v11417_v54  ;;  %v8276_v29 = vpack.i.bf16 %v3782_v38, %v11423_v61  ;;  %v8271_v3 = vpack.i.bf16 %v5436_v52, %v11171_v7  ;;  %v5611_v16 = vrot.slane %v11381_v45, 2  ;;  %v11465_v63 = vld [vmem:[#allocation3 + $0x18] sm:$0xff] }
 0x293   : > { %v11401_v30 = vpop.permute.xlu1 %7992  ;;  %v11443_v9 = vsel %vm812_vm2, %v3954_v22, %v11430_v47  ;;  %v3958_v26 = vsel %vm812_vm2, %v11430_v47, %v3957_v11  ;;  %v11447_v24 = vrot.slane %v3663_v36, 1  ;;  %v3791_v2 = vrot.slane %v11434_v19, 1  ;;  %v11454_v45 = vld [vmem:[#allocation3 + $0x30] sm:$0xff] }
 0x294   : > { %8252 = vrot.lane.b32.xlu1 %v8251_v50, %s8806_s25  ;;  %v7983_v31 = vpop.permute.xlu0 %7982  ;;  %v5612_v22 = vsel %vm812_vm2, %v11178_v53, %v5611_v16  ;;  %v8769_v53 = vld [vmem:[%s12583_s3 + $0x8] sm:$0x3f]  }
 0x295   : > { %v7985_v28 = vunpack.i.h.bf16 %v7983_v31  ;;  %v7984_v13 = vunpack.i.l.bf16 %v7983_v31  ;;  %v8301_v16 = vpack.i.bf16 %v5612_v22, %v11189_v59 }
 0x296   : > { %8237 = vrot.lane.b32.xlu0 %v8236_v23, %s8805_s24 }
 0x297   : > { %v8013_v49 = vpop.permute.xlu1 %8012  ;;  %v4070_v7 = vsel %vm451_vm0, %v11450_v60, %v7985_v28  ;;  %v4069_v10 = vsel %vm451_vm0, %v11454_v45, %v7984_v13  ;;  %v4610_v28 = vrot.slane %v4493_v43, 1 }
 0x298   : > { %8257 = vrot.lane.b32.xlu1 %v8256_v21, %s8805_s24  ;;  %v7988_v50 = vpop.permute.xlu0 %7987  ;;  %v8015_v23 = vunpack.i.h.bf16 %v8013_v49  ;;  %v8014_v12 = vunpack.i.l.bf16 %v8013_v49 }
 0x299   : > { %v7990_v51 = vunpack.i.h.bf16 %v7988_v50  ;;  %v7989_v44 = vunpack.i.l.bf16 %v7988_v50  ;;  %v8281_v50 = vpack.i.bf16 %v3958_v26, %v11443_v9  ;;  %v4611_v26 = vsel %vm635_vm3, %v11338_v57, %v4610_v28 }
 0x29a   : > { %8242 = vrot.lane.b32.xlu0 %v8241_v4, %s8805_s24  ;;  %v4068_v31 = vsel %vm451_vm0, %v11461_v33, %v8015_v23  ;;  %v4067_v38 = vsel %vm451_vm0, %v11465_v63, %v8014_v12  ;;  %v3792_v12 = vsel %vm635_vm3, %v11447_v24, %v3791_v2  ;;  %v5329_v2 = vld [vmem:[#allocation3 + $0xe8] sm:$0x3] }
 0x29b   : > { %v8018_v20 = vpop.permute.xlu1 %8017  ;;  %v4101_v21 = vsel %vm1021_vm5, %v4069_v10, %v7989_v44  ;;  %v4102_v4 = vsel %vm1021_vm5, %v4070_v7, %v7990_v51  ;;  %v3967_v44 = vrot.slane %v11434_v19, 2  ;;  %v3964_v7 = vrot.slane %v3662_v39, 2 }
 0x29c   : > { %8262 = vrot.lane.b32.xlu1 %v8261_v18, %s8806_s25  ;;  %v8020_v32 = vunpack.i.h.bf16 %v8018_v20  ;;  %v8019_v48 = vunpack.i.l.bf16 %v8018_v20  ;;  %v11469_v49 = vpop.permute.xlu0 %7997  ;;  %v3788_v18 = vrot.slane %v3662_v39, 1  ;;  %v4786_v10 = vrot.slane %v4493_v43, 2 }
 0x29d   : > { %v5616_v43 = vrot.slane %v5329_v2, 2 }
 0x29e   : > { %8267 = vrot.lane.b32.xlu0 %v8266_v8, %s8805_s24  ;;  %v4099_v52 = vsel %vm1021_vm5, %v4067_v38, %v8019_v48  ;;  %v4100_v11 = vsel %vm1021_vm5, %v4068_v31, %v8020_v32  ;;  %v4163_v8 = vpack.c.bf16 %v4102_v4, %v4101_v21  ;;  %v11480_v23 = vsel %vm635_vm3, %v3788_v18, %v11447_v24  ;;  %v5332_v32 = vld [vmem:[#allocation3 + $0x100] sm:$0x3] }
 0x29f   : > { %v4162_v13 = vpack.c.bf16 %v4100_v11, %v4099_v52  ;;  %v11496_v20 = vpop.permute.xlu1 %8042  ;;  %v8286_v59 = vpack.i.bf16 %v3792_v12, %v11480_v23  ;;  %v8311_v48 = vpack.i.bf16 %v4611_v26, %v11356_v25  ;;  %v5440_v38 = vrot.slane %v5329_v2, 1  ;;  %v11532_v2 = vld [vmem:[#allocation3 + $0x130] sm:$0x3] }
 0x2a0   : > { %8277 = vrot.lane.b32.xlu1 %v8276_v29, %s8806_s25  ;;  %v11485_v29 = vrot.slane %v3663_v36, 2  ;;  %v5445_v39 = vrot.slane %v5332_v32, 1  ;;  %v7995_v18 = vunpack.i.h.bf16 %v11401_v30  ;;  %v4787_v22 = vsel %vm812_vm2, %v11358_v17, %v4786_v10 }
 0x2a1   : > { %v8003_v51 = vpop.permute.xlu0 %8002  ;;  %7375 = vmatmul.mubr.msk.bf16.vlgmr.msra.gmra.mrb[32].mxu1 %vm1109_vm6, %v4162_v13  ;;  %v5621_v26 = vrot.slane %v5332_v32, 2  ;;  %v7999_v10 = vunpack.i.l.bf16 %v11469_v49 }
 0x2a2   : > { %8272 = vrot.lane.b32.xlu0 %v8271_v3, %s8806_s25  ;;  %v5078_v3 = vsel %vm812_vm2, %v8769_v53, 0  ;;  %7378 = vmatprep.mubr.msk.bf16.mxu1 %vm1109_vm6, %v4163_v8  ;;  %v8005_v36 = vunpack.i.h.bf16 %v8003_v51  ;;  %v8004_v19 = vunpack.i.l.bf16 %v8003_v51  ;;  %v11504_v21 = vsel %vm812_vm2, %v3964_v7, %v11485_v29 }
 0x2a3   : > { %7407 = vmatpush3.bf16.msra.mxu0 %v5078_v3  ;;  %v3968_v4 = vsel %vm812_vm2, %v11485_v29, %v3967_v44  ;;  %v7994_v8 = vunpack.i.l.bf16 %v11401_v30  ;;  %v8000_v53 = vunpack.i.h.bf16 %v11469_v49  ;;  %v5441_v30 = vsel %vm635_vm3, %v11285_v58, %v5440_v38 }
 0x2a4   : > { %8282 = vrot.lane.b32.xlu1 %v8281_v50, %s8805_s24  ;;  %v5755_v28 = vsel %vm451_vm0, %v11450_v60, %v8005_v36  ;;  %v5754_v13 = vsel %vm451_vm0, %v11454_v45, %v8004_v19  ;;  %v8291_v50 = vpack.i.bf16 %v3968_v4, %v11504_v21  ;;  %v8321_v36 = vpack.i.bf16 %v4787_v22, %v11377_v6 }
 0x2a5   : > { %v8008_v31 = vpop.permute.xlu0 %8007  ;;  %v5446_v19 = vsel %vm635_vm3, %v11266_v27, %v5445_v39  ;;  %v5617_v7 = vsel %vm812_vm2, %v11298_v0, %v5616_v43  ;;  %v4912_v58 = vsel %vm451_vm0, %v11450_v60, %v7995_v18  ;;  %v4911_v32 = vsel %vm451_vm0, %v11454_v45, %v7994_v8  ;;  %v4499_v0 = vld [vmem:[#allocation3 + $0x148] sm:$0x3] }
 0x2a6   : > { %8302 = vrot.lane.b32.xlu0 %v8301_v16, %s8805_s24  ;;  %v8010_v52 = vunpack.i.h.bf16 %v8008_v31  ;;  %v8009_v11 = vunpack.i.l.bf16 %v8008_v31  ;;  %v8296_v4 = vpack.i.bf16 %v5441_v30, %v11305_v1  ;;  %v4615_v31 = vrot.slane %v11532_v2, 1 }
 0x2a7   : > { %v4944_v49 = vsel %vm1021_vm5, %v4912_v58, %v8000_v53  ;;  %v8331_v38 = vpack.i.bf16 %v5446_v19, %v11280_v37  ;;  %v5622_v60 = vsel %vm812_vm2, %v11290_v40, %v5621_v26  ;;  %v4943_v1 = vsel %vm1021_vm5, %v4911_v32, %v7999_v10 }
 0x2a8   : > { %8287 = vrot.lane.b32.xlu1 %v8286_v59, %s8806_s25  ;;  %v11520_v12 = vsel %vm1021_vm5, %v5754_v13, %v8009_v11  ;;  %v11523_v51 = vsel %vm1021_vm5, %v5755_v28, %v8010_v52  ;;  %v11525_v44 = vpop.permute.xlu1 %8047  ;;  %v8306_v52 = vpack.i.bf16 %v5617_v7, %v11322_v55  ;;  %v4620_v13 = vrot.slane %v4499_v0, 1  ;;  %v11567_v7 = vld [vmem:[#allocation3 + $0x50] sm:$0xff] }
 0x2a9   : > { %v5850_v3 = vpack.c.bf16 %v11523_v51, %v11520_v12  ;;  %v8023_v16 = vpop.permute.xlu0 %8022  ;;  %v4616_v22 = vsel %vm635_vm3, %v11332_v15, %v4615_v31  ;;  %v4796_v26 = vrot.slane %v4499_v0, 2  ;;  %v5006_v19 = vpack.c.bf16 %v4944_v49, %v4943_v1 }
 0x2aa   : > { %8312 = vrot.lane.b32.xlu0 %v8311_v48, %s8806_s25  ;;  %v8025_v59 = vunpack.i.h.bf16 %v8023_v16  ;;  %v8024_v48 = vunpack.i.l.bf16 %v8023_v16 }
 0x2ac   : > { %8292 = vrot.lane.b32.xlu1 %v8291_v50, %s8805_s24  ;;  %v8063_v27 = vpop.permute.xlu1 %8062  ;;  %v4910_v28 = vsel %vm451_vm0, %v11461_v33, %v8025_v59  ;;  %v4909_v37 = vsel %vm451_vm0, %v11465_v63, %v8024_v48  ;;  %v4791_v50 = vrot.slane %v11532_v2, 2  ;;  %v11565_v63 = vld [vmem:[#allocation3 + $0x130] sm:$0x3]  ;;  %v11571_v59 = vld [vmem:[#allocation3 + $0x48] sm:$0xff]  ;;  %v8341_v2 = vpack.i.bf16 %v5622_v60, %v11313_v14 }
 0x2ad   : > { %v8028_v11 = vpop.permute.xlu0 %8027  ;;  %v8065_v43 = vunpack.i.h.bf16 %v8063_v27  ;;  %v8064_v18 = vunpack.i.l.bf16 %v8063_v27  ;;  %v8316_v27 = vpack.i.bf16 %v4616_v22, %v11348_v62  ;;  %v5455_v14 = vrot.slane %v11565_v63, 1 }
 0x2ae   : > { %8322 = vrot.lane.b32.xlu0 %v8321_v36, %s8805_s24  ;;  %v8030_v39 = vunpack.i.h.bf16 %v8028_v11  ;;  %v8029_v45 = vunpack.i.l.bf16 %v8028_v11  ;;  %v5335_v36 = vld [vmem:[#allocation3 + $0x118] sm:$0x3]  ;;  %v4797_v11 = vsel %vm812_vm2, %v11430_v47, %v4796_v26  ;;  %v8045_v26 = vunpack.i.h.bf16 %v11496_v20 }
 0x2af   : > { %v4072_v10 = vsel %vm451_vm0, %v11567_v7, %v8065_v43  ;;  %v4071_v48 = vsel %vm451_vm0, %v11571_v59, %v8064_v18  ;;  %v5450_v0 = vrot.slane %v5335_v36, 1 }
 0x2b0   : > { %8297 = vrot.lane.b32.xlu1 %v8296_v4, %s8806_s25  ;;  %v4941_v55 = vsel %vm1021_vm5, %v4909_v37, %v8029_v45  ;;  %v4942_v40 = vsel %vm1021_vm5, %v4910_v28, %v8030_v39  ;;  %v8068_v8 = vpop.permute.xlu1 %8067  ;;  %v4621_v4 = vsel %vm635_vm3, %v11394_v5, %v4620_v13  ;;  %v5626_v45 = vrot.slane %v5335_v36, 2  ;;  %v8772_v13 = vld [vmem:[#allocation3 + $0x68] sm:$0xff] }
 0x2b1   : > { %v5005_v53 = vpack.c.bf16 %v4942_v40, %v4941_v55  ;;  %v8033_v30 = vpop.permute.xlu0 %8032  ;;  %v8070_v16 = vunpack.i.h.bf16 %v8068_v8  ;;  %v8069_v33 = vunpack.i.l.bf16 %v8068_v8  ;;  %v8351_v60 = vpack.i.bf16 %v4621_v4, %v11423_v61  ;;  %v8773_v40 = vld [vmem:[#allocation3 + $0x60] sm:$0xff] }
 0x2b2   : > { %8332 = vrot.lane.b32.xlu0 %v8331_v38, %s8806_s25  ;;  %v8035_v49 = vunpack.i.h.bf16 %v8033_v30  ;;  %v8034_v38 = vunpack.i.l.bf16 %v8033_v30  ;;  %v8361_v37 = vpack.i.bf16 %v4797_v11, %v11443_v9  ;;  %v5451_v8 = vsel %vm635_vm3, %v11338_v57, %v5450_v0  ;;  %v11613_v4 = vld [vmem:[#allocation3 + $0x160] sm:$0x3] }
 0x2b3   : > { %v4103_v58 = vsel %vm1021_vm5, %v4071_v48, %v8069_v33  ;;  %v4104_v32 = vsel %vm1021_vm5, %v4072_v10, %v8070_v16  ;;  %7408 = vmatprep.mubr.msk.bf16.mxu0 %vm1109_vm6, %v5005_v53  ;;  %v5631_v10 = vrot.slane %v11565_v63, 2  ;;  %v4502_v48 = vld [vmem:[#allocation3 + $0x160] sm:$0x3]  ;;  %v8044_v57 = vunpack.i.l.bf16 %v11496_v20 }
 0x2b4   : > { %8307 = vrot.lane.b32.xlu1 %v8306_v52, %s8805_s24  ;;  %v4164_v31 = vpack.c.bf16 %v4104_v32, %v4103_v58  ;;  %7409 = vmatmul.mubr.msk.bf16.vlgmr.msra.gmra.mrb[64].mxu0 %vm1109_vm6, %v5006_v19  ;;  %v4792_v52 = vsel %vm812_vm2, %v11340_v46, %v4791_v50  ;;  %v4074_v55 = vsel %vm451_vm0, %v8772_v13, %v8035_v49  ;;  %v8050_v20 = vunpack.i.h.bf16 %v11525_v44 }
 0x2b5   : > { %v8326_v43 = vpack.i.bf16 %v4792_v52, %v11365_v41  ;;  %v4073_v22 = vsel %vm451_vm0, %v8773_v40, %v8034_v38  ;;  %v5456_v50 = vsel %vm635_vm3, %v11332_v15, %v5455_v14  ;;  %v8336_v15 = vpack.i.bf16 %v5451_v8, %v11356_v25 }
 0x2b6   : > { %8342 = vrot.lane.b32.xlu0 %v8341_v2, %s8805_s24  ;;  %7379 = vmatmul.mubr.msk.bf16.gmra.mrb[36].mxu1 %vm1109_vm6, %v4164_v31  ;;  %v8371_v58 = vpack.i.bf16 %v5456_v50, %v11348_v62  ;;  %v5627_v32 = vsel %vm812_vm2, %v11358_v17, %v5626_v45  ;;  %v4625_v62 = vrot.slane %v4502_v48, 1  ;;  %v5632_v52 = vsel %vm812_vm2, %v11340_v46, %v5631_v10 }
 0x2b7   : > { %v5465_v11 = vrot.slane %v11613_v4, 1  ;;  %v8346_v46 = vpack.i.bf16 %v5627_v32, %v11377_v6 }
 0x2b8   : > { %8317 = vrot.lane.b32.xlu1 %v8316_v27, %s8806_s25  ;;  %v8038_v39 = vpop.permute.xlu0 %8037 }
 0x2b9   : > { %v8040_v18 = vunpack.i.h.bf16 %v8038_v39  ;;  %v8039_v1 = vunpack.i.l.bf16 %v8038_v39  ;;  %v8083_v28 = vpop.permute.xlu1 %8082  ;;  %v5466_v6 = vsel %vm635_vm3, %v11385_v56, %v5465_v11 }
 0x2ba   : > { %8352 = vrot.lane.b32.xlu0 %v8351_v60, %s8806_s25  ;;  %v8085_v16 = vunpack.i.h.bf16 %v8083_v28  ;;  %v8084_v33 = vunpack.i.l.bf16 %v8083_v28  ;;  %v8049_v28 = vunpack.i.l.bf16 %v11525_v44 }
 0x2bb   : > { %v4105_v53 = vsel %vm1021_vm5, %v4073_v22, %v8039_v1  ;;  %v4106_v30 = vsel %vm1021_vm5, %v4074_v55, %v8040_v18  ;;  %v4801_v18 = vrot.slane %v4502_v48, 2  ;;  %v4505_v1 = vld [vmem:[#allocation3 + $0x178] sm:$0x3]  ;;  %v5341_v22 = vld [vmem:[#allocation3 + $0x148] sm:$0x3] }
 0x2bc   : > { %8327 = vrot.lane.b32.xlu1 %v8326_v43, %s8805_s24  ;;  %v4165_v36 = vpack.c.bf16 %v4106_v30, %v4105_v53  ;;  %v8053_v19 = vpop.permute.xlu0 %8052  ;;  %v5757_v63 = vsel %vm451_vm0, %v11567_v7, %v8085_v16  ;;  %v5756_v25 = vsel %vm451_vm0, %v11571_v59, %v8084_v33  ;;  %v8381_v53 = vpack.i.bf16 %v5632_v52, %v11365_v41 }
 0x2bd   : > { %v8088_v2 = vpop.permute.xlu1 %8087  ;;  %v8055_v27 = vunpack.i.h.bf16 %v8053_v19  ;;  %v8054_v31 = vunpack.i.l.bf16 %v8053_v19  ;;  %v4626_v30 = vsel %vm635_vm3, %v11385_v56, %v4625_v62  ;;  %v4630_v33 = vrot.slane %v4505_v1, 1  ;;  %v11679_v62 = vld [vmem:[#allocation3 + $0x180] sm:$0xff] }
 0x2be   : > { %8362 = vrot.lane.b32.xlu0 %v8361_v37, %s8805_s24  ;;  %v8090_v0 = vunpack.i.h.bf16 %v8088_v2  ;;  %v8089_v14 = vunpack.i.l.bf16 %v8088_v2  ;;  %7382 = vmatprep.mubr.msk.bf16.mxu1 %vm1109_vm6, %v4165_v36  ;;  %v4916_v36 = vsel %vm451_vm0, %v8772_v13, %v8045_v26  ;;  %v4915_v19 = vsel %vm451_vm0, %v8773_v40, %v8044_v57  ;;  %v11667_v26 = vld [vmem:[#allocation3 + $0x188] sm:$0xff]  ;;  %v11669_v57 = vld [vmem:[#allocation3 + $0x190] sm:$0x3] }
 0x2bf   : > { %v5759_v37 = vsel %vm451_vm0, %v8772_v13, %v8055_v27  ;;  %v5758_v55 = vsel %vm451_vm0, %v8773_v40, %v8054_v31  ;;  %v4802_v41 = vsel %vm812_vm2, %v11387_v42, %v4801_v18  ;;  %v5460_v10 = vrot.slane %v5341_v22, 1 }
 0x2c0   : > { %8337 = vrot.lane.b32.xlu1 %v8336_v15, %s8806_s25  ;;  %v11623_v17 = vsel %vm1021_vm5, %v5756_v25, %v8089_v14  ;;  %v11626_v49 = vsel %vm1021_vm5, %v5757_v63, %v8090_v0  ;;  %v8058_v38 = vpop.permute.xlu0 %8057  ;;  %v8356_v48 = vpack.i.bf16 %v4626_v30, %v11409_v35  ;;  %v5923_v56 = vsel %vm812_vm2, %v11392_v34, 0 }
 0x2c1   : > { %v5851_v60 = vpack.c.bf16 %v11626_v49, %v11623_v17  ;;  %v8060_v39 = vunpack.i.h.bf16 %v8058_v38  ;;  %v8059_v45 = vunpack.i.l.bf16 %v8058_v38  ;;  %v11634_v43 = vpop.permute.xlu1 %8102  ;;  %v4947_v32 = vsel %vm1021_vm5, %v4915_v19, %v8049_v28  ;;  %7441 = vmatpush3.bf16.msra.mxu1 %v5923_v56 }
 0x2c2   : > { %8372 = vrot.lane.b32.xlu0 %v8371_v58, %s8806_s25  ;;  %v4948_v13 = vsel %vm1021_vm5, %v4916_v36, %v8050_v20  ;;  %v8401_v40 = vpack.i.bf16 %v5466_v6, %v11409_v35  ;;  %v8366_v27 = vpack.i.bf16 %v4802_v41, %v11417_v54  ;;  %v4631_v0 = vsel %vm635_vm3, %v11447_v24, %v4630_v33 }
 0x2c3   : > { %v11641_v8 = vsel %vm1021_vm5, %v5758_v55, %v8059_v45  ;;  %v11644_v50 = vsel %vm1021_vm5, %v5759_v37, %v8060_v39  ;;  %v4806_v34 = vrot.slane %v4505_v1, 2  ;;  %v5636_v14 = vrot.slane %v5341_v22, 2  ;;  %v11690_v1 = vld [vmem:[#allocation3 + $0x190] sm:$0x3] }
 0x2c4   : > { %8347 = vrot.lane.b32.xlu1 %v8346_v46, %s8805_s24  ;;  %v5852_v44 = vpack.c.bf16 %v11644_v50, %v11641_v8  ;;  %v8073_v16 = vpop.permute.xlu0 %8072  ;;  %v5461_v35 = vsel %vm635_vm3, %v11394_v5, %v5460_v10  ;;  %v5641_v25 = vrot.slane %v11613_v4, 2  ;;  %v4633_v11 = vrot.slane %v11667_v26, 1 }
 0x2c5   : > { %v8075_v15 = vunpack.i.h.bf16 %v8073_v16  ;;  %v8074_v2 = vunpack.i.l.bf16 %v8073_v16  ;;  %v11660_v58 = vpop.permute.xlu1 %8107  ;;  %v4635_v39 = vrot.slane %v11669_v57, 1  ;;  %v8406_v5 = vpack.i.bf16 %v4631_v0, %v11480_v23 }
 0x2c6   : > { %8382 = vrot.lane.b32.xlu0 %v8381_v53, %s8805_s24  ;;  %v5008_v37 = vpack.c.bf16 %v4948_v13, %v4947_v32  ;;  %v8376_v55 = vpack.i.bf16 %v5461_v35, %v11423_v61  ;;  %v5637_v46 = vsel %vm812_vm2, %v11430_v47, %v5636_v14  ;;  %v5642_v22 = vsel %vm812_vm2, %v11387_v42, %v5641_v25  ;;  %v11730_v25 = vld [vmem:[#allocation3 + $0x98] sm:$0xff] }
 0x2c7   : > { %v4914_v38 = vsel %vm451_vm0, %v11567_v7, %v8075_v15  ;;  %v4913_v52 = vsel %vm451_vm0, %v11571_v59, %v8074_v2  ;;  %v4807_v7 = vsel %vm812_vm2, %v11485_v29, %v4806_v34  ;;  %v4632_v59 = vrot.slane %v11679_v62, 1 }
 0x2c8   : > { %8357 = vrot.lane.b32.xlu1 %v8356_v48, %s8806_s25  ;;  %v4636_v16 = vsel %vm635_vm3, %v4633_v11, %v4635_v39  ;;  %v5475_v6 = vrot.slane %v11690_v1, 1  ;;  %v4809_v33 = vrot.slane %v11667_v26, 2  ;;  %v8411_v36 = vpack.i.bf16 %v4807_v7, %v11504_v21 }
 0x2c9   : > { %v8078_v31 = vpop.permute.xlu0 %8077  ;;  %v4634_v30 = vsel %vm635_vm3, %v4632_v59, %v4633_v11  ;;  %v4808_v61 = vrot.slane %v11679_v62, 2  ;;  %v8386_v10 = vpack.i.bf16 %v5637_v46, %v11443_v9  ;;  %v8416_v48 = vpack.i.bf16 %v5642_v22, %v11417_v54  ;;  %v11722_v9 = vld [vmem:[#allocation3 + $0x80] sm:$0xff]  ;;  %v11747_v46 = vld [vmem:[#allocation3 + $0x198] sm:$0xff] }
 0x2ca   : > { %8402 = vrot.lane.b32.xlu0 %v8401_v40, %s8806_s25  ;;  %v8080_v20 = vunpack.i.h.bf16 %v8078_v31  ;;  %v8079_v63 = vunpack.i.l.bf16 %v8078_v31  ;;  %v8391_v15 = vpack.i.bf16 %v4636_v16, %v4634_v30  ;;  %v5476_v32 = vsel %vm635_vm3, %v4633_v11, %v5475_v6  ;;  %v11751_v16 = vld [vmem:[#allocation3 + $0x1a0] sm:$0xff]  ;;  %v5353_v6 = vld [vmem:[#allocation3 + $0x1a8] sm:$0x3] }
 0x2cb   : > { %v11716_v13 = vsel %vm812_vm2, %v4808_v61, %v4809_v33  ;;  %v4811_v40 = vrot.slane %v11669_v57, 2 }
 0x2cc   : > { %v4945_v45 = vsel %vm1021_vm5, %v4913_v52, %v8079_v63  ;;  %v4946_v18 = vsel %vm1021_vm5, %v4914_v38, %v8080_v20  ;;  %8367 = vrot.lane.b32.xlu1 %v8366_v27, %s8805_s24  ;;  %v8123_v28 = vpop.permute.xlu1 %8122  ;;  %v5651_v27 = vrot.slane %v11690_v1, 2  ;;  %v11720_v20 = vld [vmem:[#allocation3 + $0x178] sm:$0x3]  ;;  %v11734_v38 = vld [vmem:[#allocation3 + $0x90] sm:$0xff] }
 0x2cd   : > { %v5007_v4 = vpack.c.bf16 %v4946_v18, %v4945_v45  ;;  %v8125_v47 = vunpack.i.h.bf16 %v8123_v28  ;;  %v8124_v19 = vunpack.i.l.bf16 %v8123_v28  ;;  %v11726_v63 = vld [vmem:[#allocation3 + $0x78] sm:$0xff]  ;;  %v4812_v28 = vsel %vm812_vm2, %v4809_v33, %v4811_v40 }
 0x2ce   : > { %8407 = vrot.lane.b32.xlu0 %v8406_v5, %s8806_s25  ;;  %v8093_v53 = vpop.permute.xlu0 %8092  ;;  %v5470_v7 = vrot.slane %v11720_v20, 1 }
 0x2cf   : > { %7412 = vmatprep.mubr.msk.bf16.mxu0 %vm1109_vm6, %v5007_v4  ;;  %v8095_v42 = vunpack.i.h.bf16 %v8093_v53  ;;  %v8094_v41 = vunpack.i.l.bf16 %v8093_v53  ;;  %v4076_v54 = vsel %vm451_vm0, %v11722_v9, %v8125_v47  ;;  %v4075_v35 = vsel %vm451_vm0, %v11726_v63, %v8124_v19 }
 0x2d0   : > { %7413 = vmatmul.mubr.msk.bf16.gmra.mrb[68].mxu0 %vm1109_vm6, %v5008_v37  ;;  %8377 = vrot.lane.b32.xlu1 %v8376_v55, %s8806_s25  ;;  %v8421_v37 = vpack.i.bf16 %v5476_v32, %v4634_v30  ;;  %v5652_v55 = vsel %vm812_vm2, %v4809_v33, %v5651_v27  ;;  %v8396_v30 = vpack.i.bf16 %v4812_v28, %v11716_v13  ;;  %v5646_v33 = vrot.slane %v11720_v20, 2 }
 0x2d1   : > { %v8128_v2 = vpop.permute.xlu1 %8127  ;;  %v4078_v57 = vsel %vm451_vm0, %v11730_v25, %v8095_v42  ;;  %v4077_v52 = vsel %vm451_vm0, %v11734_v38, %v8094_v41  ;;  %v8104_v47 = vunpack.i.l.bf16 %v11634_v43  ;;  %v8441_v42 = vpack.i.bf16 %v5652_v55, %v11716_v13 }
 0x2d2   : > { %8412 = vrot.lane.b32.xlu0 %v8411_v36, %s8805_s24  ;;  %v8098_v56 = vpop.permute.xlu0 %8097  ;;  %v8130_v31 = vunpack.i.h.bf16 %v8128_v2  ;;  %v8129_v0 = vunpack.i.l.bf16 %v8128_v2  ;;  %v5471_v41 = vsel %vm635_vm3, %v11447_v24, %v5470_v7  ;;  %v5480_v32 = vrot.slane %v5353_v6, 1 }
 0x2d3   : > { %v8100_v34 = vunpack.i.h.bf16 %v8098_v56  ;;  %v8099_v14 = vunpack.i.l.bf16 %v8098_v56  ;;  %v5478_v56 = vrot.slane %v11751_v16, 1  ;;  %v4919_v55 = vsel %vm451_vm0, %v11734_v38, %v8104_v47 }
 0x2d4   : > { %8387 = vrot.lane.b32.xlu1 %v8386_v10, %s8805_s24  ;;  %v4107_v11 = vsel %vm1021_vm5, %v4075_v35, %v8129_v0  ;;  %v4108_v39 = vsel %vm1021_vm5, %v4076_v54, %v8130_v31  ;;  %v5477_v10 = vrot.slane %v11747_v46, 1 }
 0x2d5   : > { %v4109_v45 = vsel %vm1021_vm5, %v4077_v52, %v8099_v14  ;;  %v4110_v18 = vsel %vm1021_vm5, %v4078_v57, %v8100_v34  ;;  %v4166_v5 = vpack.c.bf16 %v4108_v39, %v4107_v11  ;;  %v8143_v4 = vpop.permute.xlu1 %8142  ;;  %v8426_v52 = vpack.i.bf16 %v5471_v41, %v11480_v23 }
 0x2d6   : > { %8417 = vrot.lane.b32.xlu0 %v8416_v48, %s8805_s24  ;;  %v4167_v1 = vpack.c.bf16 %v4110_v18, %v4109_v45  ;;  %v8113_v59 = vpop.permute.xlu0 %8112  ;;  %v8145_v22 = vunpack.i.h.bf16 %v8143_v4  ;;  %v8144_v53 = vunpack.i.l.bf16 %v8143_v4  ;;  %v8105_v11 = vunpack.i.h.bf16 %v11634_v43 }
 0x2d7   : > { %7383 = vmatmul.mubr.msk.bf16.gmra.mrb[40].mxu1 %vm1109_vm6, %v4166_v5  ;;  %v8115_v36 = vunpack.i.h.bf16 %v8113_v59  ;;  %v8114_v61 = vunpack.i.l.bf16 %v8113_v59  ;;  %v8109_v39 = vunpack.i.l.bf16 %v11660_v58  ;;  %v5647_v5 = vsel %vm812_vm2, %v11485_v29, %v5646_v33 }
 0x2d8   : > { %8392 = vrot.lane.b32.xlu1 %v8391_v15, %s8806_s25  ;;  %7386 = vmatprep.mubr.msk.bf16.mxu1 %vm1109_vm6, %v4167_v1  ;;  %v5761_v40 = vsel %vm451_vm0, %v11722_v9, %v8145_v22  ;;  %v5760_v27 = vsel %vm451_vm0, %v11726_v63, %v8144_v53  ;;  %v8110_v1 = vunpack.i.h.bf16 %v11660_v58  ;;  %v5479_v4 = vsel %vm635_vm3, %v5477_v10, %v5478_v56 }
 0x2d9   : > { %v5763_v24 = vsel %vm451_vm0, %v11730_v25, %v8115_v36  ;;  %v5762_v0 = vsel %vm451_vm0, %v11734_v38, %v8114_v61  ;;  %v5481_v28 = vsel %vm635_vm3, %v5478_v56, %v5480_v32  ;;  %v5653_v23 = vrot.slane %v11747_v46, 2 }
 0x2da   : > { %8422 = vrot.lane.b32.xlu0 %v8421_v37, %s8806_s25  ;;  %v8148_v19 = vpop.permute.xlu1 %8147  ;;  %v5654_v59 = vrot.slane %v11751_v16, 2  ;;  %v5656_v37 = vrot.slane %v5353_v6, 2  ;;  %v8431_v29 = vpack.i.bf16 %v5647_v5, %v11504_v21  ;;  %v4920_v58 = vsel %vm451_vm0, %v11730_v25, %v8105_v11  ;;  %v8779_v11 = vld [vmem:[#allocation3 + $0xa8] sm:$0xff] }
 0x2db   : > { %v8150_v48 = vunpack.i.h.bf16 %v8148_v19  ;;  %v8149_v15 = vunpack.i.l.bf16 %v8148_v19  ;;  %v4951_v53 = vsel %vm1021_vm5, %v4919_v55, %v8109_v39  ;;  %v4952_v61 = vsel %vm1021_vm5, %v4920_v58, %v8110_v1  ;;  %v11827_v1 = vld [vmem:[#allocation3 + $0xc8] sm:$0xff] }
 0x2dc   : > { %v8118_v2 = vpop.permute.xlu0 %8117  ;;  %8397 = vrot.lane.b32.xlu1 %v8396_v30, %s8805_s24  ;;  %v8436_v6 = vpack.i.bf16 %v5481_v28, %v5479_v4  ;;  %v5655_v21 = vsel %vm812_vm2, %v5653_v23, %v5654_v59  ;;  %v5657_v25 = vsel %vm812_vm2, %v5654_v59, %v5656_v37  ;;  %v11831_v28 = vld [vmem:[#allocation3 + $0xc0] sm:$0xff] }
 0x2dd   : > { %v8120_v13 = vunpack.i.h.bf16 %v8118_v2  ;;  %v8119_v31 = vunpack.i.l.bf16 %v8118_v2  ;;  %v11773_v34 = vsel %vm1021_vm5, %v5760_v27, %v8149_v15  ;;  %v11776_v14 = vsel %vm1021_vm5, %v5761_v40, %v8150_v48 }
 0x2de   : > { %8442 = vrot.lane.b32.xlu0 %v8441_v42, %s8805_s24  ;;  %v5853_v20 = vpack.c.bf16 %v11776_v14, %v11773_v34  ;;  %v11787_v57 = vpop.permute.xlu1 %8162  ;;  %v5010_v15 = vpack.c.bf16 %v4952_v61, %v4951_v53 }
 0x2df   : > { %v11782_v54 = vsel %vm1021_vm5, %v5762_v0, %v8119_v31  ;;  %v11785_v35 = vsel %vm1021_vm5, %v5763_v24, %v8120_v13  ;;  %v8165_v27 = vunpack.i.h.bf16 %v11787_v57  ;;  %v8778_v0 = vld [vmem:[#allocation3 + $0xb0] sm:$0xff]  ;;  %v8164_v59 = vunpack.i.l.bf16 %v11787_v57 }
 0x2e0   : > { %v5854_v45 = vpack.c.bf16 %v11785_v35, %v11782_v54  ;;  %v8133_v18 = vpop.permute.xlu0 %8132  ;;  %8427 = vrot.lane.b32.xlu1 %v8426_v52, %s8806_s25 }
 0x2e1   : > { %v8135_v43 = vunpack.i.h.bf16 %v8133_v18  ;;  %v8134_v7 = vunpack.i.l.bf16 %v8133_v18  ;;  %v4924_v57 = vsel %vm451_vm0, %v11827_v1, %v8165_v27 }
 0x2e2   : > { %v11804_v22 = vpop.permute.xlu1 %8167 }
 0x2e3   : > { %v4918_v38 = vsel %vm451_vm0, %v11722_v9, %v8135_v43  ;;  %v4917_v47 = vsel %vm451_vm0, %v11726_v63, %v8134_v7  ;;  %v8446_v9 = vpack.i.bf16 %v5657_v25, %v5655_v21  ;;  %v8170_v53 = vunpack.i.h.bf16 %v11804_v22 }
 0x2e4   : > { %v8138_v36 = vpop.permute.xlu0 %8137  ;;  %8432 = vrot.lane.b32.xlu1 %v8431_v29, %s8805_s24  ;;  %v4923_v21 = vsel %vm451_vm0, %v11831_v28, %v8164_v59 }
 0x2e5   : > { %v8140_v30 = vunpack.i.h.bf16 %v8138_v36  ;;  %v8139_v33 = vunpack.i.l.bf16 %v8138_v36  ;;  %v8169_v36 = vunpack.i.l.bf16 %v11804_v22  ;;  %v4956_v22 = vsel %vm1021_vm5, %v4924_v57, %v8170_v53  ;;  %v11880_v57 = vld [vmem:[#allocation3 + $0xd8] sm:$0xff] }
 0x2e6   : > { %v8173_v41 = vpop.permute.xlu1 %8172 }
 0x2e7   : > { %v4949_v19 = vsel %vm1021_vm5, %v4917_v47, %v8139_v33  ;;  %v4950_v42 = vsel %vm1021_vm5, %v4918_v38, %v8140_v30  ;;  %v8175_v2 = vunpack.i.h.bf16 %v8173_v41  ;;  %v8174_v56 = vunpack.i.l.bf16 %v8173_v41 }
 0x2e8   : > { %v5009_v10 = vpack.c.bf16 %v4950_v42, %v4949_v19  ;;  %v8153_v48 = vpop.permute.xlu0 %8152  ;;  %8437 = vrot.lane.b32.xlu1 %v8436_v6, %s8806_s25  ;;  %v4955_v19 = vsel %vm1021_vm5, %v4923_v21, %v8169_v36 }
 0x2e9   : > { %v8155_v32 = vunpack.i.h.bf16 %v8153_v48  ;;  %v8154_v40 = vunpack.i.l.bf16 %v8153_v48  ;;  %v4080_v52 = vsel %vm451_vm0, %v8778_v0, %v8175_v2  ;;  %v4079_v39 = vsel %vm451_vm0, %v8779_v11, %v8174_v56 }
 0x2ea   : > { %7416 = vmatprep.mubr.msk.bf16.mxu0 %vm1109_vm6, %v5009_v10  ;;  %v8178_v63 = vpop.permute.xlu1 %8177 }
 0x2eb   : > { %7417 = vmatmul.mubr.msk.bf16.gmra.mrb[72].mxu0 %vm1109_vm6, %v5010_v15  ;;  %v8180_v13 = vunpack.i.h.bf16 %v8178_v63  ;;  %v8179_v31 = vunpack.i.l.bf16 %v8178_v63  ;;  %v4082_v4 = vsel %vm451_vm0, %v11827_v1, %v8155_v32  ;;  %v4081_v23 = vsel %vm451_vm0, %v11831_v28, %v8154_v40 }
 0x2ec   : > { %v8158_v24 = vpop.permute.xlu0 %8157  ;;  %8447 = vrot.lane.b32.xlu1 %v8446_v9, %s8805_s24 }
 0x2ed   : > { %v8160_v18 = vunpack.i.h.bf16 %v8158_v24  ;;  %v8159_v5 = vunpack.i.l.bf16 %v8158_v24  ;;  %v4111_v43 = vsel %vm1021_vm5, %v4079_v39, %v8179_v31  ;;  %v4112_v7 = vsel %vm1021_vm5, %v4080_v52, %v8180_v13 }
 0x2ee   : > { %v4168_v37 = vpack.c.bf16 %v4112_v7, %v4111_v43  ;;  %v8193_v58 = vpop.permute.xlu1 %8192 }
 0x2ef   : > { %v4113_v55 = vsel %vm1021_vm5, %v4081_v23, %v8159_v5  ;;  %v4114_v29 = vsel %vm1021_vm5, %v4082_v4, %v8160_v18  ;;  %v8195_v33 = vunpack.i.h.bf16 %v8193_v58  ;;  %v8194_v6 = vunpack.i.l.bf16 %v8193_v58 }
 0x2f0   : > { %v4169_v61 = vpack.c.bf16 %v4114_v29, %v4113_v55  ;;  %v8183_v30 = vpop.permute.xlu0 %8182  ;;  %7387 = vmatmul.mubr.msk.bf16.gmra.mrb[44].mxu1 %vm1109_vm6, %v4168_v37  ;;  %v5012_v18 = vpack.c.bf16 %v4956_v22, %v4955_v19  ;;  %v11866_v37 = vld [vmem:[#allocation3 + $0xf8] sm:$0xff]  ;;  %v11870_v29 = vld [vmem:[#allocation3 + $0xf0] sm:$0xff] }
 0x2f1   : > { %v8185_v38 = vunpack.i.h.bf16 %v8183_v30  ;;  %v8184_v47 = vunpack.i.l.bf16 %v8183_v30  ;;  %v5765_v48 = vsel %vm451_vm0, %v8778_v0, %v8195_v33  ;;  %v5764_v15 = vsel %vm451_vm0, %v8779_v11, %v8194_v6 }
 0x2f2   : > { %7390 = vmatprep.mubr.msk.bf16.mxu1 %vm1109_vm6, %v4169_v61  ;;  %v8198_v25 = vpop.permute.xlu1 %8197 }
 0x2f3   : > { %v8200_v42 = vunpack.i.h.bf16 %v8198_v25  ;;  %v8199_v41 = vunpack.i.l.bf16 %v8198_v25  ;;  %v4922_v9 = vsel %vm451_vm0, %v8778_v0, %v8185_v38  ;;  %v4921_v32 = vsel %vm451_vm0, %v8779_v11, %v8184_v47  ;;  %v11876_v38 = vld [vmem:[#allocation3 + $0xe0] sm:$0xff] }
 0x2f4   : > { %v8188_v10 = vpop.permute.xlu0 %8187 }
 0x2f5   : > { %v8190_v2 = vunpack.i.h.bf16 %v8188_v10  ;;  %v8189_v56 = vunpack.i.l.bf16 %v8188_v10  ;;  %v11855_v40 = vsel %vm1021_vm5, %v5764_v15, %v8199_v41  ;;  %v11858_v63 = vsel %vm1021_vm5, %v5765_v48, %v8200_v42 }
 0x2f6   : > { %v5855_v27 = vpack.c.bf16 %v11858_v63, %v11855_v40  ;;  %v8213_v24 = vpop.permute.xlu1 %8212 }
 0x2f7   : > { %v4953_v13 = vsel %vm1021_vm5, %v4921_v32, %v8189_v56  ;;  %v4954_v31 = vsel %vm1021_vm5, %v4922_v9, %v8190_v2  ;;  %v8215_v48 = vunpack.i.h.bf16 %v8213_v24  ;;  %v8214_v56 = vunpack.i.l.bf16 %v8213_v24 }
 0x2f8   : > { %v5011_v52 = vpack.c.bf16 %v4954_v31, %v4953_v13  ;;  %v8203_v39 = vpop.permute.xlu0 %8202 }
 0x2f9   : > { %v8205_v0 = vunpack.i.h.bf16 %v8203_v39  ;;  %v8204_v5 = vunpack.i.l.bf16 %v8203_v39 }
 0x2fa   : > { %7420 = vmatprep.mubr.msk.bf16.mxu0 %vm1109_vm6, %v5011_v52  ;;  %v8218_v11 = vpop.permute.xlu1 %8217 }
 0x2fb   : > { %7421 = vmatmul.mubr.msk.bf16.gmra.mrb[76].mxu0 %vm1109_vm6, %v5012_v18  ;;  %v8220_v23 = vunpack.i.h.bf16 %v8218_v11  ;;  %v8219_v43 = vunpack.i.l.bf16 %v8218_v11  ;;  %v4086_v55 = vsel %vm451_vm0, %v11866_v37, %v8205_v0  ;;  %v4085_v58 = vsel %vm451_vm0, %v11870_v29, %v8204_v5 }
 0x2fc   : > { %v8208_v4 = vpop.permute.xlu0 %8207  ;;  %v4928_v11 = vsel %vm451_vm0, %v11866_v37, %v8215_v48 }
 0x2fd   : > { %v8210_v7 = vunpack.i.h.bf16 %v8208_v4  ;;  %v8209_v59 = vunpack.i.l.bf16 %v8208_v4  ;;  %v4084_v47 = vsel %vm451_vm0, %v11876_v38, %v8220_v23  ;;  %v4083_v21 = vsel %vm451_vm0, %v11880_v57, %v8219_v43  ;;  %v11890_v23 = vld [vmem:[#allocation3 + $0x128] sm:$0xff] }
 0x2fe   : > { %v8223_v61 = vpop.permute.xlu1 %8222 }
 0x2ff   : > { %v4117_v53 = vsel %vm1021_vm5, %v4085_v58, %v8209_v59  ;;  %v4118_v36 = vsel %vm1021_vm5, %v4086_v55, %v8210_v7  ;;  %v8225_v30 = vunpack.i.h.bf16 %v8223_v61  ;;  %v8224_v33 = vunpack.i.l.bf16 %v8223_v61  ;;  %v11894_v7 = vld [vmem:[#allocation3 + $0x120] sm:$0xff] }
 0x300   : > { %v8228_v6 = vpop.permute.xlu0 %8227  ;;  %v4171_v25 = vpack.c.bf16 %v4118_v36, %v4117_v53  ;;  %v4927_v59 = vsel %vm451_vm0, %v11870_v29, %v8214_v56 }
 0x301   : > { %v4115_v19 = vsel %vm1021_vm5, %v4083_v21, %v8224_v33  ;;  %v4116_v22 = vsel %vm1021_vm5, %v4084_v47, %v8225_v30  ;;  %v8230_v9 = vunpack.i.h.bf16 %v8228_v6  ;;  %v8229_v13 = vunpack.i.l.bf16 %v8228_v6  ;;  %v11907_v21 = vld [vmem:[#allocation3 + $0x110] sm:$0xff] }
 0x302   : > { %v4170_v42 = vpack.c.bf16 %v4116_v22, %v4115_v19  ;;  %v8248_v41 = vpop.permute.xlu1 %8247  ;;  %v11911_v19 = vld [vmem:[#allocation3 + $0x108] sm:$0xff] }
 0x303   : > { %v8250_v31 = vunpack.i.h.bf16 %v8248_v41  ;;  %v8249_v4 = vunpack.i.l.bf16 %v8248_v41  ;;  %v4926_v55 = vsel %vm451_vm0, %v11876_v38, %v8230_v9  ;;  %v4925_v61 = vsel %vm451_vm0, %v11880_v57, %v8229_v13 }
 0x304   : > { %v8233_v10 = vpop.permute.xlu0 %8232  ;;  %7391 = vmatmul.mubr.msk.bf16.gmra.mrb[48].mxu1 %vm1109_vm6, %v4170_v42 }
 0x305   : > { %7394 = vmatprep.mubr.msk.bf16.mxu1 %vm1109_vm6, %v4171_v25  ;;  %v8235_v15 = vunpack.i.h.bf16 %v8233_v10  ;;  %v8234_v2 = vunpack.i.l.bf16 %v8233_v10  ;;  %v4960_v30 = vsel %vm1021_vm5, %v4928_v11, %v8250_v31  ;;  %v4959_v10 = vsel %vm1021_vm5, %v4927_v59, %v8249_v4 }
 0x306   : > { %v8253_v32 = vpop.permute.xlu1 %8252 }
 0x307   : > { %v8255_v39 = vunpack.i.h.bf16 %v8253_v32  ;;  %v8254_v18 = vunpack.i.l.bf16 %v8253_v32  ;;  %v4090_v43 = vsel %vm451_vm0, %v11890_v23, %v8235_v15  ;;  %v4089_v24 = vsel %vm451_vm0, %v11894_v7, %v8234_v2 }
 0x308   : > { %v8238_v52 = vpop.permute.xlu0 %8237 }
 0x309   : > { %v8240_v0 = vunpack.i.h.bf16 %v8238_v52  ;;  %v8239_v5 = vunpack.i.l.bf16 %v8238_v52  ;;  %v4088_v25 = vsel %vm451_vm0, %v11907_v21, %v8255_v39  ;;  %v4087_v22 = vsel %vm451_vm0, %v11911_v19, %v8254_v18 }
 0x30a   : > { %v8258_v36 = vpop.permute.xlu1 %8257  ;;  %v5014_v39 = vpack.c.bf16 %v4960_v30, %v4959_v10 }
 0x30b   : > { %v4121_v58 = vsel %vm1021_vm5, %v4089_v24, %v8239_v5  ;;  %v4122_v53 = vsel %vm1021_vm5, %v4090_v43, %v8240_v0  ;;  %v8260_v33 = vunpack.i.h.bf16 %v8258_v36  ;;  %v8259_v6 = vunpack.i.l.bf16 %v8258_v36  ;;  %v11930_v36 = vld [vmem:[#allocation3 + $0x150] sm:$0xff] }
 0x30c   : > { %v8243_v47 = vpop.permute.xlu0 %8242  ;;  %v4173_v48 = vpack.c.bf16 %v4122_v53, %v4121_v58  ;;  %v11926_v58 = vld [vmem:[#allocation3 + $0x158] sm:$0xff] }
 0x30d   : > { %v8245_v42 = vunpack.i.h.bf16 %v8243_v47  ;;  %v8244_v41 = vunpack.i.l.bf16 %v8243_v47  ;;  %v4119_v15 = vsel %vm1021_vm5, %v4087_v22, %v8259_v6  ;;  %v4120_v2 = vsel %vm1021_vm5, %v4088_v25, %v8260_v33  ;;  %v11938_v22 = vld [vmem:[#allocation3 + $0x140] sm:$0xff] }
 0x30e   : > { %v4172_v56 = vpack.c.bf16 %v4120_v2, %v4119_v15  ;;  %v8263_v13 = vpop.permute.xlu1 %8262 }
 0x30f   : > { %v4958_v9 = vsel %vm1021_vm5, %v4926_v55, %v8245_v42  ;;  %v4957_v32 = vsel %vm1021_vm5, %v4925_v61, %v8244_v41  ;;  %v8265_v0 = vunpack.i.h.bf16 %v8263_v13  ;;  %v8264_v5 = vunpack.i.l.bf16 %v8263_v13  ;;  %v11942_v41 = vld [vmem:[#allocation3 + $0x138] sm:$0xff] }
 0x310   : > { %v5013_v31 = vpack.c.bf16 %v4958_v9, %v4957_v32  ;;  %v8268_v52 = vpop.permute.xlu0 %8267  ;;  %7395 = vmatmul.mubr.msk.bf16.gmra.mrb[52].mxu1 %vm1109_vm6, %v4172_v56 }
 0x311   : > { %7398 = vmatprep.mubr.msk.bf16.mxu1 %vm1109_vm6, %v4173_v48  ;;  %v8270_v4 = vunpack.i.h.bf16 %v8268_v52  ;;  %v8269_v43 = vunpack.i.l.bf16 %v8268_v52  ;;  %v4094_v53 = vsel %vm451_vm0, %v11926_v58, %v8265_v0  ;;  %v4093_v61 = vsel %vm451_vm0, %v11930_v36, %v8264_v5 }
 0x312   : > { %7424 = vmatprep.mubr.msk.bf16.mxu0 %vm1109_vm6, %v5013_v31  ;;  %v8278_v18 = vpop.permute.xlu1 %8277 }
 0x313   : > { %7425 = vmatmul.mubr.msk.bf16.gmra.mrb[80].mxu0 %vm1109_vm6, %v5014_v39  ;;  %v8280_v24 = vunpack.i.h.bf16 %v8278_v18  ;;  %v8279_v59 = vunpack.i.l.bf16 %v8278_v18  ;;  %v4125_v47 = vsel %vm1021_vm5, %v4093_v61, %v8269_v43  ;;  %v4126_v25 = vsel %vm1021_vm5, %v4094_v53, %v8270_v4  ;;  %v11950_v43 = vld [vmem:[#allocation3 + $0x170] sm:$0xff] }
 0x314   : > { %v11924_v11 = vpop.permute.xlu0 %8272  ;;  %v4175_v9 = vpack.c.bf16 %v4126_v25, %v4125_v47 }
 0x315   : > { %v4092_v42 = vsel %vm451_vm0, %v11938_v22, %v8280_v24  ;;  %v4091_v10 = vsel %vm451_vm0, %v11942_v41, %v8279_v59  ;;  %v11954_v59 = vld [vmem:[#allocation3 + $0x168] sm:$0xff] }
 0x316   : > { %v8283_v55 = vpop.permute.xlu1 %8282 }
 0x317   : > { %v8285_v30 = vunpack.i.h.bf16 %v8283_v55  ;;  %v8284_v33 = vunpack.i.l.bf16 %v8283_v55 }
 0x318   : > { %v11934_v6 = vpop.permute.xlu0 %8302 }
 0x319   : > { %v4123_v48 = vsel %vm1021_vm5, %v4091_v10, %v8284_v33  ;;  %v4124_v15 = vsel %vm1021_vm5, %v4092_v42, %v8285_v30 }
 0x31a   : > { %v4174_v2 = vpack.c.bf16 %v4124_v15, %v4123_v48  ;;  %v8288_v56 = vpop.permute.xlu1 %8287 }
 0x31b   : > { %v8290_v13 = vunpack.i.h.bf16 %v8288_v56  ;;  %v8289_v31 = vunpack.i.l.bf16 %v8288_v56 }
 0x31c   : > { %v8313_v32 = vpop.permute.xlu0 %8312  ;;  %7399 = vmatmul.mubr.msk.bf16.gmra.mrb[56].mxu1 %vm1109_vm6, %v4174_v2 }
 0x31d   : > { %7402 = vmatprep.mubr.msk.bf16.mxu1 %vm1109_vm6, %v4175_v9  ;;  %v8315_v52 = vunpack.i.h.bf16 %v8313_v32  ;;  %v8314_v39 = vunpack.i.l.bf16 %v8313_v32  ;;  %v4096_v24 = vsel %vm451_vm0, %v11950_v43, %v8290_v13  ;;  %v4095_v55 = vsel %vm451_vm0, %v11954_v59, %v8289_v31 }
 0x31e   : > { %v8293_v18 = vpop.permute.xlu1 %8292 }
 0x31f   : > { %v8295_v0 = vunpack.i.h.bf16 %v8293_v18  ;;  %v8294_v5 = vunpack.i.l.bf16 %v8293_v18  ;;  %v4930_v30 = vsel %vm451_vm0, %v11907_v21, %v8315_v52  ;;  %v4929_v33 = vsel %vm451_vm0, %v11911_v19, %v8314_v39 }
 0x320   : > { %v8323_v4 = vpop.permute.xlu0 %8322 }
 0x321   : > { %v8325_v53 = vunpack.i.h.bf16 %v8323_v4  ;;  %v8324_v61 = vunpack.i.l.bf16 %v8323_v4  ;;  %v4127_v47 = vsel %vm1021_vm5, %v4095_v55, %v8294_v5  ;;  %v4128_v25 = vsel %vm1021_vm5, %v4096_v24, %v8295_v0 }
 0x322   : > { %v4176_v42 = vpack.c.bf16 %v4128_v25, %v4127_v47  ;;  %v11966_v15 = vpop.permute.xlu1 %8297  ;;  %v8274_v47 = vunpack.i.l.bf16 %v11924_v11 }
 0x323   : > { %v4961_v10 = vsel %vm1021_vm5, %v4929_v33, %v8324_v61  ;;  %v4962_v48 = vsel %vm1021_vm5, %v4930_v30, %v8325_v53  ;;  %v8275_v33 = vunpack.i.h.bf16 %v11924_v11  ;;  %v8299_v54 = vunpack.i.l.bf16 %v11966_v15 }
 0x324   : > { %v5015_v2 = vpack.c.bf16 %v4962_v48, %v4961_v10  ;;  %v11968_v56 = vpop.permute.xlu0 %8332  ;;  %7403 = vmatmul.mubr.msk.bf16.gmra.mrb[60].mxu1 %vm1109_vm6, %v4176_v42  ;;  %v8305_v10 = vunpack.i.h.bf16 %v11934_v6  ;;  %v8304_v48 = vunpack.i.l.bf16 %v11934_v6  ;;  %v5766_v6 = vsel %vm451_vm0, %v11831_v28, %v8274_v47 }
 0x325   : > { %7442 = vmatprep.mubr.msk.bf16.mxu1 %vm1109_vm6, %v5850_v3  ;;  %v8335_v35 = vunpack.i.h.bf16 %v11968_v56 }
 0x326   : > { %7428 = vmatprep.mubr.msk.bf16.mxu0 %vm1109_vm6, %v5015_v2  ;;  %v11976_v9 = vpop.permute.xlu1 %8307  ;;  %v5767_v2 = vsel %vm451_vm0, %v11827_v1, %v8275_v33  ;;  %v5798_v34 = vsel %vm1021_vm5, %v5766_v6, %v8304_v48 }
 0x327   : > { %v5799_v14 = vsel %vm1021_vm5, %v5767_v2, %v8305_v10  ;;  %v8309_v1 = vunpack.i.l.bf16 %v11976_v9 }
 0x328   : > { %v11978_v32 = vpop.permute.xlu0 %8342  ;;  %v5856_v28 = vpack.c.bf16 %v5799_v14, %v5798_v34 }
 0x32a   : > { %v8318_v13 = vpop.permute.xlu1 %8317 }
 0x32b   : > { %v8320_v52 = vunpack.i.h.bf16 %v8318_v13  ;;  %v8319_v39 = vunpack.i.l.bf16 %v8318_v13 }
 0x32c   : > { %v8353_v31 = vpop.permute.xlu0 %8352  ;;  %7443 = vmatmul.mubr.msk.bf16.vlgmr.msra.gmra.mrb[64].mxu1 %vm1109_vm6, %v5851_v60 }
 0x32d   : > { %7446 = vmatprep.mubr.msk.bf16.mxu1 %vm1109_vm6, %v5852_v44  ;;  %v8355_v12 = vunpack.i.h.bf16 %v8353_v31  ;;  %v8354_v51 = vunpack.i.l.bf16 %v8353_v31  ;;  %v4932_v4 = vsel %vm451_vm0, %v11890_v23, %v8320_v52  ;;  %v4931_v24 = vsel %vm451_vm0, %v11894_v7, %v8319_v39 }
 0x32e   : > { %v8328_v3 = vpop.permute.xlu1 %8327  ;;  %v8310_v31 = vunpack.i.h.bf16 %v11976_v9  ;;  %v8345_v39 = vunpack.i.h.bf16 %v11978_v32  ;;  %v5771_v9 = vsel %vm451_vm0, %v11866_v37, %v8335_v35 }
 0x32f   : > { %v8330_v18 = vunpack.i.h.bf16 %v8328_v3  ;;  %v8329_v0 = vunpack.i.l.bf16 %v8328_v3  ;;  %v4934_v60 = vsel %vm451_vm0, %v11938_v22, %v8355_v12  ;;  %v4933_v8 = vsel %vm451_vm0, %v11942_v41, %v8354_v51 }
 0x330   : > { %v8363_v5 = vpop.permute.xlu0 %8362  ;;  %v8344_v12 = vunpack.i.l.bf16 %v11978_v32 }
 0x331   : > { %v8365_v17 = vunpack.i.h.bf16 %v8363_v5  ;;  %v8364_v49 = vunpack.i.l.bf16 %v8363_v5  ;;  %v4963_v50 = vsel %vm1021_vm5, %v4931_v24, %v8329_v0  ;;  %v4964_v44 = vsel %vm1021_vm5, %v4932_v4, %v8330_v18 }
 0x332   : > { %v5016_v55 = vpack.c.bf16 %v4964_v44, %v4963_v50  ;;  %v12000_v30 = vpop.permute.xlu1 %8337 }
 0x333   : > { %v4965_v53 = vsel %vm1021_vm5, %v4933_v8, %v8364_v49  ;;  %v4966_v61 = vsel %vm1021_vm5, %v4934_v60, %v8365_v17  ;;  %v8340_v24 = vunpack.i.h.bf16 %v12000_v30  ;;  %v8339_v17 = vunpack.i.l.bf16 %v12000_v30 }
 0x334   : > { %v5017_v25 = vpack.c.bf16 %v4966_v61, %v4965_v53  ;;  %v12004_v42 = vpop.permute.xlu0 %8372  ;;  %7429 = vmatmul.mubr.msk.bf16.gmra.mrb[84].mxu0 %vm1109_vm6, %v5016_v55  ;;  %7447 = vmatmul.mubr.msk.bf16.gmra.mrb[68].mxu1 %vm1109_vm6, %v5853_v20  ;;  %v8300_v20 = vunpack.i.h.bf16 %v11966_v15 }
 0x335   : > { %7450 = vmatprep.mubr.msk.bf16.mxu1 %vm1109_vm6, %v5854_v45  ;;  %v8334_v45 = vunpack.i.l.bf16 %v11968_v56  ;;  %v5768_v56 = vsel %vm451_vm0, %v11880_v57, %v8299_v54  ;;  %v8375_v47 = vunpack.i.h.bf16 %v12004_v42  ;;  %v5772_v14 = vsel %vm451_vm0, %v11911_v19, %v8339_v17 }
 0x336   : > { %7432 = vmatprep.mubr.msk.bf16.mxu0 %vm1109_vm6, %v5017_v25  ;;  %v12018_v11 = vpop.permute.xlu1 %8347  ;;  %v5769_v15 = vsel %vm451_vm0, %v11876_v38, %v8300_v20  ;;  %v5800_v0 = vsel %vm1021_vm5, %v5768_v56, %v8309_v1  ;;  %v5803_v38 = vsel %vm1021_vm5, %v5771_v9, %v8345_v39  ;;  %v8374_v25 = vunpack.i.l.bf16 %v12004_v42 }
 0x337   : > { %v5770_v32 = vsel %vm451_vm0, %v11870_v29, %v8334_v45  ;;  %v5801_v40 = vsel %vm1021_vm5, %v5769_v15, %v8310_v31  ;;  %v8350_v55 = vunpack.i.h.bf16 %v12018_v11  ;;  %v8349_v53 = vunpack.i.l.bf16 %v12018_v11 }
 0x338   : > { %v12024_v13 = vpop.permute.xlu0 %8382  ;;  %v5857_v44 = vpack.c.bf16 %v5801_v40, %v5800_v0  ;;  %v5773_v11 = vsel %vm451_vm0, %v11907_v21, %v8340_v24  ;;  %v5775_v19 = vsel %vm451_vm0, %v11890_v23, %v8375_v47  ;;  %v5774_v31 = vsel %vm451_vm0, %v11894_v7, %v8374_v25 }
 0x339   : > { %v8385_v48 = vunpack.i.h.bf16 %v12024_v13  ;;  %v8384_v2 = vunpack.i.l.bf16 %v12024_v13  ;;  %v5804_v13 = vsel %vm1021_vm5, %v5772_v14, %v8349_v53  ;;  %v5805_v54 = vsel %vm1021_vm5, %v5773_v11, %v8350_v55 }
 0x33a   : > { %v8358_v52 = vpop.permute.xlu1 %8357 }
 0x33b   : > { %v8360_v3 = vunpack.i.h.bf16 %v8358_v52  ;;  %v8359_v18 = vunpack.i.l.bf16 %v8358_v52  ;;  %v5807_v39 = vsel %vm1021_vm5, %v5775_v19, %v8385_v48 }
 0x33c   : > { %v12036_v51 = vpop.permute.xlu0 %8402  ;;  %7451 = vmatmul.mubr.msk.bf16.gmra.mrb[72].mxu1 %vm1109_vm6, %v5855_v27  ;;  %v5802_v27 = vsel %vm1021_vm5, %v5770_v32, %v8344_v12  ;;  %v5859_v12 = vpack.c.bf16 %v5805_v54, %v5804_v13 }
 0x33d   : > { %7454 = vmatprep.mubr.msk.bf16.mxu1 %vm1109_vm6, %v5856_v28  ;;  %v4936_v37 = vsel %vm451_vm0, %v11926_v58, %v8360_v3  ;;  %v4935_v29 = vsel %vm451_vm0, %v11930_v36, %v8359_v18  ;;  %v5858_v30 = vpack.c.bf16 %v5803_v38, %v5802_v27  ;;  %v5806_v28 = vsel %vm1021_vm5, %v5774_v31, %v8384_v2 }
 0x33e   : > { %v8368_v63 = vpop.permute.xlu1 %8367  ;;  %v8405_v3 = vunpack.i.h.bf16 %v12036_v51  ;;  %v8404_v18 = vunpack.i.l.bf16 %v12036_v51  ;;  %v5860_v23 = vpack.c.bf16 %v5807_v39, %v5806_v28 }
 0x33f   : > { %v8370_v5 = vunpack.i.h.bf16 %v8368_v63  ;;  %v8369_v4 = vunpack.i.l.bf16 %v8368_v63 }
 0x340   : > { %v8408_v57 = vpop.permute.xlu0 %8407  ;;  %v5778_v51 = vsel %vm451_vm0, %v11930_v36, %v8404_v18  ;;  %v4131_v18 = vld [vmem:[#allocation4 + $0x10] sm:$0xff] }
 0x341   : > { %v4967_v49 = vsel %vm1021_vm5, %v4935_v29, %v8369_v4  ;;  %v4968_v60 = vsel %vm1021_vm5, %v4936_v37, %v8370_v5  ;;  %v8410_v8 = vunpack.i.h.bf16 %v8408_v57  ;;  %v8409_v50 = vunpack.i.l.bf16 %v8408_v57 }
 0x342   : > { %v5018_v61 = vpack.c.bf16 %v4968_v60, %v4967_v49  ;;  %v8378_v33 = vpop.permute.xlu1 %8377  ;;  %v5779_v5 = vsel %vm451_vm0, %v11926_v58, %v8405_v3 }
 0x343   : > { %v4938_v42 = vsel %vm451_vm0, %v11950_v43, %v8410_v8  ;;  %v4937_v20 = vsel %vm451_vm0, %v11954_v59, %v8409_v50  ;;  %v8380_v15 = vunpack.i.h.bf16 %v8378_v33  ;;  %v8379_v56 = vunpack.i.l.bf16 %v8378_v33 }
 0x344   : > { %v8413_v10 = vpop.permute.xlu0 %8412  ;;  %7433 = vmatmul.mubr.msk.bf16.gmra.mrb[88].mxu0 %vm1109_vm6, %v5018_v61  ;;  %7455 = vmatmul.mubr.msk.bf16.gmra.mrb[76].mxu1 %vm1109_vm6, %v5857_v44 }
 0x345   : > { %v8415_v6 = vunpack.i.h.bf16 %v8413_v10  ;;  %v8414_v34 = vunpack.i.l.bf16 %v8413_v10  ;;  %7458 = vmatprep.mubr.msk.bf16.mxu1 %vm1109_vm6, %v5858_v30  ;;  %v5777_v4 = vsel %vm451_vm0, %v11938_v22, %v8380_v15  ;;  %v5776_v57 = vsel %vm451_vm0, %v11942_v41, %v8379_v56  ;;  %v4129_v15 = vld [vmem:[#allocation4] sm:$0xff] }
 0x346   : > { %v8388_v21 = vpop.permute.xlu1 %8387 }
 0x347   : > { %v4969_v35 = vsel %vm1021_vm5, %v4937_v20, %v8414_v34  ;;  %v4970_v45 = vsel %vm1021_vm5, %v4938_v42, %v8415_v6  ;;  %v8390_v32 = vunpack.i.h.bf16 %v8388_v21  ;;  %v8389_v0 = vunpack.i.l.bf16 %v8388_v21 }
 0x348   : > { %v5019_v1 = vpack.c.bf16 %v4970_v45, %v4969_v35  ;;  %v8418_v52 = vpop.permute.xlu0 %8417 }
 0x349   : > { %v8420_v40 = vunpack.i.h.bf16 %v8418_v52  ;;  %v8419_v63 = vunpack.i.l.bf16 %v8418_v52  ;;  %v5808_v17 = vsel %vm1021_vm5, %v5776_v57, %v8389_v0  ;;  %v5809_v37 = vsel %vm1021_vm5, %v5777_v4, %v8390_v32  ;;  %v4130_v0 = vld [vmem:[#allocation4 + $0x8] sm:$0xff] }
 0x34a   : > { %7436 = vmatprep.mubr.msk.bf16.mxu0 %vm1109_vm6, %v5019_v1  ;;  %v8393_v9 = vpop.permute.xlu1 %8392  ;;  %v5861_v44 = vpack.c.bf16 %v5809_v37, %v5808_v17 }
 0x34b   : > { %v8395_v27 = vunpack.i.h.bf16 %v8393_v9  ;;  %v8394_v38 = vunpack.i.l.bf16 %v8393_v9  ;;  %v5811_v60 = vsel %vm1021_vm5, %v5779_v5, %v8420_v40  ;;  %v5810_v58 = vsel %vm1021_vm5, %v5778_v51, %v8419_v63  ;;  %v4132_v9 = vld [vmem:[#allocation4 + $0x18] sm:$0xff]  ;;  %v4135_v5 = vld [vmem:[#allocation4 + $0x30] sm:$0xff] }
 0x34c   : > { %v8423_v7 = vpop.permute.xlu0 %8422  ;;  %7459 = vmatmul.mubr.msk.bf16.gmra.mrb[80].mxu1 %vm1109_vm6, %v5859_v12  ;;  %v5862_v61 = vpack.c.bf16 %v5811_v60, %v5810_v58  ;;  %v4136_v60 = vld [vmem:[#allocation4 + $0x38] sm:$0xff] }
 0x34d   : > { %7462 = vmatprep.mubr.msk.bf16.mxu1 %vm1109_vm6, %v5860_v23  ;;  %v4940_v36 = vsel %vm451_vm0, %v11667_v26, %v8395_v27  ;;  %v4939_v22 = vsel %vm451_vm0, %v11679_v62, %v8394_v38  ;;  %v8425_v33 = vunpack.i.h.bf16 %v8423_v7  ;;  %v8424_v30 = vunpack.i.l.bf16 %v8423_v7 }
 0x34e   : > { %v8398_v24 = vpop.permute.xlu1 %8397 }
 0x34f   : > { %v8400_v29 = vunpack.i.h.bf16 %v8398_v24  ;;  %v8399_v49 = vunpack.i.l.bf16 %v8398_v24  ;;  %v5783_v6 = vsel %vm451_vm0, %v11667_v26, %v8425_v33  ;;  %v5782_v34 = vsel %vm451_vm0, %v11679_v62, %v8424_v30  ;;  %v4133_v24 = vld [vmem:[#allocation4 + $0x20] sm:$0xff] }
 0x350   : > { %v8443_v50 = vpop.permute.xlu0 %8442 }
 0x351   : > { %v4971_v8 = vsel %vm1021_vm5, %v4939_v22, %v8399_v49  ;;  %v4972_v41 = vsel %vm1021_vm5, %v4940_v36, %v8400_v29  ;;  %v8445_v47 = vunpack.i.h.bf16 %v8443_v50  ;;  %v8444_v25 = vunpack.i.l.bf16 %v8443_v50  ;;  %v4134_v50 = vld [vmem:[#allocation4 + $0x28] sm:$0xff] }
 0x352   : > { %v5020_v55 = vpack.c.bf16 %v4972_v41, %v4971_v8  ;;  %v8428_v53 = vpop.permute.xlu1 %8427 }
 0x353   : > { %v8430_v10 = vunpack.i.h.bf16 %v8428_v53  ;;  %v8429_v48 = vunpack.i.l.bf16 %v8428_v53  ;;  %v5814_v42 = vsel %vm1021_vm5, %v5782_v34, %v8444_v25  ;;  %v5815_v20 = vsel %vm1021_vm5, %v5783_v6, %v8445_v47 }
 0x354   : > { %7437 = vmatmul.mubr.msk.bf16.gmra.mrb[92].mxu0 %vm1109_vm6, %v5020_v55  ;;  %7463 = vmatmul.mubr.msk.bf16.gmra.mrb[84].mxu1 %vm1109_vm6, %v5861_v44  ;;  %v5864_v19 = vpack.c.bf16 %v5815_v20, %v5814_v42 }
 0x355   : > { %7466 = vmatprep.mubr.msk.bf16.mxu1 %vm1109_vm6, %v5862_v61  ;;  %v5781_v13 = vsel %vm451_vm0, %v11950_v43, %v8430_v10  ;;  %v5780_v54 = vsel %vm451_vm0, %v11954_v59, %v8429_v48 }
 0x356   : > { %v8433_v2 = vpop.permute.xlu1 %8432 }
 0x357   : > { %v8435_v11 = vunpack.i.h.bf16 %v8433_v2  ;;  %v8434_v14 = vunpack.i.l.bf16 %v8433_v2 }
 0x359   : > { %v5812_v35 = vsel %vm1021_vm5, %v5780_v54, %v8434_v14  ;;  %v5813_v45 = vsel %vm1021_vm5, %v5781_v13, %v8435_v11  ;;  %v4139_v54 = vld [vmem:[#allocation4 + $0x50] sm:$0xff] }
 0x35a   : > { %v5863_v26 = vpack.c.bf16 %v5813_v45, %v5812_v35  ;;  %v8438_v21 = vpop.permute.xlu1 %8437  ;;  %v4137_v35 = vld [vmem:[#allocation4 + $0x40] sm:$0xff] }
 0x35b   : > { %v8440_v62 = vunpack.i.h.bf16 %v8438_v21  ;;  %v8439_v31 = vunpack.i.l.bf16 %v8438_v21 }
 0x35c   : > { %7467 = vmatmul.mubr.msk.bf16.gmra.mrb[88].mxu1 %vm1109_vm6, %v5863_v26  ;;  %v4140_v26 = vld [vmem:[#allocation4 + $0x58] sm:$0xff] }
 0x35d   : > { %7470 = vmatprep.mubr.msk.bf16.mxu1 %vm1109_vm6, %v5864_v19  ;;  %v5785_v43 = vsel %vm451_vm0, %v11751_v16, %v8440_v62  ;;  %v5784_v59 = vsel %vm451_vm0, %v11747_v46, %v8439_v31  ;;  %v4138_v62 = vld [vmem:[#allocation4 + $0x48] sm:$0xff] }
 0x35e   : > { %v8448_v1 = vpop.permute.xlu1 %8447 }
 0x35f   : > { %v8450_v52 = vunpack.i.h.bf16 %v8448_v1  ;;  %v8449_v28 = vunpack.i.l.bf16 %v8448_v1 }
 0x361   : > { %v5816_v39 = vsel %vm1021_vm5, %v5784_v59, %v8449_v28  ;;  %v5817_v12 = vsel %vm1021_vm5, %v5785_v43, %v8450_v52 }
 0x362   : > { %v5865_v3 = vpack.c.bf16 %v5817_v12, %v5816_v39 }
 0x364   : > { %7471 = vmatmul.mubr.msk.bf16.gmra.mrb[92].mxu1 %vm1109_vm6, %v5865_v3 }
 0x374   : > { %v7376_v56 = vpop.f32.mrb[32].mxu1 }
 0x375   : > { %v4398_v23 = vadd.f32 %v7376_v56, %v4131_v18  ;;  %v4269_v32 = vpop.f32.mrb[33].mxu1 }
 0x376   : > { %v4396_v7 = vadd.f32 %v4269_v32, %v4129_v15  ;;  %v7377_v40 = vpop.f32.mrb[34].mxu1 }
 0x377   : > { %4430 = vst.msk [vmem:[#allocation4 + $0x10] sm:$0xff] %vm451_vm0, %v4398_v23  ;;  %v4399_v16 = vadd.f32 %v7377_v40, %v4132_v9  ;;  %v4272_v46 = vpop.f32.mrb[35].mxu1 }
 0x378   : > { %4428 = vst.msk [vmem:[#allocation4] sm:$0xff] %vm451_vm0, %v4396_v7  ;;  %v4397_v63 = vadd.f32 %v4272_v46, %v4130_v0  ;;  %v4143_v7 = vld [vmem:[#allocation4 + $0x70] sm:$0xff] }
 0x379   : > { %4431 = vst.msk [vmem:[#allocation4 + $0x18] sm:$0xff] %vm451_vm0, %v4399_v16  ;;  %v4141_v16 = vld [vmem:[#allocation4 + $0x60] sm:$0xff] }
 0x37a   : > { %4429 = vst.msk [vmem:[#allocation4 + $0x8] sm:$0xff] %vm451_vm0, %v4397_v63  ;;  %v4144_v63 = vld [vmem:[#allocation4 + $0x78] sm:$0xff] }
 0x37e   : > { %v4975_v27 = vld [vmem:[#allocation4 + $0x10] sm:$0xff] }
 0x37f   : > { %v4973_v4 = vld [vmem:[#allocation4] sm:$0xff] }
 0x380   : > { %v4976_v37 = vld [vmem:[#allocation4 + $0x18] sm:$0xff] }
 0x381   : > { %v4974_v22 = vld [vmem:[#allocation4 + $0x8] sm:$0xff] }
 0x387   : > { %v7410_v38 = vpop.f32.mrb[64].mxu0 }
 0x388   : > { %v5243_v51 = vadd.f32 %v7410_v38, %v4975_v27  ;;  %v5114_v57 = vpop.f32.mrb[65].mxu0 }
 0x389   : > { %v5241_v17 = vadd.f32 %v5114_v57, %v4973_v4  ;;  %v7411_v29 = vpop.f32.mrb[66].mxu0  ;;  %v7380_v49 = vpop.f32.mrb[36].mxu1 }
 0x38a   : > { %5275 = vst.msk [vmem:[#allocation4 + $0x10] sm:$0xff] %vm451_vm0, %v5243_v51  ;;  %v5244_v58 = vadd.f32 %v7411_v29, %v4976_v37  ;;  %v4402_v36 = vadd.f32 %v7380_v49, %v4135_v5  ;;  %v5117_v8 = vpop.f32.mrb[67].mxu0  ;;  %v4285_v41 = vpop.f32.mrb[37].mxu1  ;;  %v4142_v5 = vld [vmem:[#allocation4 + $0x68] sm:$0xff] }
 0x38b   : > { %5273 = vst.msk [vmem:[#allocation4] sm:$0xff] %vm451_vm0, %v5241_v17  ;;  %v5242_v44 = vadd.f32 %v5117_v8, %v4974_v22  ;;  %v4400_v55 = vadd.f32 %v4285_v41, %v4133_v24  ;;  %v7381_v53 = vpop.f32.mrb[38].mxu1 }
 0x38c   : > { %5276 = vst.msk [vmem:[#allocation4 + $0x18] sm:$0xff] %vm451_vm0, %v5244_v58  ;;  %4434 = vst.msk [vmem:[#allocation4 + $0x30] sm:$0xff] %vm451_vm0, %v4402_v36  ;;  %v4403_v61 = vadd.f32 %v7381_v53, %v4136_v60  ;;  %v4288_v33 = vpop.f32.mrb[39].mxu1  ;;  %v4147_v53 = vld [vmem:[#allocation4 + $0x90] sm:$0xff] }
 0x38d   : > { %5274 = vst.msk [vmem:[#allocation4 + $0x8] sm:$0xff] %vm451_vm0, %v5242_v44  ;;  %4432 = vst.msk [vmem:[#allocation4 + $0x20] sm:$0xff] %vm451_vm0, %v4400_v55  ;;  %v4401_v30 = vadd.f32 %v4288_v33, %v4134_v50 }
 0x38e   : > { %4435 = vst.msk [vmem:[#allocation4 + $0x38] sm:$0xff] %vm451_vm0, %v4403_v61  ;;  %v4145_v61 = vld [vmem:[#allocation4 + $0x80] sm:$0xff] }
 0x38f   : > { %4433 = vst.msk [vmem:[#allocation4 + $0x28] sm:$0xff] %vm451_vm0, %v4401_v30  ;;  %v4148_v30 = vld [vmem:[#allocation4 + $0x98] sm:$0xff] }
 0x393   : > { %v4979_v47 = vld [vmem:[#allocation4 + $0x30] sm:$0xff] }
 0x394   : > { %v4977_v48 = vld [vmem:[#allocation4 + $0x20] sm:$0xff] }
 0x395   : > { %v4980_v34 = vld [vmem:[#allocation4 + $0x38] sm:$0xff] }
 0x396   : > { %v4978_v42 = vld [vmem:[#allocation4 + $0x28] sm:$0xff] }
 0x3a3   : > { %v7414_v25 = vpop.f32.mrb[68].mxu0 }
 0x3a4   : > { %v5247_v10 = vadd.f32 %v7414_v25, %v4979_v47  ;;  %v5130_v2 = vpop.f32.mrb[69].mxu0 }
 0x3a5   : > { %v5245_v6 = vadd.f32 %v5130_v2, %v4977_v48  ;;  %v7415_v11 = vpop.f32.mrb[70].mxu0 }
 0x3a6   : > { %5279 = vst.msk [vmem:[#allocation4 + $0x30] sm:$0xff] %vm451_vm0, %v5247_v10  ;;  %v5248_v14 = vadd.f32 %v7415_v11, %v4980_v34  ;;  %v5133_v20 = vpop.f32.mrb[71].mxu0  ;;  %v4146_v10 = vld [vmem:[#allocation4 + $0x88] sm:$0xff] }
 0x3a7   : > { %5277 = vst.msk [vmem:[#allocation4 + $0x20] sm:$0xff] %vm451_vm0, %v5245_v6  ;;  %v5246_v13 = vadd.f32 %v5133_v20, %v4978_v42  ;;  %v4149_v42 = vld [vmem:[#allocation4 + $0xa0] sm:$0xff] }
 0x3a8   : > { %5280 = vst.msk [vmem:[#allocation4 + $0x38] sm:$0xff] %vm451_vm0, %v5248_v14  ;;  %v4151_v14 = vld [vmem:[#allocation4 + $0xb0] sm:$0xff] }
 0x3a9   : > { %5278 = vst.msk [vmem:[#allocation4 + $0x28] sm:$0xff] %vm451_vm0, %v5246_v13  ;;  %v4152_v13 = vld [vmem:[#allocation4 + $0xb8] sm:$0xff] }
 0x3aa   : > { %v7384_v45 = vpop.f32.mrb[40].mxu1 }
 0x3ab   : > { %v4406_v21 = vadd.f32 %v7384_v45, %v4139_v54  ;;  %v4301_v19 = vpop.f32.mrb[41].mxu1  ;;  %v4150_v45 = vld [vmem:[#allocation4 + $0xa8] sm:$0xff] }
 0x3ac   : > { %v4404_v31 = vadd.f32 %v4301_v19, %v4137_v35  ;;  %v7385_v1 = vpop.f32.mrb[42].mxu1 }
 0x3ad   : > { %4438 = vst.msk [vmem:[#allocation4 + $0x50] sm:$0xff] %vm451_vm0, %v4406_v21  ;;  %v4407_v52 = vadd.f32 %v7385_v1, %v4140_v26  ;;  %v4304_v28 = vpop.f32.mrb[43].mxu1 }
 0x3ae   : > { %4436 = vst.msk [vmem:[#allocation4 + $0x40] sm:$0xff] %vm451_vm0, %v4404_v31  ;;  %v4405_v43 = vadd.f32 %v4304_v28, %v4138_v62 }
 0x3af   : > { %4439 = vst.msk [vmem:[#allocation4 + $0x58] sm:$0xff] %vm451_vm0, %v4407_v52 }
 0x3b0   : > { %4437 = vst.msk [vmem:[#allocation4 + $0x48] sm:$0xff] %vm451_vm0, %v4405_v43 }
 0x3b4   : > { %v4983_v59 = vld [vmem:[#allocation4 + $0x50] sm:$0xff] }
 0x3b5   : > { %v4981_v3 = vld [vmem:[#allocation4 + $0x40] sm:$0xff] }
 0x3b6   : > { %v4984_v56 = vld [vmem:[#allocation4 + $0x58] sm:$0xff] }
 0x3b7   : > { %v4982_v32 = vld [vmem:[#allocation4 + $0x48] sm:$0xff] }
 0x3be   : > { %v7418_v39 = vpop.f32.mrb[72].mxu0 }
 0x3bf   : > { %v5251_v12 = vadd.f32 %v7418_v39, %v4983_v59  ;;  %v5146_v18 = vpop.f32.mrb[73].mxu0 }
 0x3c0   : > { %v5249_v15 = vadd.f32 %v5146_v18, %v4981_v3  ;;  %v7419_v9 = vpop.f32.mrb[74].mxu0 }
 0x3c1   : > { %5283 = vst.msk [vmem:[#allocation4 + $0x50] sm:$0xff] %vm451_vm0, %v5251_v12  ;;  %v5252_v23 = vadd.f32 %v7419_v9, %v4984_v56  ;;  %v5149_v0 = vpop.f32.mrb[75].mxu0 }
 0x3c2   : > { %5281 = vst.msk [vmem:[#allocation4 + $0x40] sm:$0xff] %vm451_vm0, %v5249_v15  ;;  %v5250_v40 = vadd.f32 %v5149_v0, %v4982_v32  ;;  %v4153_v32 = vld [vmem:[#allocation4 + $0xc0] sm:$0xff] }
 0x3c3   : > { %5284 = vst.msk [vmem:[#allocation4 + $0x58] sm:$0xff] %vm451_vm0, %v5252_v23  ;;  %v7388_v46 = vpop.f32.mrb[44].mxu1  ;;  %v4155_v23 = vld [vmem:[#allocation4 + $0xd0] sm:$0xff] }
 0x3c4   : > { %5282 = vst.msk [vmem:[#allocation4 + $0x48] sm:$0xff] %vm451_vm0, %v5250_v40  ;;  %v4410_v27 = vadd.f32 %v7388_v46, %v4143_v7  ;;  %v4317_v38 = vpop.f32.mrb[45].mxu1  ;;  %v4156_v7 = vld [vmem:[#allocation4 + $0xd8] sm:$0xff]  ;;  %v4154_v46 = vld [vmem:[#allocation4 + $0xc8] sm:$0xff] }
 0x3c5   : > { %v4408_v51 = vadd.f32 %v4317_v38, %v4141_v16  ;;  %v7389_v4 = vpop.f32.mrb[46].mxu1 }
 0x3c6   : > { %4442 = vst.msk [vmem:[#allocation4 + $0x70] sm:$0xff] %vm451_vm0, %v4410_v27  ;;  %v4411_v57 = vadd.f32 %v7389_v4, %v4144_v63  ;;  %v4320_v24 = vpop.f32.mrb[47].mxu1  ;;  %v4159_v4 = vld [vmem:[#allocation4 + $0xf0] sm:$0xff] }
 0x3c7   : > { %4440 = vst.msk [vmem:[#allocation4 + $0x60] sm:$0xff] %vm451_vm0, %v4408_v51  ;;  %v4409_v17 = vadd.f32 %v4320_v24, %v4142_v5 }
 0x3c8   : > { %4443 = vst.msk [vmem:[#allocation4 + $0x78] sm:$0xff] %vm451_vm0, %v4411_v57  ;;  %v4157_v57 = vld [vmem:[#allocation4 + $0xe0] sm:$0xff] }
 0x3c9   : > { %4441 = vst.msk [vmem:[#allocation4 + $0x68] sm:$0xff] %vm451_vm0, %v4409_v17  ;;  %v4160_v17 = vld [vmem:[#allocation4 + $0xf8] sm:$0xff] }
 0x3cd   : > { %v4987_v37 = vld [vmem:[#allocation4 + $0x70] sm:$0xff] }
 0x3ce   : > { %v7422_v29 = vpop.f32.mrb[76].mxu0  ;;  %v4985_v60 = vld [vmem:[#allocation4 + $0x60] sm:$0xff] }
 0x3cf   : > { %v5255_v49 = vadd.f32 %v7422_v29, %v4987_v37  ;;  %v5162_v58 = vpop.f32.mrb[77].mxu0  ;;  %v4988_v22 = vld [vmem:[#allocation4 + $0x78] sm:$0xff] }
 0x3d0   : > { %v5253_v36 = vadd.f32 %v5162_v58, %v4985_v60  ;;  %v7423_v8 = vpop.f32.mrb[78].mxu0  ;;  %v4986_v50 = vld [vmem:[#allocation4 + $0x68] sm:$0xff] }
 0x3d1   : > { %5287 = vst.msk [vmem:[#allocation4 + $0x70] sm:$0xff] %vm451_vm0, %v5255_v49  ;;  %v5256_v41 = vadd.f32 %v7423_v8, %v4988_v22  ;;  %v5165_v44 = vpop.f32.mrb[79].mxu0  ;;  %v4158_v49 = vld [vmem:[#allocation4 + $0xe8] sm:$0xff] }
 0x3d2   : > { %5285 = vst.msk [vmem:[#allocation4 + $0x60] sm:$0xff] %vm451_vm0, %v5253_v36  ;;  %v5254_v55 = vadd.f32 %v5165_v44, %v4986_v50 }
 0x3d3   : > { %5288 = vst.msk [vmem:[#allocation4 + $0x78] sm:$0xff] %vm451_vm0, %v5256_v41  ;;  %v5820_v41 = vld [vmem:[#allocation4 + $0x10] sm:$0xff] }
 0x3d4   : > { %5286 = vst.msk [vmem:[#allocation4 + $0x68] sm:$0xff] %vm451_vm0, %v5254_v55  ;;  %v5818_v55 = vld [vmem:[#allocation4] sm:$0xff] }
 0x3d7   : > { %v7392_v33 = vpop.f32.mrb[48].mxu1 }
 0x3d8   : > { %v4414_v47 = vadd.f32 %v7392_v33, %v4147_v53  ;;  %v4333_v25 = vpop.f32.mrb[49].mxu1  ;;  %v5821_v33 = vld [vmem:[#allocation4 + $0x18] sm:$0xff] }
 0x3d9   : > { %v4412_v48 = vadd.f32 %v4333_v25, %v4145_v61  ;;  %v7393_v2 = vpop.f32.mrb[50].mxu1  ;;  %v5819_v25 = vld [vmem:[#allocation4 + $0x8] sm:$0xff] }
 0x3da   : > { %4446 = vst.msk [vmem:[#allocation4 + $0x90] sm:$0xff] %vm451_vm0, %v4414_v47  ;;  %v4415_v6 = vadd.f32 %v7393_v2, %v4148_v30  ;;  %v4336_v34 = vpop.f32.mrb[51].mxu1  ;;  %v12196_v2 = vld [vmem:[%s12584_s4] ss:$0 sm:$0xff] }
 0x3db   : > { %4444 = vst.msk [vmem:[#allocation4 + $0x80] sm:$0xff] %vm451_vm0, %v4412_v48  ;;  %v4413_v11 = vadd.f32 %v4336_v34, %v4146_v10 }
 0x3dc   : > { %4447 = vst.msk [vmem:[#allocation4 + $0x98] sm:$0xff] %vm451_vm0, %v4415_v6 }
 0x3dd   : > { %4445 = vst.msk [vmem:[#allocation4 + $0x88] sm:$0xff] %vm451_vm0, %v4413_v11  ;;  %v5824_v11 = vld [vmem:[#allocation4 + $0x30] sm:$0xff] }
 0x3e1   : > { %v4991_v19 = vld [vmem:[#allocation4 + $0x90] sm:$0xff] }
 0x3e2   : > { %v4989_v28 = vld [vmem:[#allocation4 + $0x80] sm:$0xff] }
 0x3e3   : > { %v7396_v20 = vpop.f32.mrb[52].mxu1  ;;  %v4992_v12 = vld [vmem:[#allocation4 + $0x98] sm:$0xff] }
 0x3e4   : > { %v4418_v54 = vadd.f32 %v7396_v20, %v4151_v14  ;;  %v4349_v35 = vpop.f32.mrb[53].mxu1  ;;  %v4990_v15 = vld [vmem:[#allocation4 + $0x88] sm:$0xff] }
 0x3e5   : > { %v4416_v26 = vadd.f32 %v4349_v35, %v4149_v42  ;;  %v7397_v21 = vpop.f32.mrb[54].mxu1  ;;  %v5822_v35 = vld [vmem:[#allocation4 + $0x20] sm:$0xff] }
 0x3e6   : > { %v7426_v62 = vpop.f32.mrb[80].mxu0  ;;  %4450 = vst.msk [vmem:[#allocation4 + $0xb0] sm:$0xff] %vm451_vm0, %v4418_v54  ;;  %v4419_v31 = vadd.f32 %v7397_v21, %v4152_v13  ;;  %v4352_v1 = vpop.f32.mrb[55].mxu1 }
 0x3e7   : > { %v5259_v52 = vadd.f32 %v7426_v62, %v4991_v19  ;;  %v5178_v43 = vpop.f32.mrb[81].mxu0  ;;  %4448 = vst.msk [vmem:[#allocation4 + $0xa0] sm:$0xff] %vm451_vm0, %v4416_v26  ;;  %v4417_v59 = vadd.f32 %v4352_v1, %v4150_v45  ;;  %v5825_v1 = vld [vmem:[#allocation4 + $0x38] sm:$0xff] }
 0x3e8   : > { %v5257_v39 = vadd.f32 %v5178_v43, %v4989_v28  ;;  %v7427_v3 = vpop.f32.mrb[82].mxu0  ;;  %4451 = vst.msk [vmem:[#allocation4 + $0xb8] sm:$0xff] %vm451_vm0, %v4419_v31 }
 0x3e9   : > { %5291 = vst.msk [vmem:[#allocation4 + $0x90] sm:$0xff] %vm451_vm0, %v5259_v52  ;;  %v5260_v18 = vadd.f32 %v7427_v3, %v4992_v12  ;;  %v5181_v56 = vpop.f32.mrb[83].mxu0  ;;  %4449 = vst.msk [vmem:[#allocation4 + $0xa8] sm:$0xff] %vm451_vm0, %v4417_v59 }
 0x3ea   : > { %5289 = vst.msk [vmem:[#allocation4 + $0x80] sm:$0xff] %vm451_vm0, %v5257_v39  ;;  %v5258_v9 = vadd.f32 %v5181_v56, %v4990_v15 }
 0x3eb   : > { %5292 = vst.msk [vmem:[#allocation4 + $0x98] sm:$0xff] %vm451_vm0, %v5260_v18  ;;  %v5823_v18 = vld [vmem:[#allocation4 + $0x28] sm:$0xff] }
 0x3ec   : > { %5290 = vst.msk [vmem:[#allocation4 + $0x88] sm:$0xff] %vm451_vm0, %v5258_v9 }
 0x3ed   : > { %v4995_v6 = vld [vmem:[#allocation4 + $0xb0] sm:$0xff] }
 0x3ee   : > { %v4993_v13 = vld [vmem:[#allocation4 + $0xa0] sm:$0xff] }
 0x3ef   : > { %v7400_v0 = vpop.f32.mrb[56].mxu1  ;;  %v4996_v62 = vld [vmem:[#allocation4 + $0xb8] sm:$0xff] }
 0x3f0   : > { %v4422_v40 = vadd.f32 %v7400_v0, %v4155_v23  ;;  %v4365_v16 = vpop.f32.mrb[57].mxu1  ;;  %v4994_v12 = vld [vmem:[#allocation4 + $0xa8] sm:$0xff] }
 0x3f1   : > { %v4420_v63 = vadd.f32 %v4365_v16, %v4153_v32  ;;  %v7401_v27 = vpop.f32.mrb[58].mxu1 }
 0x3f2   : > { %4454 = vst.msk [vmem:[#allocation4 + $0xd0] sm:$0xff] %vm451_vm0, %v4422_v40  ;;  %v4423_v38 = vadd.f32 %v7401_v27, %v4156_v7  ;;  %v4368_v5 = vpop.f32.mrb[59].mxu1 }
 0x3f3   : > { %4452 = vst.msk [vmem:[#allocation4 + $0xc0] sm:$0xff] %vm451_vm0, %v4420_v63  ;;  %v4421_v51 = vadd.f32 %v4368_v5, %v4154_v46 }
 0x3f4   : > { %4455 = vst.msk [vmem:[#allocation4 + $0xd8] sm:$0xff] %vm451_vm0, %v4423_v38  ;;  %v5828_v38 = vld [vmem:[#allocation4 + $0x50] sm:$0xff] }
 0x3f5   : > { %4453 = vst.msk [vmem:[#allocation4 + $0xc8] sm:$0xff] %vm451_vm0, %v4421_v51 }
 0x3f7   : > { %v7404_v24 = vpop.f32.mrb[60].mxu1 }
 0x3f8   : > { %v4426_v37 = vadd.f32 %v7404_v24, %v4159_v4  ;;  %v4381_v29 = vpop.f32.mrb[61].mxu1  ;;  %v5826_v4 = vld [vmem:[#allocation4 + $0x40] sm:$0xff] }
 0x3f9   : > { %v4424_v60 = vadd.f32 %v4381_v29, %v4157_v57  ;;  %v7405_v58 = vpop.f32.mrb[62].mxu1 }
 0x3fa   : > { %4458 = vst.msk [vmem:[#allocation4 + $0xf0] sm:$0xff] %vm451_vm0, %v4426_v37  ;;  %v4427_v36 = vadd.f32 %v7405_v58, %v4160_v17  ;;  %v4384_v22 = vpop.f32.mrb[63].mxu1  ;;  %v5829_v37 = vld [vmem:[#allocation4 + $0x58] sm:$0xff] }
 0x3fb   : > { %4456 = vst.msk [vmem:[#allocation4 + $0xe0] sm:$0xff] %vm451_vm0, %v4424_v60  ;;  %v4425_v8 = vadd.f32 %v4384_v22, %v4158_v49 }
 0x3fc   : > { %4459 = vst.msk [vmem:[#allocation4 + $0xf8] sm:$0xff] %vm451_vm0, %v4427_v36  ;;  %v5827_v36 = vld [vmem:[#allocation4 + $0x48] sm:$0xff] }
 0x3fd   : > { %4457 = vst.msk [vmem:[#allocation4 + $0xe8] sm:$0xff] %vm451_vm0, %v4425_v8 }
 0x3ff   : > { %v7444_v50 = vpop.f32.mrb[64].mxu1 }
 0x400   : > { %v6088_v44 = vadd.f32 %v7444_v50, %v5820_v41  ;;  %v5959_v53 = vpop.f32.mrb[65].mxu1 }
 0x401   : > { %v6086_v61 = vadd.f32 %v5959_v53, %v5818_v55  ;;  %v7445_v30 = vpop.f32.mrb[66].mxu1  ;;  %v12234_v55 = vld [vmem:[%s8945_s23] sm:$0xff]  }
 0x402   : > { %6120 = vst.msk [vmem:[#allocation4 + $0x10] sm:$0xff] %vm451_vm0, %v6088_v44  ;;  %v6089_v47 = vadd.f32 %v7445_v30, %v5821_v33  ;;  %v5962_v10 = vpop.f32.mrb[67].mxu1  ;;  %v12231_v44 = vld [vmem:[%s8945_s23 + $0x8] sm:$0xff]  }
 0x403   : > { %6118 = vst.msk [vmem:[#allocation4] sm:$0xff] %vm451_vm0, %v6086_v61  ;;  %v6087_v48 = vadd.f32 %v5962_v10, %v5819_v25  ;;  %v7080_v10 = vunpack.c.l.bf16 %v12231_v44 }
 0x404   : > { %6121 = vst.msk [vmem:[#allocation4 + $0x18] sm:$0xff] %vm451_vm0, %v6089_v47 }
 0x405   : > { %6119 = vst.msk [vmem:[#allocation4 + $0x8] sm:$0xff] %vm451_vm0, %v6087_v48  ;;  %v7076_v48 = vunpack.c.l.bf16 %v12234_v55 }
 0x407   : > { %v7430_v34 = vpop.f32.mrb[84].mxu0  ;;  %v7448_v14 = vpop.f32.mrb[68].mxu1 }
 0x408   : > { %v5263_v42 = vadd.f32 %v7430_v34, %v4995_v6  ;;  %v6092_v20 = vadd.f32 %v7448_v14, %v5824_v11  ;;  %v5194_v54 = vpop.f32.mrb[85].mxu0  ;;  %v5975_v45 = vpop.f32.mrb[69].mxu1  ;;  %v4999_v34 = vld [vmem:[#allocation4 + $0xd0] sm:$0xff] }
 0x409   : > { %v6152_v26 = vld [vmem:[#allocation4 + $0x10] sm:$0xff]  ;;  %v5261_v21 = vadd.f32 %v5194_v54, %v4993_v13  ;;  %v6090_v19 = vadd.f32 %v5975_v45, %v5822_v35  ;;  %v7431_v31 = vpop.f32.mrb[86].mxu0  ;;  %v7449_v52 = vpop.f32.mrb[70].mxu1  ;;  %v7081_v13 = vunpack.c.h.bf16 %v12231_v44  ;;  %v4997_v45 = vld [vmem:[#allocation4 + $0xc0] sm:$0xff] }
 0x40a   : > { %v12199_v28 = vadd.f32 %v12196_v2, %v6152_v26  ;;  %v6150_v43 = vld [vmem:[#allocation4] sm:$0xff]  ;;  %5295 = vst.msk [vmem:[#allocation4 + $0xb0] sm:$0xff] %vm451_vm0, %v5263_v42  ;;  %6124 = vst.msk [vmem:[#allocation4 + $0x30] sm:$0xff] %vm451_vm0, %v6092_v20  ;;  %v5264_v59 = vadd.f32 %v7431_v31, %v4996_v62  ;;  %v6093_v39 = vadd.f32 %v7449_v52, %v5825_v1  ;;  %v5197_v3 = vpop.f32.mrb[87].mxu0  ;;  %v5978_v15 = vpop.f32.mrb[71].mxu1  ;;  %v5832_v14 = vld [vmem:[#allocation4 + $0x70] sm:$0xff] }
 0x40b   : > { %v12204_v56 = vadd.f32 %v12196_v2, %v6150_v43  ;;  %v6153_v9 = vld [vmem:[#allocation4 + $0x18] sm:$0xff]  ;;  %5293 = vst.msk [vmem:[#allocation4 + $0xa0] sm:$0xff] %vm451_vm0, %v5261_v21  ;;  %6122 = vst.msk [vmem:[#allocation4 + $0x20] sm:$0xff] %vm451_vm0, %v6090_v19  ;;  %v5262_v23 = vadd.f32 %v5197_v3, %v4994_v12  ;;  %v6091_v32 = vadd.f32 %v5978_v15, %v5823_v18  ;;  %v5830_v21 = vld [vmem:[#allocation4 + $0x60] sm:$0xff] }
 0x40c   : > { %v6912_v0 = vmul.f32 -1.442695, %v12199_v28  ;;  %v12210_v7 = vadd.f32 %v12196_v2, %v6153_v9  ;;  %v6151_v40 = vld [vmem:[#allocation4 + $0x8] sm:$0xff]  ;;  %5296 = vst.msk [vmem:[#allocation4 + $0xb8] sm:$0xff] %vm451_vm0, %v5264_v59  ;;  %6125 = vst.msk [vmem:[#allocation4 + $0x38] sm:$0xff] %vm451_vm0, %v6093_v39  ;;  %v5000_v59 = vld [vmem:[#allocation4 + $0xd8] sm:$0xff] }
 0x40d   : > { %v6910_v16 = vmul.f32 -1.442695, %v12204_v56  ;;  %v12216_v46 = vadd.f32 %v12196_v2, %v6151_v40  ;;  %5294 = vst.msk [vmem:[#allocation4 + $0xa8] sm:$0xff] %vm451_vm0, %v5262_v23  ;;  %6123 = vst.msk [vmem:[#allocation4 + $0x28] sm:$0xff] %vm451_vm0, %v6091_v32  ;;  %v5833_v12 = vld [vmem:[#allocation4 + $0x78] sm:$0xff]  ;;  %v4998_v40 = vld [vmem:[#allocation4 + $0xc8] sm:$0xff] }
 0x40e   : > { %8585 = vpow2.f32 %v6912_v0  ;;  %v6913_v63 = vmul.f32 -1.442695, %v12210_v7 }
 0x40f   : > { %8587 = vpow2.f32 %v6910_v16  ;;  %v6911_v27 = vmul.f32 -1.442695, %v12216_v46  ;;  %v7452_v5 = vpop.f32.mrb[72].mxu1 }
 0x410   : > { %8589 = vpow2.f32 %v6913_v63  ;;  %v6096_v51 = vadd.f32 %v7452_v5, %v5828_v38  ;;  %v5991_v57 = vpop.f32.mrb[73].mxu1  ;;  %v12257_v5 = vld [vmem:[%s8945_s23 + $0x18] sm:$0xff]  }
 0x411   : > { %8591 = vpow2.f32 %v6911_v27  ;;  %v6156_v24 = vld [vmem:[#allocation4 + $0x30] sm:$0xff]  ;;  %v6094_v17 = vadd.f32 %v5991_v57, %v5826_v4  ;;  %v7453_v29 = vpop.f32.mrb[74].mxu1 }
 0x412   : > { %v12223_v49 = vadd.f32 %v12196_v2, %v6156_v24  ;;  %v6154_v60 = vld [vmem:[#allocation4 + $0x20] sm:$0xff]  ;;  %6128 = vst.msk [vmem:[#allocation4 + $0x50] sm:$0xff] %vm451_vm0, %v6096_v51  ;;  %v6097_v58 = vadd.f32 %v7453_v29, %v5829_v37  ;;  %v5994_v22 = vpop.f32.mrb[75].mxu1 }
 0x413   : > { %v12227_v8 = vadd.f32 %v12196_v2, %v6154_v60  ;;  %v6157_v41 = vld [vmem:[#allocation4 + $0x38] sm:$0xff]  ;;  %6126 = vst.msk [vmem:[#allocation4 + $0x40] sm:$0xff] %vm451_vm0, %v6094_v17  ;;  %v6095_v50 = vadd.f32 %v5994_v22, %v5827_v36  ;;  %v12265_v17 = vld [vmem:[%s8945_s23 + $0x10] sm:$0xff]   ;;  %v12274_v36 = vld [vmem:[%s8945_s23 + $0x28] sm:$0xff]  }
 0x414   : > { %v6916_v53 = vmul.f32 -1.442695, %v12223_v49  ;;  %v12238_v61 = vadd.f32 %v12196_v2, %v6157_v41  ;;  %v6155_v33 = vld [vmem:[#allocation4 + $0x28] sm:$0xff]  ;;  %6129 = vst.msk [vmem:[#allocation4 + $0x58] sm:$0xff] %vm451_vm0, %v6097_v58 }
 0x415   : > { %v6914_v30 = vmul.f32 -1.442695, %v12227_v8  ;;  %v12243_v47 = vadd.f32 %v12196_v2, %v6155_v33  ;;  %6127 = vst.msk [vmem:[#allocation4 + $0x48] sm:$0xff] %vm451_vm0, %v6095_v50  ;;  %v5831_v58 = vld [vmem:[#allocation4 + $0x68] sm:$0xff]  ;;  %v7088_v33 = vunpack.c.l.bf16 %v12257_v5 }
 0x416   : > { %8593 = vpow2.f32 %v6916_v53  ;;  %v6917_v25 = vmul.f32 -1.442695, %v12238_v61  ;;  %v7077_v53 = vunpack.c.h.bf16 %v12234_v55 }
 0x417   : > { %8595 = vpow2.f32 %v6914_v30  ;;  %v6915_v6 = vmul.f32 -1.442695, %v12243_v47  ;;  %v7434_v11 = vpop.f32.mrb[88].mxu0  ;;  %v7456_v42 = vpop.f32.mrb[76].mxu1  ;;  %v12284_v30 = vld [vmem:[%s8945_s23 + $0x20] sm:$0xff]  }
 0x418   : > { %v8586_v20 = vpop.eup %8585  ;;  %8597 = vpow2.f32 %v6917_v25  ;;  %v5267_v54 = vadd.f32 %v7434_v11, %v4999_v34  ;;  %v6100_v35 = vadd.f32 %v7456_v42, %v5832_v14  ;;  %v5210_v26 = vpop.f32.mrb[89].mxu0  ;;  %v7089_v34 = vunpack.c.h.bf16 %v12257_v5  ;;  %v5836_v14 = vld [vmem:[#allocation4 + $0x90] sm:$0xff] }
 0x419   : > { %v6007_v19 = vpop.f32.mrb[77].mxu1  ;;  %v8588_v62 = vpop.eup %8587  ;;  %v6319_v31 = vadd.f32 1.0, %v8586_v20  ;;  %8599 = vpow2.f32 %v6915_v6  ;;  %v6160_v1 = vld [vmem:[#allocation4 + $0x50] sm:$0xff]  ;;  %v5265_v52 = vadd.f32 %v5210_v26, %v4997_v45  ;;  %v7084_v6 = vunpack.c.l.bf16 %v12265_v17  ;;  %v5834_v26 = vld [vmem:[#allocation4 + $0x80] sm:$0xff] }
 0x41a   : > { %v6098_v43 = vadd.f32 %v6007_v19, %v5830_v21  ;;  %v7435_v39 = vpop.f32.mrb[90].mxu0  ;;  %v7457_v3 = vpop.f32.mrb[78].mxu1  ;;  %v6317_v15 = vadd.f32 1.0, %v8588_v62  ;;  %v12252_v9 = vadd.f32 %v12196_v2, %v6160_v1  ;;  %v6158_v23 = vld [vmem:[#allocation4 + $0x40] sm:$0xff]  ;;  %5299 = vst.msk [vmem:[#allocation4 + $0xd0] sm:$0xff] %vm451_vm0, %v5267_v54  ;;  %6132 = vst.msk [vmem:[#allocation4 + $0x70] sm:$0xff] %vm451_vm0, %v6100_v35  ;;  %v7085_v54 = vunpack.c.h.bf16 %v12265_v17 }
 0x41b   : > { %v8590_v18 = vpop.eup %8589  ;;  %v5268_v32 = vadd.f32 %v7435_v39, %v5000_v59  ;;  %v6101_v0 = vadd.f32 %v7457_v3, %v5833_v12  ;;  %v5213_v16 = vpop.f32.mrb[91].mxu0  ;;  %8601 = vrcp.f32 %v6319_v31  ;;  %v12260_v51 = vadd.f32 %v12196_v2, %v6158_v23  ;;  %v6161_v4 = vld [vmem:[#allocation4 + $0x58] sm:$0xff]  ;;  %5297 = vst.msk [vmem:[#allocation4 + $0xc0] sm:$0xff] %vm451_vm0, %v5265_v52  ;;  %v5835_v23 = vld [vmem:[#allocation4 + $0x88] sm:$0xff] }
 0x41c   : > { %v6010_v63 = vpop.f32.mrb[79].mxu1  ;;  %v8592_v27 = vpop.eup %8591  ;;  %v6320_v38 = vadd.f32 1.0, %v8590_v18  ;;  %6130 = vst.msk [vmem:[#allocation4 + $0x60] sm:$0xff] %vm451_vm0, %v6098_v43  ;;  %v5266_v57 = vadd.f32 %v5213_v16, %v4998_v40  ;;  %8603 = vrcp.f32 %v6317_v15  ;;  %v6920_v37 = vmul.f32 -1.442695, %v12252_v9  ;;  %v6159_v60 = vld [vmem:[#allocation4 + $0x48] sm:$0xff] }
 0x41d   : > { %v6318_v24 = vadd.f32 1.0, %v8592_v27  ;;  %v12269_v29 = vadd.f32 %v12196_v2, %v6161_v4  ;;  %5300 = vst.msk [vmem:[#allocation4 + $0xd8] sm:$0xff] %vm451_vm0, %v5268_v32  ;;  %6133 = vst.msk [vmem:[#allocation4 + $0x78] sm:$0xff] %vm451_vm0, %v6101_v0  ;;  %v6918_v22 = vmul.f32 -1.442695, %v12260_v51  ;;  %v12278_v41 = vadd.f32 %v12196_v2, %v6159_v60  ;;  %v5837_v43 = vld [vmem:[#allocation4 + $0x98] sm:$0xff] }
 0x41e   : > { %8605 = vrcp.f32 %v6320_v38  ;;  %5298 = vst.msk [vmem:[#allocation4 + $0xc8] sm:$0xff] %vm451_vm0, %v5266_v57  ;;  %v6099_v50 = vadd.f32 %v6010_v63, %v5831_v58  ;;  %v7096_v35 = vunpack.c.l.bf16 %v12274_v36  ;;  %v7092_v31 = vunpack.c.l.bf16 %v12284_v30  ;;  %v12299_v16 = vld [vmem:[%s8945_s23 + $0x38] sm:$0xff]  }
 0x41f   : > { %8607 = vrcp.f32 %v6318_v24  ;;  %v6921_v25 = vmul.f32 -1.442695, %v12269_v29  ;;  %v6919_v11 = vmul.f32 -1.442695, %v12278_v41  ;;  %v7460_v42 = vpop.f32.mrb[80].mxu1  ;;  %v12307_v24 = vld [vmem:[%s8945_s23 + $0x30] sm:$0xff]   ;;  %v7097_v58 = vunpack.c.h.bf16 %v12274_v36 }
 0x420   : > { %8609 = vpow2.f32 %v6920_v37  ;;  %6131 = vst.msk [vmem:[#allocation4 + $0x68] sm:$0xff] %vm451_vm0, %v6099_v50  ;;  %v8594_v20 = vpop.eup %8593  ;;  %v6104_v45 = vadd.f32 %v7460_v42, %v5836_v14  ;;  %v6023_v21 = vpop.f32.mrb[81].mxu1  ;;  %v7104_v14 = vunpack.c.l.bf16 %v12299_v16 }
 0x421   : > { %8611 = vpow2.f32 %v6918_v22  ;;  %v8596_v19 = vpop.eup %8595  ;;  %v6323_v62 = vadd.f32 1.0, %v8594_v20  ;;  %v6164_v1 = vld [vmem:[#allocation4 + $0x70] sm:$0xff]  ;;  %v6102_v52 = vadd.f32 %v6023_v21, %v5834_v26  ;;  %v7461_v59 = vpop.f32.mrb[82].mxu1  ;;  %v7093_v22 = vunpack.c.h.bf16 %v12284_v30 }
 0x422   : > { %8613 = vpow2.f32 %v6921_v25  ;;  %v8598_v39 = vpop.eup %8597  ;;  %v6321_v12 = vadd.f32 1.0, %v8596_v19  ;;  %v12295_v3 = vadd.f32 %v12196_v2, %v6164_v1  ;;  %6136 = vst.msk [vmem:[#allocation4 + $0x90] sm:$0xff] %vm451_vm0, %v6104_v45  ;;  %v6105_v15 = vadd.f32 %v7461_v59, %v5837_v43  ;;  %v6026_v32 = vpop.f32.mrb[83].mxu1 }
 0x423   : > { %8615 = vpow2.f32 %v6919_v11  ;;  %v6162_v18 = vld [vmem:[#allocation4 + $0x60] sm:$0xff]  ;;  %v8600_v0 = vpop.eup %8599  ;;  %v6324_v40 = vadd.f32 1.0, %v8598_v39  ;;  %6134 = vst.msk [vmem:[#allocation4 + $0x80] sm:$0xff] %vm451_vm0, %v6102_v52  ;;  %v6103_v38 = vadd.f32 %v6026_v32, %v5835_v23  ;;  %v7100_v21 = vunpack.c.l.bf16 %v12307_v24 }
 0x424   : > { %8617 = vrcp.f32 %v6323_v62  ;;  %v12302_v63 = vadd.f32 %v12196_v2, %v6162_v18  ;;  %v6165_v27 = vld [vmem:[#allocation4 + $0x78] sm:$0xff]  ;;  %v6322_v4 = vadd.f32 1.0, %v8600_v0  ;;  %v6924_v57 = vmul.f32 -1.442695, %v12295_v3  ;;  %6137 = vst.msk [vmem:[#allocation4 + $0x98] sm:$0xff] %vm451_vm0, %v6105_v15  ;;  %v5003_v62 = vld [vmem:[#allocation4 + $0xf0] sm:$0xff] }
 0x425   : > { %8619 = vrcp.f32 %v6321_v12  ;;  %v12310_v37 = vadd.f32 %v12196_v2, %v6165_v27  ;;  %v8602_v60 = vpop.eup %8601  ;;  %6135 = vst.msk [vmem:[#allocation4 + $0x88] sm:$0xff] %vm451_vm0, %v6103_v38 }
 0x426   : > { %8621 = vrcp.f32 %v6324_v40  ;;  %v6922_v50 = vmul.f32 -1.442695, %v12302_v63  ;;  %v8604_v25 = vpop.eup %8603  ;;  %v6415_v11 = vmul.f32 %v8602_v60, %v12199_v28 }
 0x427   : > { %8623 = vrcp.f32 %v6322_v4  ;;  %v6925_v42 = vmul.f32 -1.442695, %v12310_v37  ;;  %v6163_v20 = vld [vmem:[#allocation4 + $0x68] sm:$0xff]  ;;  %v6413_v26 = vmul.f32 %v8604_v25, %v12204_v56  ;;  %v7438_v1 = vpop.f32.mrb[92].mxu0  ;;  %v7464_v52 = vpop.f32.mrb[84].mxu1 }
 0x428   : > { %v8606_v45 = vpop.eup %8605  ;;  %8625 = vpow2.f32 %v6924_v57  ;;  %v12323_v19 = vadd.f32 %v12196_v2, %v6163_v20  ;;  %v6511_v43 = vadd.f32 %v7080_v10, %v6415_v11  ;;  %v5271_v39 = vadd.f32 %v7438_v1, %v5003_v62  ;;  %v12328_v12 = vpop.f32.mrb[93].mxu0 }
 0x429   : > { %v8608_v28 = vpop.eup %8607  ;;  %v6416_v59 = vmul.f32 %v8606_v45, %v12210_v7  ;;  %8627 = vpow2.f32 %v6922_v50  ;;  %v12330_v56 = vpop.f32.mrb[85].mxu1  ;;  %v6509_v15 = vadd.f32 %v7076_v48, %v6413_v26  ;;  %v6168_v23 = vld [vmem:[#allocation4 + $0x90] sm:$0xff] }
 0x42a   : > { %v8610_v18 = vpop.eup %8609  ;;  %v6414_v10 = vmul.f32 %v8608_v28, %v12216_v46  ;;  %8629 = vpow2.f32 %v6925_v42  ;;  %v6923_v7 = vmul.f32 -1.442695, %v12323_v19  ;;  %v12343_v32 = vpop.f32.mrb[94].mxu0  ;;  %v6980_v27 = vpack.c.bf16 %v6511_v43, %v6511_v43  ;;  %v6166_v48 = vld [vmem:[#allocation4 + $0x80] sm:$0xff]  ;;  %5303 = vst.msk [vmem:[#allocation4 + $0xf0] sm:$0xff] %vm451_vm0, %v5271_v39 }
 0x42b   : > { %v12345_v0 = vpop.f32.mrb[86].mxu1  ;;  %v8612_v40 = vpop.eup %8611  ;;  %v6512_v38 = vadd.f32 %v7081_v13, %v6416_v59  ;;  %v6327_v4 = vadd.f32 1.0, %v8610_v18  ;;  %v12350_v57 = vadd.f32 %v12196_v2, %v6168_v23  ;;  %v6978_v25 = vpack.c.bf16 %v6509_v15, %v6509_v15  ;;  %v6169_v44 = vld [vmem:[#allocation4 + $0x98] sm:$0xff]  ;;  %v5840_v15 = vld [vmem:[#allocation4 + $0xb0] sm:$0xff] }
 0x42c   : > { %v12353_v46 = vpop.f32.mrb[95].mxu0  ;;  %v12355_v60 = vpop.f32.mrb[87].mxu1  ;;  %v6510_v11 = vadd.f32 %v7077_v53, %v6414_v10  ;;  %v6325_v42 = vadd.f32 1.0, %v8612_v40  ;;  %8631 = vpow2.f32 %v6923_v7  ;;  %6672 = vst.msk [vmem:[%s12337_s29 + $0x8] sm:$0xf] %vm6669_vm7, %v6980_v27  ;;  %v6167_v62 = vld [vmem:[#allocation4 + $0x88] sm:$0xff]  ;;  %v12365_v53 = vadd.f32 %v12196_v2, %v6166_v48 }
 0x42d   : > { %v8614_v50 = vpop.eup %8613  ;;  %v6981_v20 = vpack.c.bf16 %v6512_v38, %v6512_v38  ;;  %8633 = vrcp.f32 %v6327_v4  ;;  %v6928_v26 = vmul.f32 -1.442695, %v12350_v57  ;;  %6670 = vst.msk [vmem:[%s12337_s29] sm:$0xf] %vm6669_vm7, %v6978_v25  ;;  %v12371_v39 = vadd.f32 %v12196_v2, %v6169_v44 }
 0x42e   : > { %v8616_v13 = vpop.eup %8615  ;;  %v6328_v45 = vadd.f32 1.0, %v8614_v50  ;;  %v6979_v28 = vpack.c.bf16 %v6510_v11, %v6510_v11  ;;  %8635 = vrcp.f32 %v6325_v42  ;;  %v12374_v18 = vadd.f32 %v12196_v2, %v6167_v62  ;;  %v5001_v62 = vld [vmem:[#allocation4 + $0xe0] sm:$0xff] }
 0x42f   : > { %v8618_v1 = vpop.eup %8617  ;;  %v6326_v55 = vadd.f32 1.0, %v8616_v13  ;;  %6673 = vst.msk [vmem:[%s12337_s29 + $0xc] sm:$0xf] %vm6669_vm7, %v6981_v20  ;;  %v6926_v23 = vmul.f32 -1.442695, %v12365_v53  ;;  %v6108_v40 = vadd.f32 %v7464_v52, %v5840_v15  ;;  %v7468_v27 = vpop.f32.mrb[88].mxu1  ;;  %v5269_v5 = vadd.f32 %v12328_v12, %v5001_v62 }
 0x430   : > { %v8620_v43 = vpop.eup %8619  ;;  %v6419_v59 = vmul.f32 %v8618_v1, %v12223_v49  ;;  %8637 = vrcp.f32 %v6328_v45  ;;  %6671 = vst.msk [vmem:[%s12337_s29 + $0x4] sm:$0xf] %vm6669_vm7, %v6979_v28  ;;  %v6929_v48 = vmul.f32 -1.442695, %v12371_v39  ;;  %v6055_v50 = vpop.f32.mrb[89].mxu1  ;;  %v5841_v15 = vld [vmem:[#allocation4 + $0xb8] sm:$0xff] }
 0x431   : > { %v8622_v10 = vpop.eup %8621  ;;  %v6417_v7 = vmul.f32 %v8620_v43, %v12227_v8  ;;  %8639 = vrcp.f32 %v6326_v55  ;;  %v6927_v52 = vmul.f32 -1.442695, %v12374_v18  ;;  %6140 = vst.msk [vmem:[#allocation4 + $0xb0] sm:$0xff] %vm451_vm0, %v6108_v40  ;;  %v7469_v42 = vpop.f32.mrb[90].mxu1  ;;  %v5004_v55 = vld [vmem:[#allocation4 + $0xf8] sm:$0xff]  ;;  %5301 = vst.msk [vmem:[#allocation4 + $0xe0] sm:$0xff] %vm451_vm0, %v5269_v5  ;;  %v6109_v12 = vadd.f32 %v12345_v0, %v5841_v15 }
 0x432   : > { %v8624_v38 = vpop.eup %8623  ;;  %v6515_v49 = vadd.f32 %v7088_v33, %v6419_v59  ;;  %v6420_v4 = vmul.f32 %v8622_v10, %v12238_v61  ;;  %8641 = vpow2.f32 %v6928_v26  ;;  %v6058_v20 = vpop.f32.mrb[91].mxu1  ;;  %v5002_v10 = vld [vmem:[#allocation4 + $0xe8] sm:$0xff]  ;;  %v5845_v0 = vld [vmem:[#allocation4 + $0xd8] sm:$0xff] }
 0x433   : > { %v8626_v25 = vpop.eup %8625  ;;  %v6513_v11 = vadd.f32 %v7084_v6, %v6417_v7  ;;  %v6418_v8 = vmul.f32 %v8624_v38, %v12243_v47  ;;  %8643 = vpow2.f32 %v6926_v23  ;;  %v5270_v40 = vadd.f32 %v12353_v46, %v5002_v10  ;;  %v5839_v38 = vld [vmem:[#allocation4 + $0xa8] sm:$0xff]  ;;  %6141 = vst.msk [vmem:[#allocation4 + $0xb8] sm:$0xff] %vm451_vm0, %v6109_v12 }
 0x434   : > { %v8628_v33 = vpop.eup %8627  ;;  %v6984_v44 = vpack.c.bf16 %v6515_v49, %v6515_v49  ;;  %v6516_v61 = vadd.f32 %v7089_v34, %v6420_v4  ;;  %v6331_v13 = vadd.f32 1.0, %v8626_v25  ;;  %8645 = vpow2.f32 %v6929_v48  ;;  %v5838_v34 = vld [vmem:[#allocation4 + $0xa0] sm:$0xff]  ;;  %v5844_v49 = vld [vmem:[#allocation4 + $0xd0] sm:$0xff] }
 0x435   : > { %v8630_v45 = vpop.eup %8629  ;;  %v6982_v6 = vpack.c.bf16 %v6513_v11, %v6513_v11  ;;  %v6514_v47 = vadd.f32 %v7085_v54, %v6418_v8  ;;  %v6329_v26 = vadd.f32 1.0, %v8628_v33  ;;  %8647 = vpow2.f32 %v6927_v52  ;;  %v5842_v4 = vld [vmem:[#allocation4 + $0xc0] sm:$0xff]  ;;  %v5843_v8 = vld [vmem:[#allocation4 + $0xc8] sm:$0xff]  ;;  %5302 = vst.msk [vmem:[#allocation4 + $0xe8] sm:$0xff] %vm451_vm0, %v5270_v40 }
 0x436   : > { %6676 = vst.msk [vmem:[%s12337_s29 + $0x18] sm:$0xf] %vm6669_vm7, %v6984_v44  ;;  %v6985_v1 = vpack.c.bf16 %v6516_v61, %v6516_v61  ;;  %8649 = vrcp.f32 %v6331_v13  ;;  %v6332_v28 = vadd.f32 1.0, %v8630_v45  ;;  %v8632_v43 = vpop.eup %8631  ;;  %v6106_v17 = vadd.f32 %v12330_v56, %v5838_v34  ;;  %v12413_v44 = vld [vmem:[%s8945_s23 + $0x48] sm:$0xff]  }
 0x437   : > { %6674 = vst.msk [vmem:[%s12337_s29 + $0x10] sm:$0xf] %vm6669_vm7, %v6982_v6  ;;  %v6983_v59 = vpack.c.bf16 %v6514_v47, %v6514_v47  ;;  %8651 = vrcp.f32 %v6329_v26  ;;  %v5272_v54 = vadd.f32 %v12343_v32, %v5004_v55  ;;  %v8634_v7 = vpop.eup %8633  ;;  %v6330_v23 = vadd.f32 1.0, %v8632_v43  ;;  %v7472_v46 = vpop.f32.mrb[92].mxu1  ;;  %v12421_v47 = vld [vmem:[%s8945_s23 + $0x40] sm:$0xff]  }
 0x438   : > { %6677 = vst.msk [vmem:[%s12337_s29 + $0x1c] sm:$0xf] %vm6669_vm7, %v6985_v1  ;;  %8653 = vrcp.f32 %v6332_v28  ;;  %v8636_v56 = vpop.eup %8635  ;;  %v6423_v32 = vmul.f32 %v8634_v7, %v12252_v9  ;;  %v6107_v48 = vadd.f32 %v12355_v60, %v5839_v38  ;;  %v6112_v25 = vadd.f32 %v7468_v27, %v5844_v49  ;;  %v6172_v61 = vld [vmem:[#allocation4 + $0xb0] sm:$0xff]  ;;  %v6071_v27 = vpop.f32.mrb[93].mxu1 }
 0x439   : > { %6675 = vst.msk [vmem:[%s12337_s29 + $0x14] sm:$0xf] %vm6669_vm7, %v6983_v59  ;;  %v6110_v11 = vadd.f32 %v6055_v50, %v5842_v4  ;;  %v6421_v33 = vmul.f32 %v8636_v56, %v12260_v51  ;;  %8655 = vrcp.f32 %v6330_v23  ;;  %v6113_v9 = vadd.f32 %v7469_v42, %v5845_v0  ;;  %v5848_v60 = vld [vmem:[#allocation4 + $0xf0] sm:$0xff]  ;;  %v5846_v23 = vld [vmem:[#allocation4 + $0xe0] sm:$0xff] }
 0x43a   : > { %6138 = vst.msk [vmem:[#allocation4 + $0xa0] sm:$0xff] %vm451_vm0, %v6106_v17  ;;  %5304 = vst.msk [vmem:[#allocation4 + $0xf8] sm:$0xff] %vm451_vm0, %v5272_v54  ;;  %v8638_v52 = vpop.eup %8637  ;;  %v6111_v13 = vadd.f32 %v6058_v20, %v5843_v8  ;;  %v6519_v45 = vadd.f32 %v7096_v35, %v6423_v32  ;;  %v12424_v51 = vadd.f32 %v12196_v2, %v6172_v61  ;;  %v7473_v20 = vpop.f32.mrb[94].mxu1  ;;  %v7101_v1 = vunpack.c.h.bf16 %v12307_v24 }
 0x43b   : > { %v8640_v50 = vpop.eup %8639  ;;  %v6424_v6 = vmul.f32 %v8638_v52, %v12269_v29  ;;  %6139 = vst.msk [vmem:[#allocation4 + $0xa8] sm:$0xff] %vm451_vm0, %v6107_v48  ;;  %6144 = vst.msk [vmem:[#allocation4 + $0xd0] sm:$0xff] %vm451_vm0, %v6112_v25  ;;  %v6116_v42 = vadd.f32 %v7472_v46, %v5848_v60  ;;  %v6517_v62 = vadd.f32 %v7092_v31, %v6421_v33  ;;  %v7105_v29 = vunpack.c.h.bf16 %v12299_v16  ;;  %v6074_v28 = vpop.f32.mrb[95].mxu1  ;;  %v6173_v48 = vld [vmem:[#allocation4 + $0xb8] sm:$0xff] }
 0x43c   : > { %6142 = vst.msk [vmem:[#allocation4 + $0xc0] sm:$0xff] %vm451_vm0, %v6110_v11  ;;  %v8642_v26 = vpop.eup %8641  ;;  %v6422_v35 = vmul.f32 %v8640_v50, %v12278_v41  ;;  %6145 = vst.msk [vmem:[#allocation4 + $0xd8] sm:$0xff] %vm451_vm0, %v6113_v9  ;;  %v6988_v34 = vpack.c.bf16 %v6519_v45, %v6519_v45  ;;  %v7112_v31 = vunpack.c.l.bf16 %v12413_v44  ;;  %v7108_v15 = vunpack.c.l.bf16 %v12421_v47  ;;  %v5847_v11 = vld [vmem:[#allocation4 + $0xe8] sm:$0xff] }
 0x43d   : > { %6143 = vst.msk [vmem:[#allocation4 + $0xc8] sm:$0xff] %vm451_vm0, %v6111_v13  ;;  %v8644_v5 = vpop.eup %8643  ;;  %v6520_v55 = vadd.f32 %v7097_v58, %v6424_v6  ;;  %v6335_v43 = vadd.f32 1.0, %v8642_v26  ;;  %6148 = vst.msk [vmem:[#allocation4 + $0xf0] sm:$0xff] %vm451_vm0, %v6116_v42  ;;  %v6986_v59 = vpack.c.bf16 %v6517_v62, %v6517_v62  ;;  %v6932_v7 = vmul.f32 -1.442695, %v12424_v51 }
 0x43e   : > { %v8646_v41 = vpop.eup %8645  ;;  %v6518_v17 = vadd.f32 %v7093_v22, %v6422_v35  ;;  %v6333_v54 = vadd.f32 1.0, %v8644_v5  ;;  %6680 = vst.msk [vmem:[%s12337_s29 + $0x28] sm:$0xf] %vm6669_vm7, %v6988_v34  ;;  %v6114_v38 = vadd.f32 %v6071_v27, %v5846_v23  ;;  %v12458_v46 = vadd.f32 %v12196_v2, %v6173_v48 }
 0x43f   : > { %v8648_v10 = vpop.eup %8647  ;;  %v6989_v36 = vpack.c.bf16 %v6520_v55, %v6520_v55  ;;  %8657 = vrcp.f32 %v6335_v43  ;;  %v6336_v58 = vadd.f32 1.0, %v8646_v41  ;;  %6678 = vst.msk [vmem:[%s12337_s29 + $0x20] sm:$0xf] %vm6669_vm7, %v6986_v59  ;;  %v7113_v34 = vunpack.c.h.bf16 %v12413_v44 }
 0x440   : > { %v8650_v12 = vpop.eup %8649  ;;  %v6987_v40 = vpack.c.bf16 %v6518_v17, %v6518_v17  ;;  %8659 = vrcp.f32 %v6333_v54  ;;  %v6334_v30 = vadd.f32 1.0, %v8648_v10  ;;  %6146 = vst.msk [vmem:[#allocation4 + $0xe0] sm:$0xff] %vm451_vm0, %v6114_v38  ;;  %v6933_v27 = vmul.f32 -1.442695, %v12458_v46 }
 0x441   : > { %v6170_v22 = vld [vmem:[#allocation4 + $0xa0] sm:$0xff]  ;;  %v5849_v49 = vld [vmem:[#allocation4 + $0xf8] sm:$0xff]  ;;  %v8652_v4 = vpop.eup %8651  ;;  %6681 = vst.msk [vmem:[%s12337_s29 + $0x2c] sm:$0xf] %vm6669_vm7, %v6989_v36  ;;  %v6427_v56 = vmul.f32 %v8650_v12, %v12295_v3  ;;  %8661 = vrcp.f32 %v6336_v58  ;;  %v6115_v3 = vadd.f32 %v6074_v28, %v5847_v11 }
 0x442   : > { %v12452_v32 = vadd.f32 %v12196_v2, %v6170_v22  ;;  %v6117_v25 = vadd.f32 %v7473_v20, %v5849_v49  ;;  %v8654_v0 = vpop.eup %8653  ;;  %6679 = vst.msk [vmem:[%s12337_s29 + $0x24] sm:$0xf] %vm6669_vm7, %v6987_v40  ;;  %v6425_v8 = vmul.f32 %v8652_v4, %v12302_v63  ;;  %8663 = vrcp.f32 %v6334_v30  ;;  %v6171_v52 = vld [vmem:[#allocation4 + $0xa8] sm:$0xff]  ;;  %v6176_v33 = vld [vmem:[#allocation4 + $0xd0] sm:$0xff] }
 0x443   : > { %v6523_v61 = vadd.f32 %v7104_v14, %v6427_v56  ;;  %v6428_v9 = vmul.f32 %v8654_v0, %v12310_v37  ;;  %8665 = vpow2.f32 %v6932_v7  ;;  %v8656_v63 = vpop.eup %8655  ;;  %v12470_v50 = vadd.f32 %v12196_v2, %v6171_v52  ;;  %v6174_v14 = vld [vmem:[#allocation4 + $0xc0] sm:$0xff]  ;;  %v6177_v37 = vld [vmem:[#allocation4 + $0xd8] sm:$0xff]  ;;  %6147 = vst.msk [vmem:[#allocation4 + $0xe8] sm:$0xff] %vm451_vm0, %v6115_v3 }
 0x444   : > { %v6930_v13 = vmul.f32 -1.442695, %v12452_v32  ;;  %6149 = vst.msk [vmem:[#allocation4 + $0xf8] sm:$0xff] %vm451_vm0, %v6117_v25  ;;  %v6521_v60 = vadd.f32 %v7100_v21, %v6425_v8  ;;  %v12473_v16 = vadd.f32 %v12196_v2, %v6176_v33  ;;  %v6426_v42 = vmul.f32 %v8656_v63, %v12323_v19  ;;  %v6175_v21 = vld [vmem:[#allocation4 + $0xc8] sm:$0xff]  ;;  %v6180_v20 = vld [vmem:[#allocation4 + $0xf0] sm:$0xff] }
 0x445   : > { %v6992_v45 = vpack.c.bf16 %v6523_v61, %v6523_v61  ;;  %v6524_v6 = vadd.f32 %v7105_v29, %v6428_v9  ;;  %v6931_v62 = vmul.f32 -1.442695, %v12470_v50  ;;  %v12484_v29 = vadd.f32 %v12196_v2, %v6174_v14 }
 0x446   : > { %8667 = vpow2.f32 %v6930_v13  ;;  %v6990_v26 = vpack.c.bf16 %v6521_v60, %v6521_v60  ;;  %v6936_v35 = vmul.f32 -1.442695, %v12473_v16  ;;  %v6522_v5 = vadd.f32 %v7101_v1, %v6426_v42 }
 0x447   : > { %8669 = vpow2.f32 %v6933_v27  ;;  %6684 = vst.msk [vmem:[%s12337_s29 + $0x38] sm:$0xf] %vm6669_vm7, %v6992_v45  ;;  %v6993_v28 = vpack.c.bf16 %v6524_v6, %v6524_v6  ;;  %v12487_v19 = vadd.f32 %v12196_v2, %v6177_v37  ;;  %v12493_v55 = vadd.f32 %v12196_v2, %v6175_v21  ;;  %v6178_v17 = vld [vmem:[#allocation4 + $0xe0] sm:$0xff]  ;;  %v7163_v37 = vld [vmem:[%s8945_s23 + $0x58] sm:$0xff]  }
 0x448   : > { %6682 = vst.msk [vmem:[%s12337_s29 + $0x30] sm:$0xf] %vm6669_vm7, %v6990_v26  ;;  %8671 = vpow2.f32 %v6931_v62  ;;  %v12496_v43 = vadd.f32 %v12196_v2, %v6180_v20  ;;  %v6991_v1 = vpack.c.bf16 %v6522_v5, %v6522_v5  ;;  %v6934_v41 = vmul.f32 -1.442695, %v12484_v29  ;;  %v7162_v20 = vld [vmem:[%s8945_s23 + $0x50] sm:$0xff]  }
 0x449   : > { %v8658_v24 = vpop.eup %8657  ;;  %6685 = vst.msk [vmem:[%s12337_s29 + $0x3c] sm:$0xf] %vm6669_vm7, %v6993_v28  ;;  %8673 = vpow2.f32 %v6936_v35  ;;  %v6937_v59 = vmul.f32 -1.442695, %v12487_v19  ;;  %v6935_v36 = vmul.f32 -1.442695, %v12493_v55  ;;  %v12506_v7 = vadd.f32 %v12196_v2, %v6178_v17 }
 0x44a   : > { %v8660_v54 = vpop.eup %8659  ;;  %v6431_v10 = vmul.f32 %v8658_v24, %v12350_v57  ;;  %v6940_v58 = vmul.f32 -1.442695, %v12496_v43  ;;  %6683 = vst.msk [vmem:[%s12337_s29 + $0x34] sm:$0xf] %vm6669_vm7, %v6991_v1  ;;  %v7109_v30 = vunpack.c.h.bf16 %v12421_v47  ;;  %8675 = vpow2.f32 %v6934_v41  ;;  %v6179_v56 = vld [vmem:[#allocation4 + $0xe8] sm:$0xff] }
 0x44b   : > { %v6181_v23 = vld [vmem:[#allocation4 + $0xf8] sm:$0xff]  ;;  %v8662_v12 = vpop.eup %8661  ;;  %v6429_v40 = vmul.f32 %v8660_v54, %v12365_v53  ;;  %8677 = vpow2.f32 %v6937_v59  ;;  %v6938_v4 = vmul.f32 -1.442695, %v12506_v7  ;;  %v12524_v33 = vadd.f32 %v12196_v2, %v6179_v56  ;;  %v7165_v54 = vld [vmem:[%s8945_s23 + $0x68] sm:$0xff]  }
 0x44c   : > { %v12513_v22 = vadd.f32 %v12196_v2, %v6181_v23  ;;  %v8664_v57 = vpop.eup %8663  ;;  %v6527_v38 = vadd.f32 %v7112_v31, %v6431_v10  ;;  %v6432_v49 = vmul.f32 %v8662_v12, %v12371_v39  ;;  %8679 = vpow2.f32 %v6935_v36 }
 0x44d   : > { %v8666_v48 = vpop.eup %8665  ;;  %v6525_v53 = vadd.f32 %v7108_v15, %v6429_v40  ;;  %v6430_v25 = vmul.f32 %v8664_v57, %v12374_v18  ;;  %8681 = vpow2.f32 %v6940_v58  ;;  %v6939_v9 = vmul.f32 -1.442695, %v12524_v33  ;;  %v7164_v57 = vld [vmem:[%s8945_s23 + $0x60] sm:$0xff]  }
 0x44e   : > { %v6941_v11 = vmul.f32 -1.442695, %v12513_v22  ;;  %v6996_v0 = vpack.c.bf16 %v6527_v38, %v6527_v38  ;;  %v6528_v44 = vadd.f32 %v7113_v34, %v6432_v49  ;;  %v6339_v31 = vadd.f32 1.0, %v8666_v48 }
 0x44f   : > { %v6994_v8 = vpack.c.bf16 %v6525_v53, %v6525_v53  ;;  %v6526_v52 = vadd.f32 %v7109_v30, %v6430_v25  ;;  %8683 = vpow2.f32 %v6938_v4  ;;  %v7120_v35 = vunpack.c.l.bf16 %v7163_v37 }
 0x450   : > { %v8668_v39 = vpop.eup %8667  ;;  %6688 = vst.msk [vmem:[%s12337_s29 + $0x48] sm:$0xf] %vm6669_vm7, %v6996_v0  ;;  %v6997_v18 = vpack.c.bf16 %v6528_v44, %v6528_v44  ;;  %8685 = vrcp.f32 %v6339_v31  ;;  %v7116_v41 = vunpack.c.l.bf16 %v7162_v20  ;;  %v7121_v17 = vunpack.c.h.bf16 %v7163_v37  ;;  %v7167_v0 = vld [vmem:[%s8945_s23 + $0x78] sm:$0xff]  }
 0x451   : > { %v8670_v47 = vpop.eup %8669  ;;  %v6337_v15 = vadd.f32 1.0, %v8668_v39  ;;  %6686 = vst.msk [vmem:[%s12337_s29 + $0x40] sm:$0xf] %vm6669_vm7, %v6994_v8  ;;  %v6995_v3 = vpack.c.bf16 %v6526_v52, %v6526_v52  ;;  %8687 = vpow2.f32 %v6941_v11  ;;  %v7117_v30 = vunpack.c.h.bf16 %v7162_v20  ;;  %v7166_v52 = vld [vmem:[%s8945_s23 + $0x70] sm:$0xff]  }
 0x452   : > { %v6340_v61 = vadd.f32 1.0, %v8670_v47  ;;  %v8672_v13 = vpop.eup %8671  ;;  %6689 = vst.msk [vmem:[%s12337_s29 + $0x4c] sm:$0xf] %vm6669_vm7, %v6997_v18  ;;  %v7128_v4 = vunpack.c.l.bf16 %v7165_v54  ;;  %v7124_v11 = vunpack.c.l.bf16 %v7164_v57  ;;  %v7129_v8 = vunpack.c.h.bf16 %v7165_v54 }
 0x453   : > { %8689 = vrcp.f32 %v6337_v15  ;;  %v8674_v2 = vpop.eup %8673  ;;  %6687 = vst.msk [vmem:[%s12337_s29 + $0x44] sm:$0xf] %vm6669_vm7, %v6995_v3  ;;  %v6338_v63 = vadd.f32 1.0, %v8672_v13  ;;  %v7125_v15 = vunpack.c.h.bf16 %v7164_v57 }
 0x454   : > { %8691 = vrcp.f32 %v6340_v61  ;;  %v6343_v60 = vadd.f32 1.0, %v8674_v2  ;;  %v8676_v27 = vpop.eup %8675 }
 0x455   : > { %8693 = vpow2.f32 %v6939_v9  ;;  %v8678_v14 = vpop.eup %8677  ;;  %v6341_v45 = vadd.f32 1.0, %v8676_v27  ;;  %v7136_v9 = vunpack.c.l.bf16 %v7167_v0  ;;  %v7132_v27 = vunpack.c.l.bf16 %v7166_v52 }
 0x456   : > { %8695 = vrcp.f32 %v6338_v63  ;;  %v8680_v6 = vpop.eup %8679  ;;  %v6344_v42 = vadd.f32 1.0, %v8678_v14 }
 0x457   : > { %8697 = vrcp.f32 %v6343_v60  ;;  %v8682_v21 = vpop.eup %8681  ;;  %v6342_v26 = vadd.f32 1.0, %v8680_v6 }
 0x458   : > { %8699 = vrcp.f32 %v6341_v45  ;;  %v6347_v28 = vadd.f32 1.0, %v8682_v21 }
 0x459   : > { %v8684_v62 = vpop.eup %8683  ;;  %8701 = vrcp.f32 %v6344_v42  ;;  %v7137_v42 = vunpack.c.h.bf16 %v7167_v0 }
 0x45a   : > { %v8686_v5 = vpop.eup %8685  ;;  %8703 = vrcp.f32 %v6342_v26  ;;  %v6345_v34 = vadd.f32 1.0, %v8684_v62 }
 0x45b   : > { %v8688_v24 = vpop.eup %8687  ;;  %v6435_v1 = vmul.f32 %v8686_v5, %v12424_v51  ;;  %8705 = vrcp.f32 %v6347_v28  ;;  %v7133_v28 = vunpack.c.h.bf16 %v7166_v52 }
 0x45c   : > { %8707 = vrcp.f32 %v6345_v34  ;;  %v6348_v10 = vadd.f32 1.0, %v8688_v24 }
 0x45d   : > { %v8690_v59 = vpop.eup %8689  ;;  %v6531_v58 = vadd.f32 %v7120_v35, %v6435_v1 }
 0x45e   : > { %v8692_v36 = vpop.eup %8691  ;;  %v6433_v23 = vmul.f32 %v8690_v59, %v12452_v32  ;;  %8709 = vrcp.f32 %v6348_v10 }
 0x45f   : > { %v8694_v12 = vpop.eup %8693  ;;  %v6436_v40 = vmul.f32 %v8692_v36, %v12458_v46  ;;  %v7000_v38 = vpack.c.bf16 %v6531_v58, %v6531_v58 }
 0x460   : > { %v8696_v51 = vpop.eup %8695  ;;  %v6529_v49 = vadd.f32 %v7116_v41, %v6433_v23  ;;  %v6346_v56 = vadd.f32 1.0, %v8694_v12 }
 0x461   : > { %v8698_v48 = vpop.eup %8697  ;;  %v6532_v53 = vadd.f32 %v7121_v17, %v6436_v40  ;;  %v6434_v25 = vmul.f32 %v8696_v51, %v12470_v50  ;;  %6692 = vst.msk [vmem:[%s12337_s29 + $0x58] sm:$0xf] %vm6669_vm7, %v7000_v38 }
 0x462   : > { %v6998_v32 = vpack.c.bf16 %v6529_v49, %v6529_v49  ;;  %v6439_v46 = vmul.f32 %v8698_v48, %v12473_v16  ;;  %8711 = vrcp.f32 %v6346_v56  ;;  %v8700_v44 = vpop.eup %8699 }
 0x463   : > { %v7001_v31 = vpack.c.bf16 %v6532_v53, %v6532_v53  ;;  %v6530_v39 = vadd.f32 %v7117_v30, %v6434_v25  ;;  %v8702_v47 = vpop.eup %8701  ;;  %v6437_v50 = vmul.f32 %v8700_v44, %v12484_v29 }
 0x464   : > { %6690 = vst.msk [vmem:[%s12337_s29 + $0x50] sm:$0xf] %vm6669_vm7, %v6998_v32  ;;  %v6535_v18 = vadd.f32 %v7128_v4, %v6439_v46  ;;  %v8704_v3 = vpop.eup %8703  ;;  %v6440_v61 = vmul.f32 %v8702_v47, %v12487_v19 }
 0x465   : > { %6693 = vst.msk [vmem:[%s12337_s29 + $0x5c] sm:$0xf] %vm6669_vm7, %v7001_v31  ;;  %v6999_v16 = vpack.c.bf16 %v6530_v39, %v6530_v39  ;;  %v8706_v13 = vpop.eup %8705  ;;  %v6533_v63 = vadd.f32 %v7124_v11, %v6437_v50  ;;  %v6438_v60 = vmul.f32 %v8704_v3, %v12493_v55 }
 0x466   : > { %v7004_v2 = vpack.c.bf16 %v6535_v18, %v6535_v18  ;;  %v8708_v14 = vpop.eup %8707  ;;  %v6536_v29 = vadd.f32 %v7129_v8, %v6440_v61  ;;  %v6443_v37 = vmul.f32 %v8706_v13, %v12496_v43 }
 0x467   : > { %6691 = vst.msk [vmem:[%s12337_s29 + $0x54] sm:$0xf] %vm6669_vm7, %v6999_v16  ;;  %v7002_v45 = vpack.c.bf16 %v6533_v63, %v6533_v63  ;;  %v6534_v19 = vadd.f32 %v7125_v15, %v6438_v60  ;;  %v6441_v6 = vmul.f32 %v8708_v14, %v12506_v7 }
 0x468   : > { %6696 = vst.msk [vmem:[%s12337_s29 + $0x68] sm:$0xf] %vm6669_vm7, %v7004_v2  ;;  %v8710_v21 = vpop.eup %8709  ;;  %v7005_v55 = vpack.c.bf16 %v6536_v29, %v6536_v29  ;;  %v6539_v20 = vadd.f32 %v7136_v9, %v6443_v37 }
 0x469   : > { %6694 = vst.msk [vmem:[%s12337_s29 + $0x60] sm:$0xf] %vm6669_vm7, %v7002_v45  ;;  %v7003_v26 = vpack.c.bf16 %v6534_v19, %v6534_v19  ;;  %v6537_v62 = vadd.f32 %v7132_v27, %v6441_v6  ;;  %v6444_v43 = vmul.f32 %v8710_v21, %v12513_v22 }
 0x46a   : > { %6697 = vst.msk [vmem:[%s12337_s29 + $0x6c] sm:$0xf] %vm6669_vm7, %v7005_v55  ;;  %v7008_v35 = vpack.c.bf16 %v6539_v20, %v6539_v20 }
 0x46b   : > { %6695 = vst.msk [vmem:[%s12337_s29 + $0x64] sm:$0xf] %vm6669_vm7, %v7003_v26  ;;  %v7006_v7 = vpack.c.bf16 %v6537_v62, %v6537_v62  ;;  %v6540_v34 = vadd.f32 %v7137_v42, %v6444_v43 }
 0x46c   : > { %v8712_v5 = vpop.eup %8711  ;;  %6700 = vst.msk [vmem:[%s12337_s29 + $0x78] sm:$0xf] %vm6669_vm7, %v7008_v35 }
 0x46d   : > { %v6442_v24 = vmul.f32 %v8712_v5, %v12524_v33  ;;  %6698 = vst.msk [vmem:[%s12337_s29 + $0x70] sm:$0xf] %vm6669_vm7, %v7006_v7  ;;  %v7009_v1 = vpack.c.bf16 %v6540_v34, %v6540_v34 }
 0x46f   : > { %v6538_v41 = vadd.f32 %v7133_v28, %v6442_v24  ;;  %6701 = vst.msk [vmem:[%s12337_s29 + $0x7c] sm:$0xf] %vm6669_vm7, %v7009_v1 }
 0x471   : > { %v7007_v22 = vpack.c.bf16 %v6538_v41, %v6538_v41 }
 0x473   : > { %6699 = vst.msk [vmem:[%s12337_s29 + $0x74] sm:$0xf] %vm6669_vm7, %v7007_v22 }
 0x474 PF: > { %s15_s18 = sadd.s32 1, %s8802_s18  }
 0x475   : > { %p12_p4 = scmp.ge.s32.totalorder %s15_s18, 4  }
 0x477   :  { %14 = sbr.rel (!%p12_p4) target bundleno = 1 (0x1), region = 78 }

</bundles_post_ra>
